<compile_context>
chip_gen: v7x
topology: tpu7x:2x2x1
jax: 0.10.0
libtpu: 0.0.40
codegen_flags: <defaults>
</compile_context>

<pallas_src>
import functools

import jax
import jax.numpy as jnp
from jax.experimental import pallas as pl
from jax.experimental.pallas import tpu as pltpu

LANE = 128
SUBLANE = 8


def _round_up(x, m):
    return ((x + m - 1) // m) * m


def _vmem_limit_bytes():
    """Generation-aware VMEM limit: ~3/4 of physical, capped at 100 MiB."""
    cap = 128 * 1024 * 1024
    try:
        info = pltpu.get_tpu_info()
        cap = int(getattr(info, "vmem_capacity_bytes", cap) or cap)
    except Exception:
        pass
    return min((cap * 3) // 4, 100 * 1024 * 1024)


# ----------------------------------------------------------------------------
# In-kernel helpers
# ----------------------------------------------------------------------------
def _sigmoid(x):
    # sigmoid(x) == 0.5*tanh(0.5*x) + 0.5  -> a single EUP push.
    return 0.5 * jnp.tanh(0.5 * x) + 0.5


def _lstm_cell(gates, c_prev):
    """gates: (B, 4*Hp) f32, PyTorch gate order (i, f, g, o), lane-aligned."""
    hp = gates.shape[1] // 4
    i_g = _sigmoid(gates[:, 0 * hp:1 * hp])
    f_g = _sigmoid(gates[:, 1 * hp:2 * hp])
    g_g = jnp.tanh(gates[:, 2 * hp:3 * hp])
    o_g = _sigmoid(gates[:, 3 * hp:4 * hp])
    c_new = f_g * c_prev + i_g * g_g
    h_new = o_g * jnp.tanh(c_new)
    return h_new, c_new


# ----------------------------------------------------------------------------
# Fused whole-network kernel
# ----------------------------------------------------------------------------
def make_textrnn_kernel(n_layers):
    def kernel(*refs):
        # ---- unpack (inputs..., output, scratch...) -------------------------
        x_ref = refs[0]
        pos = 1
        mid = []                               # non-final bidirectional layers
        for _ in range(n_layers - 1):
            mid.append(refs[pos:pos + 4])
            pos += 4
        wihf_ref, whhf_ref, bf_ref, wihb_ref, bb_ref = refs[pos:pos + 5]
        pos += 5
        fcwf_ref, fcwb_ref, fcb_ref = refs[pos:pos + 3]
        pos += 3
        logits_ref = refs[pos]
        pos += 1
        gx, act, hf, cf, hb, cb = refs[pos:pos + 6]

        Bp, Hp = hf.shape
        G = 4 * Hp
        T = x_ref.shape[0]
        unroll = min(T, 8)

        # ---- non-final bidirectional layers (full output sequence) ---------
        def run_bidir(in_ref, wih_ref, whh_f_ref, whh_b_ref, b_ref):
            Tl, Bpl, Din = in_ref.shape
            # Hoisted input projection for BOTH directions: one bf16 MXU matmul.
            x2 = in_ref[...].reshape(Tl * Bpl, Din).astype(jnp.bfloat16)
            gx[...] = (jnp.dot(x2, wih_ref[...],
                               preferred_element_type=jnp.float32)
                       + b_ref[...])
            hf[...] = jnp.zeros_like(hf)
            cf[...] = jnp.zeros_like(cf)
            hb[...] = jnp.zeros_like(hb)
            cb[...] = jnp.zeros_like(cb)

            def body(t, carry):
                tb = Tl - 1 - t
                row_f = pl.multiple_of(t * Bpl, Bpl)
                row_b = pl.multiple_of(tb * Bpl, Bpl)
                gates_f = (gx[pl.ds(row_f, Bpl), 0:G]
                           + jnp.dot(hf[...].astype(jnp.bfloat16),
                                     whh_f_ref[...],
                                     preferred_element_type=jnp.float32))
                gates_b = (gx[pl.ds(row_b, Bpl), G:2 * G]
                           + jnp.dot(hb[...].astype(jnp.bfloat16),
                                     whh_b_ref[...],
                                     preferred_element_type=jnp.float32))
                h_f, c_f = _lstm_cell(gates_f, cf[...])
                h_b, c_b = _lstm_cell(gates_b, cb[...])
                hf[...] = h_f
                cf[...] = c_f
                hb[...] = h_b
                cb[...] = c_b
                act[t, :, 0:Hp] = h_f            # full (8,128) f32 vst
                act[tb, :, Hp:2 * Hp] = h_b      # full (8,128) f32 vst
                return carry

            jax.lax.fori_loop(0, Tl, body, 0, unroll=unroll)

        in_ref = x_ref
        for l in range(n_layers - 1):
            wih_ref, whh_f_ref, whh_b_ref, b_ref = mid[l]
            run_bidir(in_ref, wih_ref, whh_f_ref, whh_b_ref, b_ref)
            in_ref = act     # next layer reads the sequence just written (VMEM)

        # ---- final layer: fwd full recurrence, bwd single step, fused fc ---
        Tl, Bpl, Din = in_ref.shape
        x2 = in_ref[...].reshape(Tl * Bpl, Din).astype(jnp.bfloat16)
        gx[:, 0:G] = (jnp.dot(x2, wihf_ref[...],
                              preferred_element_type=jnp.float32)
                      + bf_ref[...])
        hf[...] = jnp.zeros_like(hf)
        cf[...] = jnp.zeros_like(cf)

        def fwd_body(t, carry):
            row = pl.multiple_of(t * Bpl, Bpl)
            gates = (gx[pl.ds(row, Bpl), 0:G]
                     + jnp.dot(hf[...].astype(jnp.bfloat16), whhf_ref[...],
                               preferred_element_type=jnp.float32))
            h_new, c_new = _lstm_cell(gates, cf[...])
            hf[...] = h_new
            cf[...] = c_new
            return carry

        jax.lax.fori_loop(0, Tl, fwd_body, 0, unroll=unroll)

        # Backward direction of the last layer only needs its FIRST step
        # (input x[T-1], zero initial state => no W_hh term): it equals
        # out[:, -1, H:] of the full reverse pass.
        x_last = in_ref[Tl - 1].astype(jnp.bfloat16)          # (Bp, Din)
        gates_b = (jnp.dot(x_last, wihb_ref[...],
                           preferred_element_type=jnp.float32) + bb_ref[...])
        h_b, _ = _lstm_cell(gates_b, jnp.zeros_like(cf[...]))

        # Fused fc: two K=Hp matmuls summed -> no lane-axis concatenate.
        logits_ref[...] = (
            jnp.dot(hf[...].astype(jnp.bfloat16), fcwf_ref[...],
                    preferred_element_type=jnp.float32)
            + jnp.dot(h_b.astype(jnp.bfloat16), fcwb_ref[...],
                      preferred_element_type=jnp.float32)
            + fcb_ref[...])

    return kernel


# ----------------------------------------------------------------------------
# pallas_call wrapper (single launch for the whole network)
# ----------------------------------------------------------------------------
def _vmem_spec():
    return pl.BlockSpec(memory_space=pltpu.MemorySpace.VMEM)


def textrnn_fused_call(x, params, *, n_layers, hp, op):
    T, Bp, _ = x.shape
    inputs = [x]
    for l in range(n_layers - 1):
        lp = params["lstm"][l]
        inputs += [lp["wih_cat"], lp["whh_f"], lp["whh_b"], lp["b_cat"]]
    lp = params["lstm"][n_layers - 1]
    inputs += [lp["wih_f"], lp["whh_f"], lp["b_f"], lp["wih_b"], lp["b_b"]]
    inputs += [params["fc_w_f"], params["fc_w_b"], params["fc_b"]]

    return pl.pallas_call(
        make_textrnn_kernel(n_layers),
        out_shape=jax.ShapeDtypeStruct((Bp, op), jnp.float32),
        in_specs=[_vmem_spec()] * len(inputs),
        out_specs=_vmem_spec(),
        scratch_shapes=[
            pltpu.VMEM((T * Bp, 8 * hp), jnp.float32),   # gx: input projection
            pltpu.VMEM((T, Bp, 2 * hp), jnp.float32),    # act: inter-layer seq
            pltpu.VMEM((Bp, hp), jnp.float32),           # h fwd
            pltpu.VMEM((Bp, hp), jnp.float32),           # c fwd
            pltpu.VMEM((Bp, hp), jnp.float32),           # h bwd
            pltpu.VMEM((Bp, hp), jnp.float32),           # c bwd
        ],
        compiler_params=pltpu.CompilerParams(
            vmem_limit_bytes=_vmem_limit_bytes()),
    )(*inputs)


# ----------------------------------------------------------------------------
# TextRNN forward (eval semantics)
# ----------------------------------------------------------------------------
def textrnn_forward(text, params, *, n_layers, embedding_dim, output_dim,
                    ep, hp, bp, op):
    B, T = text.shape
    # Embedding gather (data-dependent HBM lookup) left to XLA; the table is
    # NOT padded -- only the small gathered activation is.
    emb = jnp.take(params["embedding"], text, axis=0)        # (B, T, E)
    x = jnp.transpose(emb, (1, 0, 2))                        # (T, B, E)
    x = jnp.pad(x, ((0, 0), (0, bp - B), (0, ep - embedding_dim)))
    x = x.astype(jnp.bfloat16)                               # matmul operand
    # TODO(synk): nn.LSTM inter-layer dropout (p=0.2) is training-only; this
    # eval/inference forward treats it as a no-op.
    logits_p = textrnn_fused_call(x, params, n_layers=n_layers, hp=hp, op=op)
    return logits_p[:B, :output_dim]


# ----------------------------------------------------------------------------
# Parameter init (PyTorch layout) + one-time packing to kernel layout
# ----------------------------------------------------------------------------
def init_params(key, vocab_size, embedding_dim, hidden_dim, output_dim,
                n_layers):
    keys = iter(jax.random.split(key, 64))
    k = 1.0 / jnp.sqrt(hidden_dim)

    def u(shape):
        return jax.random.uniform(next(keys), shape, jnp.float32, -k, k)

    params = {
        "embedding": jax.random.normal(
            next(keys), (vocab_size, embedding_dim), jnp.float32),
        "lstm": [],
        "fc_w": u((output_dim, 2 * hidden_dim)),
        "fc_b": u((output_dim,)),
    }
    for layer in range(n_layers):
        in_dim = embedding_dim if layer == 0 else 2 * hidden_dim
        params["lstm"].append({
            "w_ih": u((4 * hidden_dim, in_dim)),
            "w_hh": u((4 * hidden_dim, hidden_dim)),
            "b_ih": u((4 * hidden_dim,)),
            "b_hh": u((4 * hidden_dim,)),
            "w_ih_r": u((4 * hidden_dim, in_dim)),
            "w_hh_r": u((4 * hidden_dim, hidden_dim)),
            "b_ih_r": u((4 * hidden_dim,)),
            "b_hh_r": u((4 * hidden_dim,)),
        })
    return params


def prepare_params(raw, embedding_dim, hidden_dim, output_dim, n_layers,
                   ep, hp, op):
    """One-time pad / transpose / pre-sum / bf16-cast of all weights."""
    H = hidden_dim
    bf16 = jnp.bfloat16

    def pack_w(w, in_map, din_p):
        # w: (4H, in_orig) PyTorch -> (din_p, 4*hp) transposed, zero-padded.
        out = jnp.zeros((din_p, 4 * hp), jnp.float32)
        for g in range(4):
            out = out.at[in_map, g * hp:g * hp + H].set(
                jnp.transpose(w[g * H:(g + 1) * H, :]))
        return out

    def pack_b(b_ih, b_hh):
        b = b_ih + b_hh
        out = jnp.zeros((4 * hp,), jnp.float32)
        for g in range(4):
            out = out.at[g * hp:g * hp + H].set(b[g * H:(g + 1) * H])
        return out.reshape(1, 4 * hp)

    layers = []
    for l in range(n_layers):
        p = raw["lstm"][l]
        if l == 0:
            in_map = jnp.arange(embedding_dim)
            din_p = ep
        else:
            in_map = jnp.concatenate([jnp.arange(H), hp + jnp.arange(H)])
            din_p = 2 * hp

        wih_f = pack_w(p["w_ih"], in_map, din_p)
        wih_b = pack_w(p["w_ih_r"], in_map, din_p)
        whh_f = pack_w(p["w_hh"], jnp.arange(H), hp)
        whh_b = pack_w(p["w_hh_r"], jnp.arange(H), hp)
        b_f = pack_b(p["b_ih"], p["b_hh"])
        b_b = pack_b(p["b_ih_r"], p["b_hh_r"])

        if l < n_layers - 1:
            layers.append({
                "wih_cat": jnp.concatenate([wih_f, wih_b], axis=1).astype(bf16),
                "b_cat": jnp.concatenate([b_f, b_b], axis=1),       # f32
                "whh_f": whh_f.astype(bf16),
                "whh_b": whh_b.astype(bf16),
            })
        else:  # final layer: fwd full recurrence, bwd single step, fc fused
            layers.append({
                "wih_f": wih_f.astype(bf16), "whh_f": whh_f.astype(bf16),
                "b_f": b_f,                                          # f32
                "wih_b": wih_b.astype(bf16), "b_b": b_b,             # f32
            })

    fcw = raw["fc_w"]                                # (O, 2H)
    fcw_f = jnp.zeros((hp, op), jnp.float32).at[
        0:H, 0:output_dim].set(jnp.transpose(fcw[:, 0:H]))
    fcw_b = jnp.zeros((hp, op), jnp.float32).at[
        0:H, 0:output_dim].set(jnp.transpose(fcw[:, H:2 * H]))
    fcb = jnp.zeros((1, op), jnp.float32).at[0, 0:output_dim].set(raw["fc_b"])

    return {"embedding": raw["embedding"],           # unpadded (vocab, E) f32
            "lstm": layers,
            "fc_w_f": fcw_f.astype(bf16), "fc_w_b": fcw_b.astype(bf16),
            "fc_b": fcb}


# ----------------------------------------------------------------------------
# Pure-JAX reference (PyTorch eval semantics, f32) for a sanity check
# ----------------------------------------------------------------------------
_HI = jax.lax.Precision.HIGHEST


def _ref_lstm_dir(x, w_ih, w_hh, b_ih, b_hh, H, reverse):
    T, B, _ = x.shape

    def step(carry, x_t):
        h, c = carry
        g = (jnp.dot(x_t, w_ih.T, precision=_HI)
             + jnp.dot(h, w_hh.T, precision=_HI) + b_ih + b_hh)
        i = jax.nn.sigmoid(g[:, 0 * H:1 * H])
        f = jax.nn.sigmoid(g[:, 1 * H:2 * H])
        gg = jnp.tanh(g[:, 2 * H:3 * H])
        o = jax.nn.sigmoid(g[:, 3 * H:4 * H])
        c = f * c + i * gg
        h = o * jnp.tanh(c)
        return (h, c), h

    xs = x[::-1] if reverse else x
    init = (jnp.zeros((B, H), jnp.float32), jnp.zeros((B, H), jnp.float32))
    _, hs = jax.lax.scan(step, init, xs)
    return hs[::-1] if reverse else hs


def textrnn_reference(text, raw, hidden_dim, n_layers):
    emb = raw["embedding"][text]                     # (B, T, E)
    x = jnp.transpose(emb, (1, 0, 2))
    for l in range(n_layers):
        p = raw["lstm"][l]
        f = _ref_lstm_dir(x, p["w_ih"], p["w_hh"], p["b_ih"], p["b_hh"],
                          hidden_dim, False)
        b = _ref_lstm_dir(x, p["w_ih_r"], p["w_hh_r"], p["b_ih_r"], p["b_hh_r"],
                          hidden_dim, True)
        x = jnp.concatenate([f, b], axis=-1)
    return jnp.dot(x[-1], raw["fc_w"].T, precision=_HI) + raw["fc_b"]


# ----------------------------------------------------------------------------
if __name__ == "__main__":
    # Small shapes consistent with TextRNN(vocab_size, embedding_dim,
    # hidden_dim, output_dim, n_layers=2, bidirectional=True, dropout=0.2).
    batch, seq_len = 2, 8
    vocab_size, embedding_dim = 50, 32
    hidden_dim, output_dim, n_layers = 32, 4, 2

    hp = _round_up(hidden_dim, LANE)       # 128
    ep = _round_up(embedding_dim, LANE)    # 128
    op = _round_up(output_dim, LANE)       # 128
    bp = _round_up(batch, SUBLANE)         # 8

    key = jax.random.PRNGKey(0)
    k_params, k_text = jax.random.split(key)
    raw = init_params(k_params, vocab_size, embedding_dim, hidden_dim,
                      output_dim, n_layers)
    params = prepare_params(raw, embedding_dim, hidden_dim, output_dim,
                            n_layers, ep, hp, op)
    text = jax.random.randint(k_text, (batch, seq_len), 0, vocab_size,
                              dtype=jnp.int32)

    fwd = jax.jit(functools.partial(
        textrnn_forward, n_layers=n_layers, embedding_dim=embedding_dim,
        output_dim=output_dim, ep=ep, hp=hp, bp=bp, op=op))
    logits = fwd(text, params)
    jax.block_until_ready(logits)
    assert logits.shape == (batch, output_dim)

    ref = textrnn_reference(text, raw, hidden_dim, n_layers)
    max_diff = float(jnp.max(jnp.abs(logits - ref)))
    # bf16 matmul operands (f32 accumulation / cell state) -> slightly looser
    # tolerance than a pure-f32 kernel.
    assert max_diff < 5e-2, f"mismatch vs reference: max abs diff {max_diff}"

    print("KERNEL_OK")
</pallas_src>

<mosaic_0001>
module attributes {stable_mosaic.version = 11 : i64} {
  func.func @kernel(%arg0: memref<8x8x128xbf16, #tpu.memory_space<vmem>>, %arg1: memref<128x1024xbf16, #tpu.memory_space<vmem>>, %arg2: memref<128x512xbf16, #tpu.memory_space<vmem>>, %arg3: memref<128x512xbf16, #tpu.memory_space<vmem>>, %arg4: memref<1x1024xf32, #tpu.memory_space<vmem>>, %arg5: memref<256x512xbf16, #tpu.memory_space<vmem>>, %arg6: memref<128x512xbf16, #tpu.memory_space<vmem>>, %arg7: memref<1x512xf32, #tpu.memory_space<vmem>>, %arg8: memref<256x512xbf16, #tpu.memory_space<vmem>>, %arg9: memref<1x512xf32, #tpu.memory_space<vmem>>, %arg10: memref<128x128xbf16, #tpu.memory_space<vmem>>, %arg11: memref<128x128xbf16, #tpu.memory_space<vmem>>, %arg12: memref<1x128xf32, #tpu.memory_space<vmem>>, %arg13: memref<8x128xf32, #tpu.memory_space<vmem>>, %arg14: memref<64x1024xf32, #tpu.memory_space<vmem>>, %arg15: memref<8x8x256xf32, #tpu.memory_space<vmem>>, %arg16: memref<8x128xf32, #tpu.memory_space<vmem>>, %arg17: memref<8x128xf32, #tpu.memory_space<vmem>>, %arg18: memref<8x128xf32, #tpu.memory_space<vmem>>, %arg19: memref<8x128xf32, #tpu.memory_space<vmem>>) attributes {dimension_semantics = [], scalar_prefetch = 0 : i64, scratch_operands = 6 : i64, tpu.core_type = #tpu.core_type<tc>} {
    %c0 = arith.constant 0 : index
    %c0_0 = arith.constant 0 : index
    %c0_1 = arith.constant 0 : index
    %0 = vector.load %arg0[%c0, %c0_0, %c0_1] : memref<8x8x128xbf16, #tpu.memory_space<vmem>>, vector<8x8x128xbf16>
    %1 = vector.shape_cast %0 : vector<8x8x128xbf16> to vector<64x128xbf16>
    %c0_2 = arith.constant 0 : index
    %c0_3 = arith.constant 0 : index
    %2 = vector.load %arg1[%c0_2, %c0_3] : memref<128x1024xbf16, #tpu.memory_space<vmem>>, vector<128x1024xbf16>
    %cst = arith.constant dense<0.000000e+00> : vector<64x1024xf32>
    %3 = tpu.matmul %1, %2, %cst {dimension_numbers = #tpu.dot_dimension_numbers<[1], [0], [0], [1], [0, 0, 1, 1], [], []>} : vector<64x128xbf16>, vector<128x1024xbf16>, vector<64x1024xf32> -> vector<64x1024xf32>
    %c0_4 = arith.constant 0 : index
    %c0_5 = arith.constant 0 : index
    %4 = vector.load %arg4[%c0_4, %c0_5] : memref<1x1024xf32, #tpu.memory_space<vmem>>, vector<1x1024xf32>
    %5 = vector.broadcast %4 : vector<1x1024xf32> to vector<64x1024xf32>
    %6 = arith.addf %3, %5 : vector<64x1024xf32>
    %c0_6 = arith.constant 0 : index
    %c0_7 = arith.constant 0 : index
    %7 = vector.load %arg14[%c0_6, %c0_7] : memref<64x1024xf32, #tpu.memory_space<vmem>>, vector<64x1024xf32>
    tpu.vector_store %arg14[%c0_6, %c0_7], %6 {strides = array<i32>} : memref<64x1024xf32, #tpu.memory_space<vmem>>, vector<64x1024xf32>,
    %cst_8 = arith.constant 0.000000e+00 : f32
    %8 = vector.broadcast %cst_8 : f32 to vector<8x128xf32>
    %c0_9 = arith.constant 0 : index
    %c0_10 = arith.constant 0 : index
    %9 = vector.load %arg16[%c0_9, %c0_10] : memref<8x128xf32, #tpu.memory_space<vmem>>, vector<8x128xf32>
    tpu.vector_store %arg16[%c0_9, %c0_10], %8 {strides = array<i32>} : memref<8x128xf32, #tpu.memory_space<vmem>>, vector<8x128xf32>,
    %cst_11 = arith.constant 0.000000e+00 : f32
    %10 = vector.broadcast %cst_11 : f32 to vector<8x128xf32>
    %c0_12 = arith.constant 0 : index
    %c0_13 = arith.constant 0 : index
    %11 = vector.load %arg17[%c0_12, %c0_13] : memref<8x128xf32, #tpu.memory_space<vmem>>, vector<8x128xf32>
    tpu.vector_store %arg17[%c0_12, %c0_13], %10 {strides = array<i32>} : memref<8x128xf32, #tpu.memory_space<vmem>>, vector<8x128xf32>,
    %cst_14 = arith.constant 0.000000e+00 : f32
    %12 = vector.broadcast %cst_14 : f32 to vector<8x128xf32>
    %c0_15 = arith.constant 0 : index
    %c0_16 = arith.constant 0 : index
    %13 = vector.load %arg18[%c0_15, %c0_16] : memref<8x128xf32, #tpu.memory_space<vmem>>, vector<8x128xf32>
    tpu.vector_store %arg18[%c0_15, %c0_16], %12 {strides = array<i32>} : memref<8x128xf32, #tpu.memory_space<vmem>>, vector<8x128xf32>,
    %cst_17 = arith.constant 0.000000e+00 : f32
    %14 = vector.broadcast %cst_17 : f32 to vector<8x128xf32>
    %c0_18 = arith.constant 0 : index
    %c0_19 = arith.constant 0 : index
    %15 = vector.load %arg19[%c0_18, %c0_19] : memref<8x128xf32, #tpu.memory_space<vmem>>, vector<8x128xf32>
    tpu.vector_store %arg19[%c0_18, %c0_19], %14 {strides = array<i32>} : memref<8x128xf32, #tpu.memory_space<vmem>>, vector<8x128xf32>,
    %c0_i32 = arith.constant 0 : i32
    %c7_i32 = arith.constant 7 : i32
    %16 = arith.subi %c7_i32, %c0_i32 : i32
    %c8_i32 = arith.constant 8 : i32
    %17 = arith.muli %c0_i32, %c8_i32 : i32
    %18 = tpu.assume_multiple %17, 8 : i32
    %c8_i32_20 = arith.constant 8 : i32
    %19 = arith.muli %16, %c8_i32_20 : i32
    %20 = tpu.assume_multiple %19, 8 : i32
    %21 = arith.index_cast %18 : i32 to index
    %c0_21 = arith.constant 0 : index
    %22 = vector.load %arg14[%21, %c0_21] : memref<64x1024xf32, #tpu.memory_space<vmem>>, vector<8x512xf32>
    %c0_22 = arith.constant 0 : index
    %c0_23 = arith.constant 0 : index
    %23 = vector.load %arg16[%c0_22, %c0_23] : memref<8x128xf32, #tpu.memory_space<vmem>>, vector<8x128xf32>
    %24 = arith.truncf %23 : vector<8x128xf32> to vector<8x128xbf16>
    %c0_24 = arith.constant 0 : index
    %c0_25 = arith.constant 0 : index
    %25 = vector.load %arg2[%c0_24, %c0_25] : memref<128x512xbf16, #tpu.memory_space<vmem>>, vector<128x512xbf16>
    %cst_26 = arith.constant dense<0.000000e+00> : vector<8x512xf32>
    %26 = tpu.matmul %24, %25, %cst_26 {dimension_numbers = #tpu.dot_dimension_numbers<[1], [0], [0], [1], [0, 0, 1, 1], [], []>} : vector<8x128xbf16>, vector<128x512xbf16>, vector<8x512xf32> -> vector<8x512xf32>
    %27 = arith.addf %22, %26 : vector<8x512xf32>
    %28 = arith.index_cast %20 : i32 to index
    %c512 = arith.constant 512 : index
    %29 = vector.load %arg14[%28, %c512] : memref<64x1024xf32, #tpu.memory_space<vmem>>, vector<8x512xf32>
    %c0_27 = arith.constant 0 : index
    %c0_28 = arith.constant 0 : index
    %30 = vector.load %arg18[%c0_27, %c0_28] : memref<8x128xf32, #tpu.memory_space<vmem>>, vector<8x128xf32>
    %31 = arith.truncf %30 : vector<8x128xf32> to vector<8x128xbf16>
    %c0_29 = arith.constant 0 : index
    %c0_30 = arith.constant 0 : index
    %32 = vector.load %arg3[%c0_29, %c0_30] : memref<128x512xbf16, #tpu.memory_space<vmem>>, vector<128x512xbf16>
    %cst_31 = arith.constant dense<0.000000e+00> : vector<8x512xf32>
    %33 = tpu.matmul %31, %32, %cst_31 {dimension_numbers = #tpu.dot_dimension_numbers<[1], [0], [0], [1], [0, 0, 1, 1], [], []>} : vector<8x128xbf16>, vector<128x512xbf16>, vector<8x512xf32> -> vector<8x512xf32>
    %34 = arith.addf %29, %33 : vector<8x512xf32>
    %c0_32 = arith.constant 0 : index
    %c0_33 = arith.constant 0 : index
    %35 = vector.load %arg17[%c0_32, %c0_33] : memref<8x128xf32, #tpu.memory_space<vmem>>, vector<8x128xf32>
    %36 = vector.extract_strided_slice %27 {offsets = [0, 0], sizes = [8, 128], strides = [1, 1]} : vector<8x512xf32> to vector<8x128xf32>
    %cst_34 = arith.constant 5.000000e-01 : f32
    %37 = vector.broadcast %cst_34 : f32 to vector<8x128xf32>
    %38 = arith.mulf %37, %36 : vector<8x128xf32>
    %39 = math.tanh %38 : vector<8x128xf32>
    %cst_35 = arith.constant 5.000000e-01 : f32
    %40 = vector.broadcast %cst_35 : f32 to vector<8x128xf32>
    %41 = arith.mulf %40, %39 : vector<8x128xf32>
    %cst_36 = arith.constant 5.000000e-01 : f32
    %42 = vector.broadcast %cst_36 : f32 to vector<8x128xf32>
    %43 = arith.addf %41, %42 : vector<8x128xf32>
    %44 = vector.extract_strided_slice %27 {offsets = [0, 128], sizes = [8, 128], strides = [1, 1]} : vector<8x512xf32> to vector<8x128xf32>
    %cst_37 = arith.constant 5.000000e-01 : f32
    %45 = vector.broadcast %cst_37 : f32 to vector<8x128xf32>
    %46 = arith.mulf %45, %44 : vector<8x128xf32>
    %47 = math.tanh %46 : vector<8x128xf32>
    %cst_38 = arith.constant 5.000000e-01 : f32
    %48 = vector.broadcast %cst_38 : f32 to vector<8x128xf32>
    %49 = arith.mulf %48, %47 : vector<8x128xf32>
    %cst_39 = arith.constant 5.000000e-01 : f32
    %50 = vector.broadcast %cst_39 : f32 to vector<8x128xf32>
    %51 = arith.addf %49, %50 : vector<8x128xf32>
    %52 = vector.extract_strided_slice %27 {offsets = [0, 256], sizes = [8, 128], strides = [1, 1]} : vector<8x512xf32> to vector<8x128xf32>
    %53 = math.tanh %52 : vector<8x128xf32>
    %54 = vector.extract_strided_slice %27 {offsets = [0, 384], sizes = [8, 128], strides = [1, 1]} : vector<8x512xf32> to vector<8x128xf32>
    %cst_40 = arith.constant 5.000000e-01 : f32
    %55 = vector.broadcast %cst_40 : f32 to vector<8x128xf32>
    %56 = arith.mulf %55, %54 : vector<8x128xf32>
    %57 = math.tanh %56 : vector<8x128xf32>
    %cst_41 = arith.constant 5.000000e-01 : f32
    %58 = vector.broadcast %cst_41 : f32 to vector<8x128xf32>
    %59 = arith.mulf %58, %57 : vector<8x128xf32>
    %cst_42 = arith.constant 5.000000e-01 : f32
    %60 = vector.broadcast %cst_42 : f32 to vector<8x128xf32>
    %61 = arith.addf %59, %60 : vector<8x128xf32>
    %62 = arith.mulf %51, %35 : vector<8x128xf32>
    %63 = arith.mulf %43, %53 : vector<8x128xf32>
    %64 = arith.addf %62, %63 : vector<8x128xf32>
    %65 = math.tanh %64 : vector<8x128xf32>
    %66 = arith.mulf %61, %65 : vector<8x128xf32>
    %c0_43 = arith.constant 0 : index
    %c0_44 = arith.constant 0 : index
    %67 = vector.load %arg19[%c0_43, %c0_44] : memref<8x128xf32, #tpu.memory_space<vmem>>, vector<8x128xf32>
    %68 = vector.extract_strided_slice %34 {offsets = [0, 0], sizes = [8, 128], strides = [1, 1]} : vector<8x512xf32> to vector<8x128xf32>
    %cst_45 = arith.constant 5.000000e-01 : f32
    %69 = vector.broadcast %cst_45 : f32 to vector<8x128xf32>
    %70 = arith.mulf %69, %68 : vector<8x128xf32>
    %71 = math.tanh %70 : vector<8x128xf32>
    %cst_46 = arith.constant 5.000000e-01 : f32
    %72 = vector.broadcast %cst_46 : f32 to vector<8x128xf32>
    %73 = arith.mulf %72, %71 : vector<8x128xf32>
    %cst_47 = arith.constant 5.000000e-01 : f32
    %74 = vector.broadcast %cst_47 : f32 to vector<8x128xf32>
    %75 = arith.addf %73, %74 : vector<8x128xf32>
    %76 = vector.extract_strided_slice %34 {offsets = [0, 128], sizes = [8, 128], strides = [1, 1]} : vector<8x512xf32> to vector<8x128xf32>
    %cst_48 = arith.constant 5.000000e-01 : f32
    %77 = vector.broadcast %cst_48 : f32 to vector<8x128xf32>
    %78 = arith.mulf %77, %76 : vector<8x128xf32>
    %79 = math.tanh %78 : vector<8x128xf32>
    %cst_49 = arith.constant 5.000000e-01 : f32
    %80 = vector.broadcast %cst_49 : f32 to vector<8x128xf32>
    %81 = arith.mulf %80, %79 : vector<8x128xf32>
    %cst_50 = arith.constant 5.000000e-01 : f32
    %82 = vector.broadcast %cst_50 : f32 to vector<8x128xf32>
    %83 = arith.addf %81, %82 : vector<8x128xf32>
    %84 = vector.extract_strided_slice %34 {offsets = [0, 256], sizes = [8, 128], strides = [1, 1]} : vector<8x512xf32> to vector<8x128xf32>
    %85 = math.tanh %84 : vector<8x128xf32>
    %86 = vector.extract_strided_slice %34 {offsets = [0, 384], sizes = [8, 128], strides = [1, 1]} : vector<8x512xf32> to vector<8x128xf32>
    %cst_51 = arith.constant 5.000000e-01 : f32
    %87 = vector.broadcast %cst_51 : f32 to vector<8x128xf32>
    %88 = arith.mulf %87, %86 : vector<8x128xf32>
    %89 = math.tanh %88 : vector<8x128xf32>
    %cst_52 = arith.constant 5.000000e-01 : f32
    %90 = vector.broadcast %cst_52 : f32 to vector<8x128xf32>
    %91 = arith.mulf %90, %89 : vector<8x128xf32>
    %cst_53 = arith.constant 5.000000e-01 : f32
    %92 = vector.broadcast %cst_53 : f32 to vector<8x128xf32>
    %93 = arith.addf %91, %92 : vector<8x128xf32>
    %94 = arith.mulf %83, %67 : vector<8x128xf32>
    %95 = arith.mulf %75, %85 : vector<8x128xf32>
    %96 = arith.addf %94, %95 : vector<8x128xf32>
    %97 = math.tanh %96 : vector<8x128xf32>
    %98 = arith.mulf %93, %97 : vector<8x128xf32>
    %c0_54 = arith.constant 0 : index
    %c0_55 = arith.constant 0 : index
    %99 = vector.load %arg16[%c0_54, %c0_55] : memref<8x128xf32, #tpu.memory_space<vmem>>, vector<8x128xf32>
    tpu.vector_store %arg16[%c0_54, %c0_55], %66 {strides = array<i32>} : memref<8x128xf32, #tpu.memory_space<vmem>>, vector<8x128xf32>,
    %c0_56 = arith.constant 0 : index
    %c0_57 = arith.constant 0 : index
    %100 = vector.load %arg17[%c0_56, %c0_57] : memref<8x128xf32, #tpu.memory_space<vmem>>, vector<8x128xf32>
    tpu.vector_store %arg17[%c0_56, %c0_57], %64 {strides = array<i32>} : memref<8x128xf32, #tpu.memory_space<vmem>>, vector<8x128xf32>,
    %c0_58 = arith.constant 0 : index
    %c0_59 = arith.constant 0 : index
    %101 = vector.load %arg18[%c0_58, %c0_59] : memref<8x128xf32, #tpu.memory_space<vmem>>, vector<8x128xf32>
    tpu.vector_store %arg18[%c0_58, %c0_59], %98 {strides = array<i32>} : memref<8x128xf32, #tpu.memory_space<vmem>>, vector<8x128xf32>,
    %c0_60 = arith.constant 0 : index
    %c0_61 = arith.constant 0 : index
    %102 = vector.load %arg19[%c0_60, %c0_61] : memref<8x128xf32, #tpu.memory_space<vmem>>, vector<8x128xf32>
    tpu.vector_store %arg19[%c0_60, %c0_61], %96 {strides = array<i32>} : memref<8x128xf32, #tpu.memory_space<vmem>>, vector<8x128xf32>,
    %103 = arith.index_cast %c0_i32 : i32 to index
    %c0_62 = arith.constant 0 : index
    %c0_63 = arith.constant 0 : index
    %104 = vector.load %arg15[%103, %c0_62, %c0_63] : memref<8x8x256xf32, #tpu.memory_space<vmem>>, vector<1x8x128xf32>
    %105 = vector.shape_cast %104 : vector<1x8x128xf32> to vector<8x128xf32>
    %106 = vector.shape_cast %66 : vector<8x128xf32> to vector<1x8x128xf32>
    tpu.vector_store %arg15[%103, %c0_62, %c0_63], %106 {strides = array<i32>} : memref<8x8x256xf32, #tpu.memory_space<vmem>>, vector<1x8x128xf32>,
    %107 = arith.index_cast %16 : i32 to index
    %c0_64 = arith.constant 0 : index
    %c128 = arith.constant 128 : index
    %108 = vector.load %arg15[%107, %c0_64, %c128] : memref<8x8x256xf32, #tpu.memory_space<vmem>>, vector<1x8x128xf32>
    %109 = vector.shape_cast %108 : vector<1x8x128xf32> to vector<8x128xf32>
    %110 = vector.shape_cast %98 : vector<8x128xf32> to vector<1x8x128xf32>
    tpu.vector_store %arg15[%107, %c0_64, %c128], %110 {strides = array<i32>} : memref<8x8x256xf32, #tpu.memory_space<vmem>>, vector<1x8x128xf32>,
    %c1_i32 = arith.constant 1 : i32
    %c7_i32_65 = arith.constant 7 : i32
    %111 = arith.subi %c7_i32_65, %c1_i32 : i32
    %c8_i32_66 = arith.constant 8 : i32
    %112 = arith.muli %c1_i32, %c8_i32_66 : i32
    %113 = tpu.assume_multiple %112, 8 : i32
    %c8_i32_67 = arith.constant 8 : i32
    %114 = arith.muli %111, %c8_i32_67 : i32
    %115 = tpu.assume_multiple %114, 8 : i32
    %116 = arith.index_cast %113 : i32 to index
    %c0_68 = arith.constant 0 : index
    %117 = vector.load %arg14[%116, %c0_68] : memref<64x1024xf32, #tpu.memory_space<vmem>>, vector<8x512xf32>
    %c0_69 = arith.constant 0 : index
    %c0_70 = arith.constant 0 : index
    %118 = vector.load %arg16[%c0_69, %c0_70] : memref<8x128xf32, #tpu.memory_space<vmem>>, vector<8x128xf32>
    %119 = arith.truncf %118 : vector<8x128xf32> to vector<8x128xbf16>
    %c0_71 = arith.constant 0 : index
    %c0_72 = arith.constant 0 : index
    %120 = vector.load %arg2[%c0_71, %c0_72] : memref<128x512xbf16, #tpu.memory_space<vmem>>, vector<128x512xbf16>
    %cst_73 = arith.constant dense<0.000000e+00> : vector<8x512xf32>
    %121 = tpu.matmul %119, %120, %cst_73 {dimension_numbers = #tpu.dot_dimension_numbers<[1], [0], [0], [1], [0, 0, 1, 1], [], []>} : vector<8x128xbf16>, vector<128x512xbf16>, vector<8x512xf32> -> vector<8x512xf32>
    %122 = arith.addf %117, %121 : vector<8x512xf32>
    %123 = arith.index_cast %115 : i32 to index
    %c512_74 = arith.constant 512 : index
    %124 = vector.load %arg14[%123, %c512_74] : memref<64x1024xf32, #tpu.memory_space<vmem>>, vector<8x512xf32>
    %c0_75 = arith.constant 0 : index
    %c0_76 = arith.constant 0 : index
    %125 = vector.load %arg18[%c0_75, %c0_76] : memref<8x128xf32, #tpu.memory_space<vmem>>, vector<8x128xf32>
    %126 = arith.truncf %125 : vector<8x128xf32> to vector<8x128xbf16>
    %c0_77 = arith.constant 0 : index
    %c0_78 = arith.constant 0 : index
    %127 = vector.load %arg3[%c0_77, %c0_78] : memref<128x512xbf16, #tpu.memory_space<vmem>>, vector<128x512xbf16>
    %cst_79 = arith.constant dense<0.000000e+00> : vector<8x512xf32>
    %128 = tpu.matmul %126, %127, %cst_79 {dimension_numbers = #tpu.dot_dimension_numbers<[1], [0], [0], [1], [0, 0, 1, 1], [], []>} : vector<8x128xbf16>, vector<128x512xbf16>, vector<8x512xf32> -> vector<8x512xf32>
    %129 = arith.addf %124, %128 : vector<8x512xf32>
    %c0_80 = arith.constant 0 : index
    %c0_81 = arith.constant 0 : index
    %130 = vector.load %arg17[%c0_80, %c0_81] : memref<8x128xf32, #tpu.memory_space<vmem>>, vector<8x128xf32>
    %131 = vector.extract_strided_slice %122 {offsets = [0, 0], sizes = [8, 128], strides = [1, 1]} : vector<8x512xf32> to vector<8x128xf32>
    %cst_82 = arith.constant 5.000000e-01 : f32
    %132 = vector.broadcast %cst_82 : f32 to vector<8x128xf32>
    %133 = arith.mulf %132, %131 : vector<8x128xf32>
    %134 = math.tanh %133 : vector<8x128xf32>
    %cst_83 = arith.constant 5.000000e-01 : f32
    %135 = vector.broadcast %cst_83 : f32 to vector<8x128xf32>
    %136 = arith.mulf %135, %134 : vector<8x128xf32>
    %cst_84 = arith.constant 5.000000e-01 : f32
    %137 = vector.broadcast %cst_84 : f32 to vector<8x128xf32>
    %138 = arith.addf %136, %137 : vector<8x128xf32>
    %139 = vector.extract_strided_slice %122 {offsets = [0, 128], sizes = [8, 128], strides = [1, 1]} : vector<8x512xf32> to vector<8x128xf32>
    %cst_85 = arith.constant 5.000000e-01 : f32
    %140 = vector.broadcast %cst_85 : f32 to vector<8x128xf32>
    %141 = arith.mulf %140, %139 : vector<8x128xf32>
    %142 = math.tanh %141 : vector<8x128xf32>
    %cst_86 = arith.constant 5.000000e-01 : f32
    %143 = vector.broadcast %cst_86 : f32 to vector<8x128xf32>
    %144 = arith.mulf %143, %142 : vector<8x128xf32>
    %cst_87 = arith.constant 5.000000e-01 : f32
    %145 = vector.broadcast %cst_87 : f32 to vector<8x128xf32>
    %146 = arith.addf %144, %145 : vector<8x128xf32>
    %147 = vector.extract_strided_slice %122 {offsets = [0, 256], sizes = [8, 128], strides = [1, 1]} : vector<8x512xf32> to vector<8x128xf32>
    %148 = math.tanh %147 : vector<8x128xf32>
    %149 = vector.extract_strided_slice %122 {offsets = [0, 384], sizes = [8, 128], strides = [1, 1]} : vector<8x512xf32> to vector<8x128xf32>
    %cst_88 = arith.constant 5.000000e-01 : f32
    %150 = vector.broadcast %cst_88 : f32 to vector<8x128xf32>
    %151 = arith.mulf %150, %149 : vector<8x128xf32>
    %152 = math.tanh %151 : vector<8x128xf32>
    %cst_89 = arith.constant 5.000000e-01 : f32
    %153 = vector.broadcast %cst_89 : f32 to vector<8x128xf32>
    %154 = arith.mulf %153, %152 : vector<8x128xf32>
    %cst_90 = arith.constant 5.000000e-01 : f32
    %155 = vector.broadcast %cst_90 : f32 to vector<8x128xf32>
    %156 = arith.addf %154, %155 : vector<8x128xf32>
    %157 = arith.mulf %146, %130 : vector<8x128xf32>
    %158 = arith.mulf %138, %148 : vector<8x128xf32>
    %159 = arith.addf %157, %158 : vector<8x128xf32>
    %160 = math.tanh %159 : vector<8x128xf32>
    %161 = arith.mulf %156, %160 : vector<8x128xf32>
    %c0_91 = arith.constant 0 : index
    %c0_92 = arith.constant 0 : index
    %162 = vector.load %arg19[%c0_91, %c0_92] : memref<8x128xf32, #tpu.memory_space<vmem>>, vector<8x128xf32>
    %163 = vector.extract_strided_slice %129 {offsets = [0, 0], sizes = [8, 128], strides = [1, 1]} : vector<8x512xf32> to vector<8x128xf32>
    %cst_93 = arith.constant 5.000000e-01 : f32
    %164 = vector.broadcast %cst_93 : f32 to vector<8x128xf32>
    %165 = arith.mulf %164, %163 : vector<8x128xf32>
    %166 = math.tanh %165 : vector<8x128xf32>
    %cst_94 = arith.constant 5.000000e-01 : f32
    %167 = vector.broadcast %cst_94 : f32 to vector<8x128xf32>
    %168 = arith.mulf %167, %166 : vector<8x128xf32>
    %cst_95 = arith.constant 5.000000e-01 : f32
    %169 = vector.broadcast %cst_95 : f32 to vector<8x128xf32>
    %170 = arith.addf %168, %169 : vector<8x128xf32>
    %171 = vector.extract_strided_slice %129 {offsets = [0, 128], sizes = [8, 128], strides = [1, 1]} : vector<8x512xf32> to vector<8x128xf32>
    %cst_96 = arith.constant 5.000000e-01 : f32
    %172 = vector.broadcast %cst_96 : f32 to vector<8x128xf32>
    %173 = arith.mulf %172, %171 : vector<8x128xf32>
    %174 = math.tanh %173 : vector<8x128xf32>
    %cst_97 = arith.constant 5.000000e-01 : f32
    %175 = vector.broadcast %cst_97 : f32 to vector<8x128xf32>
    %176 = arith.mulf %175, %174 : vector<8x128xf32>
    %cst_98 = arith.constant 5.000000e-01 : f32
    %177 = vector.broadcast %cst_98 : f32 to vector<8x128xf32>
    %178 = arith.addf %176, %177 : vector<8x128xf32>
    %179 = vector.extract_strided_slice %129 {offsets = [0, 256], sizes = [8, 128], strides = [1, 1]} : vector<8x512xf32> to vector<8x128xf32>
    %180 = math.tanh %179 : vector<8x128xf32>
    %181 = vector.extract_strided_slice %129 {offsets = [0, 384], sizes = [8, 128], strides = [1, 1]} : vector<8x512xf32> to vector<8x128xf32>
    %cst_99 = arith.constant 5.000000e-01 : f32
    %182 = vector.broadcast %cst_99 : f32 to vector<8x128xf32>
    %183 = arith.mulf %182, %181 : vector<8x128xf32>
    %184 = math.tanh %183 : vector<8x128xf32>
    %cst_100 = arith.constant 5.000000e-01 : f32
    %185 = vector.broadcast %cst_100 : f32 to vector<8x128xf32>
    %186 = arith.mulf %185, %184 : vector<8x128xf32>
    %cst_101 = arith.constant 5.000000e-01 : f32
    %187 = vector.broadcast %cst_101 : f32 to vector<8x128xf32>
    %188 = arith.addf %186, %187 : vector<8x128xf32>
    %189 = arith.mulf %178, %162 : vector<8x128xf32>
    %190 = arith.mulf %170, %180 : vector<8x128xf32>
    %191 = arith.addf %189, %190 : vector<8x128xf32>
    %192 = math.tanh %191 : vector<8x128xf32>
    %193 = arith.mulf %188, %192 : vector<8x128xf32>
    %c0_102 = arith.constant 0 : index
    %c0_103 = arith.constant 0 : index
    %194 = vector.load %arg16[%c0_102, %c0_103] : memref<8x128xf32, #tpu.memory_space<vmem>>, vector<8x128xf32>
    tpu.vector_store %arg16[%c0_102, %c0_103], %161 {strides = array<i32>} : memref<8x128xf32, #tpu.memory_space<vmem>>, vector<8x128xf32>,
    %c0_104 = arith.constant 0 : index
    %c0_105 = arith.constant 0 : index
    %195 = vector.load %arg17[%c0_104, %c0_105] : memref<8x128xf32, #tpu.memory_space<vmem>>, vector<8x128xf32>
    tpu.vector_store %arg17[%c0_104, %c0_105], %159 {strides = array<i32>} : memref<8x128xf32, #tpu.memory_space<vmem>>, vector<8x128xf32>,
    %c0_106 = arith.constant 0 : index
    %c0_107 = arith.constant 0 : index
    %196 = vector.load %arg18[%c0_106, %c0_107] : memref<8x128xf32, #tpu.memory_space<vmem>>, vector<8x128xf32>
    tpu.vector_store %arg18[%c0_106, %c0_107], %193 {strides = array<i32>} : memref<8x128xf32, #tpu.memory_space<vmem>>, vector<8x128xf32>,
    %c0_108 = arith.constant 0 : index
    %c0_109 = arith.constant 0 : index
    %197 = vector.load %arg19[%c0_108, %c0_109] : memref<8x128xf32, #tpu.memory_space<vmem>>, vector<8x128xf32>
    tpu.vector_store %arg19[%c0_108, %c0_109], %191 {strides = array<i32>} : memref<8x128xf32, #tpu.memory_space<vmem>>, vector<8x128xf32>,
    %198 = arith.index_cast %c1_i32 : i32 to index
    %c0_110 = arith.constant 0 : index
    %c0_111 = arith.constant 0 : index
    %199 = vector.load %arg15[%198, %c0_110, %c0_111] : memref<8x8x256xf32, #tpu.memory_space<vmem>>, vector<1x8x128xf32>
    %200 = vector.shape_cast %199 : vector<1x8x128xf32> to vector<8x128xf32>
    %201 = vector.shape_cast %161 : vector<8x128xf32> to vector<1x8x128xf32>
    tpu.vector_store %arg15[%198, %c0_110, %c0_111], %201 {strides = array<i32>} : memref<8x8x256xf32, #tpu.memory_space<vmem>>, vector<1x8x128xf32>,
    %202 = arith.index_cast %111 : i32 to index
    %c0_112 = arith.constant 0 : index
    %c128_113 = arith.constant 128 : index
    %203 = vector.load %arg15[%202, %c0_112, %c128_113] : memref<8x8x256xf32, #tpu.memory_space<vmem>>, vector<1x8x128xf32>
    %204 = vector.shape_cast %203 : vector<1x8x128xf32> to vector<8x128xf32>
    %205 = vector.shape_cast %193 : vector<8x128xf32> to vector<1x8x128xf32>
    tpu.vector_store %arg15[%202, %c0_112, %c128_113], %205 {strides = array<i32>} : memref<8x8x256xf32, #tpu.memory_space<vmem>>, vector<1x8x128xf32>,
    %c2_i32 = arith.constant 2 : i32
    %c7_i32_114 = arith.constant 7 : i32
    %206 = arith.subi %c7_i32_114, %c2_i32 : i32
    %c8_i32_115 = arith.constant 8 : i32
    %207 = arith.muli %c2_i32, %c8_i32_115 : i32
    %208 = tpu.assume_multiple %207, 8 : i32
    %c8_i32_116 = arith.constant 8 : i32
    %209 = arith.muli %206, %c8_i32_116 : i32
    %210 = tpu.assume_multiple %209, 8 : i32
    %211 = arith.index_cast %208 : i32 to index
    %c0_117 = arith.constant 0 : index
    %212 = vector.load %arg14[%211, %c0_117] : memref<64x1024xf32, #tpu.memory_space<vmem>>, vector<8x512xf32>
    %c0_118 = arith.constant 0 : index
    %c0_119 = arith.constant 0 : index
    %213 = vector.load %arg16[%c0_118, %c0_119] : memref<8x128xf32, #tpu.memory_space<vmem>>, vector<8x128xf32>
    %214 = arith.truncf %213 : vector<8x128xf32> to vector<8x128xbf16>
    %c0_120 = arith.constant 0 : index
    %c0_121 = arith.constant 0 : index
    %215 = vector.load %arg2[%c0_120, %c0_121] : memref<128x512xbf16, #tpu.memory_space<vmem>>, vector<128x512xbf16>
    %cst_122 = arith.constant dense<0.000000e+00> : vector<8x512xf32>
    %216 = tpu.matmul %214, %215, %cst_122 {dimension_numbers = #tpu.dot_dimension_numbers<[1], [0], [0], [1], [0, 0, 1, 1], [], []>} : vector<8x128xbf16>, vector<128x512xbf16>, vector<8x512xf32> -> vector<8x512xf32>
    %217 = arith.addf %212, %216 : vector<8x512xf32>
    %218 = arith.index_cast %210 : i32 to index
    %c512_123 = arith.constant 512 : index
    %219 = vector.load %arg14[%218, %c512_123] : memref<64x1024xf32, #tpu.memory_space<vmem>>, vector<8x512xf32>
    %c0_124 = arith.constant 0 : index
    %c0_125 = arith.constant 0 : index
    %220 = vector.load %arg18[%c0_124, %c0_125] : memref<8x128xf32, #tpu.memory_space<vmem>>, vector<8x128xf32>
    %221 = arith.truncf %220 : vector<8x128xf32> to vector<8x128xbf16>
    %c0_126 = arith.constant 0 : index
    %c0_127 = arith.constant 0 : index
    %222 = vector.load %arg3[%c0_126, %c0_127] : memref<128x512xbf16, #tpu.memory_space<vmem>>, vector<128x512xbf16>
    %cst_128 = arith.constant dense<0.000000e+00> : vector<8x512xf32>
    %223 = tpu.matmul %221, %222, %cst_128 {dimension_numbers = #tpu.dot_dimension_numbers<[1], [0], [0], [1], [0, 0, 1, 1], [], []>} : vector<8x128xbf16>, vector<128x512xbf16>, vector<8x512xf32> -> vector<8x512xf32>
    %224 = arith.addf %219, %223 : vector<8x512xf32>
    %c0_129 = arith.constant 0 : index
    %c0_130 = arith.constant 0 : index
    %225 = vector.load %arg17[%c0_129, %c0_130] : memref<8x128xf32, #tpu.memory_space<vmem>>, vector<8x128xf32>
    %226 = vector.extract_strided_slice %217 {offsets = [0, 0], sizes = [8, 128], strides = [1, 1]} : vector<8x512xf32> to vector<8x128xf32>
    %cst_131 = arith.constant 5.000000e-01 : f32
    %227 = vector.broadcast %cst_131 : f32 to vector<8x128xf32>
    %228 = arith.mulf %227, %226 : vector<8x128xf32>
    %229 = math.tanh %228 : vector<8x128xf32>
    %cst_132 = arith.constant 5.000000e-01 : f32
    %230 = vector.broadcast %cst_132 : f32 to vector<8x128xf32>
    %231 = arith.mulf %230, %229 : vector<8x128xf32>
    %cst_133 = arith.constant 5.000000e-01 : f32
    %232 = vector.broadcast %cst_133 : f32 to vector<8x128xf32>
    %233 = arith.addf %231, %232 : vector<8x128xf32>
    %234 = vector.extract_strided_slice %217 {offsets = [0, 128], sizes = [8, 128], strides = [1, 1]} : vector<8x512xf32> to vector<8x128xf32>
    %cst_134 = arith.constant 5.000000e-01 : f32
    %235 = vector.broadcast %cst_134 : f32 to vector<8x128xf32>
    %236 = arith.mulf %235, %234 : vector<8x128xf32>
    %237 = math.tanh %236 : vector<8x128xf32>
    %cst_135 = arith.constant 5.000000e-01 : f32
    %238 = vector.broadcast %cst_135 : f32 to vector<8x128xf32>
    %239 = arith.mulf %238, %237 : vector<8x128xf32>
    %cst_136 = arith.constant 5.000000e-01 : f32
    %240 = vector.broadcast %cst_136 : f32 to vector<8x128xf32>
    %241 = arith.addf %239, %240 : vector<8x128xf32>
    %242 = vector.extract_strided_slice %217 {offsets = [0, 256], sizes = [8, 128], strides = [1, 1]} : vector<8x512xf32> to vector<8x128xf32>
    %243 = math.tanh %242 : vector<8x128xf32>
    %244 = vector.extract_strided_slice %217 {offsets = [0, 384], sizes = [8, 128], strides = [1, 1]} : vector<8x512xf32> to vector<8x128xf32>
    %cst_137 = arith.constant 5.000000e-01 : f32
    %245 = vector.broadcast %cst_137 : f32 to vector<8x128xf32>
    %246 = arith.mulf %245, %244 : vector<8x128xf32>
    %247 = math.tanh %246 : vector<8x128xf32>
    %cst_138 = arith.constant 5.000000e-01 : f32
    %248 = vector.broadcast %cst_138 : f32 to vector<8x128xf32>
    %249 = arith.mulf %248, %247 : vector<8x128xf32>
    %cst_139 = arith.constant 5.000000e-01 : f32
    %250 = vector.broadcast %cst_139 : f32 to vector<8x128xf32>
    %251 = arith.addf %249, %250 : vector<8x128xf32>
    %252 = arith.mulf %241, %225 : vector<8x128xf32>
    %253 = arith.mulf %233, %243 : vector<8x128xf32>
    %254 = arith.addf %252, %253 : vector<8x128xf32>
    %255 = math.tanh %254 : vector<8x128xf32>
    %256 = arith.mulf %251, %255 : vector<8x128xf32>
    %c0_140 = arith.constant 0 : index
    %c0_141 = arith.constant 0 : index
    %257 = vector.load %arg19[%c0_140, %c0_141] : memref<8x128xf32, #tpu.memory_space<vmem>>, vector<8x128xf32>
    %258 = vector.extract_strided_slice %224 {offsets = [0, 0], sizes = [8, 128], strides = [1, 1]} : vector<8x512xf32> to vector<8x128xf32>
    %cst_142 = arith.constant 5.000000e-01 : f32
    %259 = vector.broadcast %cst_142 : f32 to vector<8x128xf32>
    %260 = arith.mulf %259, %258 : vector<8x128xf32>
    %261 = math.tanh %260 : vector<8x128xf32>
    %cst_143 = arith.constant 5.000000e-01 : f32
    %262 = vector.broadcast %cst_143 : f32 to vector<8x128xf32>
    %263 = arith.mulf %262, %261 : vector<8x128xf32>
    %cst_144 = arith.constant 5.000000e-01 : f32
    %264 = vector.broadcast %cst_144 : f32 to vector<8x128xf32>
    %265 = arith.addf %263, %264 : vector<8x128xf32>
    %266 = vector.extract_strided_slice %224 {offsets = [0, 128], sizes = [8, 128], strides = [1, 1]} : vector<8x512xf32> to vector<8x128xf32>
    %cst_145 = arith.constant 5.000000e-01 : f32
    %267 = vector.broadcast %cst_145 : f32 to vector<8x128xf32>
    %268 = arith.mulf %267, %266 : vector<8x128xf32>
    %269 = math.tanh %268 : vector<8x128xf32>
    %cst_146 = arith.constant 5.000000e-01 : f32
    %270 = vector.broadcast %cst_146 : f32 to vector<8x128xf32>
    %271 = arith.mulf %270, %269 : vector<8x128xf32>
    %cst_147 = arith.constant 5.000000e-01 : f32
    %272 = vector.broadcast %cst_147 : f32 to vector<8x128xf32>
    %273 = arith.addf %271, %272 : vector<8x128xf32>
    %274 = vector.extract_strided_slice %224 {offsets = [0, 256], sizes = [8, 128], strides = [1, 1]} : vector<8x512xf32> to vector<8x128xf32>
    %275 = math.tanh %274 : vector<8x128xf32>
    %276 = vector.extract_strided_slice %224 {offsets = [0, 384], sizes = [8, 128], strides = [1, 1]} : vector<8x512xf32> to vector<8x128xf32>
    %cst_148 = arith.constant 5.000000e-01 : f32
    %277 = vector.broadcast %cst_148 : f32 to vector<8x128xf32>
    %278 = arith.mulf %277, %276 : vector<8x128xf32>
    %279 = math.tanh %278 : vector<8x128xf32>
    %cst_149 = arith.constant 5.000000e-01 : f32
    %280 = vector.broadcast %cst_149 : f32 to vector<8x128xf32>
    %281 = arith.mulf %280, %279 : vector<8x128xf32>
    %cst_150 = arith.constant 5.000000e-01 : f32
    %282 = vector.broadcast %cst_150 : f32 to vector<8x128xf32>
    %283 = arith.addf %281, %282 : vector<8x128xf32>
    %284 = arith.mulf %273, %257 : vector<8x128xf32>
    %285 = arith.mulf %265, %275 : vector<8x128xf32>
    %286 = arith.addf %284, %285 : vector<8x128xf32>
    %287 = math.tanh %286 : vector<8x128xf32>
    %288 = arith.mulf %283, %287 : vector<8x128xf32>
    %c0_151 = arith.constant 0 : index
    %c0_152 = arith.constant 0 : index
    %289 = vector.load %arg16[%c0_151, %c0_152] : memref<8x128xf32, #tpu.memory_space<vmem>>, vector<8x128xf32>
    tpu.vector_store %arg16[%c0_151, %c0_152], %256 {strides = array<i32>} : memref<8x128xf32, #tpu.memory_space<vmem>>, vector<8x128xf32>,
    %c0_153 = arith.constant 0 : index
    %c0_154 = arith.constant 0 : index
    %290 = vector.load %arg17[%c0_153, %c0_154] : memref<8x128xf32, #tpu.memory_space<vmem>>, vector<8x128xf32>
    tpu.vector_store %arg17[%c0_153, %c0_154], %254 {strides = array<i32>} : memref<8x128xf32, #tpu.memory_space<vmem>>, vector<8x128xf32>,
    %c0_155 = arith.constant 0 : index
    %c0_156 = arith.constant 0 : index
    %291 = vector.load %arg18[%c0_155, %c0_156] : memref<8x128xf32, #tpu.memory_space<vmem>>, vector<8x128xf32>
    tpu.vector_store %arg18[%c0_155, %c0_156], %288 {strides = array<i32>} : memref<8x128xf32, #tpu.memory_space<vmem>>, vector<8x128xf32>,
    %c0_157 = arith.constant 0 : index
    %c0_158 = arith.constant 0 : index
    %292 = vector.load %arg19[%c0_157, %c0_158] : memref<8x128xf32, #tpu.memory_space<vmem>>, vector<8x128xf32>
    tpu.vector_store %arg19[%c0_157, %c0_158], %286 {strides = array<i32>} : memref<8x128xf32, #tpu.memory_space<vmem>>, vector<8x128xf32>,
    %293 = arith.index_cast %c2_i32 : i32 to index
    %c0_159 = arith.constant 0 : index
    %c0_160 = arith.constant 0 : index
    %294 = vector.load %arg15[%293, %c0_159, %c0_160] : memref<8x8x256xf32, #tpu.memory_space<vmem>>, vector<1x8x128xf32>
    %295 = vector.shape_cast %294 : vector<1x8x128xf32> to vector<8x128xf32>
    %296 = vector.shape_cast %256 : vector<8x128xf32> to vector<1x8x128xf32>
    tpu.vector_store %arg15[%293, %c0_159, %c0_160], %296 {strides = array<i32>} : memref<8x8x256xf32, #tpu.memory_space<vmem>>, vector<1x8x128xf32>,
    %297 = arith.index_cast %206 : i32 to index
    %c0_161 = arith.constant 0 : index
    %c128_162 = arith.constant 128 : index
    %298 = vector.load %arg15[%297, %c0_161, %c128_162] : memref<8x8x256xf32, #tpu.memory_space<vmem>>, vector<1x8x128xf32>
    %299 = vector.shape_cast %298 : vector<1x8x128xf32> to vector<8x128xf32>
    %300 = vector.shape_cast %288 : vector<8x128xf32> to vector<1x8x128xf32>
    tpu.vector_store %arg15[%297, %c0_161, %c128_162], %300 {strides = array<i32>} : memref<8x8x256xf32, #tpu.memory_space<vmem>>, vector<1x8x128xf32>,
    %c3_i32 = arith.constant 3 : i32
    %c7_i32_163 = arith.constant 7 : i32
    %301 = arith.subi %c7_i32_163, %c3_i32 : i32
    %c8_i32_164 = arith.constant 8 : i32
    %302 = arith.muli %c3_i32, %c8_i32_164 : i32
    %303 = tpu.assume_multiple %302, 8 : i32
    %c8_i32_165 = arith.constant 8 : i32
    %304 = arith.muli %301, %c8_i32_165 : i32
    %305 = tpu.assume_multiple %304, 8 : i32
    %306 = arith.index_cast %303 : i32 to index
    %c0_166 = arith.constant 0 : index
    %307 = vector.load %arg14[%306, %c0_166] : memref<64x1024xf32, #tpu.memory_space<vmem>>, vector<8x512xf32>
    %c0_167 = arith.constant 0 : index
    %c0_168 = arith.constant 0 : index
    %308 = vector.load %arg16[%c0_167, %c0_168] : memref<8x128xf32, #tpu.memory_space<vmem>>, vector<8x128xf32>
    %309 = arith.truncf %308 : vector<8x128xf32> to vector<8x128xbf16>
    %c0_169 = arith.constant 0 : index
    %c0_170 = arith.constant 0 : index
    %310 = vector.load %arg2[%c0_169, %c0_170] : memref<128x512xbf16, #tpu.memory_space<vmem>>, vector<128x512xbf16>
    %cst_171 = arith.constant dense<0.000000e+00> : vector<8x512xf32>
    %311 = tpu.matmul %309, %310, %cst_171 {dimension_numbers = #tpu.dot_dimension_numbers<[1], [0], [0], [1], [0, 0, 1, 1], [], []>} : vector<8x128xbf16>, vector<128x512xbf16>, vector<8x512xf32> -> vector<8x512xf32>
    %312 = arith.addf %307, %311 : vector<8x512xf32>
    %313 = arith.index_cast %305 : i32 to index
    %c512_172 = arith.constant 512 : index
    %314 = vector.load %arg14[%313, %c512_172] : memref<64x1024xf32, #tpu.memory_space<vmem>>, vector<8x512xf32>
    %c0_173 = arith.constant 0 : index
    %c0_174 = arith.constant 0 : index
    %315 = vector.load %arg18[%c0_173, %c0_174] : memref<8x128xf32, #tpu.memory_space<vmem>>, vector<8x128xf32>
    %316 = arith.truncf %315 : vector<8x128xf32> to vector<8x128xbf16>
    %c0_175 = arith.constant 0 : index
    %c0_176 = arith.constant 0 : index
    %317 = vector.load %arg3[%c0_175, %c0_176] : memref<128x512xbf16, #tpu.memory_space<vmem>>, vector<128x512xbf16>
    %cst_177 = arith.constant dense<0.000000e+00> : vector<8x512xf32>
    %318 = tpu.matmul %316, %317, %cst_177 {dimension_numbers = #tpu.dot_dimension_numbers<[1], [0], [0], [1], [0, 0, 1, 1], [], []>} : vector<8x128xbf16>, vector<128x512xbf16>, vector<8x512xf32> -> vector<8x512xf32>
    %319 = arith.addf %314, %318 : vector<8x512xf32>
    %c0_178 = arith.constant 0 : index
    %c0_179 = arith.constant 0 : index
    %320 = vector.load %arg17[%c0_178, %c0_179] : memref<8x128xf32, #tpu.memory_space<vmem>>, vector<8x128xf32>
    %321 = vector.extract_strided_slice %312 {offsets = [0, 0], sizes = [8, 128], strides = [1, 1]} : vector<8x512xf32> to vector<8x128xf32>
    %cst_180 = arith.constant 5.000000e-01 : f32
    %322 = vector.broadcast %cst_180 : f32 to vector<8x128xf32>
    %323 = arith.mulf %322, %321 : vector<8x128xf32>
    %324 = math.tanh %323 : vector<8x128xf32>
    %cst_181 = arith.constant 5.000000e-01 : f32
    %325 = vector.broadcast %cst_181 : f32 to vector<8x128xf32>
    %326 = arith.mulf %325, %324 : vector<8x128xf32>
    %cst_182 = arith.constant 5.000000e-01 : f32
    %327 = vector.broadcast %cst_182 : f32 to vector<8x128xf32>
    %328 = arith.addf %326, %327 : vector<8x128xf32>
    %329 = vector.extract_strided_slice %312 {offsets = [0, 128], sizes = [8, 128], strides = [1, 1]} : vector<8x512xf32> to vector<8x128xf32>
    %cst_183 = arith.constant 5.000000e-01 : f32
    %330 = vector.broadcast %cst_183 : f32 to vector<8x128xf32>
    %331 = arith.mulf %330, %329 : vector<8x128xf32>
    %332 = math.tanh %331 : vector<8x128xf32>
    %cst_184 = arith.constant 5.000000e-01 : f32
    %333 = vector.broadcast %cst_184 : f32 to vector<8x128xf32>
    %334 = arith.mulf %333, %332 : vector<8x128xf32>
    %cst_185 = arith.constant 5.000000e-01 : f32
    %335 = vector.broadcast %cst_185 : f32 to vector<8x128xf32>
    %336 = arith.addf %334, %335 : vector<8x128xf32>
    %337 = vector.extract_strided_slice %312 {offsets = [0, 256], sizes = [8, 128], strides = [1, 1]} : vector<8x512xf32> to vector<8x128xf32>
    %338 = math.tanh %337 : vector<8x128xf32>
    %339 = vector.extract_strided_slice %312 {offsets = [0, 384], sizes = [8, 128], strides = [1, 1]} : vector<8x512xf32> to vector<8x128xf32>
    %cst_186 = arith.constant 5.000000e-01 : f32
    %340 = vector.broadcast %cst_186 : f32 to vector<8x128xf32>
    %341 = arith.mulf %340, %339 : vector<8x128xf32>
    %342 = math.tanh %341 : vector<8x128xf32>
    %cst_187 = arith.constant 5.000000e-01 : f32
    %343 = vector.broadcast %cst_187 : f32 to vector<8x128xf32>
    %344 = arith.mulf %343, %342 : vector<8x128xf32>
    %cst_188 = arith.constant 5.000000e-01 : f32
    %345 = vector.broadcast %cst_188 : f32 to vector<8x128xf32>
    %346 = arith.addf %344, %345 : vector<8x128xf32>
    %347 = arith.mulf %336, %320 : vector<8x128xf32>
    %348 = arith.mulf %328, %338 : vector<8x128xf32>
    %349 = arith.addf %347, %348 : vector<8x128xf32>
    %350 = math.tanh %349 : vector<8x128xf32>
    %351 = arith.mulf %346, %350 : vector<8x128xf32>
    %c0_189 = arith.constant 0 : index
    %c0_190 = arith.constant 0 : index
    %352 = vector.load %arg19[%c0_189, %c0_190] : memref<8x128xf32, #tpu.memory_space<vmem>>, vector<8x128xf32>
    %353 = vector.extract_strided_slice %319 {offsets = [0, 0], sizes = [8, 128], strides = [1, 1]} : vector<8x512xf32> to vector<8x128xf32>
    %cst_191 = arith.constant 5.000000e-01 : f32
    %354 = vector.broadcast %cst_191 : f32 to vector<8x128xf32>
    %355 = arith.mulf %354, %353 : vector<8x128xf32>
    %356 = math.tanh %355 : vector<8x128xf32>
    %cst_192 = arith.constant 5.000000e-01 : f32
    %357 = vector.broadcast %cst_192 : f32 to vector<8x128xf32>
    %358 = arith.mulf %357, %356 : vector<8x128xf32>
    %cst_193 = arith.constant 5.000000e-01 : f32
    %359 = vector.broadcast %cst_193 : f32 to vector<8x128xf32>
    %360 = arith.addf %358, %359 : vector<8x128xf32>
    %361 = vector.extract_strided_slice %319 {offsets = [0, 128], sizes = [8, 128], strides = [1, 1]} : vector<8x512xf32> to vector<8x128xf32>
    %cst_194 = arith.constant 5.000000e-01 : f32
    %362 = vector.broadcast %cst_194 : f32 to vector<8x128xf32>
    %363 = arith.mulf %362, %361 : vector<8x128xf32>
    %364 = math.tanh %363 : vector<8x128xf32>
    %cst_195 = arith.constant 5.000000e-01 : f32
    %365 = vector.broadcast %cst_195 : f32 to vector<8x128xf32>
    %366 = arith.mulf %365, %364 : vector<8x128xf32>
    %cst_196 = arith.constant 5.000000e-01 : f32
    %367 = vector.broadcast %cst_196 : f32 to vector<8x128xf32>
    %368 = arith.addf %366, %367 : vector<8x128xf32>
    %369 = vector.extract_strided_slice %319 {offsets = [0, 256], sizes = [8, 128], strides = [1, 1]} : vector<8x512xf32> to vector<8x128xf32>
    %370 = math.tanh %369 : vector<8x128xf32>
    %371 = vector.extract_strided_slice %319 {offsets = [0, 384], sizes = [8, 128], strides = [1, 1]} : vector<8x512xf32> to vector<8x128xf32>
    %cst_197 = arith.constant 5.000000e-01 : f32
    %372 = vector.broadcast %cst_197 : f32 to vector<8x128xf32>
    %373 = arith.mulf %372, %371 : vector<8x128xf32>
    %374 = math.tanh %373 : vector<8x128xf32>
    %cst_198 = arith.constant 5.000000e-01 : f32
    %375 = vector.broadcast %cst_198 : f32 to vector<8x128xf32>
    %376 = arith.mulf %375, %374 : vector<8x128xf32>
    %cst_199 = arith.constant 5.000000e-01 : f32
    %377 = vector.broadcast %cst_199 : f32 to vector<8x128xf32>
    %378 = arith.addf %376, %377 : vector<8x128xf32>
    %379 = arith.mulf %368, %352 : vector<8x128xf32>
    %380 = arith.mulf %360, %370 : vector<8x128xf32>
    %381 = arith.addf %379, %380 : vector<8x128xf32>
    %382 = math.tanh %381 : vector<8x128xf32>
    %383 = arith.mulf %378, %382 : vector<8x128xf32>
    %c0_200 = arith.constant 0 : index
    %c0_201 = arith.constant 0 : index
    %384 = vector.load %arg16[%c0_200, %c0_201] : memref<8x128xf32, #tpu.memory_space<vmem>>, vector<8x128xf32>
    tpu.vector_store %arg16[%c0_200, %c0_201], %351 {strides = array<i32>} : memref<8x128xf32, #tpu.memory_space<vmem>>, vector<8x128xf32>,
    %c0_202 = arith.constant 0 : index
    %c0_203 = arith.constant 0 : index
    %385 = vector.load %arg17[%c0_202, %c0_203] : memref<8x128xf32, #tpu.memory_space<vmem>>, vector<8x128xf32>
    tpu.vector_store %arg17[%c0_202, %c0_203], %349 {strides = array<i32>} : memref<8x128xf32, #tpu.memory_space<vmem>>, vector<8x128xf32>,
    %c0_204 = arith.constant 0 : index
    %c0_205 = arith.constant 0 : index
    %386 = vector.load %arg18[%c0_204, %c0_205] : memref<8x128xf32, #tpu.memory_space<vmem>>, vector<8x128xf32>
    tpu.vector_store %arg18[%c0_204, %c0_205], %383 {strides = array<i32>} : memref<8x128xf32, #tpu.memory_space<vmem>>, vector<8x128xf32>,
    %c0_206 = arith.constant 0 : index
    %c0_207 = arith.constant 0 : index
    %387 = vector.load %arg19[%c0_206, %c0_207] : memref<8x128xf32, #tpu.memory_space<vmem>>, vector<8x128xf32>
    tpu.vector_store %arg19[%c0_206, %c0_207], %381 {strides = array<i32>} : memref<8x128xf32, #tpu.memory_space<vmem>>, vector<8x128xf32>,
    %388 = arith.index_cast %c3_i32 : i32 to index
    %c0_208 = arith.constant 0 : index
    %c0_209 = arith.constant 0 : index
    %389 = vector.load %arg15[%388, %c0_208, %c0_209] : memref<8x8x256xf32, #tpu.memory_space<vmem>>, vector<1x8x128xf32>
    %390 = vector.shape_cast %389 : vector<1x8x128xf32> to vector<8x128xf32>
    %391 = vector.shape_cast %351 : vector<8x128xf32> to vector<1x8x128xf32>
    tpu.vector_store %arg15[%388, %c0_208, %c0_209], %391 {strides = array<i32>} : memref<8x8x256xf32, #tpu.memory_space<vmem>>, vector<1x8x128xf32>,
    %392 = arith.index_cast %301 : i32 to index
    %c0_210 = arith.constant 0 : index
    %c128_211 = arith.constant 128 : index
    %393 = vector.load %arg15[%392, %c0_210, %c128_211] : memref<8x8x256xf32, #tpu.memory_space<vmem>>, vector<1x8x128xf32>
    %394 = vector.shape_cast %393 : vector<1x8x128xf32> to vector<8x128xf32>
    %395 = vector.shape_cast %383 : vector<8x128xf32> to vector<1x8x128xf32>
    tpu.vector_store %arg15[%392, %c0_210, %c128_211], %395 {strides = array<i32>} : memref<8x8x256xf32, #tpu.memory_space<vmem>>, vector<1x8x128xf32>,
    %c4_i32 = arith.constant 4 : i32
    %c7_i32_212 = arith.constant 7 : i32
    %396 = arith.subi %c7_i32_212, %c4_i32 : i32
    %c8_i32_213 = arith.constant 8 : i32
    %397 = arith.muli %c4_i32, %c8_i32_213 : i32
    %398 = tpu.assume_multiple %397, 8 : i32
    %c8_i32_214 = arith.constant 8 : i32
    %399 = arith.muli %396, %c8_i32_214 : i32
    %400 = tpu.assume_multiple %399, 8 : i32
    %401 = arith.index_cast %398 : i32 to index
    %c0_215 = arith.constant 0 : index
    %402 = vector.load %arg14[%401, %c0_215] : memref<64x1024xf32, #tpu.memory_space<vmem>>, vector<8x512xf32>
    %c0_216 = arith.constant 0 : index
    %c0_217 = arith.constant 0 : index
    %403 = vector.load %arg16[%c0_216, %c0_217] : memref<8x128xf32, #tpu.memory_space<vmem>>, vector<8x128xf32>
    %404 = arith.truncf %403 : vector<8x128xf32> to vector<8x128xbf16>
    %c0_218 = arith.constant 0 : index
    %c0_219 = arith.constant 0 : index
    %405 = vector.load %arg2[%c0_218, %c0_219] : memref<128x512xbf16, #tpu.memory_space<vmem>>, vector<128x512xbf16>
    %cst_220 = arith.constant dense<0.000000e+00> : vector<8x512xf32>
    %406 = tpu.matmul %404, %405, %cst_220 {dimension_numbers = #tpu.dot_dimension_numbers<[1], [0], [0], [1], [0, 0, 1, 1], [], []>} : vector<8x128xbf16>, vector<128x512xbf16>, vector<8x512xf32> -> vector<8x512xf32>
    %407 = arith.addf %402, %406 : vector<8x512xf32>
    %408 = arith.index_cast %400 : i32 to index
    %c512_221 = arith.constant 512 : index
    %409 = vector.load %arg14[%408, %c512_221] : memref<64x1024xf32, #tpu.memory_space<vmem>>, vector<8x512xf32>
    %c0_222 = arith.constant 0 : index
    %c0_223 = arith.constant 0 : index
    %410 = vector.load %arg18[%c0_222, %c0_223] : memref<8x128xf32, #tpu.memory_space<vmem>>, vector<8x128xf32>
    %411 = arith.truncf %410 : vector<8x128xf32> to vector<8x128xbf16>
    %c0_224 = arith.constant 0 : index
    %c0_225 = arith.constant 0 : index
    %412 = vector.load %arg3[%c0_224, %c0_225] : memref<128x512xbf16, #tpu.memory_space<vmem>>, vector<128x512xbf16>
    %cst_226 = arith.constant dense<0.000000e+00> : vector<8x512xf32>
    %413 = tpu.matmul %411, %412, %cst_226 {dimension_numbers = #tpu.dot_dimension_numbers<[1], [0], [0], [1], [0, 0, 1, 1], [], []>} : vector<8x128xbf16>, vector<128x512xbf16>, vector<8x512xf32> -> vector<8x512xf32>
    %414 = arith.addf %409, %413 : vector<8x512xf32>
    %c0_227 = arith.constant 0 : index
    %c0_228 = arith.constant 0 : index
    %415 = vector.load %arg17[%c0_227, %c0_228] : memref<8x128xf32, #tpu.memory_space<vmem>>, vector<8x128xf32>
    %416 = vector.extract_strided_slice %407 {offsets = [0, 0], sizes = [8, 128], strides = [1, 1]} : vector<8x512xf32> to vector<8x128xf32>
    %cst_229 = arith.constant 5.000000e-01 : f32
    %417 = vector.broadcast %cst_229 : f32 to vector<8x128xf32>
    %418 = arith.mulf %417, %416 : vector<8x128xf32>
    %419 = math.tanh %418 : vector<8x128xf32>
    %cst_230 = arith.constant 5.000000e-01 : f32
    %420 = vector.broadcast %cst_230 : f32 to vector<8x128xf32>
    %421 = arith.mulf %420, %419 : vector<8x128xf32>
    %cst_231 = arith.constant 5.000000e-01 : f32
    %422 = vector.broadcast %cst_231 : f32 to vector<8x128xf32>
    %423 = arith.addf %421, %422 : vector<8x128xf32>
    %424 = vector.extract_strided_slice %407 {offsets = [0, 128], sizes = [8, 128], strides = [1, 1]} : vector<8x512xf32> to vector<8x128xf32>
    %cst_232 = arith.constant 5.000000e-01 : f32
    %425 = vector.broadcast %cst_232 : f32 to vector<8x128xf32>
    %426 = arith.mulf %425, %424 : vector<8x128xf32>
    %427 = math.tanh %426 : vector<8x128xf32>
    %cst_233 = arith.constant 5.000000e-01 : f32
    %428 = vector.broadcast %cst_233 : f32 to vector<8x128xf32>
    %429 = arith.mulf %428, %427 : vector<8x128xf32>
    %cst_234 = arith.constant 5.000000e-01 : f32
    %430 = vector.broadcast %cst_234 : f32 to vector<8x128xf32>
    %431 = arith.addf %429, %430 : vector<8x128xf32>
    %432 = vector.extract_strided_slice %407 {offsets = [0, 256], sizes = [8, 128], strides = [1, 1]} : vector<8x512xf32> to vector<8x128xf32>
    %433 = math.tanh %432 : vector<8x128xf32>
    %434 = vector.extract_strided_slice %407 {offsets = [0, 384], sizes = [8, 128], strides = [1, 1]} : vector<8x512xf32> to vector<8x128xf32>
    %cst_235 = arith.constant 5.000000e-01 : f32
    %435 = vector.broadcast %cst_235 : f32 to vector<8x128xf32>
    %436 = arith.mulf %435, %434 : vector<8x128xf32>
    %437 = math.tanh %436 : vector<8x128xf32>
    %cst_236 = arith.constant 5.000000e-01 : f32
    %438 = vector.broadcast %cst_236 : f32 to vector<8x128xf32>
    %439 = arith.mulf %438, %437 : vector<8x128xf32>
    %cst_237 = arith.constant 5.000000e-01 : f32
    %440 = vector.broadcast %cst_237 : f32 to vector<8x128xf32>
    %441 = arith.addf %439, %440 : vector<8x128xf32>
    %442 = arith.mulf %431, %415 : vector<8x128xf32>
    %443 = arith.mulf %423, %433 : vector<8x128xf32>
    %444 = arith.addf %442, %443 : vector<8x128xf32>
    %445 = math.tanh %444 : vector<8x128xf32>
    %446 = arith.mulf %441, %445 : vector<8x128xf32>
    %c0_238 = arith.constant 0 : index
    %c0_239 = arith.constant 0 : index
    %447 = vector.load %arg19[%c0_238, %c0_239] : memref<8x128xf32, #tpu.memory_space<vmem>>, vector<8x128xf32>
    %448 = vector.extract_strided_slice %414 {offsets = [0, 0], sizes = [8, 128], strides = [1, 1]} : vector<8x512xf32> to vector<8x128xf32>
    %cst_240 = arith.constant 5.000000e-01 : f32
    %449 = vector.broadcast %cst_240 : f32 to vector<8x128xf32>
    %450 = arith.mulf %449, %448 : vector<8x128xf32>
    %451 = math.tanh %450 : vector<8x128xf32>
    %cst_241 = arith.constant 5.000000e-01 : f32
    %452 = vector.broadcast %cst_241 : f32 to vector<8x128xf32>
    %453 = arith.mulf %452, %451 : vector<8x128xf32>
    %cst_242 = arith.constant 5.000000e-01 : f32
    %454 = vector.broadcast %cst_242 : f32 to vector<8x128xf32>
    %455 = arith.addf %453, %454 : vector<8x128xf32>
    %456 = vector.extract_strided_slice %414 {offsets = [0, 128], sizes = [8, 128], strides = [1, 1]} : vector<8x512xf32> to vector<8x128xf32>
    %cst_243 = arith.constant 5.000000e-01 : f32
    %457 = vector.broadcast %cst_243 : f32 to vector<8x128xf32>
    %458 = arith.mulf %457, %456 : vector<8x128xf32>
    %459 = math.tanh %458 : vector<8x128xf32>
    %cst_244 = arith.constant 5.000000e-01 : f32
    %460 = vector.broadcast %cst_244 : f32 to vector<8x128xf32>
    %461 = arith.mulf %460, %459 : vector<8x128xf32>
    %cst_245 = arith.constant 5.000000e-01 : f32
    %462 = vector.broadcast %cst_245 : f32 to vector<8x128xf32>
    %463 = arith.addf %461, %462 : vector<8x128xf32>
    %464 = vector.extract_strided_slice %414 {offsets = [0, 256], sizes = [8, 128], strides = [1, 1]} : vector<8x512xf32> to vector<8x128xf32>
    %465 = math.tanh %464 : vector<8x128xf32>
    %466 = vector.extract_strided_slice %414 {offsets = [0, 384], sizes = [8, 128], strides = [1, 1]} : vector<8x512xf32> to vector<8x128xf32>
    %cst_246 = arith.constant 5.000000e-01 : f32
    %467 = vector.broadcast %cst_246 : f32 to vector<8x128xf32>
    %468 = arith.mulf %467, %466 : vector<8x128xf32>
    %469 = math.tanh %468 : vector<8x128xf32>
    %cst_247 = arith.constant 5.000000e-01 : f32
    %470 = vector.broadcast %cst_247 : f32 to vector<8x128xf32>
    %471 = arith.mulf %470, %469 : vector<8x128xf32>
    %cst_248 = arith.constant 5.000000e-01 : f32
    %472 = vector.broadcast %cst_248 : f32 to vector<8x128xf32>
    %473 = arith.addf %471, %472 : vector<8x128xf32>
    %474 = arith.mulf %463, %447 : vector<8x128xf32>
    %475 = arith.mulf %455, %465 : vector<8x128xf32>
    %476 = arith.addf %474, %475 : vector<8x128xf32>
    %477 = math.tanh %476 : vector<8x128xf32>
    %478 = arith.mulf %473, %477 : vector<8x128xf32>
    %c0_249 = arith.constant 0 : index
    %c0_250 = arith.constant 0 : index
    %479 = vector.load %arg16[%c0_249, %c0_250] : memref<8x128xf32, #tpu.memory_space<vmem>>, vector<8x128xf32>
    tpu.vector_store %arg16[%c0_249, %c0_250], %446 {strides = array<i32>} : memref<8x128xf32, #tpu.memory_space<vmem>>, vector<8x128xf32>,
    %c0_251 = arith.constant 0 : index
    %c0_252 = arith.constant 0 : index
    %480 = vector.load %arg17[%c0_251, %c0_252] : memref<8x128xf32, #tpu.memory_space<vmem>>, vector<8x128xf32>
    tpu.vector_store %arg17[%c0_251, %c0_252], %444 {strides = array<i32>} : memref<8x128xf32, #tpu.memory_space<vmem>>, vector<8x128xf32>,
    %c0_253 = arith.constant 0 : index
    %c0_254 = arith.constant 0 : index
    %481 = vector.load %arg18[%c0_253, %c0_254] : memref<8x128xf32, #tpu.memory_space<vmem>>, vector<8x128xf32>
    tpu.vector_store %arg18[%c0_253, %c0_254], %478 {strides = array<i32>} : memref<8x128xf32, #tpu.memory_space<vmem>>, vector<8x128xf32>,
    %c0_255 = arith.constant 0 : index
    %c0_256 = arith.constant 0 : index
    %482 = vector.load %arg19[%c0_255, %c0_256] : memref<8x128xf32, #tpu.memory_space<vmem>>, vector<8x128xf32>
    tpu.vector_store %arg19[%c0_255, %c0_256], %476 {strides = array<i32>} : memref<8x128xf32, #tpu.memory_space<vmem>>, vector<8x128xf32>,
    %483 = arith.index_cast %c4_i32 : i32 to index
    %c0_257 = arith.constant 0 : index
    %c0_258 = arith.constant 0 : index
    %484 = vector.load %arg15[%483, %c0_257, %c0_258] : memref<8x8x256xf32, #tpu.memory_space<vmem>>, vector<1x8x128xf32>
    %485 = vector.shape_cast %484 : vector<1x8x128xf32> to vector<8x128xf32>
    %486 = vector.shape_cast %446 : vector<8x128xf32> to vector<1x8x128xf32>
    tpu.vector_store %arg15[%483, %c0_257, %c0_258], %486 {strides = array<i32>} : memref<8x8x256xf32, #tpu.memory_space<vmem>>, vector<1x8x128xf32>,
    %487 = arith.index_cast %396 : i32 to index
    %c0_259 = arith.constant 0 : index
    %c128_260 = arith.constant 128 : index
    %488 = vector.load %arg15[%487, %c0_259, %c128_260] : memref<8x8x256xf32, #tpu.memory_space<vmem>>, vector<1x8x128xf32>
    %489 = vector.shape_cast %488 : vector<1x8x128xf32> to vector<8x128xf32>
    %490 = vector.shape_cast %478 : vector<8x128xf32> to vector<1x8x128xf32>
    tpu.vector_store %arg15[%487, %c0_259, %c128_260], %490 {strides = array<i32>} : memref<8x8x256xf32, #tpu.memory_space<vmem>>, vector<1x8x128xf32>,
    %c5_i32 = arith.constant 5 : i32
    %c7_i32_261 = arith.constant 7 : i32
    %491 = arith.subi %c7_i32_261, %c5_i32 : i32
    %c8_i32_262 = arith.constant 8 : i32
    %492 = arith.muli %c5_i32, %c8_i32_262 : i32
    %493 = tpu.assume_multiple %492, 8 : i32
    %c8_i32_263 = arith.constant 8 : i32
    %494 = arith.muli %491, %c8_i32_263 : i32
    %495 = tpu.assume_multiple %494, 8 : i32
    %496 = arith.index_cast %493 : i32 to index
    %c0_264 = arith.constant 0 : index
    %497 = vector.load %arg14[%496, %c0_264] : memref<64x1024xf32, #tpu.memory_space<vmem>>, vector<8x512xf32>
    %c0_265 = arith.constant 0 : index
    %c0_266 = arith.constant 0 : index
    %498 = vector.load %arg16[%c0_265, %c0_266] : memref<8x128xf32, #tpu.memory_space<vmem>>, vector<8x128xf32>
    %499 = arith.truncf %498 : vector<8x128xf32> to vector<8x128xbf16>
    %c0_267 = arith.constant 0 : index
    %c0_268 = arith.constant 0 : index
    %500 = vector.load %arg2[%c0_267, %c0_268] : memref<128x512xbf16, #tpu.memory_space<vmem>>, vector<128x512xbf16>
    %cst_269 = arith.constant dense<0.000000e+00> : vector<8x512xf32>
    %501 = tpu.matmul %499, %500, %cst_269 {dimension_numbers = #tpu.dot_dimension_numbers<[1], [0], [0], [1], [0, 0, 1, 1], [], []>} : vector<8x128xbf16>, vector<128x512xbf16>, vector<8x512xf32> -> vector<8x512xf32>
    %502 = arith.addf %497, %501 : vector<8x512xf32>
    %503 = arith.index_cast %495 : i32 to index
    %c512_270 = arith.constant 512 : index
    %504 = vector.load %arg14[%503, %c512_270] : memref<64x1024xf32, #tpu.memory_space<vmem>>, vector<8x512xf32>
    %c0_271 = arith.constant 0 : index
    %c0_272 = arith.constant 0 : index
    %505 = vector.load %arg18[%c0_271, %c0_272] : memref<8x128xf32, #tpu.memory_space<vmem>>, vector<8x128xf32>
    %506 = arith.truncf %505 : vector<8x128xf32> to vector<8x128xbf16>
    %c0_273 = arith.constant 0 : index
    %c0_274 = arith.constant 0 : index
    %507 = vector.load %arg3[%c0_273, %c0_274] : memref<128x512xbf16, #tpu.memory_space<vmem>>, vector<128x512xbf16>
    %cst_275 = arith.constant dense<0.000000e+00> : vector<8x512xf32>
    %508 = tpu.matmul %506, %507, %cst_275 {dimension_numbers = #tpu.dot_dimension_numbers<[1], [0], [0], [1], [0, 0, 1, 1], [], []>} : vector<8x128xbf16>, vector<128x512xbf16>, vector<8x512xf32> -> vector<8x512xf32>
    %509 = arith.addf %504, %508 : vector<8x512xf32>
    %c0_276 = arith.constant 0 : index
    %c0_277 = arith.constant 0 : index
    %510 = vector.load %arg17[%c0_276, %c0_277] : memref<8x128xf32, #tpu.memory_space<vmem>>, vector<8x128xf32>
    %511 = vector.extract_strided_slice %502 {offsets = [0, 0], sizes = [8, 128], strides = [1, 1]} : vector<8x512xf32> to vector<8x128xf32>
    %cst_278 = arith.constant 5.000000e-01 : f32
    %512 = vector.broadcast %cst_278 : f32 to vector<8x128xf32>
    %513 = arith.mulf %512, %511 : vector<8x128xf32>
    %514 = math.tanh %513 : vector<8x128xf32>
    %cst_279 = arith.constant 5.000000e-01 : f32
    %515 = vector.broadcast %cst_279 : f32 to vector<8x128xf32>
    %516 = arith.mulf %515, %514 : vector<8x128xf32>
    %cst_280 = arith.constant 5.000000e-01 : f32
    %517 = vector.broadcast %cst_280 : f32 to vector<8x128xf32>
    %518 = arith.addf %516, %517 : vector<8x128xf32>
    %519 = vector.extract_strided_slice %502 {offsets = [0, 128], sizes = [8, 128], strides = [1, 1]} : vector<8x512xf32> to vector<8x128xf32>
    %cst_281 = arith.constant 5.000000e-01 : f32
    %520 = vector.broadcast %cst_281 : f32 to vector<8x128xf32>
    %521 = arith.mulf %520, %519 : vector<8x128xf32>
    %522 = math.tanh %521 : vector<8x128xf32>
    %cst_282 = arith.constant 5.000000e-01 : f32
    %523 = vector.broadcast %cst_282 : f32 to vector<8x128xf32>
    %524 = arith.mulf %523, %522 : vector<8x128xf32>
    %cst_283 = arith.constant 5.000000e-01 : f32
    %525 = vector.broadcast %cst_283 : f32 to vector<8x128xf32>
    %526 = arith.addf %524, %525 : vector<8x128xf32>
    %527 = vector.extract_strided_slice %502 {offsets = [0, 256], sizes = [8, 128], strides = [1, 1]} : vector<8x512xf32> to vector<8x128xf32>
    %528 = math.tanh %527 : vector<8x128xf32>
    %529 = vector.extract_strided_slice %502 {offsets = [0, 384], sizes = [8, 128], strides = [1, 1]} : vector<8x512xf32> to vector<8x128xf32>
    %cst_284 = arith.constant 5.000000e-01 : f32
    %530 = vector.broadcast %cst_284 : f32 to vector<8x128xf32>
    %531 = arith.mulf %530, %529 : vector<8x128xf32>
    %532 = math.tanh %531 : vector<8x128xf32>
    %cst_285 = arith.constant 5.000000e-01 : f32
    %533 = vector.broadcast %cst_285 : f32 to vector<8x128xf32>
    %534 = arith.mulf %533, %532 : vector<8x128xf32>
    %cst_286 = arith.constant 5.000000e-01 : f32
    %535 = vector.broadcast %cst_286 : f32 to vector<8x128xf32>
    %536 = arith.addf %534, %535 : vector<8x128xf32>
    %537 = arith.mulf %526, %510 : vector<8x128xf32>
    %538 = arith.mulf %518, %528 : vector<8x128xf32>
    %539 = arith.addf %537, %538 : vector<8x128xf32>
    %540 = math.tanh %539 : vector<8x128xf32>
    %541 = arith.mulf %536, %540 : vector<8x128xf32>
    %c0_287 = arith.constant 0 : index
    %c0_288 = arith.constant 0 : index
    %542 = vector.load %arg19[%c0_287, %c0_288] : memref<8x128xf32, #tpu.memory_space<vmem>>, vector<8x128xf32>
    %543 = vector.extract_strided_slice %509 {offsets = [0, 0], sizes = [8, 128], strides = [1, 1]} : vector<8x512xf32> to vector<8x128xf32>
    %cst_289 = arith.constant 5.000000e-01 : f32
    %544 = vector.broadcast %cst_289 : f32 to vector<8x128xf32>
    %545 = arith.mulf %544, %543 : vector<8x128xf32>
    %546 = math.tanh %545 : vector<8x128xf32>
    %cst_290 = arith.constant 5.000000e-01 : f32
    %547 = vector.broadcast %cst_290 : f32 to vector<8x128xf32>
    %548 = arith.mulf %547, %546 : vector<8x128xf32>
    %cst_291 = arith.constant 5.000000e-01 : f32
    %549 = vector.broadcast %cst_291 : f32 to vector<8x128xf32>
    %550 = arith.addf %548, %549 : vector<8x128xf32>
    %551 = vector.extract_strided_slice %509 {offsets = [0, 128], sizes = [8, 128], strides = [1, 1]} : vector<8x512xf32> to vector<8x128xf32>
    %cst_292 = arith.constant 5.000000e-01 : f32
    %552 = vector.broadcast %cst_292 : f32 to vector<8x128xf32>
    %553 = arith.mulf %552, %551 : vector<8x128xf32>
    %554 = math.tanh %553 : vector<8x128xf32>
    %cst_293 = arith.constant 5.000000e-01 : f32
    %555 = vector.broadcast %cst_293 : f32 to vector<8x128xf32>
    %556 = arith.mulf %555, %554 : vector<8x128xf32>
    %cst_294 = arith.constant 5.000000e-01 : f32
    %557 = vector.broadcast %cst_294 : f32 to vector<8x128xf32>
    %558 = arith.addf %556, %557 : vector<8x128xf32>
    %559 = vector.extract_strided_slice %509 {offsets = [0, 256], sizes = [8, 128], strides = [1, 1]} : vector<8x512xf32> to vector<8x128xf32>
    %560 = math.tanh %559 : vector<8x128xf32>
    %561 = vector.extract_strided_slice %509 {offsets = [0, 384], sizes = [8, 128], strides = [1, 1]} : vector<8x512xf32> to vector<8x128xf32>
    %cst_295 = arith.constant 5.000000e-01 : f32
    %562 = vector.broadcast %cst_295 : f32 to vector<8x128xf32>
    %563 = arith.mulf %562, %561 : vector<8x128xf32>
    %564 = math.tanh %563 : vector<8x128xf32>
    %cst_296 = arith.constant 5.000000e-01 : f32
    %565 = vector.broadcast %cst_296 : f32 to vector<8x128xf32>
    %566 = arith.mulf %565, %564 : vector<8x128xf32>
    %cst_297 = arith.constant 5.000000e-01 : f32
    %567 = vector.broadcast %cst_297 : f32 to vector<8x128xf32>
    %568 = arith.addf %566, %567 : vector<8x128xf32>
    %569 = arith.mulf %558, %542 : vector<8x128xf32>
    %570 = arith.mulf %550, %560 : vector<8x128xf32>
    %571 = arith.addf %569, %570 : vector<8x128xf32>
    %572 = math.tanh %571 : vector<8x128xf32>
    %573 = arith.mulf %568, %572 : vector<8x128xf32>
    %c0_298 = arith.constant 0 : index
    %c0_299 = arith.constant 0 : index
    %574 = vector.load %arg16[%c0_298, %c0_299] : memref<8x128xf32, #tpu.memory_space<vmem>>, vector<8x128xf32>
    tpu.vector_store %arg16[%c0_298, %c0_299], %541 {strides = array<i32>} : memref<8x128xf32, #tpu.memory_space<vmem>>, vector<8x128xf32>,
    %c0_300 = arith.constant 0 : index
    %c0_301 = arith.constant 0 : index
    %575 = vector.load %arg17[%c0_300, %c0_301] : memref<8x128xf32, #tpu.memory_space<vmem>>, vector<8x128xf32>
    tpu.vector_store %arg17[%c0_300, %c0_301], %539 {strides = array<i32>} : memref<8x128xf32, #tpu.memory_space<vmem>>, vector<8x128xf32>,
    %c0_302 = arith.constant 0 : index
    %c0_303 = arith.constant 0 : index
    %576 = vector.load %arg18[%c0_302, %c0_303] : memref<8x128xf32, #tpu.memory_space<vmem>>, vector<8x128xf32>
    tpu.vector_store %arg18[%c0_302, %c0_303], %573 {strides = array<i32>} : memref<8x128xf32, #tpu.memory_space<vmem>>, vector<8x128xf32>,
    %c0_304 = arith.constant 0 : index
    %c0_305 = arith.constant 0 : index
    %577 = vector.load %arg19[%c0_304, %c0_305] : memref<8x128xf32, #tpu.memory_space<vmem>>, vector<8x128xf32>
    tpu.vector_store %arg19[%c0_304, %c0_305], %571 {strides = array<i32>} : memref<8x128xf32, #tpu.memory_space<vmem>>, vector<8x128xf32>,
    %578 = arith.index_cast %c5_i32 : i32 to index
    %c0_306 = arith.constant 0 : index
    %c0_307 = arith.constant 0 : index
    %579 = vector.load %arg15[%578, %c0_306, %c0_307] : memref<8x8x256xf32, #tpu.memory_space<vmem>>, vector<1x8x128xf32>
    %580 = vector.shape_cast %579 : vector<1x8x128xf32> to vector<8x128xf32>
    %581 = vector.shape_cast %541 : vector<8x128xf32> to vector<1x8x128xf32>
    tpu.vector_store %arg15[%578, %c0_306, %c0_307], %581 {strides = array<i32>} : memref<8x8x256xf32, #tpu.memory_space<vmem>>, vector<1x8x128xf32>,
    %582 = arith.index_cast %491 : i32 to index
    %c0_308 = arith.constant 0 : index
    %c128_309 = arith.constant 128 : index
    %583 = vector.load %arg15[%582, %c0_308, %c128_309] : memref<8x8x256xf32, #tpu.memory_space<vmem>>, vector<1x8x128xf32>
    %584 = vector.shape_cast %583 : vector<1x8x128xf32> to vector<8x128xf32>
    %585 = vector.shape_cast %573 : vector<8x128xf32> to vector<1x8x128xf32>
    tpu.vector_store %arg15[%582, %c0_308, %c128_309], %585 {strides = array<i32>} : memref<8x8x256xf32, #tpu.memory_space<vmem>>, vector<1x8x128xf32>,
    %c6_i32 = arith.constant 6 : i32
    %c7_i32_310 = arith.constant 7 : i32
    %586 = arith.subi %c7_i32_310, %c6_i32 : i32
    %c8_i32_311 = arith.constant 8 : i32
    %587 = arith.muli %c6_i32, %c8_i32_311 : i32
    %588 = tpu.assume_multiple %587, 8 : i32
    %c8_i32_312 = arith.constant 8 : i32
    %589 = arith.muli %586, %c8_i32_312 : i32
    %590 = tpu.assume_multiple %589, 8 : i32
    %591 = arith.index_cast %588 : i32 to index
    %c0_313 = arith.constant 0 : index
    %592 = vector.load %arg14[%591, %c0_313] : memref<64x1024xf32, #tpu.memory_space<vmem>>, vector<8x512xf32>
    %c0_314 = arith.constant 0 : index
    %c0_315 = arith.constant 0 : index
    %593 = vector.load %arg16[%c0_314, %c0_315] : memref<8x128xf32, #tpu.memory_space<vmem>>, vector<8x128xf32>
    %594 = arith.truncf %593 : vector<8x128xf32> to vector<8x128xbf16>
    %c0_316 = arith.constant 0 : index
    %c0_317 = arith.constant 0 : index
    %595 = vector.load %arg2[%c0_316, %c0_317] : memref<128x512xbf16, #tpu.memory_space<vmem>>, vector<128x512xbf16>
    %cst_318 = arith.constant dense<0.000000e+00> : vector<8x512xf32>
    %596 = tpu.matmul %594, %595, %cst_318 {dimension_numbers = #tpu.dot_dimension_numbers<[1], [0], [0], [1], [0, 0, 1, 1], [], []>} : vector<8x128xbf16>, vector<128x512xbf16>, vector<8x512xf32> -> vector<8x512xf32>
    %597 = arith.addf %592, %596 : vector<8x512xf32>
    %598 = arith.index_cast %590 : i32 to index
    %c512_319 = arith.constant 512 : index
    %599 = vector.load %arg14[%598, %c512_319] : memref<64x1024xf32, #tpu.memory_space<vmem>>, vector<8x512xf32>
    %c0_320 = arith.constant 0 : index
    %c0_321 = arith.constant 0 : index
    %600 = vector.load %arg18[%c0_320, %c0_321] : memref<8x128xf32, #tpu.memory_space<vmem>>, vector<8x128xf32>
    %601 = arith.truncf %600 : vector<8x128xf32> to vector<8x128xbf16>
    %c0_322 = arith.constant 0 : index
    %c0_323 = arith.constant 0 : index
    %602 = vector.load %arg3[%c0_322, %c0_323] : memref<128x512xbf16, #tpu.memory_space<vmem>>, vector<128x512xbf16>
    %cst_324 = arith.constant dense<0.000000e+00> : vector<8x512xf32>
    %603 = tpu.matmul %601, %602, %cst_324 {dimension_numbers = #tpu.dot_dimension_numbers<[1], [0], [0], [1], [0, 0, 1, 1], [], []>} : vector<8x128xbf16>, vector<128x512xbf16>, vector<8x512xf32> -> vector<8x512xf32>
    %604 = arith.addf %599, %603 : vector<8x512xf32>
    %c0_325 = arith.constant 0 : index
    %c0_326 = arith.constant 0 : index
    %605 = vector.load %arg17[%c0_325, %c0_326] : memref<8x128xf32, #tpu.memory_space<vmem>>, vector<8x128xf32>
    %606 = vector.extract_strided_slice %597 {offsets = [0, 0], sizes = [8, 128], strides = [1, 1]} : vector<8x512xf32> to vector<8x128xf32>
    %cst_327 = arith.constant 5.000000e-01 : f32
    %607 = vector.broadcast %cst_327 : f32 to vector<8x128xf32>
    %608 = arith.mulf %607, %606 : vector<8x128xf32>
    %609 = math.tanh %608 : vector<8x128xf32>
    %cst_328 = arith.constant 5.000000e-01 : f32
    %610 = vector.broadcast %cst_328 : f32 to vector<8x128xf32>
    %611 = arith.mulf %610, %609 : vector<8x128xf32>
    %cst_329 = arith.constant 5.000000e-01 : f32
    %612 = vector.broadcast %cst_329 : f32 to vector<8x128xf32>
    %613 = arith.addf %611, %612 : vector<8x128xf32>
    %614 = vector.extract_strided_slice %597 {offsets = [0, 128], sizes = [8, 128], strides = [1, 1]} : vector<8x512xf32> to vector<8x128xf32>
    %cst_330 = arith.constant 5.000000e-01 : f32
    %615 = vector.broadcast %cst_330 : f32 to vector<8x128xf32>
    %616 = arith.mulf %615, %614 : vector<8x128xf32>
    %617 = math.tanh %616 : vector<8x128xf32>
    %cst_331 = arith.constant 5.000000e-01 : f32
    %618 = vector.broadcast %cst_331 : f32 to vector<8x128xf32>
    %619 = arith.mulf %618, %617 : vector<8x128xf32>
    %cst_332 = arith.constant 5.000000e-01 : f32
    %620 = vector.broadcast %cst_332 : f32 to vector<8x128xf32>
    %621 = arith.addf %619, %620 : vector<8x128xf32>
    %622 = vector.extract_strided_slice %597 {offsets = [0, 256], sizes = [8, 128], strides = [1, 1]} : vector<8x512xf32> to vector<8x128xf32>
    %623 = math.tanh %622 : vector<8x128xf32>
    %624 = vector.extract_strided_slice %597 {offsets = [0, 384], sizes = [8, 128], strides = [1, 1]} : vector<8x512xf32> to vector<8x128xf32>
    %cst_333 = arith.constant 5.000000e-01 : f32
    %625 = vector.broadcast %cst_333 : f32 to vector<8x128xf32>
    %626 = arith.mulf %625, %624 : vector<8x128xf32>
    %627 = math.tanh %626 : vector<8x128xf32>
    %cst_334 = arith.constant 5.000000e-01 : f32
    %628 = vector.broadcast %cst_334 : f32 to vector<8x128xf32>
    %629 = arith.mulf %628, %627 : vector<8x128xf32>
    %cst_335 = arith.constant 5.000000e-01 : f32
    %630 = vector.broadcast %cst_335 : f32 to vector<8x128xf32>
    %631 = arith.addf %629, %630 : vector<8x128xf32>
    %632 = arith.mulf %621, %605 : vector<8x128xf32>
    %633 = arith.mulf %613, %623 : vector<8x128xf32>
    %634 = arith.addf %632, %633 : vector<8x128xf32>
    %635 = math.tanh %634 : vector<8x128xf32>
    %636 = arith.mulf %631, %635 : vector<8x128xf32>
    %c0_336 = arith.constant 0 : index
    %c0_337 = arith.constant 0 : index
    %637 = vector.load %arg19[%c0_336, %c0_337] : memref<8x128xf32, #tpu.memory_space<vmem>>, vector<8x128xf32>
    %638 = vector.extract_strided_slice %604 {offsets = [0, 0], sizes = [8, 128], strides = [1, 1]} : vector<8x512xf32> to vector<8x128xf32>
    %cst_338 = arith.constant 5.000000e-01 : f32
    %639 = vector.broadcast %cst_338 : f32 to vector<8x128xf32>
    %640 = arith.mulf %639, %638 : vector<8x128xf32>
    %641 = math.tanh %640 : vector<8x128xf32>
    %cst_339 = arith.constant 5.000000e-01 : f32
    %642 = vector.broadcast %cst_339 : f32 to vector<8x128xf32>
    %643 = arith.mulf %642, %641 : vector<8x128xf32>
    %cst_340 = arith.constant 5.000000e-01 : f32
    %644 = vector.broadcast %cst_340 : f32 to vector<8x128xf32>
    %645 = arith.addf %643, %644 : vector<8x128xf32>
    %646 = vector.extract_strided_slice %604 {offsets = [0, 128], sizes = [8, 128], strides = [1, 1]} : vector<8x512xf32> to vector<8x128xf32>
    %cst_341 = arith.constant 5.000000e-01 : f32
    %647 = vector.broadcast %cst_341 : f32 to vector<8x128xf32>
    %648 = arith.mulf %647, %646 : vector<8x128xf32>
    %649 = math.tanh %648 : vector<8x128xf32>
    %cst_342 = arith.constant 5.000000e-01 : f32
    %650 = vector.broadcast %cst_342 : f32 to vector<8x128xf32>
    %651 = arith.mulf %650, %649 : vector<8x128xf32>
    %cst_343 = arith.constant 5.000000e-01 : f32
    %652 = vector.broadcast %cst_343 : f32 to vector<8x128xf32>
    %653 = arith.addf %651, %652 : vector<8x128xf32>
    %654 = vector.extract_strided_slice %604 {offsets = [0, 256], sizes = [8, 128], strides = [1, 1]} : vector<8x512xf32> to vector<8x128xf32>
    %655 = math.tanh %654 : vector<8x128xf32>
    %656 = vector.extract_strided_slice %604 {offsets = [0, 384], sizes = [8, 128], strides = [1, 1]} : vector<8x512xf32> to vector<8x128xf32>
    %cst_344 = arith.constant 5.000000e-01 : f32
    %657 = vector.broadcast %cst_344 : f32 to vector<8x128xf32>
    %658 = arith.mulf %657, %656 : vector<8x128xf32>
    %659 = math.tanh %658 : vector<8x128xf32>
    %cst_345 = arith.constant 5.000000e-01 : f32
    %660 = vector.broadcast %cst_345 : f32 to vector<8x128xf32>
    %661 = arith.mulf %660, %659 : vector<8x128xf32>
    %cst_346 = arith.constant 5.000000e-01 : f32
    %662 = vector.broadcast %cst_346 : f32 to vector<8x128xf32>
    %663 = arith.addf %661, %662 : vector<8x128xf32>
    %664 = arith.mulf %653, %637 : vector<8x128xf32>
    %665 = arith.mulf %645, %655 : vector<8x128xf32>
    %666 = arith.addf %664, %665 : vector<8x128xf32>
    %667 = math.tanh %666 : vector<8x128xf32>
    %668 = arith.mulf %663, %667 : vector<8x128xf32>
    %c0_347 = arith.constant 0 : index
    %c0_348 = arith.constant 0 : index
    %669 = vector.load %arg16[%c0_347, %c0_348] : memref<8x128xf32, #tpu.memory_space<vmem>>, vector<8x128xf32>
    tpu.vector_store %arg16[%c0_347, %c0_348], %636 {strides = array<i32>} : memref<8x128xf32, #tpu.memory_space<vmem>>, vector<8x128xf32>,
    %c0_349 = arith.constant 0 : index
    %c0_350 = arith.constant 0 : index
    %670 = vector.load %arg17[%c0_349, %c0_350] : memref<8x128xf32, #tpu.memory_space<vmem>>, vector<8x128xf32>
    tpu.vector_store %arg17[%c0_349, %c0_350], %634 {strides = array<i32>} : memref<8x128xf32, #tpu.memory_space<vmem>>, vector<8x128xf32>,
    %c0_351 = arith.constant 0 : index
    %c0_352 = arith.constant 0 : index
    %671 = vector.load %arg18[%c0_351, %c0_352] : memref<8x128xf32, #tpu.memory_space<vmem>>, vector<8x128xf32>
    tpu.vector_store %arg18[%c0_351, %c0_352], %668 {strides = array<i32>} : memref<8x128xf32, #tpu.memory_space<vmem>>, vector<8x128xf32>,
    %c0_353 = arith.constant 0 : index
    %c0_354 = arith.constant 0 : index
    %672 = vector.load %arg19[%c0_353, %c0_354] : memref<8x128xf32, #tpu.memory_space<vmem>>, vector<8x128xf32>
    tpu.vector_store %arg19[%c0_353, %c0_354], %666 {strides = array<i32>} : memref<8x128xf32, #tpu.memory_space<vmem>>, vector<8x128xf32>,
    %673 = arith.index_cast %c6_i32 : i32 to index
    %c0_355 = arith.constant 0 : index
    %c0_356 = arith.constant 0 : index
    %674 = vector.load %arg15[%673, %c0_355, %c0_356] : memref<8x8x256xf32, #tpu.memory_space<vmem>>, vector<1x8x128xf32>
    %675 = vector.shape_cast %674 : vector<1x8x128xf32> to vector<8x128xf32>
    %676 = vector.shape_cast %636 : vector<8x128xf32> to vector<1x8x128xf32>
    tpu.vector_store %arg15[%673, %c0_355, %c0_356], %676 {strides = array<i32>} : memref<8x8x256xf32, #tpu.memory_space<vmem>>, vector<1x8x128xf32>,
    %677 = arith.index_cast %586 : i32 to index
    %c0_357 = arith.constant 0 : index
    %c128_358 = arith.constant 128 : index
    %678 = vector.load %arg15[%677, %c0_357, %c128_358] : memref<8x8x256xf32, #tpu.memory_space<vmem>>, vector<1x8x128xf32>
    %679 = vector.shape_cast %678 : vector<1x8x128xf32> to vector<8x128xf32>
    %680 = vector.shape_cast %668 : vector<8x128xf32> to vector<1x8x128xf32>
    tpu.vector_store %arg15[%677, %c0_357, %c128_358], %680 {strides = array<i32>} : memref<8x8x256xf32, #tpu.memory_space<vmem>>, vector<1x8x128xf32>,
    %c7_i32_359 = arith.constant 7 : i32
    %c7_i32_360 = arith.constant 7 : i32
    %681 = arith.subi %c7_i32_360, %c7_i32_359 : i32
    %c8_i32_361 = arith.constant 8 : i32
    %682 = arith.muli %c7_i32_359, %c8_i32_361 : i32
    %683 = tpu.assume_multiple %682, 8 : i32
    %c8_i32_362 = arith.constant 8 : i32
    %684 = arith.muli %681, %c8_i32_362 : i32
    %685 = tpu.assume_multiple %684, 8 : i32
    %686 = arith.index_cast %683 : i32 to index
    %c0_363 = arith.constant 0 : index
    %687 = vector.load %arg14[%686, %c0_363] : memref<64x1024xf32, #tpu.memory_space<vmem>>, vector<8x512xf32>
    %c0_364 = arith.constant 0 : index
    %c0_365 = arith.constant 0 : index
    %688 = vector.load %arg16[%c0_364, %c0_365] : memref<8x128xf32, #tpu.memory_space<vmem>>, vector<8x128xf32>
    %689 = arith.truncf %688 : vector<8x128xf32> to vector<8x128xbf16>
    %c0_366 = arith.constant 0 : index
    %c0_367 = arith.constant 0 : index
    %690 = vector.load %arg2[%c0_366, %c0_367] : memref<128x512xbf16, #tpu.memory_space<vmem>>, vector<128x512xbf16>
    %cst_368 = arith.constant dense<0.000000e+00> : vector<8x512xf32>
    %691 = tpu.matmul %689, %690, %cst_368 {dimension_numbers = #tpu.dot_dimension_numbers<[1], [0], [0], [1], [0, 0, 1, 1], [], []>} : vector<8x128xbf16>, vector<128x512xbf16>, vector<8x512xf32> -> vector<8x512xf32>
    %692 = arith.addf %687, %691 : vector<8x512xf32>
    %693 = arith.index_cast %685 : i32 to index
    %c512_369 = arith.constant 512 : index
    %694 = vector.load %arg14[%693, %c512_369] : memref<64x1024xf32, #tpu.memory_space<vmem>>, vector<8x512xf32>
    %c0_370 = arith.constant 0 : index
    %c0_371 = arith.constant 0 : index
    %695 = vector.load %arg18[%c0_370, %c0_371] : memref<8x128xf32, #tpu.memory_space<vmem>>, vector<8x128xf32>
    %696 = arith.truncf %695 : vector<8x128xf32> to vector<8x128xbf16>
    %c0_372 = arith.constant 0 : index
    %c0_373 = arith.constant 0 : index
    %697 = vector.load %arg3[%c0_372, %c0_373] : memref<128x512xbf16, #tpu.memory_space<vmem>>, vector<128x512xbf16>
    %cst_374 = arith.constant dense<0.000000e+00> : vector<8x512xf32>
    %698 = tpu.matmul %696, %697, %cst_374 {dimension_numbers = #tpu.dot_dimension_numbers<[1], [0], [0], [1], [0, 0, 1, 1], [], []>} : vector<8x128xbf16>, vector<128x512xbf16>, vector<8x512xf32> -> vector<8x512xf32>
    %699 = arith.addf %694, %698 : vector<8x512xf32>
    %c0_375 = arith.constant 0 : index
    %c0_376 = arith.constant 0 : index
    %700 = vector.load %arg17[%c0_375, %c0_376] : memref<8x128xf32, #tpu.memory_space<vmem>>, vector<8x128xf32>
    %701 = vector.extract_strided_slice %692 {offsets = [0, 0], sizes = [8, 128], strides = [1, 1]} : vector<8x512xf32> to vector<8x128xf32>
    %cst_377 = arith.constant 5.000000e-01 : f32
    %702 = vector.broadcast %cst_377 : f32 to vector<8x128xf32>
    %703 = arith.mulf %702, %701 : vector<8x128xf32>
    %704 = math.tanh %703 : vector<8x128xf32>
    %cst_378 = arith.constant 5.000000e-01 : f32
    %705 = vector.broadcast %cst_378 : f32 to vector<8x128xf32>
    %706 = arith.mulf %705, %704 : vector<8x128xf32>
    %cst_379 = arith.constant 5.000000e-01 : f32
    %707 = vector.broadcast %cst_379 : f32 to vector<8x128xf32>
    %708 = arith.addf %706, %707 : vector<8x128xf32>
    %709 = vector.extract_strided_slice %692 {offsets = [0, 128], sizes = [8, 128], strides = [1, 1]} : vector<8x512xf32> to vector<8x128xf32>
    %cst_380 = arith.constant 5.000000e-01 : f32
    %710 = vector.broadcast %cst_380 : f32 to vector<8x128xf32>
    %711 = arith.mulf %710, %709 : vector<8x128xf32>
    %712 = math.tanh %711 : vector<8x128xf32>
    %cst_381 = arith.constant 5.000000e-01 : f32
    %713 = vector.broadcast %cst_381 : f32 to vector<8x128xf32>
    %714 = arith.mulf %713, %712 : vector<8x128xf32>
    %cst_382 = arith.constant 5.000000e-01 : f32
    %715 = vector.broadcast %cst_382 : f32 to vector<8x128xf32>
    %716 = arith.addf %714, %715 : vector<8x128xf32>
    %717 = vector.extract_strided_slice %692 {offsets = [0, 256], sizes = [8, 128], strides = [1, 1]} : vector<8x512xf32> to vector<8x128xf32>
    %718 = math.tanh %717 : vector<8x128xf32>
    %719 = vector.extract_strided_slice %692 {offsets = [0, 384], sizes = [8, 128], strides = [1, 1]} : vector<8x512xf32> to vector<8x128xf32>
    %cst_383 = arith.constant 5.000000e-01 : f32
    %720 = vector.broadcast %cst_383 : f32 to vector<8x128xf32>
    %721 = arith.mulf %720, %719 : vector<8x128xf32>
    %722 = math.tanh %721 : vector<8x128xf32>
    %cst_384 = arith.constant 5.000000e-01 : f32
    %723 = vector.broadcast %cst_384 : f32 to vector<8x128xf32>
    %724 = arith.mulf %723, %722 : vector<8x128xf32>
    %cst_385 = arith.constant 5.000000e-01 : f32
    %725 = vector.broadcast %cst_385 : f32 to vector<8x128xf32>
    %726 = arith.addf %724, %725 : vector<8x128xf32>
    %727 = arith.mulf %716, %700 : vector<8x128xf32>
    %728 = arith.mulf %708, %718 : vector<8x128xf32>
    %729 = arith.addf %727, %728 : vector<8x128xf32>
    %730 = math.tanh %729 : vector<8x128xf32>
    %731 = arith.mulf %726, %730 : vector<8x128xf32>
    %c0_386 = arith.constant 0 : index
    %c0_387 = arith.constant 0 : index
    %732 = vector.load %arg19[%c0_386, %c0_387] : memref<8x128xf32, #tpu.memory_space<vmem>>, vector<8x128xf32>
    %733 = vector.extract_strided_slice %699 {offsets = [0, 0], sizes = [8, 128], strides = [1, 1]} : vector<8x512xf32> to vector<8x128xf32>
    %cst_388 = arith.constant 5.000000e-01 : f32
    %734 = vector.broadcast %cst_388 : f32 to vector<8x128xf32>
    %735 = arith.mulf %734, %733 : vector<8x128xf32>
    %736 = math.tanh %735 : vector<8x128xf32>
    %cst_389 = arith.constant 5.000000e-01 : f32
    %737 = vector.broadcast %cst_389 : f32 to vector<8x128xf32>
    %738 = arith.mulf %737, %736 : vector<8x128xf32>
    %cst_390 = arith.constant 5.000000e-01 : f32
    %739 = vector.broadcast %cst_390 : f32 to vector<8x128xf32>
    %740 = arith.addf %738, %739 : vector<8x128xf32>
    %741 = vector.extract_strided_slice %699 {offsets = [0, 128], sizes = [8, 128], strides = [1, 1]} : vector<8x512xf32> to vector<8x128xf32>
    %cst_391 = arith.constant 5.000000e-01 : f32
    %742 = vector.broadcast %cst_391 : f32 to vector<8x128xf32>
    %743 = arith.mulf %742, %741 : vector<8x128xf32>
    %744 = math.tanh %743 : vector<8x128xf32>
    %cst_392 = arith.constant 5.000000e-01 : f32
    %745 = vector.broadcast %cst_392 : f32 to vector<8x128xf32>
    %746 = arith.mulf %745, %744 : vector<8x128xf32>
    %cst_393 = arith.constant 5.000000e-01 : f32
    %747 = vector.broadcast %cst_393 : f32 to vector<8x128xf32>
    %748 = arith.addf %746, %747 : vector<8x128xf32>
    %749 = vector.extract_strided_slice %699 {offsets = [0, 256], sizes = [8, 128], strides = [1, 1]} : vector<8x512xf32> to vector<8x128xf32>
    %750 = math.tanh %749 : vector<8x128xf32>
    %751 = vector.extract_strided_slice %699 {offsets = [0, 384], sizes = [8, 128], strides = [1, 1]} : vector<8x512xf32> to vector<8x128xf32>
    %cst_394 = arith.constant 5.000000e-01 : f32
    %752 = vector.broadcast %cst_394 : f32 to vector<8x128xf32>
    %753 = arith.mulf %752, %751 : vector<8x128xf32>
    %754 = math.tanh %753 : vector<8x128xf32>
    %cst_395 = arith.constant 5.000000e-01 : f32
    %755 = vector.broadcast %cst_395 : f32 to vector<8x128xf32>
    %756 = arith.mulf %755, %754 : vector<8x128xf32>
    %cst_396 = arith.constant 5.000000e-01 : f32
    %757 = vector.broadcast %cst_396 : f32 to vector<8x128xf32>
    %758 = arith.addf %756, %757 : vector<8x128xf32>
    %759 = arith.mulf %748, %732 : vector<8x128xf32>
    %760 = arith.mulf %740, %750 : vector<8x128xf32>
    %761 = arith.addf %759, %760 : vector<8x128xf32>
    %762 = math.tanh %761 : vector<8x128xf32>
    %763 = arith.mulf %758, %762 : vector<8x128xf32>
    %c0_397 = arith.constant 0 : index
    %c0_398 = arith.constant 0 : index
    %764 = vector.load %arg16[%c0_397, %c0_398] : memref<8x128xf32, #tpu.memory_space<vmem>>, vector<8x128xf32>
    tpu.vector_store %arg16[%c0_397, %c0_398], %731 {strides = array<i32>} : memref<8x128xf32, #tpu.memory_space<vmem>>, vector<8x128xf32>,
    %c0_399 = arith.constant 0 : index
    %c0_400 = arith.constant 0 : index
    %765 = vector.load %arg17[%c0_399, %c0_400] : memref<8x128xf32, #tpu.memory_space<vmem>>, vector<8x128xf32>
    tpu.vector_store %arg17[%c0_399, %c0_400], %729 {strides = array<i32>} : memref<8x128xf32, #tpu.memory_space<vmem>>, vector<8x128xf32>,
    %c0_401 = arith.constant 0 : index
    %c0_402 = arith.constant 0 : index
    %766 = vector.load %arg18[%c0_401, %c0_402] : memref<8x128xf32, #tpu.memory_space<vmem>>, vector<8x128xf32>
    tpu.vector_store %arg18[%c0_401, %c0_402], %763 {strides = array<i32>} : memref<8x128xf32, #tpu.memory_space<vmem>>, vector<8x128xf32>,
    %c0_403 = arith.constant 0 : index
    %c0_404 = arith.constant 0 : index
    %767 = vector.load %arg19[%c0_403, %c0_404] : memref<8x128xf32, #tpu.memory_space<vmem>>, vector<8x128xf32>
    tpu.vector_store %arg19[%c0_403, %c0_404], %761 {strides = array<i32>} : memref<8x128xf32, #tpu.memory_space<vmem>>, vector<8x128xf32>,
    %768 = arith.index_cast %c7_i32_359 : i32 to index
    %c0_405 = arith.constant 0 : index
    %c0_406 = arith.constant 0 : index
    %769 = vector.load %arg15[%768, %c0_405, %c0_406] : memref<8x8x256xf32, #tpu.memory_space<vmem>>, vector<1x8x128xf32>
    %770 = vector.shape_cast %769 : vector<1x8x128xf32> to vector<8x128xf32>
    %771 = vector.shape_cast %731 : vector<8x128xf32> to vector<1x8x128xf32>
    tpu.vector_store %arg15[%768, %c0_405, %c0_406], %771 {strides = array<i32>} : memref<8x8x256xf32, #tpu.memory_space<vmem>>, vector<1x8x128xf32>,
    %772 = arith.index_cast %681 : i32 to index
    %c0_407 = arith.constant 0 : index
    %c128_408 = arith.constant 128 : index
    %773 = vector.load %arg15[%772, %c0_407, %c128_408] : memref<8x8x256xf32, #tpu.memory_space<vmem>>, vector<1x8x128xf32>
    %774 = vector.shape_cast %773 : vector<1x8x128xf32> to vector<8x128xf32>
    %775 = vector.shape_cast %763 : vector<8x128xf32> to vector<1x8x128xf32>
    tpu.vector_store %arg15[%772, %c0_407, %c128_408], %775 {strides = array<i32>} : memref<8x8x256xf32, #tpu.memory_space<vmem>>, vector<1x8x128xf32>,
    %c8_i32_409 = arith.constant 8 : i32
    %c0_410 = arith.constant 0 : index
    %c0_411 = arith.constant 0 : index
    %c0_412 = arith.constant 0 : index
    %776 = vector.load %arg15[%c0_410, %c0_411, %c0_412] : memref<8x8x256xf32, #tpu.memory_space<vmem>>, vector<8x8x256xf32>
    %777 = vector.shape_cast %776 : vector<8x8x256xf32> to vector<64x256xf32>
    %778 = arith.truncf %777 : vector<64x256xf32> to vector<64x256xbf16>
    %c0_413 = arith.constant 0 : index
    %c0_414 = arith.constant 0 : index
    %779 = vector.load %arg5[%c0_413, %c0_414] : memref<256x512xbf16, #tpu.memory_space<vmem>>, vector<256x512xbf16>
    %cst_415 = arith.constant dense<0.000000e+00> : vector<64x512xf32>
    %780 = tpu.matmul %778, %779, %cst_415 {dimension_numbers = #tpu.dot_dimension_numbers<[1], [0], [0], [1], [0, 0, 1, 1], [], []>} : vector<64x256xbf16>, vector<256x512xbf16>, vector<64x512xf32> -> vector<64x512xf32>
    %c0_416 = arith.constant 0 : index
    %c0_417 = arith.constant 0 : index
    %781 = vector.load %arg7[%c0_416, %c0_417] : memref<1x512xf32, #tpu.memory_space<vmem>>, vector<1x512xf32>
    %782 = vector.broadcast %781 : vector<1x512xf32> to vector<64x512xf32>
    %783 = arith.addf %780, %782 : vector<64x512xf32>
    %c0_418 = arith.constant 0 : index
    %c0_419 = arith.constant 0 : index
    %784 = vector.load %arg14[%c0_418, %c0_419] : memref<64x1024xf32, #tpu.memory_space<vmem>>, vector<64x512xf32>
    tpu.vector_store %arg14[%c0_418, %c0_419], %783 {strides = array<i32>} : memref<64x1024xf32, #tpu.memory_space<vmem>>, vector<64x512xf32>,
    %cst_420 = arith.constant 0.000000e+00 : f32
    %785 = vector.broadcast %cst_420 : f32 to vector<8x128xf32>
    %c0_421 = arith.constant 0 : index
    %c0_422 = arith.constant 0 : index
    %786 = vector.load %arg16[%c0_421, %c0_422] : memref<8x128xf32, #tpu.memory_space<vmem>>, vector<8x128xf32>
    tpu.vector_store %arg16[%c0_421, %c0_422], %785 {strides = array<i32>} : memref<8x128xf32, #tpu.memory_space<vmem>>, vector<8x128xf32>,
    %cst_423 = arith.constant 0.000000e+00 : f32
    %787 = vector.broadcast %cst_423 : f32 to vector<8x128xf32>
    %c0_424 = arith.constant 0 : index
    %c0_425 = arith.constant 0 : index
    %788 = vector.load %arg17[%c0_424, %c0_425] : memref<8x128xf32, #tpu.memory_space<vmem>>, vector<8x128xf32>
    tpu.vector_store %arg17[%c0_424, %c0_425], %787 {strides = array<i32>} : memref<8x128xf32, #tpu.memory_space<vmem>>, vector<8x128xf32>,
    %c0_i32_426 = arith.constant 0 : i32
    %c8_i32_427 = arith.constant 8 : i32
    %789 = arith.muli %c0_i32_426, %c8_i32_427 : i32
    %790 = tpu.assume_multiple %789, 8 : i32
    %791 = arith.index_cast %790 : i32 to index
    %c0_428 = arith.constant 0 : index
    %792 = vector.load %arg14[%791, %c0_428] : memref<64x1024xf32, #tpu.memory_space<vmem>>, vector<8x512xf32>
    %c0_429 = arith.constant 0 : index
    %c0_430 = arith.constant 0 : index
    %793 = vector.load %arg16[%c0_429, %c0_430] : memref<8x128xf32, #tpu.memory_space<vmem>>, vector<8x128xf32>
    %794 = arith.truncf %793 : vector<8x128xf32> to vector<8x128xbf16>
    %c0_431 = arith.constant 0 : index
    %c0_432 = arith.constant 0 : index
    %795 = vector.load %arg6[%c0_431, %c0_432] : memref<128x512xbf16, #tpu.memory_space<vmem>>, vector<128x512xbf16>
    %cst_433 = arith.constant dense<0.000000e+00> : vector<8x512xf32>
    %796 = tpu.matmul %794, %795, %cst_433 {dimension_numbers = #tpu.dot_dimension_numbers<[1], [0], [0], [1], [0, 0, 1, 1], [], []>} : vector<8x128xbf16>, vector<128x512xbf16>, vector<8x512xf32> -> vector<8x512xf32>
    %797 = arith.addf %792, %796 : vector<8x512xf32>
    %c0_434 = arith.constant 0 : index
    %c0_435 = arith.constant 0 : index
    %798 = vector.load %arg17[%c0_434, %c0_435] : memref<8x128xf32, #tpu.memory_space<vmem>>, vector<8x128xf32>
    %799 = vector.extract_strided_slice %797 {offsets = [0, 0], sizes = [8, 128], strides = [1, 1]} : vector<8x512xf32> to vector<8x128xf32>
    %cst_436 = arith.constant 5.000000e-01 : f32
    %800 = vector.broadcast %cst_436 : f32 to vector<8x128xf32>
    %801 = arith.mulf %800, %799 : vector<8x128xf32>
    %802 = math.tanh %801 : vector<8x128xf32>
    %cst_437 = arith.constant 5.000000e-01 : f32
    %803 = vector.broadcast %cst_437 : f32 to vector<8x128xf32>
    %804 = arith.mulf %803, %802 : vector<8x128xf32>
    %cst_438 = arith.constant 5.000000e-01 : f32
    %805 = vector.broadcast %cst_438 : f32 to vector<8x128xf32>
    %806 = arith.addf %804, %805 : vector<8x128xf32>
    %807 = vector.extract_strided_slice %797 {offsets = [0, 128], sizes = [8, 128], strides = [1, 1]} : vector<8x512xf32> to vector<8x128xf32>
    %cst_439 = arith.constant 5.000000e-01 : f32
    %808 = vector.broadcast %cst_439 : f32 to vector<8x128xf32>
    %809 = arith.mulf %808, %807 : vector<8x128xf32>
    %810 = math.tanh %809 : vector<8x128xf32>
    %cst_440 = arith.constant 5.000000e-01 : f32
    %811 = vector.broadcast %cst_440 : f32 to vector<8x128xf32>
    %812 = arith.mulf %811, %810 : vector<8x128xf32>
    %cst_441 = arith.constant 5.000000e-01 : f32
    %813 = vector.broadcast %cst_441 : f32 to vector<8x128xf32>
    %814 = arith.addf %812, %813 : vector<8x128xf32>
    %815 = vector.extract_strided_slice %797 {offsets = [0, 256], sizes = [8, 128], strides = [1, 1]} : vector<8x512xf32> to vector<8x128xf32>
    %816 = math.tanh %815 : vector<8x128xf32>
    %817 = vector.extract_strided_slice %797 {offsets = [0, 384], sizes = [8, 128], strides = [1, 1]} : vector<8x512xf32> to vector<8x128xf32>
    %cst_442 = arith.constant 5.000000e-01 : f32
    %818 = vector.broadcast %cst_442 : f32 to vector<8x128xf32>
    %819 = arith.mulf %818, %817 : vector<8x128xf32>
    %820 = math.tanh %819 : vector<8x128xf32>
    %cst_443 = arith.constant 5.000000e-01 : f32
    %821 = vector.broadcast %cst_443 : f32 to vector<8x128xf32>
    %822 = arith.mulf %821, %820 : vector<8x128xf32>
    %cst_444 = arith.constant 5.000000e-01 : f32
    %823 = vector.broadcast %cst_444 : f32 to vector<8x128xf32>
    %824 = arith.addf %822, %823 : vector<8x128xf32>
    %825 = arith.mulf %814, %798 : vector<8x128xf32>
    %826 = arith.mulf %806, %816 : vector<8x128xf32>
    %827 = arith.addf %825, %826 : vector<8x128xf32>
    %828 = math.tanh %827 : vector<8x128xf32>
    %829 = arith.mulf %824, %828 : vector<8x128xf32>
    %c0_445 = arith.constant 0 : index
    %c0_446 = arith.constant 0 : index
    %830 = vector.load %arg16[%c0_445, %c0_446] : memref<8x128xf32, #tpu.memory_space<vmem>>, vector<8x128xf32>
    tpu.vector_store %arg16[%c0_445, %c0_446], %829 {strides = array<i32>} : memref<8x128xf32, #tpu.memory_space<vmem>>, vector<8x128xf32>,
    %c0_447 = arith.constant 0 : index
    %c0_448 = arith.constant 0 : index
    %831 = vector.load %arg17[%c0_447, %c0_448] : memref<8x128xf32, #tpu.memory_space<vmem>>, vector<8x128xf32>
    tpu.vector_store %arg17[%c0_447, %c0_448], %827 {strides = array<i32>} : memref<8x128xf32, #tpu.memory_space<vmem>>, vector<8x128xf32>,
    %c1_i32_449 = arith.constant 1 : i32
    %c8_i32_450 = arith.constant 8 : i32
    %832 = arith.muli %c1_i32_449, %c8_i32_450 : i32
    %833 = tpu.assume_multiple %832, 8 : i32
    %834 = arith.index_cast %833 : i32 to index
    %c0_451 = arith.constant 0 : index
    %835 = vector.load %arg14[%834, %c0_451] : memref<64x1024xf32, #tpu.memory_space<vmem>>, vector<8x512xf32>
    %c0_452 = arith.constant 0 : index
    %c0_453 = arith.constant 0 : index
    %836 = vector.load %arg16[%c0_452, %c0_453] : memref<8x128xf32, #tpu.memory_space<vmem>>, vector<8x128xf32>
    %837 = arith.truncf %836 : vector<8x128xf32> to vector<8x128xbf16>
    %c0_454 = arith.constant 0 : index
    %c0_455 = arith.constant 0 : index
    %838 = vector.load %arg6[%c0_454, %c0_455] : memref<128x512xbf16, #tpu.memory_space<vmem>>, vector<128x512xbf16>
    %cst_456 = arith.constant dense<0.000000e+00> : vector<8x512xf32>
    %839 = tpu.matmul %837, %838, %cst_456 {dimension_numbers = #tpu.dot_dimension_numbers<[1], [0], [0], [1], [0, 0, 1, 1], [], []>} : vector<8x128xbf16>, vector<128x512xbf16>, vector<8x512xf32> -> vector<8x512xf32>
    %840 = arith.addf %835, %839 : vector<8x512xf32>
    %c0_457 = arith.constant 0 : index
    %c0_458 = arith.constant 0 : index
    %841 = vector.load %arg17[%c0_457, %c0_458] : memref<8x128xf32, #tpu.memory_space<vmem>>, vector<8x128xf32>
    %842 = vector.extract_strided_slice %840 {offsets = [0, 0], sizes = [8, 128], strides = [1, 1]} : vector<8x512xf32> to vector<8x128xf32>
    %cst_459 = arith.constant 5.000000e-01 : f32
    %843 = vector.broadcast %cst_459 : f32 to vector<8x128xf32>
    %844 = arith.mulf %843, %842 : vector<8x128xf32>
    %845 = math.tanh %844 : vector<8x128xf32>
    %cst_460 = arith.constant 5.000000e-01 : f32
    %846 = vector.broadcast %cst_460 : f32 to vector<8x128xf32>
    %847 = arith.mulf %846, %845 : vector<8x128xf32>
    %cst_461 = arith.constant 5.000000e-01 : f32
    %848 = vector.broadcast %cst_461 : f32 to vector<8x128xf32>
    %849 = arith.addf %847, %848 : vector<8x128xf32>
    %850 = vector.extract_strided_slice %840 {offsets = [0, 128], sizes = [8, 128], strides = [1, 1]} : vector<8x512xf32> to vector<8x128xf32>
    %cst_462 = arith.constant 5.000000e-01 : f32
    %851 = vector.broadcast %cst_462 : f32 to vector<8x128xf32>
    %852 = arith.mulf %851, %850 : vector<8x128xf32>
    %853 = math.tanh %852 : vector<8x128xf32>
    %cst_463 = arith.constant 5.000000e-01 : f32
    %854 = vector.broadcast %cst_463 : f32 to vector<8x128xf32>
    %855 = arith.mulf %854, %853 : vector<8x128xf32>
    %cst_464 = arith.constant 5.000000e-01 : f32
    %856 = vector.broadcast %cst_464 : f32 to vector<8x128xf32>
    %857 = arith.addf %855, %856 : vector<8x128xf32>
    %858 = vector.extract_strided_slice %840 {offsets = [0, 256], sizes = [8, 128], strides = [1, 1]} : vector<8x512xf32> to vector<8x128xf32>
    %859 = math.tanh %858 : vector<8x128xf32>
    %860 = vector.extract_strided_slice %840 {offsets = [0, 384], sizes = [8, 128], strides = [1, 1]} : vector<8x512xf32> to vector<8x128xf32>
    %cst_465 = arith.constant 5.000000e-01 : f32
    %861 = vector.broadcast %cst_465 : f32 to vector<8x128xf32>
    %862 = arith.mulf %861, %860 : vector<8x128xf32>
    %863 = math.tanh %862 : vector<8x128xf32>
    %cst_466 = arith.constant 5.000000e-01 : f32
    %864 = vector.broadcast %cst_466 : f32 to vector<8x128xf32>
    %865 = arith.mulf %864, %863 : vector<8x128xf32>
    %cst_467 = arith.constant 5.000000e-01 : f32
    %866 = vector.broadcast %cst_467 : f32 to vector<8x128xf32>
    %867 = arith.addf %865, %866 : vector<8x128xf32>
    %868 = arith.mulf %857, %841 : vector<8x128xf32>
    %869 = arith.mulf %849, %859 : vector<8x128xf32>
    %870 = arith.addf %868, %869 : vector<8x128xf32>
    %871 = math.tanh %870 : vector<8x128xf32>
    %872 = arith.mulf %867, %871 : vector<8x128xf32>
    %c0_468 = arith.constant 0 : index
    %c0_469 = arith.constant 0 : index
    %873 = vector.load %arg16[%c0_468, %c0_469] : memref<8x128xf32, #tpu.memory_space<vmem>>, vector<8x128xf32>
    tpu.vector_store %arg16[%c0_468, %c0_469], %872 {strides = array<i32>} : memref<8x128xf32, #tpu.memory_space<vmem>>, vector<8x128xf32>,
    %c0_470 = arith.constant 0 : index
    %c0_471 = arith.constant 0 : index
    %874 = vector.load %arg17[%c0_470, %c0_471] : memref<8x128xf32, #tpu.memory_space<vmem>>, vector<8x128xf32>
    tpu.vector_store %arg17[%c0_470, %c0_471], %870 {strides = array<i32>} : memref<8x128xf32, #tpu.memory_space<vmem>>, vector<8x128xf32>,
    %c2_i32_472 = arith.constant 2 : i32
    %c8_i32_473 = arith.constant 8 : i32
    %875 = arith.muli %c2_i32_472, %c8_i32_473 : i32
    %876 = tpu.assume_multiple %875, 8 : i32
    %877 = arith.index_cast %876 : i32 to index
    %c0_474 = arith.constant 0 : index
    %878 = vector.load %arg14[%877, %c0_474] : memref<64x1024xf32, #tpu.memory_space<vmem>>, vector<8x512xf32>
    %c0_475 = arith.constant 0 : index
    %c0_476 = arith.constant 0 : index
    %879 = vector.load %arg16[%c0_475, %c0_476] : memref<8x128xf32, #tpu.memory_space<vmem>>, vector<8x128xf32>
    %880 = arith.truncf %879 : vector<8x128xf32> to vector<8x128xbf16>
    %c0_477 = arith.constant 0 : index
    %c0_478 = arith.constant 0 : index
    %881 = vector.load %arg6[%c0_477, %c0_478] : memref<128x512xbf16, #tpu.memory_space<vmem>>, vector<128x512xbf16>
    %cst_479 = arith.constant dense<0.000000e+00> : vector<8x512xf32>
    %882 = tpu.matmul %880, %881, %cst_479 {dimension_numbers = #tpu.dot_dimension_numbers<[1], [0], [0], [1], [0, 0, 1, 1], [], []>} : vector<8x128xbf16>, vector<128x512xbf16>, vector<8x512xf32> -> vector<8x512xf32>
    %883 = arith.addf %878, %882 : vector<8x512xf32>
    %c0_480 = arith.constant 0 : index
    %c0_481 = arith.constant 0 : index
    %884 = vector.load %arg17[%c0_480, %c0_481] : memref<8x128xf32, #tpu.memory_space<vmem>>, vector<8x128xf32>
    %885 = vector.extract_strided_slice %883 {offsets = [0, 0], sizes = [8, 128], strides = [1, 1]} : vector<8x512xf32> to vector<8x128xf32>
    %cst_482 = arith.constant 5.000000e-01 : f32
    %886 = vector.broadcast %cst_482 : f32 to vector<8x128xf32>
    %887 = arith.mulf %886, %885 : vector<8x128xf32>
    %888 = math.tanh %887 : vector<8x128xf32>
    %cst_483 = arith.constant 5.000000e-01 : f32
    %889 = vector.broadcast %cst_483 : f32 to vector<8x128xf32>
    %890 = arith.mulf %889, %888 : vector<8x128xf32>
    %cst_484 = arith.constant 5.000000e-01 : f32
    %891 = vector.broadcast %cst_484 : f32 to vector<8x128xf32>
    %892 = arith.addf %890, %891 : vector<8x128xf32>
    %893 = vector.extract_strided_slice %883 {offsets = [0, 128], sizes = [8, 128], strides = [1, 1]} : vector<8x512xf32> to vector<8x128xf32>
    %cst_485 = arith.constant 5.000000e-01 : f32
    %894 = vector.broadcast %cst_485 : f32 to vector<8x128xf32>
    %895 = arith.mulf %894, %893 : vector<8x128xf32>
    %896 = math.tanh %895 : vector<8x128xf32>
    %cst_486 = arith.constant 5.000000e-01 : f32
    %897 = vector.broadcast %cst_486 : f32 to vector<8x128xf32>
    %898 = arith.mulf %897, %896 : vector<8x128xf32>
    %cst_487 = arith.constant 5.000000e-01 : f32
    %899 = vector.broadcast %cst_487 : f32 to vector<8x128xf32>
    %900 = arith.addf %898, %899 : vector<8x128xf32>
    %901 = vector.extract_strided_slice %883 {offsets = [0, 256], sizes = [8, 128], strides = [1, 1]} : vector<8x512xf32> to vector<8x128xf32>
    %902 = math.tanh %901 : vector<8x128xf32>
    %903 = vector.extract_strided_slice %883 {offsets = [0, 384], sizes = [8, 128], strides = [1, 1]} : vector<8x512xf32> to vector<8x128xf32>
    %cst_488 = arith.constant 5.000000e-01 : f32
    %904 = vector.broadcast %cst_488 : f32 to vector<8x128xf32>
    %905 = arith.mulf %904, %903 : vector<8x128xf32>
    %906 = math.tanh %905 : vector<8x128xf32>
    %cst_489 = arith.constant 5.000000e-01 : f32
    %907 = vector.broadcast %cst_489 : f32 to vector<8x128xf32>
    %908 = arith.mulf %907, %906 : vector<8x128xf32>
    %cst_490 = arith.constant 5.000000e-01 : f32
    %909 = vector.broadcast %cst_490 : f32 to vector<8x128xf32>
    %910 = arith.addf %908, %909 : vector<8x128xf32>
    %911 = arith.mulf %900, %884 : vector<8x128xf32>
    %912 = arith.mulf %892, %902 : vector<8x128xf32>
    %913 = arith.addf %911, %912 : vector<8x128xf32>
    %914 = math.tanh %913 : vector<8x128xf32>
    %915 = arith.mulf %910, %914 : vector<8x128xf32>
    %c0_491 = arith.constant 0 : index
    %c0_492 = arith.constant 0 : index
    %916 = vector.load %arg16[%c0_491, %c0_492] : memref<8x128xf32, #tpu.memory_space<vmem>>, vector<8x128xf32>
    tpu.vector_store %arg16[%c0_491, %c0_492], %915 {strides = array<i32>} : memref<8x128xf32, #tpu.memory_space<vmem>>, vector<8x128xf32>,
    %c0_493 = arith.constant 0 : index
    %c0_494 = arith.constant 0 : index
    %917 = vector.load %arg17[%c0_493, %c0_494] : memref<8x128xf32, #tpu.memory_space<vmem>>, vector<8x128xf32>
    tpu.vector_store %arg17[%c0_493, %c0_494], %913 {strides = array<i32>} : memref<8x128xf32, #tpu.memory_space<vmem>>, vector<8x128xf32>,
    %c3_i32_495 = arith.constant 3 : i32
    %c8_i32_496 = arith.constant 8 : i32
    %918 = arith.muli %c3_i32_495, %c8_i32_496 : i32
    %919 = tpu.assume_multiple %918, 8 : i32
    %920 = arith.index_cast %919 : i32 to index
    %c0_497 = arith.constant 0 : index
    %921 = vector.load %arg14[%920, %c0_497] : memref<64x1024xf32, #tpu.memory_space<vmem>>, vector<8x512xf32>
    %c0_498 = arith.constant 0 : index
    %c0_499 = arith.constant 0 : index
    %922 = vector.load %arg16[%c0_498, %c0_499] : memref<8x128xf32, #tpu.memory_space<vmem>>, vector<8x128xf32>
    %923 = arith.truncf %922 : vector<8x128xf32> to vector<8x128xbf16>
    %c0_500 = arith.constant 0 : index
    %c0_501 = arith.constant 0 : index
    %924 = vector.load %arg6[%c0_500, %c0_501] : memref<128x512xbf16, #tpu.memory_space<vmem>>, vector<128x512xbf16>
    %cst_502 = arith.constant dense<0.000000e+00> : vector<8x512xf32>
    %925 = tpu.matmul %923, %924, %cst_502 {dimension_numbers = #tpu.dot_dimension_numbers<[1], [0], [0], [1], [0, 0, 1, 1], [], []>} : vector<8x128xbf16>, vector<128x512xbf16>, vector<8x512xf32> -> vector<8x512xf32>
    %926 = arith.addf %921, %925 : vector<8x512xf32>
    %c0_503 = arith.constant 0 : index
    %c0_504 = arith.constant 0 : index
    %927 = vector.load %arg17[%c0_503, %c0_504] : memref<8x128xf32, #tpu.memory_space<vmem>>, vector<8x128xf32>
    %928 = vector.extract_strided_slice %926 {offsets = [0, 0], sizes = [8, 128], strides = [1, 1]} : vector<8x512xf32> to vector<8x128xf32>
    %cst_505 = arith.constant 5.000000e-01 : f32
    %929 = vector.broadcast %cst_505 : f32 to vector<8x128xf32>
    %930 = arith.mulf %929, %928 : vector<8x128xf32>
    %931 = math.tanh %930 : vector<8x128xf32>
    %cst_506 = arith.constant 5.000000e-01 : f32
    %932 = vector.broadcast %cst_506 : f32 to vector<8x128xf32>
    %933 = arith.mulf %932, %931 : vector<8x128xf32>
    %cst_507 = arith.constant 5.000000e-01 : f32
    %934 = vector.broadcast %cst_507 : f32 to vector<8x128xf32>
    %935 = arith.addf %933, %934 : vector<8x128xf32>
    %936 = vector.extract_strided_slice %926 {offsets = [0, 128], sizes = [8, 128], strides = [1, 1]} : vector<8x512xf32> to vector<8x128xf32>
    %cst_508 = arith.constant 5.000000e-01 : f32
    %937 = vector.broadcast %cst_508 : f32 to vector<8x128xf32>
    %938 = arith.mulf %937, %936 : vector<8x128xf32>
    %939 = math.tanh %938 : vector<8x128xf32>
    %cst_509 = arith.constant 5.000000e-01 : f32
    %940 = vector.broadcast %cst_509 : f32 to vector<8x128xf32>
    %941 = arith.mulf %940, %939 : vector<8x128xf32>
    %cst_510 = arith.constant 5.000000e-01 : f32
    %942 = vector.broadcast %cst_510 : f32 to vector<8x128xf32>
    %943 = arith.addf %941, %942 : vector<8x128xf32>
    %944 = vector.extract_strided_slice %926 {offsets = [0, 256], sizes = [8, 128], strides = [1, 1]} : vector<8x512xf32> to vector<8x128xf32>
    %945 = math.tanh %944 : vector<8x128xf32>
    %946 = vector.extract_strided_slice %926 {offsets = [0, 384], sizes = [8, 128], strides = [1, 1]} : vector<8x512xf32> to vector<8x128xf32>
    %cst_511 = arith.constant 5.000000e-01 : f32
    %947 = vector.broadcast %cst_511 : f32 to vector<8x128xf32>
    %948 = arith.mulf %947, %946 : vector<8x128xf32>
    %949 = math.tanh %948 : vector<8x128xf32>
    %cst_512 = arith.constant 5.000000e-01 : f32
    %950 = vector.broadcast %cst_512 : f32 to vector<8x128xf32>
    %951 = arith.mulf %950, %949 : vector<8x128xf32>
    %cst_513 = arith.constant 5.000000e-01 : f32
    %952 = vector.broadcast %cst_513 : f32 to vector<8x128xf32>
    %953 = arith.addf %951, %952 : vector<8x128xf32>
    %954 = arith.mulf %943, %927 : vector<8x128xf32>
    %955 = arith.mulf %935, %945 : vector<8x128xf32>
    %956 = arith.addf %954, %955 : vector<8x128xf32>
    %957 = math.tanh %956 : vector<8x128xf32>
    %958 = arith.mulf %953, %957 : vector<8x128xf32>
    %c0_514 = arith.constant 0 : index
    %c0_515 = arith.constant 0 : index
    %959 = vector.load %arg16[%c0_514, %c0_515] : memref<8x128xf32, #tpu.memory_space<vmem>>, vector<8x128xf32>
    tpu.vector_store %arg16[%c0_514, %c0_515], %958 {strides = array<i32>} : memref<8x128xf32, #tpu.memory_space<vmem>>, vector<8x128xf32>,
    %c0_516 = arith.constant 0 : index
    %c0_517 = arith.constant 0 : index
    %960 = vector.load %arg17[%c0_516, %c0_517] : memref<8x128xf32, #tpu.memory_space<vmem>>, vector<8x128xf32>
    tpu.vector_store %arg17[%c0_516, %c0_517], %956 {strides = array<i32>} : memref<8x128xf32, #tpu.memory_space<vmem>>, vector<8x128xf32>,
    %c4_i32_518 = arith.constant 4 : i32
    %c8_i32_519 = arith.constant 8 : i32
    %961 = arith.muli %c4_i32_518, %c8_i32_519 : i32
    %962 = tpu.assume_multiple %961, 8 : i32
    %963 = arith.index_cast %962 : i32 to index
    %c0_520 = arith.constant 0 : index
    %964 = vector.load %arg14[%963, %c0_520] : memref<64x1024xf32, #tpu.memory_space<vmem>>, vector<8x512xf32>
    %c0_521 = arith.constant 0 : index
    %c0_522 = arith.constant 0 : index
    %965 = vector.load %arg16[%c0_521, %c0_522] : memref<8x128xf32, #tpu.memory_space<vmem>>, vector<8x128xf32>
    %966 = arith.truncf %965 : vector<8x128xf32> to vector<8x128xbf16>
    %c0_523 = arith.constant 0 : index
    %c0_524 = arith.constant 0 : index
    %967 = vector.load %arg6[%c0_523, %c0_524] : memref<128x512xbf16, #tpu.memory_space<vmem>>, vector<128x512xbf16>
    %cst_525 = arith.constant dense<0.000000e+00> : vector<8x512xf32>
    %968 = tpu.matmul %966, %967, %cst_525 {dimension_numbers = #tpu.dot_dimension_numbers<[1], [0], [0], [1], [0, 0, 1, 1], [], []>} : vector<8x128xbf16>, vector<128x512xbf16>, vector<8x512xf32> -> vector<8x512xf32>
    %969 = arith.addf %964, %968 : vector<8x512xf32>
    %c0_526 = arith.constant 0 : index
    %c0_527 = arith.constant 0 : index
    %970 = vector.load %arg17[%c0_526, %c0_527] : memref<8x128xf32, #tpu.memory_space<vmem>>, vector<8x128xf32>
    %971 = vector.extract_strided_slice %969 {offsets = [0, 0], sizes = [8, 128], strides = [1, 1]} : vector<8x512xf32> to vector<8x128xf32>
    %cst_528 = arith.constant 5.000000e-01 : f32
    %972 = vector.broadcast %cst_528 : f32 to vector<8x128xf32>
    %973 = arith.mulf %972, %971 : vector<8x128xf32>
    %974 = math.tanh %973 : vector<8x128xf32>
    %cst_529 = arith.constant 5.000000e-01 : f32
    %975 = vector.broadcast %cst_529 : f32 to vector<8x128xf32>
    %976 = arith.mulf %975, %974 : vector<8x128xf32>
    %cst_530 = arith.constant 5.000000e-01 : f32
    %977 = vector.broadcast %cst_530 : f32 to vector<8x128xf32>
    %978 = arith.addf %976, %977 : vector<8x128xf32>
    %979 = vector.extract_strided_slice %969 {offsets = [0, 128], sizes = [8, 128], strides = [1, 1]} : vector<8x512xf32> to vector<8x128xf32>
    %cst_531 = arith.constant 5.000000e-01 : f32
    %980 = vector.broadcast %cst_531 : f32 to vector<8x128xf32>
    %981 = arith.mulf %980, %979 : vector<8x128xf32>
    %982 = math.tanh %981 : vector<8x128xf32>
    %cst_532 = arith.constant 5.000000e-01 : f32
    %983 = vector.broadcast %cst_532 : f32 to vector<8x128xf32>
    %984 = arith.mulf %983, %982 : vector<8x128xf32>
    %cst_533 = arith.constant 5.000000e-01 : f32
    %985 = vector.broadcast %cst_533 : f32 to vector<8x128xf32>
    %986 = arith.addf %984, %985 : vector<8x128xf32>
    %987 = vector.extract_strided_slice %969 {offsets = [0, 256], sizes = [8, 128], strides = [1, 1]} : vector<8x512xf32> to vector<8x128xf32>
    %988 = math.tanh %987 : vector<8x128xf32>
    %989 = vector.extract_strided_slice %969 {offsets = [0, 384], sizes = [8, 128], strides = [1, 1]} : vector<8x512xf32> to vector<8x128xf32>
    %cst_534 = arith.constant 5.000000e-01 : f32
    %990 = vector.broadcast %cst_534 : f32 to vector<8x128xf32>
    %991 = arith.mulf %990, %989 : vector<8x128xf32>
    %992 = math.tanh %991 : vector<8x128xf32>
    %cst_535 = arith.constant 5.000000e-01 : f32
    %993 = vector.broadcast %cst_535 : f32 to vector<8x128xf32>
    %994 = arith.mulf %993, %992 : vector<8x128xf32>
    %cst_536 = arith.constant 5.000000e-01 : f32
    %995 = vector.broadcast %cst_536 : f32 to vector<8x128xf32>
    %996 = arith.addf %994, %995 : vector<8x128xf32>
    %997 = arith.mulf %986, %970 : vector<8x128xf32>
    %998 = arith.mulf %978, %988 : vector<8x128xf32>
    %999 = arith.addf %997, %998 : vector<8x128xf32>
    %1000 = math.tanh %999 : vector<8x128xf32>
    %1001 = arith.mulf %996, %1000 : vector<8x128xf32>
    %c0_537 = arith.constant 0 : index
    %c0_538 = arith.constant 0 : index
    %1002 = vector.load %arg16[%c0_537, %c0_538] : memref<8x128xf32, #tpu.memory_space<vmem>>, vector<8x128xf32>
    tpu.vector_store %arg16[%c0_537, %c0_538], %1001 {strides = array<i32>} : memref<8x128xf32, #tpu.memory_space<vmem>>, vector<8x128xf32>,
    %c0_539 = arith.constant 0 : index
    %c0_540 = arith.constant 0 : index
    %1003 = vector.load %arg17[%c0_539, %c0_540] : memref<8x128xf32, #tpu.memory_space<vmem>>, vector<8x128xf32>
    tpu.vector_store %arg17[%c0_539, %c0_540], %999 {strides = array<i32>} : memref<8x128xf32, #tpu.memory_space<vmem>>, vector<8x128xf32>,
    %c5_i32_541 = arith.constant 5 : i32
    %c8_i32_542 = arith.constant 8 : i32
    %1004 = arith.muli %c5_i32_541, %c8_i32_542 : i32
    %1005 = tpu.assume_multiple %1004, 8 : i32
    %1006 = arith.index_cast %1005 : i32 to index
    %c0_543 = arith.constant 0 : index
    %1007 = vector.load %arg14[%1006, %c0_543] : memref<64x1024xf32, #tpu.memory_space<vmem>>, vector<8x512xf32>
    %c0_544 = arith.constant 0 : index
    %c0_545 = arith.constant 0 : index
    %1008 = vector.load %arg16[%c0_544, %c0_545] : memref<8x128xf32, #tpu.memory_space<vmem>>, vector<8x128xf32>
    %1009 = arith.truncf %1008 : vector<8x128xf32> to vector<8x128xbf16>
    %c0_546 = arith.constant 0 : index
    %c0_547 = arith.constant 0 : index
    %1010 = vector.load %arg6[%c0_546, %c0_547] : memref<128x512xbf16, #tpu.memory_space<vmem>>, vector<128x512xbf16>
    %cst_548 = arith.constant dense<0.000000e+00> : vector<8x512xf32>
    %1011 = tpu.matmul %1009, %1010, %cst_548 {dimension_numbers = #tpu.dot_dimension_numbers<[1], [0], [0], [1], [0, 0, 1, 1], [], []>} : vector<8x128xbf16>, vector<128x512xbf16>, vector<8x512xf32> -> vector<8x512xf32>
    %1012 = arith.addf %1007, %1011 : vector<8x512xf32>
    %c0_549 = arith.constant 0 : index
    %c0_550 = arith.constant 0 : index
    %1013 = vector.load %arg17[%c0_549, %c0_550] : memref<8x128xf32, #tpu.memory_space<vmem>>, vector<8x128xf32>
    %1014 = vector.extract_strided_slice %1012 {offsets = [0, 0], sizes = [8, 128], strides = [1, 1]} : vector<8x512xf32> to vector<8x128xf32>
    %cst_551 = arith.constant 5.000000e-01 : f32
    %1015 = vector.broadcast %cst_551 : f32 to vector<8x128xf32>
    %1016 = arith.mulf %1015, %1014 : vector<8x128xf32>
    %1017 = math.tanh %1016 : vector<8x128xf32>
    %cst_552 = arith.constant 5.000000e-01 : f32
    %1018 = vector.broadcast %cst_552 : f32 to vector<8x128xf32>
    %1019 = arith.mulf %1018, %1017 : vector<8x128xf32>
    %cst_553 = arith.constant 5.000000e-01 : f32
    %1020 = vector.broadcast %cst_553 : f32 to vector<8x128xf32>
    %1021 = arith.addf %1019, %1020 : vector<8x128xf32>
    %1022 = vector.extract_strided_slice %1012 {offsets = [0, 128], sizes = [8, 128], strides = [1, 1]} : vector<8x512xf32> to vector<8x128xf32>
    %cst_554 = arith.constant 5.000000e-01 : f32
    %1023 = vector.broadcast %cst_554 : f32 to vector<8x128xf32>
    %1024 = arith.mulf %1023, %1022 : vector<8x128xf32>
    %1025 = math.tanh %1024 : vector<8x128xf32>
    %cst_555 = arith.constant 5.000000e-01 : f32
    %1026 = vector.broadcast %cst_555 : f32 to vector<8x128xf32>
    %1027 = arith.mulf %1026, %1025 : vector<8x128xf32>
    %cst_556 = arith.constant 5.000000e-01 : f32
    %1028 = vector.broadcast %cst_556 : f32 to vector<8x128xf32>
    %1029 = arith.addf %1027, %1028 : vector<8x128xf32>
    %1030 = vector.extract_strided_slice %1012 {offsets = [0, 256], sizes = [8, 128], strides = [1, 1]} : vector<8x512xf32> to vector<8x128xf32>
    %1031 = math.tanh %1030 : vector<8x128xf32>
    %1032 = vector.extract_strided_slice %1012 {offsets = [0, 384], sizes = [8, 128], strides = [1, 1]} : vector<8x512xf32> to vector<8x128xf32>
    %cst_557 = arith.constant 5.000000e-01 : f32
    %1033 = vector.broadcast %cst_557 : f32 to vector<8x128xf32>
    %1034 = arith.mulf %1033, %1032 : vector<8x128xf32>
    %1035 = math.tanh %1034 : vector<8x128xf32>
    %cst_558 = arith.constant 5.000000e-01 : f32
    %1036 = vector.broadcast %cst_558 : f32 to vector<8x128xf32>
    %1037 = arith.mulf %1036, %1035 : vector<8x128xf32>
    %cst_559 = arith.constant 5.000000e-01 : f32
    %1038 = vector.broadcast %cst_559 : f32 to vector<8x128xf32>
    %1039 = arith.addf %1037, %1038 : vector<8x128xf32>
    %1040 = arith.mulf %1029, %1013 : vector<8x128xf32>
    %1041 = arith.mulf %1021, %1031 : vector<8x128xf32>
    %1042 = arith.addf %1040, %1041 : vector<8x128xf32>
    %1043 = math.tanh %1042 : vector<8x128xf32>
    %1044 = arith.mulf %1039, %1043 : vector<8x128xf32>
    %c0_560 = arith.constant 0 : index
    %c0_561 = arith.constant 0 : index
    %1045 = vector.load %arg16[%c0_560, %c0_561] : memref<8x128xf32, #tpu.memory_space<vmem>>, vector<8x128xf32>
    tpu.vector_store %arg16[%c0_560, %c0_561], %1044 {strides = array<i32>} : memref<8x128xf32, #tpu.memory_space<vmem>>, vector<8x128xf32>,
    %c0_562 = arith.constant 0 : index
    %c0_563 = arith.constant 0 : index
    %1046 = vector.load %arg17[%c0_562, %c0_563] : memref<8x128xf32, #tpu.memory_space<vmem>>, vector<8x128xf32>
    tpu.vector_store %arg17[%c0_562, %c0_563], %1042 {strides = array<i32>} : memref<8x128xf32, #tpu.memory_space<vmem>>, vector<8x128xf32>,
    %c6_i32_564 = arith.constant 6 : i32
    %c8_i32_565 = arith.constant 8 : i32
    %1047 = arith.muli %c6_i32_564, %c8_i32_565 : i32
    %1048 = tpu.assume_multiple %1047, 8 : i32
    %1049 = arith.index_cast %1048 : i32 to index
    %c0_566 = arith.constant 0 : index
    %1050 = vector.load %arg14[%1049, %c0_566] : memref<64x1024xf32, #tpu.memory_space<vmem>>, vector<8x512xf32>
    %c0_567 = arith.constant 0 : index
    %c0_568 = arith.constant 0 : index
    %1051 = vector.load %arg16[%c0_567, %c0_568] : memref<8x128xf32, #tpu.memory_space<vmem>>, vector<8x128xf32>
    %1052 = arith.truncf %1051 : vector<8x128xf32> to vector<8x128xbf16>
    %c0_569 = arith.constant 0 : index
    %c0_570 = arith.constant 0 : index
    %1053 = vector.load %arg6[%c0_569, %c0_570] : memref<128x512xbf16, #tpu.memory_space<vmem>>, vector<128x512xbf16>
    %cst_571 = arith.constant dense<0.000000e+00> : vector<8x512xf32>
    %1054 = tpu.matmul %1052, %1053, %cst_571 {dimension_numbers = #tpu.dot_dimension_numbers<[1], [0], [0], [1], [0, 0, 1, 1], [], []>} : vector<8x128xbf16>, vector<128x512xbf16>, vector<8x512xf32> -> vector<8x512xf32>
    %1055 = arith.addf %1050, %1054 : vector<8x512xf32>
    %c0_572 = arith.constant 0 : index
    %c0_573 = arith.constant 0 : index
    %1056 = vector.load %arg17[%c0_572, %c0_573] : memref<8x128xf32, #tpu.memory_space<vmem>>, vector<8x128xf32>
    %1057 = vector.extract_strided_slice %1055 {offsets = [0, 0], sizes = [8, 128], strides = [1, 1]} : vector<8x512xf32> to vector<8x128xf32>
    %cst_574 = arith.constant 5.000000e-01 : f32
    %1058 = vector.broadcast %cst_574 : f32 to vector<8x128xf32>
    %1059 = arith.mulf %1058, %1057 : vector<8x128xf32>
    %1060 = math.tanh %1059 : vector<8x128xf32>
    %cst_575 = arith.constant 5.000000e-01 : f32
    %1061 = vector.broadcast %cst_575 : f32 to vector<8x128xf32>
    %1062 = arith.mulf %1061, %1060 : vector<8x128xf32>
    %cst_576 = arith.constant 5.000000e-01 : f32
    %1063 = vector.broadcast %cst_576 : f32 to vector<8x128xf32>
    %1064 = arith.addf %1062, %1063 : vector<8x128xf32>
    %1065 = vector.extract_strided_slice %1055 {offsets = [0, 128], sizes = [8, 128], strides = [1, 1]} : vector<8x512xf32> to vector<8x128xf32>
    %cst_577 = arith.constant 5.000000e-01 : f32
    %1066 = vector.broadcast %cst_577 : f32 to vector<8x128xf32>
    %1067 = arith.mulf %1066, %1065 : vector<8x128xf32>
    %1068 = math.tanh %1067 : vector<8x128xf32>
    %cst_578 = arith.constant 5.000000e-01 : f32
    %1069 = vector.broadcast %cst_578 : f32 to vector<8x128xf32>
    %1070 = arith.mulf %1069, %1068 : vector<8x128xf32>
    %cst_579 = arith.constant 5.000000e-01 : f32
    %1071 = vector.broadcast %cst_579 : f32 to vector<8x128xf32>
    %1072 = arith.addf %1070, %1071 : vector<8x128xf32>
    %1073 = vector.extract_strided_slice %1055 {offsets = [0, 256], sizes = [8, 128], strides = [1, 1]} : vector<8x512xf32> to vector<8x128xf32>
    %1074 = math.tanh %1073 : vector<8x128xf32>
    %1075 = vector.extract_strided_slice %1055 {offsets = [0, 384], sizes = [8, 128], strides = [1, 1]} : vector<8x512xf32> to vector<8x128xf32>
    %cst_580 = arith.constant 5.000000e-01 : f32
    %1076 = vector.broadcast %cst_580 : f32 to vector<8x128xf32>
    %1077 = arith.mulf %1076, %1075 : vector<8x128xf32>
    %1078 = math.tanh %1077 : vector<8x128xf32>
    %cst_581 = arith.constant 5.000000e-01 : f32
    %1079 = vector.broadcast %cst_581 : f32 to vector<8x128xf32>
    %1080 = arith.mulf %1079, %1078 : vector<8x128xf32>
    %cst_582 = arith.constant 5.000000e-01 : f32
    %1081 = vector.broadcast %cst_582 : f32 to vector<8x128xf32>
    %1082 = arith.addf %1080, %1081 : vector<8x128xf32>
    %1083 = arith.mulf %1072, %1056 : vector<8x128xf32>
    %1084 = arith.mulf %1064, %1074 : vector<8x128xf32>
    %1085 = arith.addf %1083, %1084 : vector<8x128xf32>
    %1086 = math.tanh %1085 : vector<8x128xf32>
    %1087 = arith.mulf %1082, %1086 : vector<8x128xf32>
    %c0_583 = arith.constant 0 : index
    %c0_584 = arith.constant 0 : index
    %1088 = vector.load %arg16[%c0_583, %c0_584] : memref<8x128xf32, #tpu.memory_space<vmem>>, vector<8x128xf32>
    tpu.vector_store %arg16[%c0_583, %c0_584], %1087 {strides = array<i32>} : memref<8x128xf32, #tpu.memory_space<vmem>>, vector<8x128xf32>,
    %c0_585 = arith.constant 0 : index
    %c0_586 = arith.constant 0 : index
    %1089 = vector.load %arg17[%c0_585, %c0_586] : memref<8x128xf32, #tpu.memory_space<vmem>>, vector<8x128xf32>
    tpu.vector_store %arg17[%c0_585, %c0_586], %1085 {strides = array<i32>} : memref<8x128xf32, #tpu.memory_space<vmem>>, vector<8x128xf32>,
    %c7_i32_587 = arith.constant 7 : i32
    %c8_i32_588 = arith.constant 8 : i32
    %1090 = arith.muli %c7_i32_587, %c8_i32_588 : i32
    %1091 = tpu.assume_multiple %1090, 8 : i32
    %1092 = arith.index_cast %1091 : i32 to index
    %c0_589 = arith.constant 0 : index
    %1093 = vector.load %arg14[%1092, %c0_589] : memref<64x1024xf32, #tpu.memory_space<vmem>>, vector<8x512xf32>
    %c0_590 = arith.constant 0 : index
    %c0_591 = arith.constant 0 : index
    %1094 = vector.load %arg16[%c0_590, %c0_591] : memref<8x128xf32, #tpu.memory_space<vmem>>, vector<8x128xf32>
    %1095 = arith.truncf %1094 : vector<8x128xf32> to vector<8x128xbf16>
    %c0_592 = arith.constant 0 : index
    %c0_593 = arith.constant 0 : index
    %1096 = vector.load %arg6[%c0_592, %c0_593] : memref<128x512xbf16, #tpu.memory_space<vmem>>, vector<128x512xbf16>
    %cst_594 = arith.constant dense<0.000000e+00> : vector<8x512xf32>
    %1097 = tpu.matmul %1095, %1096, %cst_594 {dimension_numbers = #tpu.dot_dimension_numbers<[1], [0], [0], [1], [0, 0, 1, 1], [], []>} : vector<8x128xbf16>, vector<128x512xbf16>, vector<8x512xf32> -> vector<8x512xf32>
    %1098 = arith.addf %1093, %1097 : vector<8x512xf32>
    %c0_595 = arith.constant 0 : index
    %c0_596 = arith.constant 0 : index
    %1099 = vector.load %arg17[%c0_595, %c0_596] : memref<8x128xf32, #tpu.memory_space<vmem>>, vector<8x128xf32>
    %1100 = vector.extract_strided_slice %1098 {offsets = [0, 0], sizes = [8, 128], strides = [1, 1]} : vector<8x512xf32> to vector<8x128xf32>
    %cst_597 = arith.constant 5.000000e-01 : f32
    %1101 = vector.broadcast %cst_597 : f32 to vector<8x128xf32>
    %1102 = arith.mulf %1101, %1100 : vector<8x128xf32>
    %1103 = math.tanh %1102 : vector<8x128xf32>
    %cst_598 = arith.constant 5.000000e-01 : f32
    %1104 = vector.broadcast %cst_598 : f32 to vector<8x128xf32>
    %1105 = arith.mulf %1104, %1103 : vector<8x128xf32>
    %cst_599 = arith.constant 5.000000e-01 : f32
    %1106 = vector.broadcast %cst_599 : f32 to vector<8x128xf32>
    %1107 = arith.addf %1105, %1106 : vector<8x128xf32>
    %1108 = vector.extract_strided_slice %1098 {offsets = [0, 128], sizes = [8, 128], strides = [1, 1]} : vector<8x512xf32> to vector<8x128xf32>
    %cst_600 = arith.constant 5.000000e-01 : f32
    %1109 = vector.broadcast %cst_600 : f32 to vector<8x128xf32>
    %1110 = arith.mulf %1109, %1108 : vector<8x128xf32>
    %1111 = math.tanh %1110 : vector<8x128xf32>
    %cst_601 = arith.constant 5.000000e-01 : f32
    %1112 = vector.broadcast %cst_601 : f32 to vector<8x128xf32>
    %1113 = arith.mulf %1112, %1111 : vector<8x128xf32>
    %cst_602 = arith.constant 5.000000e-01 : f32
    %1114 = vector.broadcast %cst_602 : f32 to vector<8x128xf32>
    %1115 = arith.addf %1113, %1114 : vector<8x128xf32>
    %1116 = vector.extract_strided_slice %1098 {offsets = [0, 256], sizes = [8, 128], strides = [1, 1]} : vector<8x512xf32> to vector<8x128xf32>
    %1117 = math.tanh %1116 : vector<8x128xf32>
    %1118 = vector.extract_strided_slice %1098 {offsets = [0, 384], sizes = [8, 128], strides = [1, 1]} : vector<8x512xf32> to vector<8x128xf32>
    %cst_603 = arith.constant 5.000000e-01 : f32
    %1119 = vector.broadcast %cst_603 : f32 to vector<8x128xf32>
    %1120 = arith.mulf %1119, %1118 : vector<8x128xf32>
    %1121 = math.tanh %1120 : vector<8x128xf32>
    %cst_604 = arith.constant 5.000000e-01 : f32
    %1122 = vector.broadcast %cst_604 : f32 to vector<8x128xf32>
    %1123 = arith.mulf %1122, %1121 : vector<8x128xf32>
    %cst_605 = arith.constant 5.000000e-01 : f32
    %1124 = vector.broadcast %cst_605 : f32 to vector<8x128xf32>
    %1125 = arith.addf %1123, %1124 : vector<8x128xf32>
    %1126 = arith.mulf %1115, %1099 : vector<8x128xf32>
    %1127 = arith.mulf %1107, %1117 : vector<8x128xf32>
    %1128 = arith.addf %1126, %1127 : vector<8x128xf32>
    %1129 = math.tanh %1128 : vector<8x128xf32>
    %1130 = arith.mulf %1125, %1129 : vector<8x128xf32>
    %c0_606 = arith.constant 0 : index
    %c0_607 = arith.constant 0 : index
    %1131 = vector.load %arg16[%c0_606, %c0_607] : memref<8x128xf32, #tpu.memory_space<vmem>>, vector<8x128xf32>
    tpu.vector_store %arg16[%c0_606, %c0_607], %1130 {strides = array<i32>} : memref<8x128xf32, #tpu.memory_space<vmem>>, vector<8x128xf32>,
    %c0_608 = arith.constant 0 : index
    %c0_609 = arith.constant 0 : index
    %1132 = vector.load %arg17[%c0_608, %c0_609] : memref<8x128xf32, #tpu.memory_space<vmem>>, vector<8x128xf32>
    tpu.vector_store %arg17[%c0_608, %c0_609], %1128 {strides = array<i32>} : memref<8x128xf32, #tpu.memory_space<vmem>>, vector<8x128xf32>,
    %c8_i32_610 = arith.constant 8 : i32
    %c7 = arith.constant 7 : index
    %c0_611 = arith.constant 0 : index
    %c0_612 = arith.constant 0 : index
    %1133 = vector.load %arg15[%c7, %c0_611, %c0_612] : memref<8x8x256xf32, #tpu.memory_space<vmem>>, vector<1x8x256xf32>
    %1134 = vector.shape_cast %1133 : vector<1x8x256xf32> to vector<8x256xf32>
    %1135 = arith.truncf %1134 : vector<8x256xf32> to vector<8x256xbf16>
    %c0_613 = arith.constant 0 : index
    %c0_614 = arith.constant 0 : index
    %1136 = vector.load %arg8[%c0_613, %c0_614] : memref<256x512xbf16, #tpu.memory_space<vmem>>, vector<256x512xbf16>
    %cst_615 = arith.constant dense<0.000000e+00> : vector<8x512xf32>
    %1137 = tpu.matmul %1135, %1136, %cst_615 {dimension_numbers = #tpu.dot_dimension_numbers<[1], [0], [0], [1], [0, 0, 1, 1], [], []>} : vector<8x256xbf16>, vector<256x512xbf16>, vector<8x512xf32> -> vector<8x512xf32>
    %c0_616 = arith.constant 0 : index
    %c0_617 = arith.constant 0 : index
    %1138 = vector.load %arg9[%c0_616, %c0_617] : memref<1x512xf32, #tpu.memory_space<vmem>>, vector<1x512xf32>
    %1139 = vector.broadcast %1138 : vector<1x512xf32> to vector<8x512xf32>
    %1140 = arith.addf %1137, %1139 : vector<8x512xf32>
    %cst_618 = arith.constant 0.000000e+00 : f32
    %1141 = vector.broadcast %cst_618 : f32 to vector<8x128xf32>
    %1142 = vector.extract_strided_slice %1140 {offsets = [0, 0], sizes = [8, 128], strides = [1, 1]} : vector<8x512xf32> to vector<8x128xf32>
    %cst_619 = arith.constant 5.000000e-01 : f32
    %1143 = vector.broadcast %cst_619 : f32 to vector<8x128xf32>
    %1144 = arith.mulf %1143, %1142 : vector<8x128xf32>
    %1145 = math.tanh %1144 : vector<8x128xf32>
    %cst_620 = arith.constant 5.000000e-01 : f32
    %1146 = vector.broadcast %cst_620 : f32 to vector<8x128xf32>
    %1147 = arith.mulf %1146, %1145 : vector<8x128xf32>
    %cst_621 = arith.constant 5.000000e-01 : f32
    %1148 = vector.broadcast %cst_621 : f32 to vector<8x128xf32>
    %1149 = arith.addf %1147, %1148 : vector<8x128xf32>
    %1150 = vector.extract_strided_slice %1140 {offsets = [0, 128], sizes = [8, 128], strides = [1, 1]} : vector<8x512xf32> to vector<8x128xf32>
    %cst_622 = arith.constant 5.000000e-01 : f32
    %1151 = vector.broadcast %cst_622 : f32 to vector<8x128xf32>
    %1152 = arith.mulf %1151, %1150 : vector<8x128xf32>
    %1153 = math.tanh %1152 : vector<8x128xf32>
    %cst_623 = arith.constant 5.000000e-01 : f32
    %1154 = vector.broadcast %cst_623 : f32 to vector<8x128xf32>
    %1155 = arith.mulf %1154, %1153 : vector<8x128xf32>
    %cst_624 = arith.constant 5.000000e-01 : f32
    %1156 = vector.broadcast %cst_624 : f32 to vector<8x128xf32>
    %1157 = arith.addf %1155, %1156 : vector<8x128xf32>
    %1158 = vector.extract_strided_slice %1140 {offsets = [0, 256], sizes = [8, 128], strides = [1, 1]} : vector<8x512xf32> to vector<8x128xf32>
    %1159 = math.tanh %1158 : vector<8x128xf32>
    %1160 = vector.extract_strided_slice %1140 {offsets = [0, 384], sizes = [8, 128], strides = [1, 1]} : vector<8x512xf32> to vector<8x128xf32>
    %cst_625 = arith.constant 5.000000e-01 : f32
    %1161 = vector.broadcast %cst_625 : f32 to vector<8x128xf32>
    %1162 = arith.mulf %1161, %1160 : vector<8x128xf32>
    %1163 = math.tanh %1162 : vector<8x128xf32>
    %cst_626 = arith.constant 5.000000e-01 : f32
    %1164 = vector.broadcast %cst_626 : f32 to vector<8x128xf32>
    %1165 = arith.mulf %1164, %1163 : vector<8x128xf32>
    %cst_627 = arith.constant 5.000000e-01 : f32
    %1166 = vector.broadcast %cst_627 : f32 to vector<8x128xf32>
    %1167 = arith.addf %1165, %1166 : vector<8x128xf32>
    %1168 = arith.mulf %1157, %1141 : vector<8x128xf32>
    %1169 = arith.mulf %1149, %1159 : vector<8x128xf32>
    %1170 = arith.addf %1168, %1169 : vector<8x128xf32>
    %1171 = math.tanh %1170 : vector<8x128xf32>
    %1172 = arith.mulf %1167, %1171 : vector<8x128xf32>
    %c0_628 = arith.constant 0 : index
    %c0_629 = arith.constant 0 : index
    %1173 = vector.load %arg16[%c0_628, %c0_629] : memref<8x128xf32, #tpu.memory_space<vmem>>, vector<8x128xf32>
    %1174 = arith.truncf %1173 : vector<8x128xf32> to vector<8x128xbf16>
    %c0_630 = arith.constant 0 : index
    %c0_631 = arith.constant 0 : index
    %1175 = vector.load %arg10[%c0_630, %c0_631] : memref<128x128xbf16, #tpu.memory_space<vmem>>, vector<128x128xbf16>
    %cst_632 = arith.constant dense<0.000000e+00> : vector<8x128xf32>
    %1176 = tpu.matmul %1174, %1175, %cst_632 {dimension_numbers = #tpu.dot_dimension_numbers<[1], [0], [0], [1], [0, 0, 1, 1], [], []>} : vector<8x128xbf16>, vector<128x128xbf16>, vector<8x128xf32> -> vector<8x128xf32>
    %1177 = arith.truncf %1172 : vector<8x128xf32> to vector<8x128xbf16>
    %c0_633 = arith.constant 0 : index
    %c0_634 = arith.constant 0 : index
    %1178 = vector.load %arg11[%c0_633, %c0_634] : memref<128x128xbf16, #tpu.memory_space<vmem>>, vector<128x128xbf16>
    %cst_635 = arith.constant dense<0.000000e+00> : vector<8x128xf32>
    %1179 = tpu.matmul %1177, %1178, %cst_635 {dimension_numbers = #tpu.dot_dimension_numbers<[1], [0], [0], [1], [0, 0, 1, 1], [], []>} : vector<8x128xbf16>, vector<128x128xbf16>, vector<8x128xf32> -> vector<8x128xf32>
    %1180 = arith.addf %1176, %1179 : vector<8x128xf32>
    %c0_636 = arith.constant 0 : index
    %c0_637 = arith.constant 0 : index
    %1181 = vector.load %arg12[%c0_636, %c0_637] : memref<1x128xf32, #tpu.memory_space<vmem>>, vector<1x128xf32>
    %1182 = vector.broadcast %1181 : vector<1x128xf32> to vector<8x128xf32>
    %1183 = arith.addf %1180, %1182 : vector<8x128xf32>
    %c0_638 = arith.constant 0 : index
    %c0_639 = arith.constant 0 : index
    %1184 = vector.load %arg13[%c0_638, %c0_639] : memref<8x128xf32, #tpu.memory_space<vmem>>, vector<8x128xf32>
    tpu.vector_store %arg13[%c0_638, %c0_639], %1183 {strides = array<i32>} : memref<8x128xf32, #tpu.memory_space<vmem>>, vector<8x128xf32>,
    return
  }
}

</mosaic_0001>

<bundles_post_ra>
// kernel: textrnn_forward.1
= control target key start
LH: loop header
LB: loop body
LE: loop exit
PB: predicated region body
PF: predicated region fallthrough
CT: control target
= control target key end

     0   :  { %18 = vsyncpa [#allocation9], 0  ;;  %s14352_s0 = inlined_call_operand.hbm [shape: bf16[8,8,128], index: 0, kind: input, shape index: {}]   ;;  %s14353_s1 = inlined_call_operand.hbm [shape: bf16[128,1024], index: 1, kind: input, shape index: {}]   ;;  %s14354_s2 = inlined_call_operand.hbm [shape: bf16[128,512], index: 2, kind: input, shape index: {}]   ;;  %s14355_s3 = inlined_call_operand.hbm [shape: bf16[128,512], index: 3, kind: input, shape index: {}]   ;;  %s14356_s4 = inlined_call_operand.hbm [shape: f32[1,1024], index: 4, kind: input, shape index: {}]   ;;  %s14357_s5 = inlined_call_operand.hbm [shape: bf16[256,512], index: 5, kind: input, shape index: {}]   ;;  %s14358_s6 = inlined_call_operand.hbm [shape: bf16[128,512], index: 6, kind: input, shape index: {}]   ;;  %s14359_s7 = inlined_call_operand.hbm [shape: f32[1,512], index: 7, kind: input, shape index: {}]   ;;  %s14360_s8 = inlined_call_operand.hbm [shape: bf16[256,512], index: 8, kind: input, shape index: {}]   ;;  %s14361_s9 = inlined_call_operand.hbm [shape: f32[1,512], index: 9, kind: input, shape index: {}]   ;;  %s14362_s10 = inlined_call_operand.hbm [shape: bf16[128,128], index: 10, kind: input, shape index: {}]   ;;  %s14363_s11 = inlined_call_operand.hbm [shape: bf16[128,128], index: 11, kind: input, shape index: {}]   ;;  %s14364_s12 = inlined_call_operand.hbm [shape: f32[1,128], index: 12, kind: input, shape index: {}]   ;;  %s14365_s13 = inlined_call_operand.hbm [shape: f32[8,128], index: 13, kind: output, shape index: {}]  }
   0x1   :  { %19 = vsyncpa [#allocation12], 0 }
   0x2   :  { %20 = vsyncpa [#allocation15], 0 }
   0x3   :  { %21 = vsyncpa [#allocation18], 0 }
   0x4   :  { %22 = vsyncpa [#allocation21], 0 }
   0x5   :  { %23 = vsyncpa [#allocation24], 0 }
   0x6   :  { %24 = vsyncpa [#allocation27], 0 }
   0x7   :  { %25 = vsyncpa [#allocation10], 0  ;;  %s12126_s25 = smov [#allocation11]   ;;  %s11802_s29 = scalar_lea.hbm %s14353_s1, 8192 }
   0x8   :  { %s43_s26 = sshll.u32 %s12126_s25, 4  ;;  %p11803_p0 = scmp.ne.s32.totalorder %s14353_s1, %s11802_s29  ;;  %s44_s26 = int_to_ptr.vmem [resolvable:$true] %s43_s26 }
   0x9   :  { %p11806_p1 = scmp.lt.u32.totalorder %s11802_s29, %s14353_s1 }
   0xb   :  { %p11808_p2 = pnand %p11806_p1, %p11803_p0 }
   0xd   :  { %11811 = shalt.err (!%p11808_p2)
}
   0xe   :  { %s11812_s17 = scalar_lea.vmem %s44_s26, 8192  ;;  %p11817_p4 = scmp.lt.s32.totalorder %s44_s26, %s44_s26 }
   0xf   :  { %p11813_p3 = scmp.ne.s32.totalorder %s44_s26, %s11812_s17  ;;  %p11818_p5 = scmp.lt.s32.totalorder %s11812_s17, %s11812_s17 }
  0x11   :  { %p11819_p6 = por %p11818_p5, %p11817_p4 }
  0x13   :  { %p11820_p7 = pnand %p11819_p6, %p11813_p3 }
  0x15   :  { %11823 = shalt.err (!%p11820_p7)
}
  0x16   :  { %s12127_s18 = smov 512   ;;  %s12128_s19 = smov 32  }
  0x17   :  { %49 = dma.hbm_to_vmem [thread:$0]  %s14353_s1, 8192, %s44_s26, [#allocation12], %s12127_s18, %s12127_s18, %s12128_s19  }
  0x18   :  { %s12129_s22 = smov [#allocation14]   ;;  %s12130_s24 = smov [#allocation17]  }
  0x19   :  { %s67_s23 = sshll.u32 %s12129_s22, 4  ;;  %s89_s25 = sshll.u32 %s12130_s24, 4  ;;  %s68_s23 = int_to_ptr.vmem [resolvable:$true] %s67_s23  ;;  %s90_s25 = int_to_ptr.vmem [resolvable:$true] %s89_s25 }
  0x1a   :  { %s11824_s29 = scalar_lea.hbm %s14355_s3, 4096 }
  0x1b   :  { %p11825_p8 = scmp.ne.s32.totalorder %s14355_s3, %s11824_s29  ;;  %p11828_p9 = scmp.lt.u32.totalorder %s11824_s29, %s14355_s3 }
  0x1d   :  { %p11830_p10 = pnand %p11828_p9, %p11825_p8 }
  0x1f   :  { %11833 = shalt.err (!%p11830_p10)
}
  0x20   :  { %s11834_s1 = scalar_lea.vmem %s68_s23, 4096  ;;  %p11839_p12 = scmp.lt.s32.totalorder %s68_s23, %s68_s23 }
  0x21   :  { %p11835_p11 = scmp.ne.s32.totalorder %s68_s23, %s11834_s1  ;;  %p11840_p13 = scmp.lt.s32.totalorder %s11834_s1, %s11834_s1 }
  0x23   :  { %p11841_p0 = por %p11840_p13, %p11839_p12 }
  0x25   :  { %p11842_p1 = pnand %p11841_p0, %p11835_p11 }
  0x27   :  { %11845 = shalt.err (!%p11842_p1)
}
  0x28   :  { %s12131_s26 = smov 256   ;;  %s12132_s17 = smov 16  }
  0x29   :  { %73 = dma.hbm_to_vmem [thread:$0]  %s14355_s3, 4096, %s68_s23, [#allocation15], %s12131_s26, %s12131_s26, %s12132_s17  }
  0x2a   :  { %s11846_s22 = scalar_lea.hbm %s14357_s5, 8192 }
  0x2b   :  { %p11847_p2 = scmp.ne.s32.totalorder %s14357_s5, %s11846_s22  ;;  %p11850_p3 = scmp.lt.u32.totalorder %s11846_s22, %s14357_s5 }
  0x2d   :  { %p11852_p4 = pnand %p11850_p3, %p11847_p2 }
  0x2f   :  { %11855 = shalt.err (!%p11852_p4)
}
  0x30   :  { %s11856_s30 = scalar_lea.vmem %s90_s25, 8192  ;;  %p11861_p6 = scmp.lt.s32.totalorder %s90_s25, %s90_s25 }
  0x31   :  { %p11857_p5 = scmp.ne.s32.totalorder %s90_s25, %s11856_s30  ;;  %p11862_p7 = scmp.lt.s32.totalorder %s11856_s30, %s11856_s30 }
  0x33   :  { %p11863_p8 = por %p11862_p7, %p11861_p6 }
  0x35   :  { %p11864_p9 = pnand %p11863_p8, %p11857_p5 }
  0x37   :  { %11867 = shalt.err (!%p11864_p9)
}
  0x38   :  { %95 = dma.hbm_to_vmem [thread:$0]  %s14357_s5, 8192, %s90_s25, [#allocation18], %s12131_s26, %s12131_s26, %s12132_s17  }
  0x39   :  { %s12133_s14 = smov [#allocation20]   ;;  %s12134_s16 = smov [#allocation23]  }
  0x3a   :  { %s114_s15 = sshll.u32 %s12133_s14, 4  ;;  %s136_s1 = sshll.u32 %s12134_s16, 4  ;;  %s115_s15 = int_to_ptr.vmem [resolvable:$true] %s114_s15  ;;  %s137_s1 = int_to_ptr.vmem [resolvable:$true] %s136_s1 }
  0x3b   :  { %s11868_s20 = scalar_lea.hbm %s14359_s7, 64 }
  0x3c   :  { %p11869_p10 = scmp.ne.s32.totalorder %s14359_s7, %s11868_s20  ;;  %p11872_p11 = scmp.lt.u32.totalorder %s11868_s20, %s14359_s7 }
  0x3e   :  { %p11874_p12 = pnand %p11872_p11, %p11869_p10 }
  0x40   :  { %11877 = shalt.err (!%p11874_p12)
}
  0x41   :  { %s11878_s5 = scalar_lea.vmem %s115_s15, 64  ;;  %p11883_p0 = scmp.lt.s32.totalorder %s115_s15, %s115_s15 }
  0x42   :  { %p11879_p13 = scmp.ne.s32.totalorder %s115_s15, %s11878_s5  ;;  %p11884_p1 = scmp.lt.s32.totalorder %s11878_s5, %s11878_s5 }
  0x44   :  { %p11885_p2 = por %p11884_p1, %p11883_p0 }
  0x46   :  { %p11886_p3 = pnand %p11885_p2, %p11879_p13 }
  0x48   :  { %11889 = shalt.err (!%p11886_p3)
}
  0x49   :  { %117 = dma.hbm_to_vmem [thread:$0]  %s14359_s7, 64, %s115_s15, [#allocation21]  }
  0x4a   :  { %s11890_s3 = scalar_lea.hbm %s14361_s9, 64 }
  0x4b   :  { %p11891_p4 = scmp.ne.s32.totalorder %s14361_s9, %s11890_s3  ;;  %p11894_p5 = scmp.lt.u32.totalorder %s11890_s3, %s14361_s9 }
  0x4d   :  { %p11896_p6 = pnand %p11894_p5, %p11891_p4 }
  0x4f   :  { %11899 = shalt.err (!%p11896_p6)
}
  0x50   :  { %s11900_s19 = scalar_lea.vmem %s137_s1, 64  ;;  %p11905_p8 = scmp.lt.s32.totalorder %s137_s1, %s137_s1 }
  0x51   :  { %p11901_p7 = scmp.ne.s32.totalorder %s137_s1, %s11900_s19  ;;  %p11906_p9 = scmp.lt.s32.totalorder %s11900_s19, %s11900_s19 }
  0x53   :  { %p11907_p10 = por %p11906_p9, %p11905_p8 }
  0x55   :  { %p11908_p11 = pnand %p11907_p10, %p11901_p7 }
  0x57   :  { %11911 = shalt.err (!%p11908_p11)
}
  0x58   :  { %139 = dma.hbm_to_vmem [thread:$0]  %s14361_s9, 64, %s137_s1, [#allocation24]  }
  0x59   :  { %s12135_s20 = smov [#allocation26]   ;;  %s12136_s22 = smov [#allocation8]  }
  0x5a   :  { %s157_s21 = sshll.u32 %s12135_s20, 4  ;;  %s31_s24 = sshll.u32 %s12136_s22, 4  ;;  %s158_s21 = int_to_ptr.vmem [resolvable:$true] %s157_s21  ;;  %s32_s24 = int_to_ptr.vmem [resolvable:$true] %s31_s24 }
  0x5b   :  { %s11912_s25 = scalar_lea.hbm %s14363_s11, 1024 }
  0x5c   :  { %p11913_p12 = scmp.ne.s32.totalorder %s14363_s11, %s11912_s25  ;;  %p11916_p13 = scmp.lt.u32.totalorder %s11912_s25, %s14363_s11 }
  0x5e   :  { %p11918_p0 = pnand %p11916_p13, %p11913_p12 }
  0x60   :  { %11921 = shalt.err (!%p11918_p0)
}
  0x61   :  { %s11922_s9 = scalar_lea.vmem %s158_s21, 1024  ;;  %p11927_p2 = scmp.lt.s32.totalorder %s158_s21, %s158_s21 }
  0x62   :  { %p11923_p1 = scmp.ne.s32.totalorder %s158_s21, %s11922_s9  ;;  %p11928_p3 = scmp.lt.s32.totalorder %s11922_s9, %s11922_s9 }
  0x64   :  { %p11929_p4 = por %p11928_p3, %p11927_p2 }
  0x66   :  { %p11930_p5 = pnand %p11929_p4, %p11923_p1 }
  0x68   :  { %11933 = shalt.err (!%p11930_p5)
}
  0x69   :  { %s12137_s1 = smov 64   ;;  %s12138_s23 = smov 4  }
  0x6a   :  { %163 = dma.hbm_to_vmem [thread:$0]  %s14363_s11, 1024, %s158_s21, [#allocation27], %s12137_s1, %s12137_s1, %s12138_s23  }
  0x6b   :  { %s11934_s7 = scalar_lea.hbm %s14352_s0, 512 }
  0x6c   :  { %p11935_p6 = scmp.ne.s32.totalorder %s14352_s0, %s11934_s7  ;;  %p11938_p7 = scmp.lt.u32.totalorder %s11934_s7, %s14352_s0 }
  0x6e   :  { %p11940_p8 = pnand %p11938_p7, %p11935_p6 }
  0x70   :  { %11943 = shalt.err (!%p11940_p8)
}
  0x71   :  { %s11944_s5 = scalar_lea.vmem %s32_s24, 512  ;;  %p11949_p10 = scmp.lt.s32.totalorder %s32_s24, %s32_s24 }
  0x72   :  { %p11945_p9 = scmp.ne.s32.totalorder %s32_s24, %s11944_s5  ;;  %p11950_p11 = scmp.lt.s32.totalorder %s11944_s5, %s11944_s5 }
  0x74   :  { %p11951_p12 = por %p11950_p11, %p11949_p10 }
  0x76   :  { %p11952_p13 = pnand %p11951_p12, %p11945_p9 }
  0x78   :  { %11955 = shalt.err (!%p11952_p13)
}
  0x79   :  { %37 = dma.hbm_to_vmem [thread:$0]  %s14352_s0, 512, %s32_s24, [#allocation9], %s12137_s1, %s12137_s1, %s12138_s23  }
  0x7a   :  { %s12139_s25 = smov [#allocation13]   ;;  %s12140_s29 = smov [#allocation16]  }
  0x7b   :  { %s55_s28 = sshll.u32 %s12139_s25, 4  ;;  %s80_s30 = sshll.u32 %s12140_s29, 4  ;;  %s56_s28 = int_to_ptr.vmem [resolvable:$true] %s55_s28  ;;  %s81_s30 = int_to_ptr.vmem [resolvable:$true] %s80_s30 }
  0x7c   :  { %s11956_s14 = scalar_lea.hbm %s14354_s2, 4096 }
  0x7d   :  { %p11957_p0 = scmp.ne.s32.totalorder %s14354_s2, %s11956_s14  ;;  %p11960_p1 = scmp.lt.u32.totalorder %s11956_s14, %s14354_s2 }
  0x7f   :  { %p11962_p2 = pnand %p11960_p1, %p11957_p0 }
  0x81   :  { %11965 = shalt.err (!%p11962_p2)
}
  0x82   :  { %s11966_s0 = scalar_lea.vmem %s56_s28, 4096  ;;  %p11971_p4 = scmp.lt.s32.totalorder %s56_s28, %s56_s28 }
  0x83   :  { %p11967_p3 = scmp.ne.s32.totalorder %s56_s28, %s11966_s0  ;;  %p11972_p5 = scmp.lt.s32.totalorder %s11966_s0, %s11966_s0 }
  0x85   :  { %p11973_p6 = por %p11972_p5, %p11971_p4 }
  0x87   :  { %p11974_p7 = pnand %p11973_p6, %p11967_p3 }
  0x89   :  { %11977 = shalt.err (!%p11974_p7)
}
  0x8a   :  { %61 = dma.hbm_to_vmem [thread:$0]  %s14354_s2, 4096, %s56_s28, [#allocation12], %s12131_s26, %s12131_s26, %s12132_s17  }
  0x8b   :  { %s11978_s27 = scalar_lea.hbm %s14356_s4, 128 }
  0x8c   :  { %p11979_p8 = scmp.ne.s32.totalorder %s14356_s4, %s11978_s27  ;;  %p11982_p9 = scmp.lt.u32.totalorder %s11978_s27, %s14356_s4 }
  0x8e   :  { %p11984_p10 = pnand %p11982_p9, %p11979_p8 }
  0x90   :  { %11987 = shalt.err (!%p11984_p10)
}
  0x91   :  { %s11988_s29 = scalar_lea.vmem %s81_s30, 128  ;;  %p11993_p12 = scmp.lt.s32.totalorder %s81_s30, %s81_s30 }
  0x92   :  { %p11989_p11 = scmp.ne.s32.totalorder %s81_s30, %s11988_s29  ;;  %p11994_p13 = scmp.lt.s32.totalorder %s11988_s29, %s11988_s29 }
  0x94   :  { %p11995_p0 = por %p11994_p13, %p11993_p12 }
  0x96   :  { %p11996_p1 = pnand %p11995_p0, %p11989_p11 }
  0x98   :  { %11999 = shalt.err (!%p11996_p1)
}
  0x99   :  { %83 = dma.hbm_to_vmem [thread:$0]  %s14356_s4, 128, %s81_s30, [#allocation15]  }
  0x9a   :  { %s12141_s3 = smov [#allocation19]   ;;  %s12142_s14 = smov [#allocation22]  }
  0x9b   :  { %s101_s9 = sshll.u32 %s12141_s3, 4  ;;  %s123_s16 = sshll.u32 %s12142_s14, 4  ;;  %s102_s9 = int_to_ptr.vmem [resolvable:$true] %s101_s9  ;;  %s124_s16 = int_to_ptr.vmem [resolvable:$true] %s123_s16 }
  0x9c   :  { %s12000_s7 = scalar_lea.hbm %s14358_s6, 4096 }
  0x9d   :  { %p12001_p2 = scmp.ne.s32.totalorder %s14358_s6, %s12000_s7  ;;  %p12004_p3 = scmp.lt.u32.totalorder %s12000_s7, %s14358_s6 }
  0x9f   :  { %p12006_p4 = pnand %p12004_p3, %p12001_p2 }
  0xa1   :  { %12009 = shalt.err (!%p12006_p4)
}
  0xa2   :  { %s12010_s4 = scalar_lea.vmem %s102_s9, 4096  ;;  %p12015_p6 = scmp.lt.s32.totalorder %s102_s9, %s102_s9 }
  0xa3   :  { %p12011_p5 = scmp.ne.s32.totalorder %s102_s9, %s12010_s4  ;;  %p12016_p7 = scmp.lt.s32.totalorder %s12010_s4, %s12010_s4 }
  0xa5   :  { %p12017_p8 = por %p12016_p7, %p12015_p6 }
  0xa7   :  { %p12018_p9 = pnand %p12017_p8, %p12011_p5 }
  0xa9   :  { %12021 = shalt.err (!%p12018_p9)
}
  0xaa   :  { %107 = dma.hbm_to_vmem [thread:$0]  %s14358_s6, 4096, %s102_s9, [#allocation18], %s12131_s26, %s12131_s26, %s12132_s17  }
  0xab   :  { %s12022_s11 = scalar_lea.hbm %s14360_s8, 8192 }
  0xac   :  { %p12023_p10 = scmp.ne.s32.totalorder %s14360_s8, %s12022_s11  ;;  %p12026_p11 = scmp.lt.u32.totalorder %s12022_s11, %s14360_s8 }
  0xae   :  { %p12028_p12 = pnand %p12026_p11, %p12023_p10 }
  0xb0   :  { %12031 = shalt.err (!%p12028_p12)
}
  0xb1   :  { %s12032_s28 = scalar_lea.vmem %s124_s16, 8192  ;;  %p12037_p0 = scmp.lt.s32.totalorder %s124_s16, %s124_s16 }
  0xb2   :  { %p12033_p13 = scmp.ne.s32.totalorder %s124_s16, %s12032_s28  ;;  %p12038_p1 = scmp.lt.s32.totalorder %s12032_s28, %s12032_s28 }
  0xb4   :  { %p12039_p2 = por %p12038_p1, %p12037_p0 }
  0xb6   :  { %p12040_p3 = pnand %p12039_p2, %p12033_p13 }
  0xb8   :  { %12043 = shalt.err (!%p12040_p3)
}
  0xb9   :  { %129 = dma.hbm_to_vmem [thread:$0]  %s14360_s8, 8192, %s124_s16, [#allocation21], %s12131_s26, %s12131_s26, %s12132_s17  }
  0xba   :  { %s12143_s9 = smov [#allocation25]   ;;  %s12144_s18 = smov [#allocation28]  }
  0xbb   :  { %s145_s14 = sshll.u32 %s12143_s9, 4  ;;  %s170_s19 = sshll.u32 %s12144_s18, 4  ;;  %s146_s14 = int_to_ptr.vmem [resolvable:$true] %s145_s14  ;;  %s171_s19 = int_to_ptr.vmem [resolvable:$true] %s170_s19 }
  0xbc   :  { %s12044_s24 = scalar_lea.hbm %s14362_s10, 1024 }
  0xbd   :  { %p12045_p4 = scmp.ne.s32.totalorder %s14362_s10, %s12044_s24  ;;  %p12048_p5 = scmp.lt.u32.totalorder %s12044_s24, %s14362_s10 }
  0xbf   :  { %p12050_p6 = pnand %p12048_p5, %p12045_p4 }
  0xc1   :  { %12053 = shalt.err (!%p12050_p6)
}
  0xc2   :  { %s12054_s8 = scalar_lea.vmem %s146_s14, 1024  ;;  %p12059_p8 = scmp.lt.s32.totalorder %s146_s14, %s146_s14 }
  0xc3   :  { %p12055_p7 = scmp.ne.s32.totalorder %s146_s14, %s12054_s8  ;;  %p12060_p9 = scmp.lt.s32.totalorder %s12054_s8, %s12054_s8 }
  0xc5   :  { %p12061_p10 = por %p12060_p9, %p12059_p8 }
  0xc7   :  { %p12062_p11 = pnand %p12061_p10, %p12055_p7 }
  0xc9   :  { %12065 = shalt.err (!%p12062_p11)
}
  0xca   :  { %151 = dma.hbm_to_vmem [thread:$0]  %s14362_s10, 1024, %s146_s14, [#allocation24], %s12137_s1, %s12137_s1, %s12138_s23  }
  0xcb   :  { %s12066_s27 = scalar_lea.hbm %s14364_s12, 16 }
  0xcc   :  { %p12067_p12 = scmp.ne.s32.totalorder %s14364_s12, %s12066_s27  ;;  %p12070_p13 = scmp.lt.u32.totalorder %s12066_s27, %s14364_s12 }
  0xce   :  { %p12072_p0 = pnand %p12070_p13, %p12067_p12 }
  0xd0   :  { %12075 = shalt.err (!%p12072_p0)
}
  0xd1   :  { %s12076_s29 = scalar_lea.vmem %s171_s19, 16  ;;  %s12080_s2 = scalar_lea.vmem %s171_s19, 32 }
  0xd2   :  { %p12077_p1 = scmp.ne.s32.totalorder %s171_s19, %s12076_s29  ;;  %p12081_p2 = scmp.lt.s32.totalorder %s171_s19, %s171_s19 }
  0xd3   :  { %p12082_p3 = scmp.lt.s32.totalorder %s12080_s2, %s12076_s29 }
  0xd5   :  { %p12083_p4 = por %p12082_p3, %p12081_p2 }
  0xd7   :  { %p12084_p5 = pnand %p12083_p4, %p12077_p1 }
  0xd9   :  { %12087 = shalt.err (!%p12084_p5)
}
  0xda   :  { %173 = dma.hbm_to_vmem [thread:$0]  %s14364_s12, 16, %s171_s19, [#allocation27]  }
  0xdb   :  { %12110 = dma.done.wait [#allocation9], 512  }
  0xdc   :  { %12111 = vsyncadd [#allocation9], 4294966784 }
  0xdd   :  { %12112 = dma.done.wait [#allocation12], 12288  }
  0xde   :  { %12113 = vsyncadd [#allocation12], 4294955008 }
  0xdf   :  { %12114 = dma.done.wait [#allocation15], 4224  }
  0xe0   :  { %12115 = vsyncadd [#allocation15], 4294963072 }
  0xe1   :  { %12116 = dma.done.wait [#allocation18], 12288  }
  0xe2   :  { %12117 = vsyncadd [#allocation18], 4294955008 }
  0xe3   :  { %12118 = dma.done.wait [#allocation21], 8256  }
  0xe4   :  { %12119 = vsyncadd [#allocation21], 4294959040 }
  0xe5   :  { %12120 = dma.done.wait [#allocation24], 1088  }
  0xe6   :  { %12121 = vsyncadd [#allocation24], 4294966208 }
  0xe7   :  { %12122 = dma.done.wait [#allocation27], 1040  }
  0xe8   :  { %12123 = vsyncadd [#allocation27], 4294966256  ;;  %v14368_v0 = vmov 0   ;;  %v222_v1 = vld [vmem:[#allocation11] sm:$0xff]  ;;  %v223_v3 = vld [vmem:[#allocation11 + $0x8] sm:$0xff]  ;;  %vm12148_vm0 = vmmov 0  }
  0xe9   :  { %704 = vmatprep.mubr.bf16.mxu0 %v14368_v0  ;;  %777 = vmatprep.mubr.bf16.mxu1 %v14368_v0  ;;  %v226_v2 = vld [vmem:[#allocation11 + $0x20] sm:$0xff]  ;;  %v227_v5 = vld [vmem:[#allocation11 + $0x28] sm:$0xff]  ;;  %v224_v63 = vld [vmem:[#allocation11 + $0x10] sm:$0xff]  ;;  %s12149_s12 = smov [#allocation29]  }
  0xea   :  { %v9772_v4 = vcombine.high %v222_v1, %v226_v2  ;;  %v9771_v6 = vcombine.low %v222_v1, %v226_v2  ;;  %v230_v7 = vld [vmem:[#allocation11 + $0x40] sm:$0xff]  ;;  %v9774_v9 = vcombine.high %v223_v3, %v227_v5  ;;  %v9773_v10 = vcombine.low %v223_v3, %v227_v5  ;;  %v231_v12 = vld [vmem:[#allocation11 + $0x48] sm:$0xff]  ;;  %v228_v1 = vld [vmem:[#allocation11 + $0x30] sm:$0xff]  ;;  %s9745_s23 = sshll.u32 %s12149_s12, 4  ;;  %s9746_s23 = int_to_ptr.vmem [resolvable:$true] %s9745_s23 }
  0xeb   :  { %v234_v8 = vld [vmem:[#allocation11 + $0x60] sm:$0xff]  ;;  %v235_v13 = vld [vmem:[#allocation11 + $0x68] sm:$0xff]  ;;  %v225_v2 = vld [vmem:[#allocation11 + $0x18] sm:$0xff]  ;;  %s12088_s28 = scalar_lea.vmem %s9746_s23, 128  ;;  %p12093_p7 = scmp.lt.s32.totalorder %s9746_s23, %s9746_s23 }
  0xec   :  { %v9780_v11 = vcombine.high %v230_v7, %v234_v8  ;;  %v238_v14 = vld [vmem:[#allocation11 + $0x80] sm:$0xff]  ;;  %672 = vmatprep.subr.bf16.mxu0 %v9772_v4  ;;  %v9782_v15 = vcombine.high %v231_v12, %v235_v13  ;;  %v239_v17 = vld [vmem:[#allocation11 + $0x88] sm:$0xff]  ;;  %745 = vmatprep.subr.bf16.mxu1 %v9774_v9  ;;  %v9779_v19 = vcombine.low %v230_v7, %v234_v8  ;;  %v229_v3 = vld [vmem:[#allocation11 + $0x38] sm:$0xff]  ;;  %p12089_p6 = scmp.ne.s32.totalorder %s9746_s23, %s12088_s28  ;;  %p12094_p8 = scmp.lt.s32.totalorder %s12088_s28, %s12088_s28 }
  0xed   :  { %v242_v16 = vld [vmem:[#allocation11 + $0xa0] sm:$0xff]  ;;  %v243_v18 = vld [vmem:[#allocation11 + $0xa8] sm:$0xff]  ;;  %673 = vmatpush1.bf16.msra.mxu0 %v9771_v6  ;;  %746 = vmatpush1.bf16.msra.mxu1 %v9773_v10  ;;  %v9781_v20 = vcombine.low %v231_v12, %v235_v13  ;;  %v9776_v7 = vcombine.high %v224_v63, %v228_v1  ;;  %v9778_v8 = vcombine.high %v225_v2, %v229_v3  ;;  %v232_v9 = vld [vmem:[#allocation11 + $0x50] sm:$0xff] }
  0xee   :  { %674 = vmatprep.subr.bf16.mxu0 %v9780_v11  ;;  %v9788_v21 = vcombine.high %v238_v14, %v242_v16  ;;  %747 = vmatprep.subr.bf16.mxu1 %v9782_v15  ;;  %v9790_v22 = vcombine.high %v239_v17, %v243_v18  ;;  %v246_v23 = vld [vmem:[#allocation11 + $0xc0] sm:$0xff]  ;;  %v247_v25 = vld [vmem:[#allocation11 + $0xc8] sm:$0xff]  ;;  %v9787_v27 = vcombine.low %v238_v14, %v242_v16  ;;  %v236_v10 = vld [vmem:[#allocation11 + $0x70] sm:$0xff]  ;;  %p12095_p9 = por %p12094_p8, %p12093_p7 }
  0xef   :  { %v250_v24 = vld [vmem:[#allocation11 + $0xe0] sm:$0xff]  ;;  %v251_v26 = vld [vmem:[#allocation11 + $0xe8] sm:$0xff]  ;;  %v9789_v28 = vcombine.low %v239_v17, %v243_v18  ;;  %v233_v11 = vld [vmem:[#allocation11 + $0x58] sm:$0xff]  ;;  %v9775_v13 = vcombine.low %v224_v63, %v228_v1  ;;  %v9777_v14 = vcombine.low %v225_v2, %v229_v3  ;;  %v9784_v15 = vcombine.high %v232_v9, %v236_v10 }
  0xf0   :  { %v9796_v29 = vcombine.high %v246_v23, %v250_v24  ;;  %v9798_v30 = vcombine.high %v247_v25, %v251_v26  ;;  %v254_v31 = vld [vmem:[#allocation11 + $0x100] sm:$0xff]  ;;  %v255_v33 = vld [vmem:[#allocation11 + $0x108] sm:$0xff]  ;;  %v9795_v35 = vcombine.low %v246_v23, %v250_v24  ;;  %v9797_v36 = vcombine.low %v247_v25, %v251_v26  ;;  %v237_v12 = vld [vmem:[#allocation11 + $0x78] sm:$0xff]  ;;  %p12096_p10 = pnand %p12095_p9, %p12089_p6 }
  0xf1   :  { %675 = vmatpush1.bf16.msra.mxu0 %v9779_v19  ;;  %748 = vmatpush1.bf16.msra.mxu1 %v9781_v20  ;;  %v258_v32 = vld [vmem:[#allocation11 + $0x120] sm:$0xff]  ;;  %v259_v34 = vld [vmem:[#allocation11 + $0x128] sm:$0xff]  ;;  %v9786_v16 = vcombine.high %v233_v11, %v237_v12  ;;  %v240_v17 = vld [vmem:[#allocation11 + $0x90] sm:$0xff] }
  0xf2   :  { %676 = vmatprep.subr.bf16.mxu0 %v9788_v21  ;;  %749 = vmatprep.subr.bf16.mxu1 %v9790_v22  ;;  %v9804_v37 = vcombine.high %v254_v31, %v258_v32  ;;  %v262_v38 = vld [vmem:[#allocation11 + $0x140] sm:$0xff]  ;;  %v9806_v39 = vcombine.high %v255_v33, %v259_v34  ;;  %v263_v41 = vld [vmem:[#allocation11 + $0x148] sm:$0xff]  ;;  %v9803_v43 = vcombine.low %v254_v31, %v258_v32  ;;  %v244_v18 = vld [vmem:[#allocation11 + $0xb0] sm:$0xff] }
  0xf3   :  { %v266_v40 = vld [vmem:[#allocation11 + $0x160] sm:$0xff]  ;;  %v267_v42 = vld [vmem:[#allocation11 + $0x168] sm:$0xff]  ;;  %v9805_v44 = vcombine.low %v255_v33, %v259_v34  ;;  %v241_v19 = vld [vmem:[#allocation11 + $0x98] sm:$0xff]  ;;  %v9783_v21 = vcombine.low %v232_v9, %v236_v10  ;;  %v9785_v22 = vcombine.low %v233_v11, %v237_v12  ;;  %v9792_v24 = vcombine.high %v240_v17, %v244_v18 }
  0xf4   :  { %v9812_v45 = vcombine.high %v262_v38, %v266_v40  ;;  %v270_v46 = vld [vmem:[#allocation11 + $0x180] sm:$0xff]  ;;  %v9814_v47 = vcombine.high %v263_v41, %v267_v42  ;;  %v271_v49 = vld [vmem:[#allocation11 + $0x188] sm:$0xff]  ;;  %v9811_v51 = vcombine.low %v262_v38, %v266_v40  ;;  %v9813_v52 = vcombine.low %v263_v41, %v267_v42  ;;  %v245_v20 = vld [vmem:[#allocation11 + $0xb8] sm:$0xff] }
  0xf5   :  { %677 = vmatpush1.bf16.msra.mxu0 %v9787_v27  ;;  %750 = vmatpush1.bf16.msra.mxu1 %v9789_v28  ;;  %v274_v48 = vld [vmem:[#allocation11 + $0x1a0] sm:$0xff]  ;;  %v275_v50 = vld [vmem:[#allocation11 + $0x1a8] sm:$0xff]  ;;  %v9794_v25 = vcombine.high %v241_v19, %v245_v20  ;;  %v248_v26 = vld [vmem:[#allocation11 + $0xd0] sm:$0xff]  ;;  %v9793_v31 = vcombine.low %v241_v19, %v245_v20 }
  0xf6   :  { %678 = vmatprep.subr.bf16.mxu0 %v9796_v29  ;;  %751 = vmatprep.subr.bf16.mxu1 %v9798_v30  ;;  %v9820_v53 = vcombine.high %v270_v46, %v274_v48  ;;  %v9822_v54 = vcombine.high %v271_v49, %v275_v50  ;;  %v278_v55 = vld [vmem:[#allocation11 + $0x1c0] sm:$0xff]  ;;  %v279_v57 = vld [vmem:[#allocation11 + $0x1c8] sm:$0xff]  ;;  %v9819_v59 = vcombine.low %v270_v46, %v274_v48  ;;  %v252_v27 = vld [vmem:[#allocation11 + $0xf0] sm:$0xff] }
  0xf7   :  { %v282_v56 = vld [vmem:[#allocation11 + $0x1e0] sm:$0xff]  ;;  %v283_v58 = vld [vmem:[#allocation11 + $0x1e8] sm:$0xff]  ;;  %v9821_v60 = vcombine.low %v271_v49, %v275_v50  ;;  %v249_v28 = vld [vmem:[#allocation11 + $0xd8] sm:$0xff]  ;;  %v9791_v30 = vcombine.low %v240_v17, %v244_v18  ;;  %v9800_v32 = vcombine.high %v248_v26, %v252_v27  ;;  %v9799_v38 = vcombine.low %v248_v26, %v252_v27 }
  0xf8   :  { %v9828_v61 = vcombine.high %v278_v55, %v282_v56  ;;  %v9830_v62 = vcombine.high %v279_v57, %v283_v58  ;;  %v9827_v4 = vcombine.low %v278_v55, %v282_v56  ;;  %v9829_v5 = vcombine.low %v279_v57, %v283_v58  ;;  %v12402_v6 = vld [vmem:[#allocation8] sm:$0xff]   ;;  %v12406_v23 = vld [vmem:[#allocation8 + $0x8] sm:$0xff]   ;;  %v253_v29 = vld [vmem:[#allocation11 + $0xf8] sm:$0xff] }
  0xf9   :  { %679 = vmatpush1.bf16.msra.mxu0 %v9795_v35  ;;  %752 = vmatpush1.bf16.msra.mxu1 %v9797_v36  ;;  %v9802_v33 = vcombine.high %v249_v28, %v253_v29  ;;  %v256_v34 = vld [vmem:[#allocation11 + $0x110] sm:$0xff]  ;;  %v257_v36 = vld [vmem:[#allocation11 + $0x118] sm:$0xff] }
  0xfa   :  { %680 = vmatprep.subr.bf16.mxu0 %v9804_v37  ;;  %753 = vmatprep.subr.bf16.mxu1 %v9806_v39  ;;  %v260_v35 = vld [vmem:[#allocation11 + $0x130] sm:$0xff]  ;;  %v261_v37 = vld [vmem:[#allocation11 + $0x138] sm:$0xff]  ;;  %v9801_v39 = vcombine.low %v249_v28, %v253_v29 }
  0xfb   :  { %v12412_v40 = vld [vmem:[#allocation8 + $0x10] sm:$0xff]   ;;  %v9808_v41 = vcombine.high %v256_v34, %v260_v35  ;;  %v9810_v42 = vcombine.high %v257_v36, %v261_v37  ;;  %v269_v46 = vld [vmem:[#allocation11 + $0x178] sm:$0xff]  ;;  %v9809_v48 = vcombine.low %v257_v36, %v261_v37 }
  0xfc   :  { %v12418_v57 = vld [vmem:[#allocation8 + $0x18] sm:$0xff]   ;;  %v12430_v10 = vld [vmem:[#allocation13] ss:$16 sps:$4 sm:$0xff]   ;;  %v12435_v12 = vld [vmem:[#allocation13 + $0x24] ss:$16 sps:$4 sm:$0xff]  }
  0xfd   :  { %681 = vmatpush1.bf16.msra.mxu0 %v9803_v43  ;;  %754 = vmatpush1.bf16.msra.mxu1 %v9805_v44  ;;  %v264_v43 = vld [vmem:[#allocation11 + $0x150] sm:$0xff]  ;;  %v285_v63 = vld [vmem:[#allocation11 + $0x1f8] sm:$0xff] }
  0xfe   :  { %682 = vmatprep.subr.bf16.mxu0 %v9812_v45  ;;  %755 = vmatprep.subr.bf16.mxu1 %v9814_v47  ;;  %v268_v44 = vld [vmem:[#allocation11 + $0x170] sm:$0xff]  ;;  %v265_v45 = vld [vmem:[#allocation11 + $0x158] sm:$0xff]  ;;  %v9807_v47 = vcombine.low %v256_v34, %v260_v35 }
  0xff   :  { %v9816_v49 = vcombine.high %v264_v43, %v268_v44  ;;  %v9818_v50 = vcombine.high %v265_v45, %v269_v46  ;;  %v9815_v55 = vcombine.low %v264_v43, %v268_v44  ;;  %v9817_v56 = vcombine.low %v265_v45, %v269_v46  ;;  %v12427_v9 = vld [vmem:[#allocation13 + $0xc] ss:$16 sps:$4 sm:$0xff]   ;;  %v12432_v11 = vld [vmem:[#allocation13 + $0x8] ss:$16 sps:$4 sm:$0xff]   ;;  %v12455_v18 = vld [vmem:[#allocation13 + $0x40] ss:$16 sps:$4 sm:$0xff]  }
 0x100   :  { %v12449_v17 = vld [vmem:[#allocation13 + $0x4c] ss:$16 sps:$4 sm:$0xff]   ;;  %v12458_v19 = vld [vmem:[#allocation13 + $0x48] ss:$16 sps:$4 sm:$0xff]   ;;  %v12460_v20 = vld [vmem:[#allocation13 + $0x64] ss:$16 sps:$4 sm:$0xff]  }
 0x101   :  { %683 = vmatpush1.bf16.msra.mxu0 %v9811_v51  ;;  %756 = vmatpush1.bf16.msra.mxu1 %v9813_v52  ;;  %v272_v51 = vld [vmem:[#allocation11 + $0x190] sm:$0xff]  ;;  %v12486_v27 = vld [vmem:[#allocation13 + $0x88] ss:$16 sps:$4 sm:$0xff]   ;;  %v12519_v36 = vld [vmem:[#allocation13 + $0xec] ss:$16 sps:$4 sm:$0xff]   ;;  %v14366_v46 = vmov 0.0|0.0  }
 0x102   :  { %684 = vmatprep.subr.bf16.mxu0 %v9820_v53  ;;  %757 = vmatprep.subr.bf16.mxu1 %v9822_v54  ;;  %v276_v52 = vld [vmem:[#allocation11 + $0x1b0] sm:$0xff]  ;;  %v273_v53 = vld [vmem:[#allocation11 + $0x198] sm:$0xff] }
 0x103   :  { %v277_v54 = vld [vmem:[#allocation11 + $0x1b8] sm:$0xff]  ;;  %v9824_v58 = vcombine.high %v272_v51, %v276_v52  ;;  %v9823_v1 = vcombine.low %v272_v51, %v276_v52  ;;  %v12483_v26 = vld [vmem:[#allocation13 + $0x80] ss:$16 sps:$4 sm:$0xff]   ;;  %v12488_v28 = vld [vmem:[#allocation13 + $0xa4] ss:$16 sps:$4 sm:$0xff]  }
 0x104   :  { %v9825_v2 = vcombine.low %v273_v53, %v277_v54  ;;  %v12496_v29 = vld [vmem:[#allocation13 + $0xa0] ss:$16 sps:$4 sm:$0xff]   ;;  %v12514_v34 = vld [vmem:[#allocation13 + $0xc8] ss:$16 sps:$4 sm:$0xff]   ;;  %v12516_v35 = vld [vmem:[#allocation13 + $0xe4] ss:$16 sps:$4 sm:$0xff]  }
 0x105   :  { %685 = vmatpush1.bf16.msra.mxu0 %v9819_v59  ;;  %758 = vmatpush1.bf16.msra.mxu1 %v9821_v60  ;;  %v9826_v59 = vcombine.high %v273_v53, %v277_v54  ;;  %v280_v60 = vld [vmem:[#allocation11 + $0x1d0] sm:$0xff]  ;;  %v10893_v44 = vld [vmem:[#allocation14 + $0x2c] ss:$16 sps:$4 sm:$0xff]   ;;  %v10897_v51 = vld [vmem:[#allocation14 + $0x48] ss:$16 sps:$4 sm:$0xff]  }
 0x106   :  { %686 = vmatprep.subr.bf16.mxu0 %v9828_v61  ;;  %759 = vmatprep.subr.bf16.mxu1 %v9830_v62  ;;  %v284_v61 = vld [vmem:[#allocation11 + $0x1f0] sm:$0xff]  ;;  %v281_v62 = vld [vmem:[#allocation11 + $0x1d8] sm:$0xff] }
 0x107   :  { %v9832_v3 = vcombine.high %v280_v60, %v284_v61  ;;  %v12524_v37 = vld [vmem:[#allocation13 + $0xe0] ss:$16 sps:$4 sm:$0xff]   ;;  %v10890_v43 = vld [vmem:[#allocation14 + $0x24] ss:$16 sps:$4 sm:$0xff]   ;;  %v10905_v53 = vld [vmem:[#allocation14 + $0x6c] ss:$16 sps:$4 sm:$0xff]  }
 0x108   :  { %v10888_v45 = vld [vmem:[#allocation14 + $0x20] ss:$16 sps:$4 sm:$0xff]   ;;  %v10902_v52 = vld [vmem:[#allocation14 + $0x64] ss:$16 sps:$4 sm:$0xff]  }
 0x109   :  { %687 = vmatpush1.bf16.msra.mxu0 %v9827_v4  ;;  %760 = vmatpush1.bf16.msra.mxu1 %v9829_v5  ;;  %v9834_v4 = vcombine.high %v281_v62, %v285_v63  ;;  %v9831_v5 = vcombine.low %v280_v60, %v284_v61  ;;  %v10900_v54 = vld [vmem:[#allocation14 + $0x60] ss:$16 sps:$4 sm:$0xff]   ;;  %v10914_v60 = vld [vmem:[#allocation14 + $0xa4] ss:$16 sps:$4 sm:$0xff]   ;;  %v10917_v61 = vld [vmem:[#allocation14 + $0xac] ss:$16 sps:$4 sm:$0xff]  }
 0x10a   :  { %818 = vmatprep.subr.bf16.mxu0 %v9776_v7  ;;  %891 = vmatprep.subr.bf16.mxu1 %v9778_v8  ;;  %v9833_v7 = vcombine.low %v281_v62, %v285_v63  ;;  %v12424_v8 = vld [vmem:[#allocation13 + $0x4] ss:$16 sps:$4 sm:$0xff]   ;;  %v10912_v62 = vld [vmem:[#allocation14 + $0xa0] ss:$16 sps:$4 sm:$0xff]   ;;  %v10915_v63 = vld [vmem:[#allocation14 + $0xa8] ss:$16 sps:$4 sm:$0xff]  }
 0x10c   :  { %705 = vmatmul.mubr.bf16.vlgmr.msra.gmra.mrb[0].mxu0 %v12402_v6  ;;  %778 = vmatmul.mubr.bf16.vlgmr.msra.gmra.mrb[0].mxu1 %v12402_v6 }
 0x10d   :  { %819 = vmatpush1.bf16.msra.mxu0 %v9775_v13  ;;  %892 = vmatpush1.bf16.msra.mxu1 %v9777_v14  ;;  %v12438_v13 = vld [vmem:[#allocation13 + $0x20] ss:$16 sps:$4 sm:$0xff]   ;;  %v12440_v14 = vld [vmem:[#allocation13 + $0x2c] ss:$16 sps:$4 sm:$0xff]  }
 0x10e   :  { %820 = vmatprep.subr.bf16.mxu0 %v9784_v15  ;;  %893 = vmatprep.subr.bf16.mxu1 %v9786_v16  ;;  %v12443_v15 = vld [vmem:[#allocation13 + $0x28] ss:$16 sps:$4 sm:$0xff]   ;;  %v12445_v16 = vld [vmem:[#allocation13 + $0x44] ss:$16 sps:$4 sm:$0xff]  }
 0x10f   :  { %714 = vmatprep.mubr.bf16.mxu0 %v14368_v0  ;;  %787 = vmatprep.mubr.bf16.mxu1 %v14368_v0 }
 0x111   :  { %821 = vmatpush1.bf16.msra.mxu0 %v9783_v21  ;;  %894 = vmatpush1.bf16.msra.mxu1 %v9785_v22  ;;  %v12468_v21 = vld [vmem:[#allocation13 + $0x60] ss:$16 sps:$4 sm:$0xff]   ;;  %v12471_v22 = vld [vmem:[#allocation13 + $0x68] ss:$16 sps:$4 sm:$0xff]  }
 0x112   :  { %822 = vmatprep.subr.bf16.mxu0 %v9792_v24  ;;  %895 = vmatprep.subr.bf16.mxu1 %v9794_v25  ;;  %v12473_v24 = vld [vmem:[#allocation13 + $0x84] ss:$16 sps:$4 sm:$0xff]   ;;  %v12477_v25 = vld [vmem:[#allocation13 + $0x8c] ss:$16 sps:$4 sm:$0xff]  }
 0x114   :  { %715 = vmatmul.mubr.bf16.gmra.mrb[4].mxu0 %v12406_v23  ;;  %788 = vmatmul.mubr.bf16.gmra.mrb[4].mxu1 %v12406_v23 }
 0x115   :  { %823 = vmatpush1.bf16.msra.mxu0 %v9791_v30  ;;  %896 = vmatpush1.bf16.msra.mxu1 %v9793_v31  ;;  %v12499_v30 = vld [vmem:[#allocation13 + $0xa8] ss:$16 sps:$4 sm:$0xff]   ;;  %v12501_v31 = vld [vmem:[#allocation13 + $0xc4] ss:$16 sps:$4 sm:$0xff]  }
 0x116   :  { %824 = vmatprep.subr.bf16.mxu0 %v9800_v32  ;;  %897 = vmatprep.subr.bf16.mxu1 %v9802_v33  ;;  %v12505_v32 = vld [vmem:[#allocation13 + $0xcc] ss:$16 sps:$4 sm:$0xff]   ;;  %v12511_v33 = vld [vmem:[#allocation13 + $0xc0] ss:$16 sps:$4 sm:$0xff]  }
 0x117   :  { %724 = vmatprep.mubr.bf16.mxu0 %v14368_v0  ;;  %797 = vmatprep.mubr.bf16.mxu1 %v14368_v0 }
 0x119   :  { %825 = vmatpush1.bf16.msra.mxu0 %v9799_v38  ;;  %898 = vmatpush1.bf16.msra.mxu1 %v9801_v39  ;;  %v12527_v38 = vld [vmem:[#allocation13 + $0xe8] ss:$16 sps:$4 sm:$0xff]   ;;  %v12529_v39 = vld [vmem:[#allocation14 + $0x4] ss:$16 sps:$4 sm:$0xff]  }
 0x11a   :  { %826 = vmatprep.subr.bf16.mxu0 %v9808_v41  ;;  %899 = vmatprep.subr.bf16.mxu1 %v9810_v42  ;;  %v10882_v41 = vld [vmem:[#allocation14] ss:$16 sps:$4 sm:$0xff]   ;;  %v10885_v42 = vld [vmem:[#allocation14 + $0x8] ss:$16 sps:$4 sm:$0xff]  }
 0x11c   :  { %725 = vmatmul.mubr.bf16.gmra.mrb[8].mxu0 %v12412_v40  ;;  %798 = vmatmul.mubr.bf16.gmra.mrb[8].mxu1 %v12412_v40 }
 0x11d   :  { %827 = vmatpush1.bf16.msra.mxu0 %v9807_v47  ;;  %900 = vmatpush1.bf16.msra.mxu1 %v9809_v48  ;;  %v10891_v47 = vld [vmem:[#allocation14 + $0x28] ss:$16 sps:$4 sm:$0xff]   ;;  %v10896_v48 = vld [vmem:[#allocation14 + $0x44] ss:$16 sps:$4 sm:$0xff]  }
 0x11e   :  { %828 = vmatprep.subr.bf16.mxu0 %v9816_v49  ;;  %901 = vmatprep.subr.bf16.mxu1 %v9818_v50  ;;  %v10899_v49 = vld [vmem:[#allocation14 + $0x4c] ss:$16 sps:$4 sm:$0xff]   ;;  %v10894_v50 = vld [vmem:[#allocation14 + $0x40] ss:$16 sps:$4 sm:$0xff]  }
 0x11f   :  { %734 = vmatprep.mubr.bf16.mxu0 %v14368_v0  ;;  %807 = vmatprep.mubr.bf16.mxu1 %v14368_v0 }
 0x121   :  { %829 = vmatpush1.bf16.msra.mxu0 %v9815_v55  ;;  %902 = vmatpush1.bf16.msra.mxu1 %v9817_v56  ;;  %v10903_v55 = vld [vmem:[#allocation14 + $0x68] ss:$16 sps:$4 sm:$0xff]   ;;  %v10908_v56 = vld [vmem:[#allocation14 + $0x84] ss:$16 sps:$4 sm:$0xff]  }
 0x122   :  { %830 = vmatprep.subr.bf16.mxu0 %v9824_v58  ;;  %903 = vmatprep.subr.bf16.mxu1 %v9826_v59  ;;  %v10906_v58 = vld [vmem:[#allocation14 + $0x80] ss:$16 sps:$4 sm:$0xff]   ;;  %v10909_v59 = vld [vmem:[#allocation14 + $0x88] ss:$16 sps:$4 sm:$0xff]  }
 0x124   :  { %735 = vmatmul.mubr.bf16.gmra.mrb[12].mxu0 %v12418_v57  ;;  %808 = vmatmul.mubr.bf16.gmra.mrb[12].mxu1 %v12418_v57 }
 0x125   :  { %831 = vmatpush1.bf16.msra.mxu0 %v9823_v1  ;;  %904 = vmatpush1.bf16.msra.mxu1 %v9825_v2  ;;  %v10920_v1 = vld [vmem:[#allocation14 + $0xc4] ss:$16 sps:$4 sm:$0xff]   ;;  %v10923_v2 = vld [vmem:[#allocation14 + $0xcc] ss:$16 sps:$4 sm:$0xff]  }
 0x126   :  { %832 = vmatprep.subr.bf16.mxu0 %v9832_v3  ;;  %905 = vmatprep.subr.bf16.mxu1 %v9834_v4  ;;  %v10918_v3 = vld [vmem:[#allocation14 + $0xc0] ss:$16 sps:$4 sm:$0xff]   ;;  %v10921_v4 = vld [vmem:[#allocation14 + $0xc8] ss:$16 sps:$4 sm:$0xff]  }
 0x127   :  { %850 = vmatprep.mubr.bf16.mxu0 %v14368_v0  ;;  %923 = vmatprep.mubr.bf16.mxu1 %v14368_v0 }
 0x129   :  { %833 = vmatpush1.bf16.msra.mxu0 %v9831_v5  ;;  %906 = vmatpush1.bf16.msra.mxu1 %v9833_v7  ;;  %v10926_v5 = vld [vmem:[#allocation14 + $0xe4] ss:$16 sps:$4 sm:$0xff]   ;;  %v10929_v7 = vld [vmem:[#allocation14 + $0xec] ss:$16 sps:$4 sm:$0xff]  }
 0x12a   :  { %1233 = vmatprep.subr.bf16.mxu0 %v12424_v8  ;;  %1274 = vmatprep.subr.bf16.mxu1 %v12427_v9 }
 0x12c   :  { %851 = vmatmul.mubr.bf16.vlgmr.msra.gmra.mrb[16].mxu0 %v12402_v6  ;;  %924 = vmatmul.mubr.bf16.vlgmr.msra.gmra.mrb[16].mxu1 %v12402_v6  ;;  %v12463_v6 = vld [vmem:[#allocation13 + $0x6c] ss:$16 sps:$4 sm:$0xff]  }
 0x12d   :  { %1234 = vmatpush1.bf16.msra.mxu0 %v12430_v10  ;;  %1275 = vmatpush1.bf16.msra.mxu1 %v12432_v11 }
 0x12e   :  { %1235 = vmatprep.subr.bf16.mxu0 %v12435_v12  ;;  %1276 = vmatprep.subr.bf16.mxu1 %v12440_v14 }
 0x12f   :  { %860 = vmatprep.mubr.bf16.mxu0 %v14368_v0  ;;  %933 = vmatprep.mubr.bf16.mxu1 %v14368_v0 }
 0x131   :  { %1236 = vmatpush1.bf16.msra.mxu0 %v12438_v13  ;;  %1277 = vmatpush1.bf16.msra.mxu1 %v12443_v15 }
 0x132   :  { %1237 = vmatprep.subr.bf16.mxu0 %v12445_v16  ;;  %1278 = vmatprep.subr.bf16.mxu1 %v12449_v17 }
 0x134   :  { %861 = vmatmul.mubr.bf16.gmra.mrb[20].mxu0 %v12406_v23  ;;  %934 = vmatmul.mubr.bf16.gmra.mrb[20].mxu1 %v12406_v23  ;;  %v12491_v23 = vld [vmem:[#allocation13 + $0xac] ss:$16 sps:$4 sm:$0xff]  }
 0x135   :  { %1238 = vmatpush1.bf16.msra.mxu0 %v12455_v18  ;;  %1279 = vmatpush1.bf16.msra.mxu1 %v12458_v19 }
 0x136   :  { %1239 = vmatprep.subr.bf16.mxu0 %v12460_v20  ;;  %1280 = vmatprep.subr.bf16.mxu1 %v12463_v6 }
 0x137   :  { %870 = vmatprep.mubr.bf16.mxu0 %v14368_v0  ;;  %943 = vmatprep.mubr.bf16.mxu1 %v14368_v0 }
 0x139   :  { %1240 = vmatpush1.bf16.msra.mxu0 %v12468_v21  ;;  %1281 = vmatpush1.bf16.msra.mxu1 %v12471_v22 }
 0x13a   :  { %1241 = vmatprep.subr.bf16.mxu0 %v12473_v24  ;;  %1282 = vmatprep.subr.bf16.mxu1 %v12477_v25 }
 0x13c   :  { %871 = vmatmul.mubr.bf16.gmra.mrb[24].mxu0 %v12412_v40  ;;  %944 = vmatmul.mubr.bf16.gmra.mrb[24].mxu1 %v12412_v40  ;;  %v12533_v40 = vld [vmem:[#allocation14 + $0xc] ss:$16 sps:$4 sm:$0xff]  }
 0x13d   :  { %1242 = vmatpush1.bf16.msra.mxu0 %v12483_v26  ;;  %1283 = vmatpush1.bf16.msra.mxu1 %v12486_v27 }
 0x13e   :  { %1243 = vmatprep.subr.bf16.mxu0 %v12488_v28  ;;  %1284 = vmatprep.subr.bf16.mxu1 %v12491_v23 }
 0x13f   :  { %880 = vmatprep.mubr.bf16.mxu0 %v14368_v0  ;;  %953 = vmatprep.mubr.bf16.mxu1 %v14368_v0 }
 0x141   :  { %1244 = vmatpush1.bf16.msra.mxu0 %v12496_v29  ;;  %1285 = vmatpush1.bf16.msra.mxu1 %v12499_v30 }
 0x142   :  { %1245 = vmatprep.subr.bf16.mxu0 %v12501_v31  ;;  %1286 = vmatprep.subr.bf16.mxu1 %v12505_v32 }
 0x144   :  { %881 = vmatmul.mubr.bf16.gmra.mrb[28].mxu0 %v12418_v57  ;;  %954 = vmatmul.mubr.bf16.gmra.mrb[28].mxu1 %v12418_v57  ;;  %v10911_v57 = vld [vmem:[#allocation14 + $0x8c] ss:$16 sps:$4 sm:$0xff]  }
 0x145   :  { %1246 = vmatpush1.bf16.msra.mxu0 %v12511_v33  ;;  %1287 = vmatpush1.bf16.msra.mxu1 %v12514_v34 }
 0x146   :  { %1247 = vmatprep.subr.bf16.mxu0 %v12516_v35  ;;  %1288 = vmatprep.subr.bf16.mxu1 %v12519_v36 }
 0x147   :  { %1265 = vmatprep.mubr.bf16.mxu0 %v14368_v0  ;;  %1306 = vmatprep.mubr.bf16.mxu1 %v14368_v0 }
 0x149   :  { %1248 = vmatpush1.bf16.msra.mxu0 %v12524_v37  ;;  %1289 = vmatpush1.bf16.msra.mxu1 %v12527_v38 }
 0x14a   :  { %1520 = vmatprep.subr.bf16.mxu0 %v12529_v39  ;;  %1561 = vmatprep.subr.bf16.mxu1 %v12533_v40 }
 0x14c   :  { %1266 = vmatmul.mubr.bf16.vlgmr.msra.gmra.mrb[32].mxu0 %v14366_v46  ;;  %1307 = vmatmul.mubr.bf16.vlgmr.msra.gmra.mrb[32].mxu1 %v14366_v46 }
 0x14d   :  { %1521 = vmatpush1.bf16.msra.mxu0 %v10882_v41  ;;  %1562 = vmatpush1.bf16.msra.mxu1 %v10885_v42  ;;  %v10924_v41 = vld [vmem:[#allocation14 + $0xe0] ss:$16 sps:$4 sm:$0xff]   ;;  %v10927_v42 = vld [vmem:[#allocation14 + $0xe8] ss:$16 sps:$4 sm:$0xff]  }
 0x14e   :  { %1522 = vmatprep.subr.bf16.mxu0 %v10890_v43  ;;  %1563 = vmatprep.subr.bf16.mxu1 %v10893_v44 }
 0x14f   :  { %1552 = vmatprep.mubr.bf16.mxu0 %v14368_v0  ;;  %1593 = vmatprep.mubr.bf16.mxu1 %v14368_v0 }
 0x151   :  { %1523 = vmatpush1.bf16.msra.mxu0 %v10888_v45  ;;  %1564 = vmatpush1.bf16.msra.mxu1 %v10891_v47 }
 0x152   :  { %1524 = vmatprep.subr.bf16.mxu0 %v10896_v48  ;;  %1565 = vmatprep.subr.bf16.mxu1 %v10899_v49 }
 0x155   :  { %1525 = vmatpush1.bf16.msra.mxu0 %v10894_v50  ;;  %1566 = vmatpush1.bf16.msra.mxu1 %v10897_v51 }
 0x156   :  { %1526 = vmatprep.subr.bf16.mxu0 %v10902_v52  ;;  %1567 = vmatprep.subr.bf16.mxu1 %v10905_v53 }
 0x159   :  { %1527 = vmatpush1.bf16.msra.mxu0 %v10900_v54  ;;  %1568 = vmatpush1.bf16.msra.mxu1 %v10903_v55 }
 0x15a   :  { %1528 = vmatprep.subr.bf16.mxu0 %v10908_v56  ;;  %1569 = vmatprep.subr.bf16.mxu1 %v10911_v57 }
 0x15d   :  { %1529 = vmatpush1.bf16.msra.mxu0 %v10906_v58  ;;  %1570 = vmatpush1.bf16.msra.mxu1 %v10909_v59 }
 0x15e   :  { %1530 = vmatprep.subr.bf16.mxu0 %v10914_v60  ;;  %1571 = vmatprep.subr.bf16.mxu1 %v10917_v61 }
 0x161   :  { %1531 = vmatpush1.bf16.msra.mxu0 %v10912_v62  ;;  %1572 = vmatpush1.bf16.msra.mxu1 %v10915_v63 }
 0x162   :  { %1532 = vmatprep.subr.bf16.mxu0 %v10920_v1  ;;  %1573 = vmatprep.subr.bf16.mxu1 %v10923_v2 }
 0x165   :  { %1533 = vmatpush1.bf16.msra.mxu0 %v10918_v3  ;;  %1574 = vmatpush1.bf16.msra.mxu1 %v10921_v4 }
 0x166   :  { %1534 = vmatprep.subr.bf16.mxu0 %v10926_v5  ;;  %1575 = vmatprep.subr.bf16.mxu1 %v10929_v7 }
 0x169   :  { %1535 = vmatpush1.bf16.msra.mxu0 %v10924_v41  ;;  %1576 = vmatpush1.bf16.msra.mxu1 %v10927_v42 }
 0x16a   :  { %1852 = vmatprep.subr.bf16.mxu0 %v12424_v8  ;;  %1893 = vmatprep.subr.bf16.mxu1 %v12427_v9  ;;  %v288_v8 = vlaneseq }
 0x16c   :  { %1553 = vmatmul.mubr.bf16.vlgmr.msra.gmra.mrb[36].mxu0 %v14366_v46  ;;  %1594 = vmatmul.mubr.bf16.vlgmr.msra.gmra.mrb[36].mxu1 %v14366_v46  ;;  %v12586_v9 = vshrl.u32 %v288_v8, 7 }
 0x16d   :  { %1853 = vmatpush1.bf16.msra.mxu0 %v12430_v10  ;;  %1894 = vmatpush1.bf16.msra.mxu1 %v12432_v11  ;;  %v12591_v11 = vld [vmem:[#allocation16] sm:$0xff] }
 0x16e   :  { %1854 = vmatprep.subr.bf16.mxu0 %v12435_v12  ;;  %1895 = vmatprep.subr.bf16.mxu1 %v12440_v14  ;;  %v12589_v10 = vsub.s32 0, %v12586_v9  ;;  %v12594_v12 = vsub.s32 2, %v12586_v9  ;;  %v12600_v14 = vsub.s32 1, %v12586_v9  ;;  %v306_v7 = vsub.s32 4, %v12586_v9 }
 0x16f   :  { %1884 = vmatprep.mubr.bf16.mxu0 %v14368_v0  ;;  %1925 = vmatprep.mubr.bf16.mxu1 %v14368_v0 }
 0x170   :  { %14418 = vst [vmem:[#allocation38_spill] sm:$0xff] %v12589_v10  ;;  %14419 = vst [vmem:[#allocation39_spill] sm:$0xff] %v12594_v12 }
 0x171   :  { %1855 = vmatpush1.bf16.msra.mxu0 %v12438_v13  ;;  %1896 = vmatpush1.bf16.msra.mxu1 %v12443_v15  ;;  %v12597_v13 = vsub.s32 3, %v12586_v9  ;;  %14421 = vst [vmem:[#allocation41_spill] sm:$0xff] %v12600_v14  ;;  %v12604_v15 = vrot.slane %v12591_v11, %v12589_v10 }
 0x172   :  { %1856 = vmatprep.subr.bf16.mxu0 %v12445_v16  ;;  %1897 = vmatprep.subr.bf16.mxu1 %v12449_v17  ;;  %v12610_v17 = vrot.slane %v12591_v11, %v12594_v12 }
 0x173   :  { %14420 = vst [vmem:[#allocation40_spill] sm:$0xff] %v12597_v13 }
 0x175   :  { %1857 = vmatpush1.bf16.msra.mxu0 %v12455_v18  ;;  %1898 = vmatpush1.bf16.msra.mxu1 %v12458_v19 }
 0x176   :  { %1858 = vmatprep.subr.bf16.mxu0 %v12460_v20  ;;  %1899 = vmatprep.subr.bf16.mxu1 %v12463_v6  ;;  %v12618_v20 = vrot.slane %v12591_v11, %v12597_v13  ;;  %v12622_v6 = vrot.slane %v12591_v11, %v12600_v14 }
 0x179   :  { %1859 = vmatpush1.bf16.msra.mxu0 %v12468_v21  ;;  %1900 = vmatpush1.bf16.msra.mxu1 %v12471_v22 }
 0x17a   :  { %1860 = vmatprep.subr.bf16.mxu0 %v12473_v24  ;;  %1901 = vmatprep.subr.bf16.mxu1 %v12477_v25 }
 0x17d   :  { %1861 = vmatpush1.bf16.msra.mxu0 %v12483_v26  ;;  %1902 = vmatpush1.bf16.msra.mxu1 %v12486_v27 }
 0x17e   :  { %1862 = vmatprep.subr.bf16.mxu0 %v12488_v28  ;;  %1903 = vmatprep.subr.bf16.mxu1 %v12491_v23 }
 0x181   :  { %1863 = vmatpush1.bf16.msra.mxu0 %v12496_v29  ;;  %1904 = vmatpush1.bf16.msra.mxu1 %v12499_v30 }
 0x182   :  { %1864 = vmatprep.subr.bf16.mxu0 %v12501_v31  ;;  %1905 = vmatprep.subr.bf16.mxu1 %v12505_v32 }
 0x185   :  { %1865 = vmatpush1.bf16.msra.mxu0 %v12511_v33  ;;  %1906 = vmatpush1.bf16.msra.mxu1 %v12514_v34 }
 0x186   :  { %1866 = vmatprep.subr.bf16.mxu0 %v12516_v35  ;;  %1907 = vmatprep.subr.bf16.mxu1 %v12519_v36 }
 0x189   :  { %1867 = vmatpush1.bf16.msra.mxu0 %v12524_v37  ;;  %1908 = vmatpush1.bf16.msra.mxu1 %v12527_v38 }
 0x18a   :  { %2139 = vmatprep.subr.bf16.mxu0 %v12529_v39  ;;  %2180 = vmatprep.subr.bf16.mxu1 %v12533_v40 }
 0x1df   :  { %v12606_v16 = vpop.f32.mrb[0].mxu0  ;;  %v12614_v19 = vpop.f32.mrb[0].mxu1 }
 0x1e0   :  { %v12612_v18 = vpop.f32.mrb[1].mxu0  ;;  %v12624_v22 = vpop.f32.mrb[1].mxu1 }
 0x1e1   :  { %v710_v21 = vpop.f32.mrb[2].mxu0  ;;  %v783_v26 = vpop.f32.mrb[2].mxu1 }
 0x1e2   :  { %v12627_v24 = vadd.f32 %v710_v21, %v12604_v15  ;;  %v712_v25 = vpop.f32.mrb[3].mxu0  ;;  %v12633_v28 = vadd.f32 %v783_v26, %v12610_v17  ;;  %v785_v23 = vpop.f32.mrb[3].mxu1  ;;  %v314_v26 = vsub.s32 6, %v12586_v9 }
 0x1e3   :  { %v12630_v27 = vadd.f32 %v712_v25, %v12622_v6  ;;  %v12636_v29 = vadd.f32 %v785_v23, %v12618_v20  ;;  %v310_v25 = vsub.s32 5, %v12586_v9 }
 0x1e7   :  { %v716_v30 = vpop.f32.mrb[4].mxu0  ;;  %v789_v33 = vpop.f32.mrb[4].mxu1 }
 0x1e8   :  { %v12639_v31 = vadd.f32 %v716_v30, %v12604_v15  ;;  %v718_v32 = vpop.f32.mrb[5].mxu0  ;;  %v12645_v36 = vadd.f32 %v789_v33, %v12610_v17  ;;  %v791_v37 = vpop.f32.mrb[5].mxu1 }
 0x1e9   :  { %v12642_v34 = vadd.f32 %v718_v32, %v12622_v6  ;;  %v720_v35 = vpop.f32.mrb[6].mxu0  ;;  %v12651_v40 = vadd.f32 %v791_v37, %v12618_v20  ;;  %v793_v43 = vpop.f32.mrb[6].mxu1 }
 0x1ea   :  { %v12648_v38 = vadd.f32 %v720_v35, %v12604_v15  ;;  %v722_v39 = vpop.f32.mrb[7].mxu0  ;;  %v12657_v45 = vadd.f32 %v793_v43, %v12610_v17  ;;  %v795_v47 = vpop.f32.mrb[7].mxu1  ;;  %v318_v35 = vsub.s32 7, %v12586_v9 }
 0x1eb   :  { %14422 = vst [vmem:[#allocation42_spill] sm:$0xff] %v12642_v34  ;;  %14424 = vst [vmem:[#allocation44_spill] sm:$0xff] %v12651_v40  ;;  %v12654_v44 = vadd.f32 %v722_v39, %v12622_v6  ;;  %v12660_v48 = vadd.f32 %v795_v47, %v12618_v20 }
 0x1ec   :  { %14423 = vst [vmem:[#allocation43_spill] sm:$0xff] %v12648_v38  ;;  %14426 = vst [vmem:[#allocation46_spill] sm:$0xff] %v12657_v45  ;;  %v12724_v9 = vrot.slane %v12591_v11, %v318_v35 }
 0x1ed   :  { %14425 = vst [vmem:[#allocation45_spill] sm:$0xff] %v12654_v44  ;;  %14427 = vst [vmem:[#allocation47_spill] sm:$0xff] %v12660_v48 }
 0x1ef   :  { %v726_v49 = vpop.f32.mrb[8].mxu0  ;;  %v799_v52 = vpop.f32.mrb[8].mxu1 }
 0x1f0   :  { %v12663_v50 = vadd.f32 %v726_v49, %v12604_v15  ;;  %v728_v51 = vpop.f32.mrb[9].mxu0  ;;  %v12669_v55 = vadd.f32 %v799_v52, %v12610_v17  ;;  %v801_v56 = vpop.f32.mrb[9].mxu1  ;;  %v12715_v49 = vrot.slane %v12591_v11, %v306_v7  ;;  %v12721_v52 = vrot.slane %v12591_v11, %v314_v26 }
 0x1f1   :  { %v12666_v53 = vadd.f32 %v728_v51, %v12622_v6  ;;  %v730_v54 = vpop.f32.mrb[10].mxu0  ;;  %v12675_v59 = vadd.f32 %v801_v56, %v12618_v20  ;;  %v803_v60 = vpop.f32.mrb[10].mxu1  ;;  %v12718_v51 = vrot.slane %v12591_v11, %v310_v25 }
 0x1f2   :  { %14428 = vst [vmem:[#allocation48_spill] sm:$0xff] %v12663_v50  ;;  %14430 = vst [vmem:[#allocation50_spill] sm:$0xff] %v12669_v55  ;;  %v12672_v57 = vadd.f32 %v730_v54, %v12604_v15  ;;  %v732_v58 = vpop.f32.mrb[11].mxu0  ;;  %v12681_v62 = vadd.f32 %v803_v60, %v12610_v17  ;;  %v805_v63 = vpop.f32.mrb[11].mxu1 }
 0x1f3   :  { %14429 = vst [vmem:[#allocation49_spill] sm:$0xff] %v12666_v53  ;;  %14432 = vst [vmem:[#allocation52_spill] sm:$0xff] %v12675_v59  ;;  %v12678_v61 = vadd.f32 %v732_v58, %v12622_v6  ;;  %v12684_v1 = vadd.f32 %v805_v63, %v12618_v20  ;;  %v12942_v59 = vld [vmem:[#allocation14 + $0xc] ss:$16 sps:$4 sm:$0xff]  }
 0x1f4   :  { %14431 = vst [vmem:[#allocation51_spill] sm:$0xff] %v12672_v57  ;;  %14434 = vst [vmem:[#allocation54_spill] sm:$0xff] %v12681_v62  ;;  %v12928_v57 = vld [vmem:[#allocation13 + $0xe4] ss:$16 sps:$4 sm:$0xff]  }
 0x1f5   :  { %14433 = vst [vmem:[#allocation53_spill] sm:$0xff] %v12678_v61  ;;  %14435 = vst [vmem:[#allocation55_spill] sm:$0xff] %v12684_v1 }
 0x1f7   :  { %v736_v2 = vpop.f32.mrb[12].mxu0  ;;  %v809_v5 = vpop.f32.mrb[12].mxu1 }
 0x1f8   :  { %v12687_v3 = vadd.f32 %v736_v2, %v12604_v15  ;;  %v738_v4 = vpop.f32.mrb[13].mxu0  ;;  %v12694_v8 = vadd.f32 %v809_v5, %v12610_v17  ;;  %v811_v21 = vpop.f32.mrb[13].mxu1 }
 0x1f9   :  { %v12691_v41 = vadd.f32 %v738_v4, %v12622_v6  ;;  %v740_v42 = vpop.f32.mrb[14].mxu0  ;;  %v12702_v32 = vadd.f32 %v811_v21, %v12618_v20  ;;  %v813_v33 = vpop.f32.mrb[14].mxu1 }
 0x1fa   :  { %14436 = vst [vmem:[#allocation56_spill] sm:$0xff] %v12687_v3  ;;  %14438 = vst [vmem:[#allocation58_spill] sm:$0xff] %v12694_v8  ;;  %v12699_v23 = vadd.f32 %v740_v42, %v12604_v15  ;;  %v742_v30 = vpop.f32.mrb[15].mxu0  ;;  %v12709_v39 = vadd.f32 %v813_v33, %v12610_v17  ;;  %v815_v43 = vpop.f32.mrb[15].mxu1 }
 0x1fb   :  { %14437 = vst [vmem:[#allocation57_spill] sm:$0xff] %v12691_v41  ;;  %14440 = vst [vmem:[#allocation60_spill] sm:$0xff] %v12702_v32  ;;  %v12706_v37 = vadd.f32 %v742_v30, %v12622_v6  ;;  %v12712_v47 = vadd.f32 %v815_v43, %v12618_v20  ;;  %v709_v32 = vadd.f32 %v12612_v18, %v12622_v6 }
 0x1fc   :  { %14439 = vst [vmem:[#allocation59_spill] sm:$0xff] %v12699_v23  ;;  %14442 = vst [vmem:[#allocation62_spill] sm:$0xff] %v12709_v39 }
 0x1fd   :  { %14441 = vst [vmem:[#allocation61_spill] sm:$0xff] %v12706_v37  ;;  %14443 = vst [vmem:[#allocation63_spill] sm:$0xff] %v12712_v47 }
 0x1ff   :  { %v852_v54 = vpop.f32.mrb[16].mxu0  ;;  %v925_v60 = vpop.f32.mrb[16].mxu1 }
 0x200   :  { %v12727_v56 = vadd.f32 %v852_v54, %v12715_v49  ;;  %v854_v58 = vpop.f32.mrb[17].mxu0  ;;  %v12733_v4 = vadd.f32 %v925_v60, %v12721_v52  ;;  %v927_v5 = vpop.f32.mrb[17].mxu1 }
 0x201   :  { %v12730_v63 = vadd.f32 %v854_v58, %v12718_v51  ;;  %v856_v2 = vpop.f32.mrb[18].mxu0  ;;  %v12739_v11 = vadd.f32 %v927_v5, %v12724_v9  ;;  %v929_v21 = vpop.f32.mrb[18].mxu1 }
 0x202   :  { %14444 = vst [vmem:[#allocation64_spill] sm:$0xff] %v12727_v56  ;;  %14446 = vst [vmem:[#allocation66_spill] sm:$0xff] %v12733_v4  ;;  %v12736_v7 = vadd.f32 %v856_v2, %v12715_v49  ;;  %v858_v42 = vpop.f32.mrb[19].mxu0  ;;  %v12745_v26 = vadd.f32 %v929_v21, %v12721_v52  ;;  %v931_v30 = vpop.f32.mrb[19].mxu1 }
 0x203   :  { %14445 = vst [vmem:[#allocation65_spill] sm:$0xff] %v12730_v63  ;;  %14448 = vst [vmem:[#allocation68_spill] sm:$0xff] %v12739_v11  ;;  %v12742_v25 = vadd.f32 %v858_v42, %v12718_v51  ;;  %v12748_v33 = vadd.f32 %v931_v30, %v12724_v9 }
 0x204   :  { %14447 = vst [vmem:[#allocation67_spill] sm:$0xff] %v12736_v7  ;;  %14450 = vst [vmem:[#allocation70_spill] sm:$0xff] %v12745_v26 }
 0x205   :  { %14449 = vst [vmem:[#allocation69_spill] sm:$0xff] %v12742_v25  ;;  %14451 = vst [vmem:[#allocation71_spill] sm:$0xff] %v12748_v33 }
 0x207   :  { %v862_v35 = vpop.f32.mrb[20].mxu0  ;;  %v935_v58 = vpop.f32.mrb[20].mxu1 }
 0x208   :  { %v12751_v43 = vadd.f32 %v862_v35, %v12715_v49  ;;  %v864_v54 = vpop.f32.mrb[21].mxu0  ;;  %v12757_v5 = vadd.f32 %v935_v58, %v12721_v52  ;;  %v937_v42 = vpop.f32.mrb[21].mxu1 }
 0x209   :  { %v12754_v60 = vadd.f32 %v864_v54, %v12718_v51  ;;  %v866_v2 = vpop.f32.mrb[22].mxu0  ;;  %v12763_v30 = vadd.f32 %v937_v42, %v12724_v9  ;;  %v939_v0 = vpop.f32.mrb[22].mxu1 }
 0x20a   :  { %14452 = vst [vmem:[#allocation72_spill] sm:$0xff] %v12751_v43  ;;  %14454 = vst [vmem:[#allocation74_spill] sm:$0xff] %v12757_v5  ;;  %v12760_v21 = vadd.f32 %v866_v2, %v12715_v49  ;;  %v868_v46 = vpop.f32.mrb[23].mxu0  ;;  %v12769_v13 = vadd.f32 %v939_v0, %v12721_v52  ;;  %v941_v54 = vpop.f32.mrb[23].mxu1 }
 0x20b   :  { %14453 = vst [vmem:[#allocation73_spill] sm:$0xff] %v12754_v60  ;;  %14456 = vst [vmem:[#allocation76_spill] sm:$0xff] %v12763_v30  ;;  %v12766_v35 = vadd.f32 %v868_v46, %v12718_v51  ;;  %v12772_v14 = vadd.f32 %v941_v54, %v12724_v9 }
 0x20c   :  { %14455 = vst [vmem:[#allocation75_spill] sm:$0xff] %v12760_v21  ;;  %14458 = vst [vmem:[#allocation78_spill] sm:$0xff] %v12769_v13  ;;  %v12934_v13 = vld [vmem:[#allocation13 + $0xe8] ss:$16 sps:$4 sm:$0xff]   ;;  %v12940_v21 = vld [vmem:[#allocation14 + $0x4] ss:$16 sps:$4 sm:$0xff]  }
 0x20d   :  { %14457 = vst [vmem:[#allocation77_spill] sm:$0xff] %v12766_v35  ;;  %14459 = vst [vmem:[#allocation79_spill] sm:$0xff] %v12772_v14  ;;  %v12930_v14 = vld [vmem:[#allocation13 + $0xec] ss:$16 sps:$4 sm:$0xff]   ;;  %v12932_v35 = vld [vmem:[#allocation13 + $0xe0] ss:$16 sps:$4 sm:$0xff]  }
 0x20f   :  { %v872_v58 = vpop.f32.mrb[24].mxu0  ;;  %v945_v10 = vpop.f32.mrb[24].mxu1 }
 0x210   :  { %v12775_v12 = vadd.f32 %v872_v58, %v12715_v49  ;;  %v874_v2 = vpop.f32.mrb[25].mxu0  ;;  %v12781_v46 = vadd.f32 %v945_v10, %v12721_v52  ;;  %v947_v63 = vpop.f32.mrb[25].mxu1 }
 0x211   :  { %v12778_v42 = vadd.f32 %v874_v2, %v12718_v51  ;;  %v876_v11 = vpop.f32.mrb[26].mxu0  ;;  %v12787_v54 = vadd.f32 %v947_v63, %v12724_v9  ;;  %v949_v56 = vpop.f32.mrb[26].mxu1 }
 0x212   :  { %14460 = vst [vmem:[#allocation80_spill] sm:$0xff] %v12775_v12  ;;  %14462 = vst [vmem:[#allocation82_spill] sm:$0xff] %v12781_v46  ;;  %v12784_v0 = vadd.f32 %v876_v11, %v12715_v49  ;;  %v878_v4 = vpop.f32.mrb[27].mxu0  ;;  %v12793_v47 = vadd.f32 %v949_v56, %v12721_v52  ;;  %v951_v2 = vpop.f32.mrb[27].mxu1 }
 0x213   :  { %14461 = vst [vmem:[#allocation81_spill] sm:$0xff] %v12778_v42  ;;  %14464 = vst [vmem:[#allocation84_spill] sm:$0xff] %v12787_v54  ;;  %v12790_v58 = vadd.f32 %v878_v4, %v12718_v51  ;;  %v12796_v37 = vadd.f32 %v951_v2, %v12724_v9 }
 0x214   :  { %14463 = vst [vmem:[#allocation83_spill] sm:$0xff] %v12784_v0  ;;  %14466 = vst [vmem:[#allocation86_spill] sm:$0xff] %v12793_v47 }
 0x215   :  { %14465 = vst [vmem:[#allocation85_spill] sm:$0xff] %v12790_v58  ;;  %14467 = vst [vmem:[#allocation87_spill] sm:$0xff] %v12796_v37 }
 0x217   :  { %v882_v10 = vpop.f32.mrb[28].mxu0  ;;  %v955_v23 = vpop.f32.mrb[28].mxu1 }
 0x218   :  { %v12799_v39 = vadd.f32 %v882_v10, %v12715_v49  ;;  %v884_v11 = vpop.f32.mrb[29].mxu0  ;;  %v12805_v4 = vadd.f32 %v955_v23, %v12721_v52  ;;  %v957_v25 = vpop.f32.mrb[29].mxu1  ;;  %v707_v10 = vadd.f32 %v12606_v16, %v12604_v15  ;;  %v782_v23 = vadd.f32 %v12624_v22, %v12618_v20 }
 0x219   :  { %v12802_v63 = vadd.f32 %v884_v11, %v12718_v51  ;;  %v886_v33 = vpop.f32.mrb[30].mxu0  ;;  %v12808_v26 = vadd.f32 %v957_v25, %v12724_v9  ;;  %v959_v2 = vpop.f32.mrb[30].mxu1  ;;  %v780_v11 = vadd.f32 %v12614_v19, %v12610_v17 }
 0x21a   :  { %v888_v56 = vpop.f32.mrb[31].mxu0  ;;  %v961_v7 = vpop.f32.mrb[31].mxu1 }
 0x21f   :  { %v1267_v41 = vpop.f32.mrb[32].mxu0  ;;  %v1308_v3 = vpop.f32.mrb[32].mxu1 }
 0x220   :  { %v1315_v8 = vadd.f32 %v1267_v41, %v707_v10  ;;  %v1269_v30 = vpop.f32.mrb[33].mxu0  ;;  %v1317_v25 = vadd.f32 %v1308_v3, %v780_v11  ;;  %v1310_v5 = vpop.f32.mrb[33].mxu1  ;;  %v962_v11 = vadd.f32 %v961_v7, %v12724_v9  ;;  %v11772_v7 = vld [vmem:[#allocation14] ss:$16 sps:$4 sm:$0xff]  }
 0x221   :  { %v1316_v60 = vadd.f32 %v1269_v30, %v709_v32  ;;  %v1271_v43 = vpop.f32.mrb[34].mxu0  ;;  %v1318_v61 = vadd.f32 %v1310_v5, %v782_v23  ;;  %v1312_v16 = vpop.f32.mrb[34].mxu1 }
 0x222   :  { %v1607_v1 = vmul.f32 0.5, %v1315_v8  ;;  %v1272_v15 = vpop.f32.mrb[35].mxu0  ;;  %v1313_v18 = vpop.f32.mrb[35].mxu1 }
 0x223   :  { %v1611_v62 = vmul.f32 0.5, %v1316_v60  ;;  %v1616_v17 = vmul.f32 0.5, %v1318_v61  ;;  %v889_v61 = vadd.f32 %v888_v56, %v12718_v51  ;;  %v11773_v56 = vld [vmem:[#allocation14 + $0x8] ss:$16 sps:$4 sm:$0xff]  }
 0x224   :  { %11522 = vtanh.f32 %v1607_v1  ;;  %v960_v1 = vadd.f32 %v959_v2, %v12721_v52  ;;  %v11774_v2 = vld [vmem:[#allocation14 + $0x24] ss:$16 sps:$4 sm:$0xff]  }
 0x225   :  { %11524 = vtanh.f32 %v1611_v62  ;;  %v887_v62 = vadd.f32 %v886_v33, %v12715_v49 }
 0x226   :  { %11526 = vtanh.f32 %v1317_v25 }
 0x227   :  { %11528 = vtanh.f32 %v1616_v17 }
 0x22e   :  { %v11523_v19 = vpop.eup %11522 }
 0x22f   :  { %v11525_v6 = vpop.eup %11524  ;;  %v1609_v20 = vmul.f32 0.5, %v11523_v19 }
 0x230   :  { %v1613_v22 = vmul.f32 0.5, %v11525_v6  ;;  %v11527_v3 = vpop.eup %11526 }
 0x231   :  { %v1610_v41 = vadd.f32 0.5, %v1609_v20  ;;  %v11529_v60 = vpop.eup %11528 }
 0x232   :  { %v1614_v32 = vadd.f32 0.5, %v1613_v22  ;;  %v1618_v5 = vmul.f32 0.5, %v11529_v60  ;;  %v11776_v60 = vld [vmem:[#allocation14 + $0x20] ss:$16 sps:$4 sm:$0xff]  }
 0x233   :  { %v1621_v30 = vmul.f32 %v11527_v3, %v1610_v41 }
 0x234   :  { %v1620_v43 = vmul.f32 0.0, %v1614_v32  ;;  %v1619_v16 = vadd.f32 0.5, %v1618_v5  ;;  %v11775_v32 = vld [vmem:[#allocation14 + $0x2c] ss:$16 sps:$4 sm:$0xff]   ;;  %v11777_v5 = vld [vmem:[#allocation14 + $0x28] ss:$16 sps:$4 sm:$0xff]  }
 0x236   :  { %v12818_v8 = vadd.f32 %v1621_v30, %v1620_v43  ;;  %v14469_v30 = vmov 0  }
 0x238   :  { %11530 = vtanh.f32 %v12818_v8 }
 0x23f   :  { %v1554_v10 = vpop.f32.mrb[36].mxu0  ;;  %v1595_v25 = vpop.f32.mrb[36].mxu1 }
 0x240   :  { %v1602_v23 = vadd.f32 %v1554_v10, %v887_v62  ;;  %v1556_v15 = vpop.f32.mrb[37].mxu0  ;;  %v1604_v18 = vadd.f32 %v1595_v25, %v960_v1  ;;  %v1597_v19 = vpop.f32.mrb[37].mxu1  ;;  %v11778_v62 = vld [vmem:[#allocation14 + $0x44] ss:$16 sps:$4 sm:$0xff]   ;;  %v11780_v25 = vld [vmem:[#allocation14 + $0x40] ss:$16 sps:$4 sm:$0xff]  }
 0x241   :  { %v1603_v17 = vadd.f32 %v1556_v15, %v889_v61  ;;  %v1558_v6 = vpop.f32.mrb[38].mxu0  ;;  %v1605_v41 = vadd.f32 %v1597_v19, %v962_v11  ;;  %v1599_v49 = vpop.f32.mrb[38].mxu1  ;;  %v11779_v61 = vld [vmem:[#allocation14 + $0x4c] ss:$16 sps:$4 sm:$0xff]   ;;  %v11781_v15 = vld [vmem:[#allocation14 + $0x48] ss:$16 sps:$4 sm:$0xff]  }
 0x242   :  { %v11531_v20 = vpop.eup %11530  ;;  %v1626_v22 = vmul.f32 0.5, %v1602_v23  ;;  %v1559_v3 = vpop.f32.mrb[39].mxu0  ;;  %v11786_v49 = vld [vmem:[#allocation14 + $0x84] ss:$16 sps:$4 sm:$0xff]  }
 0x243   :  { %v12825_v33 = vmul.f32 %v11531_v20, %v1619_v16  ;;  %v1630_v51 = vmul.f32 0.5, %v1603_v17  ;;  %v1600_v52 = vpop.f32.mrb[39].mxu1  ;;  %v1635_v43 = vmul.f32 0.5, %v1605_v41  ;;  %v11783_v17 = vld [vmem:[#allocation14 + $0x6c] ss:$16 sps:$4 sm:$0xff]  }
 0x244   :  { %11532 = vtanh.f32 %v1626_v22  ;;  %v11784_v41 = vld [vmem:[#allocation14 + $0x60] ss:$16 sps:$4 sm:$0xff]   ;;  %v11785_v3 = vld [vmem:[#allocation14 + $0x68] ss:$16 sps:$4 sm:$0xff]  }
 0x245   :  { %14468 = vst [vmem:[#allocation88_spill] sm:$0xff] %v12825_v33  ;;  %11534 = vtanh.f32 %v1630_v51  ;;  %v1659_v9 = vpack.c.bf16 %v12825_v33, %v12825_v33  ;;  %v11787_v51 = vld [vmem:[#allocation14 + $0x8c] ss:$16 sps:$4 sm:$0xff]   ;;  %v12922_v33 = vld [vmem:[#allocation13 + $0xc8] ss:$16 sps:$4 sm:$0xff]  }
 0x246   :  { %11536 = vtanh.f32 %v1604_v18  ;;  %v11782_v18 = vld [vmem:[#allocation14 + $0x64] ss:$16 sps:$4 sm:$0xff]  }
 0x247   :  { %1885 = vmatmul.mubr.bf16.vlgmr.msra.gmra.mrb[40].mxu0 %v1659_v9  ;;  %1926 = vmatmul.mubr.bf16.vlgmr.msra.gmra.mrb[40].mxu1 %v1659_v9  ;;  %11538 = vtanh.f32 %v1635_v43  ;;  %v11788_v9 = vld [vmem:[#allocation14 + $0x80] ss:$16 sps:$4 sm:$0xff]  }
 0x248   :  { %2140 = vmatpush1.bf16.msra.mxu0 %v11772_v7  ;;  %2181 = vmatpush1.bf16.msra.mxu1 %v11773_v56  ;;  %v11789_v7 = vld [vmem:[#allocation14 + $0x88] ss:$16 sps:$4 sm:$0xff]   ;;  %v11790_v56 = vld [vmem:[#allocation14 + $0xa4] ss:$16 sps:$4 sm:$0xff]   ;;  %v11792_v43 = vld [vmem:[#allocation14 + $0xa0] ss:$16 sps:$4 sm:$0xff]  }
 0x249   :  { %2141 = vmatprep.subr.bf16.mxu0 %v11774_v2  ;;  %2182 = vmatprep.subr.bf16.mxu1 %v11775_v32  ;;  %v11791_v2 = vld [vmem:[#allocation14 + $0xac] ss:$16 sps:$4 sm:$0xff]  }
 0x24a   :  { %2171 = vmatprep.mubr.bf16.mxu0 %v14469_v30  ;;  %2212 = vmatprep.mubr.bf16.mxu1 %v14469_v30 }
 0x24c   :  { %2142 = vmatpush1.bf16.msra.mxu0 %v11776_v60  ;;  %2183 = vmatpush1.bf16.msra.mxu1 %v11777_v5  ;;  %v11793_v60 = vld [vmem:[#allocation14 + $0xa8] ss:$16 sps:$4 sm:$0xff]  }
 0x24d   :  { %2143 = vmatprep.subr.bf16.mxu0 %v11778_v62  ;;  %2184 = vmatprep.subr.bf16.mxu1 %v11779_v61  ;;  %v11794_v62 = vld [vmem:[#allocation14 + $0xc4] ss:$16 sps:$4 sm:$0xff]   ;;  %v11795_v61 = vld [vmem:[#allocation14 + $0xcc] ss:$16 sps:$4 sm:$0xff]  }
 0x24e   :  { %v11533_v1 = vpop.eup %11532 }
 0x24f   :  { %v11535_v10 = vpop.eup %11534  ;;  %v1628_v11 = vmul.f32 0.5, %v11533_v1  ;;  %v11796_v1 = vld [vmem:[#allocation14 + $0xc0] ss:$16 sps:$4 sm:$0xff]  }
 0x250   :  { %v1632_v23 = vmul.f32 0.5, %v11535_v10  ;;  %2144 = vmatpush1.bf16.msra.mxu0 %v11780_v25  ;;  %2185 = vmatpush1.bf16.msra.mxu1 %v11781_v15  ;;  %v11537_v19 = vpop.eup %11536  ;;  %v11797_v10 = vld [vmem:[#allocation14 + $0xc8] ss:$16 sps:$4 sm:$0xff]   ;;  %v11799_v25 = vld [vmem:[#allocation14 + $0xec] ss:$16 sps:$4 sm:$0xff]  }
 0x251   :  { %v1629_v16 = vadd.f32 0.5, %v1628_v11  ;;  %2145 = vmatprep.subr.bf16.mxu0 %v11782_v18  ;;  %2186 = vmatprep.subr.bf16.mxu1 %v11783_v17  ;;  %v11539_v32 = vpop.eup %11538  ;;  %v11800_v18 = vld [vmem:[#allocation14 + $0xe0] ss:$16 sps:$4 sm:$0xff]   ;;  %v11801_v17 = vld [vmem:[#allocation14 + $0xe8] ss:$16 sps:$4 sm:$0xff]  }
 0x252   :  { %v1633_v6 = vadd.f32 0.5, %v1632_v23  ;;  %v1637_v5 = vmul.f32 0.5, %v11539_v32  ;;  %v11798_v23 = vld [vmem:[#allocation14 + $0xe4] ss:$16 sps:$4 sm:$0xff]   ;;  %v12874_v32 = vld [vmem:[#allocation13 + $0x48] ss:$16 sps:$4 sm:$0xff]  }
 0x253   :  { %v1640_v20 = vmul.f32 %v11537_v19, %v1629_v16 }
 0x254   :  { %v1639_v22 = vmul.f32 0.0, %v1633_v6  ;;  %2146 = vmatpush1.bf16.msra.mxu0 %v11784_v41  ;;  %2187 = vmatpush1.bf16.msra.mxu1 %v11785_v3  ;;  %v1638_v11 = vadd.f32 0.5, %v1637_v5  ;;  %v12844_v6 = vld [vmem:[#allocation13 + $0x4] ss:$16 sps:$4 sm:$0xff]   ;;  %v12850_v41 = vld [vmem:[#allocation13 + $0x8] ss:$16 sps:$4 sm:$0xff]  }
 0x255   :  { %2147 = vmatprep.subr.bf16.mxu0 %v11786_v49  ;;  %2188 = vmatprep.subr.bf16.mxu1 %v11787_v51  ;;  %v12856_v3 = vld [vmem:[#allocation13 + $0x24] ss:$16 sps:$4 sm:$0xff]   ;;  %v12858_v49 = vld [vmem:[#allocation13 + $0x2c] ss:$16 sps:$4 sm:$0xff]   ;;  %v12860_v51 = vld [vmem:[#allocation13 + $0x20] ss:$16 sps:$4 sm:$0xff]  }
 0x256   :  { %v12831_v52 = vadd.f32 %v1640_v20, %v1639_v22  ;;  %v12846_v20 = vld [vmem:[#allocation13 + $0xc] ss:$16 sps:$4 sm:$0xff]   ;;  %v12848_v22 = vld [vmem:[#allocation13] ss:$16 sps:$4 sm:$0xff]  }
 0x257   :  { %v12884_v5 = vld [vmem:[#allocation13 + $0x60] ss:$16 sps:$4 sm:$0xff]  }
 0x258   :  { %11540 = vtanh.f32 %v12831_v52  ;;  %2148 = vmatpush1.bf16.msra.mxu0 %v11788_v9  ;;  %2189 = vmatpush1.bf16.msra.mxu1 %v11789_v7  ;;  %v12862_v9 = vld [vmem:[#allocation13 + $0x28] ss:$16 sps:$4 sm:$0xff]   ;;  %v12868_v7 = vld [vmem:[#allocation13 + $0x44] ss:$16 sps:$4 sm:$0xff]  }
 0x259   :  { %2149 = vmatprep.subr.bf16.mxu0 %v11790_v56  ;;  %2190 = vmatprep.subr.bf16.mxu1 %v11791_v2  ;;  %v12870_v56 = vld [vmem:[#allocation13 + $0x4c] ss:$16 sps:$4 sm:$0xff]   ;;  %v12872_v2 = vld [vmem:[#allocation13 + $0x40] ss:$16 sps:$4 sm:$0xff]  }
 0x25c   :  { %2150 = vmatpush1.bf16.msra.mxu0 %v11792_v43  ;;  %2191 = vmatpush1.bf16.msra.mxu1 %v11793_v60  ;;  %v12880_v43 = vld [vmem:[#allocation13 + $0x64] ss:$16 sps:$4 sm:$0xff]   ;;  %v12882_v60 = vld [vmem:[#allocation13 + $0x6c] ss:$16 sps:$4 sm:$0xff]  }
 0x25d   :  { %2151 = vmatprep.subr.bf16.mxu0 %v11794_v62  ;;  %2192 = vmatprep.subr.bf16.mxu1 %v11795_v61  ;;  %v12886_v62 = vld [vmem:[#allocation13 + $0x68] ss:$16 sps:$4 sm:$0xff]   ;;  %v12892_v61 = vld [vmem:[#allocation13 + $0x84] ss:$16 sps:$4 sm:$0xff]  }
 0x260   :  { %2152 = vmatpush1.bf16.msra.mxu0 %v11796_v1  ;;  %2193 = vmatpush1.bf16.msra.mxu1 %v11797_v10  ;;  %v12894_v1 = vld [vmem:[#allocation13 + $0x8c] ss:$16 sps:$4 sm:$0xff]   ;;  %v12896_v10 = vld [vmem:[#allocation13 + $0x80] ss:$16 sps:$4 sm:$0xff]  }
 0x261   :  { %2153 = vmatprep.subr.bf16.mxu0 %v11798_v23  ;;  %2194 = vmatprep.subr.bf16.mxu1 %v11799_v25  ;;  %v12904_v23 = vld [vmem:[#allocation13 + $0xa4] ss:$16 sps:$4 sm:$0xff]   ;;  %v12906_v25 = vld [vmem:[#allocation13 + $0xac] ss:$16 sps:$4 sm:$0xff]  }
 0x262   :  { %v11541_v15 = vpop.eup %11540 }
 0x263   :  { %v12834_v16 = vmul.f32 %v11541_v15, %v1638_v11  ;;  %v12898_v11 = vld [vmem:[#allocation13 + $0x88] ss:$16 sps:$4 sm:$0xff]   ;;  %v12908_v15 = vld [vmem:[#allocation13 + $0xa0] ss:$16 sps:$4 sm:$0xff]  }
 0x264   :  { %2154 = vmatpush1.bf16.msra.mxu0 %v11800_v18  ;;  %2195 = vmatpush1.bf16.msra.mxu1 %v11801_v17  ;;  %v12910_v18 = vld [vmem:[#allocation13 + $0xa8] ss:$16 sps:$4 sm:$0xff]   ;;  %v12916_v17 = vld [vmem:[#allocation13 + $0xc4] ss:$16 sps:$4 sm:$0xff]  }
 0x265   :  { %14470 = vst [vmem:[#allocation89_spill] sm:$0xff] %v12834_v16  ;;  %v12838_v19 = vpack.c.bf16 %v12834_v16, %v12834_v16  ;;  %2472 = vmatprep.subr.bf16.mxu0 %v12844_v6  ;;  %2513 = vmatprep.subr.bf16.mxu1 %v12846_v20  ;;  %v12920_v16 = vld [vmem:[#allocation13 + $0xc0] ss:$16 sps:$4 sm:$0xff]  }
 0x267   :  { %14471 = vst [vmem:[#allocation90_spill] sm:$0xff] %v12838_v19  ;;  %2172 = vmatmul.mubr.bf16.vlgmr.msra.gmra.mrb[44].mxu0 %v12838_v19  ;;  %2213 = vmatmul.mubr.bf16.vlgmr.msra.gmra.mrb[44].mxu1 %v12838_v19  ;;  %v12918_v19 = vld [vmem:[#allocation13 + $0xcc] ss:$16 sps:$4 sm:$0xff]  }
 0x268   :  { %2504 = vmatprep.mubr.bf16.mxu0 %v14469_v30  ;;  %2545 = vmatprep.mubr.bf16.mxu1 %v14469_v30 }
 0x269   :  { %2473 = vmatpush1.bf16.msra.mxu0 %v12848_v22  ;;  %2514 = vmatpush1.bf16.msra.mxu1 %v12850_v41 }
 0x26a   :  { %2474 = vmatprep.subr.bf16.mxu0 %v12856_v3  ;;  %2515 = vmatprep.subr.bf16.mxu1 %v12858_v49 }
 0x26d   :  { %2475 = vmatpush1.bf16.msra.mxu0 %v12860_v51  ;;  %2516 = vmatpush1.bf16.msra.mxu1 %v12862_v9 }
 0x26e   :  { %2476 = vmatprep.subr.bf16.mxu0 %v12868_v7  ;;  %2517 = vmatprep.subr.bf16.mxu1 %v12870_v56 }
 0x271   :  { %2477 = vmatpush1.bf16.msra.mxu0 %v12872_v2  ;;  %2518 = vmatpush1.bf16.msra.mxu1 %v12874_v32 }
 0x272   :  { %2478 = vmatprep.subr.bf16.mxu0 %v12880_v43  ;;  %2519 = vmatprep.subr.bf16.mxu1 %v12882_v60 }
 0x275   :  { %2479 = vmatpush1.bf16.msra.mxu0 %v12884_v5  ;;  %2520 = vmatpush1.bf16.msra.mxu1 %v12886_v62 }
 0x276   :  { %2480 = vmatprep.subr.bf16.mxu0 %v12892_v61  ;;  %2521 = vmatprep.subr.bf16.mxu1 %v12894_v1 }
 0x279   :  { %2481 = vmatpush1.bf16.msra.mxu0 %v12896_v10  ;;  %2522 = vmatpush1.bf16.msra.mxu1 %v12898_v11 }
 0x27a   :  { %2482 = vmatprep.subr.bf16.mxu0 %v12904_v23  ;;  %2523 = vmatprep.subr.bf16.mxu1 %v12906_v25 }
 0x27d   :  { %2483 = vmatpush1.bf16.msra.mxu0 %v12908_v15  ;;  %2524 = vmatpush1.bf16.msra.mxu1 %v12910_v18 }
 0x27e   :  { %2484 = vmatprep.subr.bf16.mxu0 %v12916_v17  ;;  %2525 = vmatprep.subr.bf16.mxu1 %v12918_v19 }
 0x281   :  { %2485 = vmatpush1.bf16.msra.mxu0 %v12920_v16  ;;  %2526 = vmatpush1.bf16.msra.mxu1 %v12922_v33 }
 0x282   :  { %2486 = vmatprep.subr.bf16.mxu0 %v12928_v57  ;;  %2527 = vmatprep.subr.bf16.mxu1 %v12930_v14 }
 0x285   :  { %2487 = vmatpush1.bf16.msra.mxu0 %v12932_v35  ;;  %2528 = vmatpush1.bf16.msra.mxu1 %v12934_v13 }
 0x286   :  { %2759 = vmatprep.subr.bf16.mxu0 %v12940_v21  ;;  %2800 = vmatprep.subr.bf16.mxu1 %v12942_v59 }
 0x31a   :  { %v1886_v53 = vpop.f32.mrb[40].mxu0  ;;  %v1927_v55 = vpop.f32.mrb[40].mxu1 }
 0x31b   :  { %v1934_v50 = vadd.f32 %v1886_v53, %v12627_v24  ;;  %v1936_v54 = vadd.f32 %v1927_v55, %v12633_v28  ;;  %v1888_v42 = vpop.f32.mrb[41].mxu0  ;;  %v1929_v46 = vpop.f32.mrb[41].mxu1 }
 0x31c   :  { %v1935_v12 = vadd.f32 %v1888_v42, %v12630_v27  ;;  %v1937_v48 = vadd.f32 %v1929_v46, %v12636_v29  ;;  %v1890_v44 = vpop.f32.mrb[42].mxu0  ;;  %v1931_v45 = vpop.f32.mrb[42].mxu1 }
 0x31d   :  { %v2226_v38 = vmul.f32 0.5, %v1934_v50  ;;  %v1891_v37 = vpop.f32.mrb[43].mxu0  ;;  %v1932_v58 = vpop.f32.mrb[43].mxu1 }
 0x31e   :  { %v2230_v47 = vmul.f32 0.5, %v1935_v12  ;;  %v2235_v0 = vmul.f32 0.5, %v1937_v48 }
 0x31f   :  { %11542 = vtanh.f32 %v2226_v38 }
 0x320   :  { %11544 = vtanh.f32 %v2230_v47 }
 0x321   :  { %11546 = vtanh.f32 %v1936_v54 }
 0x322   :  { %11548 = vtanh.f32 %v2235_v0 }
 0x329   :  { %v11543_v40 = vpop.eup %11542 }
 0x32a   :  { %v11545_v24 = vpop.eup %11544  ;;  %v2228_v53 = vmul.f32 0.5, %v11543_v40 }
 0x32b   :  { %v2232_v28 = vmul.f32 0.5, %v11545_v24  ;;  %v11547_v34 = vpop.eup %11546 }
 0x32c   :  { %v2229_v55 = vadd.f32 0.5, %v2228_v53  ;;  %v11549_v12 = vpop.eup %11548 }
 0x32d   :  { %v2233_v27 = vadd.f32 0.5, %v2232_v28  ;;  %v2237_v38 = vmul.f32 0.5, %v11549_v12  ;;  %v12974_v12 = vld [vmem:[#allocation14 + $0x28] ss:$16 sps:$4 sm:$0xff]  }
 0x32e   :  { %v2240_v42 = vmul.f32 %v11547_v34, %v2229_v55 }
 0x32f   :  { %v2239_v29 = vmul.f32 %v2233_v27, %v12818_v8  ;;  %v2238_v46 = vadd.f32 0.5, %v2237_v38  ;;  %v12978_v38 = vld [vmem:[#allocation14 + $0x44] ss:$16 sps:$4 sm:$0xff]  }
 0x331   :  { %v12951_v44 = vadd.f32 %v2240_v42, %v2239_v29  ;;  %v12966_v42 = vld [vmem:[#allocation14 + $0x24] ss:$16 sps:$4 sm:$0xff]   ;;  %v12972_v29 = vld [vmem:[#allocation14 + $0x20] ss:$16 sps:$4 sm:$0xff]  }
 0x333   :  { %11550 = vtanh.f32 %v12951_v44 }
 0x33a   :  { %v2173_v45 = vpop.f32.mrb[44].mxu0  ;;  %v2214_v50 = vpop.f32.mrb[44].mxu1 }
 0x33b   :  { %v2221_v48 = vadd.f32 %v2173_v45, %v12799_v39  ;;  %v2223_v40 = vadd.f32 %v2214_v50, %v12805_v4  ;;  %v2175_v37 = vpop.f32.mrb[45].mxu0  ;;  %v2216_v47 = vpop.f32.mrb[45].mxu1  ;;  %v12960_v39 = vld [vmem:[#allocation14] ss:$16 sps:$4 sm:$0xff]   ;;  %v12962_v4 = vld [vmem:[#allocation14 + $0x8] ss:$16 sps:$4 sm:$0xff]  }
 0x33c   :  { %v2222_v0 = vadd.f32 %v2175_v37, %v12802_v63  ;;  %v2224_v34 = vadd.f32 %v2216_v47, %v12808_v26  ;;  %v2177_v54 = vpop.f32.mrb[46].mxu0  ;;  %v2218_v58 = vpop.f32.mrb[46].mxu1  ;;  %v12968_v26 = vld [vmem:[#allocation14 + $0x2c] ss:$16 sps:$4 sm:$0xff]   ;;  %v12992_v37 = vld [vmem:[#allocation14 + $0x64] ss:$16 sps:$4 sm:$0xff]  }
 0x33d   :  { %v11551_v8 = vpop.eup %11550  ;;  %v2245_v24 = vmul.f32 0.5, %v2221_v48  ;;  %v2178_v53 = vpop.f32.mrb[47].mxu0  ;;  %v12980_v45 = vld [vmem:[#allocation14 + $0x4c] ss:$16 sps:$4 sm:$0xff]   ;;  %v12986_v48 = vld [vmem:[#allocation14 + $0x40] ss:$16 sps:$4 sm:$0xff]  }
 0x33e   :  { %v2219_v28 = vpop.f32.mrb[47].mxu1  ;;  %v12958_v55 = vmul.f32 %v11551_v8, %v2238_v46  ;;  %v2249_v27 = vmul.f32 0.5, %v2222_v0  ;;  %v2254_v50 = vmul.f32 0.5, %v2224_v34  ;;  %v12994_v47 = vld [vmem:[#allocation14 + $0x6c] ss:$16 sps:$4 sm:$0xff]  }
 0x33f   :  { %11552 = vtanh.f32 %v2245_v24  ;;  %14473 = vst [vmem:[#allocation92_spill] sm:$0xff] %v12994_v47  ;;  %v12998_v58 = vld [vmem:[#allocation14 + $0x60] ss:$16 sps:$4 sm:$0xff]   ;;  %v13000_v8 = vld [vmem:[#allocation14 + $0x68] ss:$16 sps:$4 sm:$0xff]  }
 0x340   :  { %14472 = vst [vmem:[#allocation91_spill] sm:$0xff] %v12958_v55  ;;  %11554 = vtanh.f32 %v2249_v27  ;;  %v2279_v63 = vpack.c.bf16 %v12958_v55, %v12958_v55  ;;  %v13004_v53 = vld [vmem:[#allocation14 + $0x84] ss:$16 sps:$4 sm:$0xff]   ;;  %v13006_v28 = vld [vmem:[#allocation14 + $0x8c] ss:$16 sps:$4 sm:$0xff]  }
 0x341   :  { %11556 = vtanh.f32 %v2223_v40  ;;  %v12988_v40 = vld [vmem:[#allocation14 + $0x48] ss:$16 sps:$4 sm:$0xff]   ;;  %14474 = vst [vmem:[#allocation93_spill] sm:$0xff] %v13006_v28  ;;  %v13017_v55 = vld [vmem:[#allocation14 + $0xa4] ss:$16 sps:$4 sm:$0xff]  }
 0x342   :  { %2505 = vmatmul.mubr.bf16.vlgmr.msra.gmra.mrb[48].mxu0 %v2279_v63  ;;  %2546 = vmatmul.mubr.bf16.vlgmr.msra.gmra.mrb[48].mxu1 %v2279_v63  ;;  %11558 = vtanh.f32 %v2254_v50  ;;  %14477 = vst [vmem:[#allocation96_spill] sm:$0xff] %v13017_v55 }
 0x343   :  { %2760 = vmatpush1.bf16.msra.mxu0 %v12960_v39  ;;  %2801 = vmatpush1.bf16.msra.mxu1 %v12962_v4 }
 0x344   :  { %2761 = vmatprep.subr.bf16.mxu0 %v12966_v42  ;;  %2802 = vmatprep.subr.bf16.mxu1 %v12968_v26 }
 0x345   :  { %2791 = vmatprep.mubr.bf16.mxu0 %v14469_v30  ;;  %2832 = vmatprep.mubr.bf16.mxu1 %v14469_v30 }
 0x347   :  { %2762 = vmatpush1.bf16.msra.mxu0 %v12972_v29  ;;  %2803 = vmatpush1.bf16.msra.mxu1 %v12974_v12 }
 0x348   :  { %2763 = vmatprep.subr.bf16.mxu0 %v12978_v38  ;;  %2804 = vmatprep.subr.bf16.mxu1 %v12980_v45 }
 0x349   :  { %v11553_v46 = vpop.eup %11552 }
 0x34a   :  { %v11555_v0 = vpop.eup %11554  ;;  %v2247_v54 = vmul.f32 0.5, %v11553_v46 }
 0x34b   :  { %v2251_v34 = vmul.f32 0.5, %v11555_v0  ;;  %2764 = vmatpush1.bf16.msra.mxu0 %v12986_v48  ;;  %2805 = vmatpush1.bf16.msra.mxu1 %v12988_v40  ;;  %v11557_v27 = vpop.eup %11556  ;;  %v13011_v0 = vld [vmem:[#allocation14 + $0x80] ss:$16 sps:$4 sm:$0xff]  }
 0x34c   :  { %v2248_v24 = vadd.f32 0.5, %v2247_v54  ;;  %2765 = vmatprep.subr.bf16.mxu0 %v12992_v37  ;;  %2806 = vmatprep.subr.bf16.mxu1 %v12994_v47  ;;  %14475 = vst [vmem:[#allocation94_spill] sm:$0xff] %v13011_v0  ;;  %v13013_v54 = vld [vmem:[#allocation14 + $0x88] ss:$16 sps:$4 sm:$0xff]   ;;  %v13019_v47 = vld [vmem:[#allocation14 + $0xac] ss:$16 sps:$4 sm:$0xff]  }
 0x34d   :  { %v2252_v63 = vadd.f32 0.5, %v2251_v34  ;;  %14476 = vst [vmem:[#allocation95_spill] sm:$0xff] %v13013_v54  ;;  %14478 = vst [vmem:[#allocation97_spill] sm:$0xff] %v13019_v47 }
 0x34e   :  { %v2259_v50 = vmul.f32 %v11557_v27, %v2248_v24  ;;  %v13028_v24 = vld [vmem:[#allocation14 + $0xa8] ss:$16 sps:$4 sm:$0xff]   ;;  %v13032_v27 = vld [vmem:[#allocation14 + $0xc4] ss:$16 sps:$4 sm:$0xff]  }
 0x34f   :  { %v2258_v46 = vmul.f32 %v2252_v63, %v12831_v52  ;;  %2766 = vmatpush1.bf16.msra.mxu0 %v12998_v58  ;;  %2807 = vmatpush1.bf16.msra.mxu1 %v13000_v8  ;;  %v13026_v52 = vld [vmem:[#allocation14 + $0xa0] ss:$16 sps:$4 sm:$0xff]   ;;  %14480 = vst [vmem:[#allocation99_spill] sm:$0xff] %v13028_v24  ;;  %14481 = vst [vmem:[#allocation100_spill] sm:$0xff] %v13032_v27  ;;  %v13034_v63 = vld [vmem:[#allocation14 + $0xcc] ss:$16 sps:$4 sm:$0xff]  }
 0x350   :  { %2767 = vmatprep.subr.bf16.mxu0 %v13004_v53  ;;  %2808 = vmatprep.subr.bf16.mxu1 %v13006_v28  ;;  %14479 = vst [vmem:[#allocation98_spill] sm:$0xff] %v13026_v52 }
 0x351   :  { %v13021_v34 = vadd.f32 %v2259_v50, %v2258_v46  ;;  %v11559_v50 = vpop.eup %11558  ;;  %v13038_v46 = vld [vmem:[#allocation14 + $0xc0] ss:$16 sps:$4 sm:$0xff]  }
 0x352   :  { %14482 = vst [vmem:[#allocation101_spill] sm:$0xff] %v13038_v46 }
 0x353   :  { %11560 = vtanh.f32 %v13021_v34  ;;  %2768 = vmatpush1.bf16.msra.mxu0 %v13011_v0  ;;  %2809 = vmatpush1.bf16.msra.mxu1 %v13013_v54  ;;  %v13040_v54 = vld [vmem:[#allocation14 + $0xc8] ss:$16 sps:$4 sm:$0xff]   ;;  %v2256_v0 = vmul.f32 0.5, %v11559_v50 }
 0x354   :  { %2769 = vmatprep.subr.bf16.mxu0 %v13017_v55  ;;  %2810 = vmatprep.subr.bf16.mxu1 %v13019_v47  ;;  %v13044_v55 = vld [vmem:[#allocation14 + $0xe4] ss:$16 sps:$4 sm:$0xff]   ;;  %v13046_v47 = vld [vmem:[#allocation14 + $0xec] ss:$16 sps:$4 sm:$0xff]  }
 0x355   :  { %v2257_v28 = vadd.f32 0.5, %v2256_v0 }
 0x357   :  { %2770 = vmatpush1.bf16.msra.mxu0 %v13026_v52  ;;  %2811 = vmatpush1.bf16.msra.mxu1 %v13028_v24  ;;  %v13050_v52 = vld [vmem:[#allocation14 + $0xe0] ss:$16 sps:$4 sm:$0xff]   ;;  %v13052_v24 = vld [vmem:[#allocation14 + $0xe8] ss:$16 sps:$4 sm:$0xff]  }
 0x358   :  { %2771 = vmatprep.subr.bf16.mxu0 %v13032_v27  ;;  %2812 = vmatprep.subr.bf16.mxu1 %v13034_v63 }
 0x35b   :  { %2772 = vmatpush1.bf16.msra.mxu0 %v13038_v46  ;;  %2813 = vmatpush1.bf16.msra.mxu1 %v13040_v54 }
 0x35c   :  { %2773 = vmatprep.subr.bf16.mxu0 %v13044_v55  ;;  %2814 = vmatprep.subr.bf16.mxu1 %v13046_v47 }
 0x35d   :  { %v11561_v50 = vpop.eup %11560 }
 0x35e   :  { %v13056_v27 = vmul.f32 %v11561_v50, %v2257_v28 }
 0x35f   :  { %2774 = vmatpush1.bf16.msra.mxu0 %v13050_v52  ;;  %2815 = vmatpush1.bf16.msra.mxu1 %v13052_v24 }
 0x360   :  { %14483 = vst [vmem:[#allocation102_spill] sm:$0xff] %v13056_v27  ;;  %v2566_v46 = vpack.c.bf16 %v13056_v27, %v13056_v27  ;;  %3092 = vmatprep.subr.bf16.mxu0 %v12844_v6  ;;  %3133 = vmatprep.subr.bf16.mxu1 %v12846_v20  ;;  %v13323_v27 = vld [vmem:[#allocation14 + $0x80] ss:$16 sps:$4 sm:$0xff]  }
 0x362   :  { %2792 = vmatmul.mubr.bf16.vlgmr.msra.gmra.mrb[52].mxu0 %v2566_v46  ;;  %2833 = vmatmul.mubr.bf16.vlgmr.msra.gmra.mrb[52].mxu1 %v2566_v46  ;;  %v14488_v46 = vld [vmem:[#allocation85_spill] sm:$0xff] }
 0x363   :  { %3093 = vmatpush1.bf16.msra.mxu0 %v12848_v22  ;;  %3134 = vmatpush1.bf16.msra.mxu1 %v12850_v41  ;;  %v14484_v41 = vld [vmem:[#allocation42_spill] sm:$0xff] }
 0x364   :  { %3094 = vmatprep.subr.bf16.mxu0 %v12856_v3  ;;  %3135 = vmatprep.subr.bf16.mxu1 %v12858_v49  ;;  %v14485_v3 = vld [vmem:[#allocation44_spill] sm:$0xff] }
 0x365   :  { %3124 = vmatprep.mubr.bf16.mxu0 %v14469_v30  ;;  %3165 = vmatprep.mubr.bf16.mxu1 %v14469_v30 }
 0x367   :  { %3095 = vmatpush1.bf16.msra.mxu0 %v12860_v51  ;;  %3136 = vmatpush1.bf16.msra.mxu1 %v12862_v9 }
 0x368   :  { %3096 = vmatprep.subr.bf16.mxu0 %v12868_v7  ;;  %3137 = vmatprep.subr.bf16.mxu1 %v12870_v56 }
 0x36b   :  { %3097 = vmatpush1.bf16.msra.mxu0 %v12872_v2  ;;  %3138 = vmatpush1.bf16.msra.mxu1 %v12874_v32 }
 0x36c   :  { %3098 = vmatprep.subr.bf16.mxu0 %v12880_v43  ;;  %3139 = vmatprep.subr.bf16.mxu1 %v12882_v60 }
 0x36f   :  { %3099 = vmatpush1.bf16.msra.mxu0 %v12884_v5  ;;  %3140 = vmatpush1.bf16.msra.mxu1 %v12886_v62 }
 0x370   :  { %3100 = vmatprep.subr.bf16.mxu0 %v12892_v61  ;;  %3141 = vmatprep.subr.bf16.mxu1 %v12894_v1 }
 0x373   :  { %3101 = vmatpush1.bf16.msra.mxu0 %v12896_v10  ;;  %3142 = vmatpush1.bf16.msra.mxu1 %v12898_v11 }
 0x374   :  { %3102 = vmatprep.subr.bf16.mxu0 %v12904_v23  ;;  %3143 = vmatprep.subr.bf16.mxu1 %v12906_v25  ;;  %v14486_v23 = vld [vmem:[#allocation83_spill] sm:$0xff] }
 0x377   :  { %3103 = vmatpush1.bf16.msra.mxu0 %v12908_v15  ;;  %3144 = vmatpush1.bf16.msra.mxu1 %v12910_v18  ;;  %v14487_v15 = vld [vmem:[#allocation86_spill] sm:$0xff] }
 0x378   :  { %3104 = vmatprep.subr.bf16.mxu0 %v12916_v17  ;;  %3145 = vmatprep.subr.bf16.mxu1 %v12918_v19  ;;  %14511 = vst [vmem:[#allocation86_spill] sm:$0xff] %v13323_v27 }
 0x37b   :  { %3105 = vmatpush1.bf16.msra.mxu0 %v12920_v16  ;;  %3146 = vmatpush1.bf16.msra.mxu1 %v12922_v33 }
 0x37c   :  { %3106 = vmatprep.subr.bf16.mxu0 %v12928_v57  ;;  %3147 = vmatprep.subr.bf16.mxu1 %v12930_v14 }
 0x37f   :  { %3107 = vmatpush1.bf16.msra.mxu0 %v12932_v35  ;;  %3148 = vmatpush1.bf16.msra.mxu1 %v12934_v13 }
 0x380   :  { %3379 = vmatprep.subr.bf16.mxu0 %v12940_v21  ;;  %3420 = vmatprep.subr.bf16.mxu1 %v12942_v59 }
 0x415   :  { %v2506_v6 = vpop.f32.mrb[48].mxu0  ;;  %v2547_v20 = vpop.f32.mrb[48].mxu1 }
 0x416   :  { %v2554_v19 = vadd.f32 %v2506_v6, %v12639_v31  ;;  %v2556_v16 = vadd.f32 %v2547_v20, %v12645_v36  ;;  %v2508_v22 = vpop.f32.mrb[49].mxu0  ;;  %v2549_v33 = vpop.f32.mrb[49].mxu1  ;;  %v14489_v6 = vld [vmem:[#allocation87_spill] sm:$0xff] }
 0x417   :  { %v2555_v57 = vadd.f32 %v2508_v22, %v14484_v41  ;;  %v2557_v14 = vadd.f32 %v2549_v33, %v14485_v3  ;;  %v2510_v49 = vpop.f32.mrb[50].mxu0  ;;  %v2551_v35 = vpop.f32.mrb[50].mxu1 }
 0x418   :  { %v2846_v51 = vmul.f32 0.5, %v2554_v19  ;;  %v2511_v13 = vpop.f32.mrb[51].mxu0  ;;  %v2552_v9 = vpop.f32.mrb[51].mxu1 }
 0x419   :  { %v2850_v21 = vmul.f32 0.5, %v2555_v57  ;;  %v2855_v59 = vmul.f32 0.5, %v2557_v14  ;;  %v14495_v9 = vld [vmem:[#allocation96_spill] sm:$0xff] }
 0x41a   :  { %11562 = vtanh.f32 %v2846_v51 }
 0x41b   :  { %11564 = vtanh.f32 %v2850_v21  ;;  %v14496_v21 = vld [vmem:[#allocation97_spill] sm:$0xff] }
 0x41c   :  { %11566 = vtanh.f32 %v2556_v16 }
 0x41d   :  { %11568 = vtanh.f32 %v2855_v59  ;;  %v14499_v59 = vld [vmem:[#allocation100_spill] sm:$0xff] }
 0x424   :  { %v11563_v7 = vpop.eup %11562 }
 0x425   :  { %v11565_v31 = vpop.eup %11564  ;;  %v2848_v56 = vmul.f32 0.5, %v11563_v7  ;;  %v14500_v7 = vld [vmem:[#allocation101_spill] sm:$0xff] }
 0x426   :  { %v2852_v36 = vmul.f32 0.5, %v11565_v31  ;;  %v11567_v32 = vpop.eup %11566 }
 0x427   :  { %v2849_v2 = vadd.f32 0.5, %v2848_v56  ;;  %v11569_v61 = vpop.eup %11568 }
 0x428   :  { %v2853_v43 = vadd.f32 0.5, %v2852_v36  ;;  %v2857_v1 = vmul.f32 0.5, %v11569_v61  ;;  %v13184_v61 = vld [vmem:[#allocation13 + $0x40] ss:$16 sps:$4 sm:$0xff]  }
 0x429   :  { %v2860_v60 = vmul.f32 %v11567_v32, %v2849_v2  ;;  %v13172_v32 = vld [vmem:[#allocation13 + $0x20] ss:$16 sps:$4 sm:$0xff]  }
 0x42a   :  { %v2859_v5 = vmul.f32 %v2853_v43, %v12951_v44  ;;  %v2858_v0 = vadd.f32 0.5, %v2857_v1  ;;  %v13174_v43 = vld [vmem:[#allocation13 + $0x28] ss:$16 sps:$4 sm:$0xff]  }
 0x42b   :  { %v13186_v1 = vld [vmem:[#allocation13 + $0x48] ss:$16 sps:$4 sm:$0xff]  }
 0x42c   :  { %v13103_v62 = vadd.f32 %v2860_v60, %v2859_v5  ;;  %v13180_v60 = vld [vmem:[#allocation13 + $0x44] ss:$16 sps:$4 sm:$0xff]   ;;  %v13182_v5 = vld [vmem:[#allocation13 + $0x4c] ss:$16 sps:$4 sm:$0xff]  }
 0x42e   :  { %11570 = vtanh.f32 %v13103_v62 }
 0x435   :  { %v2793_v10 = vpop.f32.mrb[52].mxu0  ;;  %v2834_v11 = vpop.f32.mrb[52].mxu1 }
 0x436   :  { %v2841_v25 = vadd.f32 %v2793_v10, %v14486_v23  ;;  %v2843_v18 = vadd.f32 %v2834_v11, %v14487_v15  ;;  %v2795_v17 = vpop.f32.mrb[53].mxu0  ;;  %v2836_v28 = vpop.f32.mrb[53].mxu1  ;;  %v13192_v10 = vld [vmem:[#allocation13 + $0x64] ss:$16 sps:$4 sm:$0xff]   ;;  %v13194_v11 = vld [vmem:[#allocation13 + $0x6c] ss:$16 sps:$4 sm:$0xff]  }
 0x437   :  { %v2842_v50 = vadd.f32 %v2795_v17, %v14488_v46  ;;  %v2844_v20 = vadd.f32 %v2836_v28, %v14489_v6  ;;  %v2797_v44 = vpop.f32.mrb[54].mxu0  ;;  %v2838_v19 = vpop.f32.mrb[54].mxu1  ;;  %v13196_v23 = vld [vmem:[#allocation13 + $0x60] ss:$16 sps:$4 sm:$0xff]   ;;  %v13204_v15 = vld [vmem:[#allocation13 + $0x84] ss:$16 sps:$4 sm:$0xff]  }
 0x438   :  { %v11571_v16 = vpop.eup %11570  ;;  %v2865_v22 = vmul.f32 0.5, %v2841_v25  ;;  %v2798_v33 = vpop.f32.mrb[55].mxu0  ;;  %v13198_v25 = vld [vmem:[#allocation13 + $0x68] ss:$16 sps:$4 sm:$0xff]   ;;  %v13208_v17 = vld [vmem:[#allocation13 + $0x80] ss:$16 sps:$4 sm:$0xff]  }
 0x439   :  { %v2839_v41 = vpop.f32.mrb[55].mxu1  ;;  %v13110_v57 = vmul.f32 %v11571_v16, %v2858_v0  ;;  %v2869_v3 = vmul.f32 0.5, %v2842_v50  ;;  %v2874_v49 = vmul.f32 0.5, %v2844_v20  ;;  %v13210_v28 = vld [vmem:[#allocation13 + $0x88] ss:$16 sps:$4 sm:$0xff]  }
 0x43a   :  { %11572 = vtanh.f32 %v2865_v22  ;;  %v13216_v0 = vld [vmem:[#allocation13 + $0xa4] ss:$16 sps:$4 sm:$0xff]   ;;  %v13218_v46 = vld [vmem:[#allocation13 + $0xac] ss:$16 sps:$4 sm:$0xff]   ;;  %v13220_v50 = vld [vmem:[#allocation13 + $0xa0] ss:$16 sps:$4 sm:$0xff]  }
 0x43b   :  { %14490 = vst [vmem:[#allocation42_spill] sm:$0xff] %v13110_v57  ;;  %11574 = vtanh.f32 %v2869_v3  ;;  %v2899_v14 = vpack.c.bf16 %v13110_v57, %v13110_v57  ;;  %v13222_v6 = vld [vmem:[#allocation13 + $0xa8] ss:$16 sps:$4 sm:$0xff]   ;;  %v13228_v20 = vld [vmem:[#allocation13 + $0xc4] ss:$16 sps:$4 sm:$0xff]  }
 0x43c   :  { %11576 = vtanh.f32 %v2843_v18  ;;  %v13206_v18 = vld [vmem:[#allocation13 + $0x8c] ss:$16 sps:$4 sm:$0xff]   ;;  %v13232_v19 = vld [vmem:[#allocation13 + $0xc0] ss:$16 sps:$4 sm:$0xff]   ;;  %v13234_v16 = vld [vmem:[#allocation13 + $0xc8] ss:$16 sps:$4 sm:$0xff]  }
 0x43d   :  { %3125 = vmatmul.mubr.bf16.vlgmr.msra.gmra.mrb[56].mxu0 %v2899_v14  ;;  %3166 = vmatmul.mubr.bf16.vlgmr.msra.gmra.mrb[56].mxu1 %v2899_v14  ;;  %11578 = vtanh.f32 %v2874_v49  ;;  %v13230_v44 = vld [vmem:[#allocation13 + $0xcc] ss:$16 sps:$4 sm:$0xff]   ;;  %v13240_v22 = vld [vmem:[#allocation13 + $0xe4] ss:$16 sps:$4 sm:$0xff]   ;;  %v13244_v41 = vld [vmem:[#allocation13 + $0xe0] ss:$16 sps:$4 sm:$0xff]  }
 0x43e   :  { %3380 = vmatpush1.bf16.msra.mxu0 %v12960_v39  ;;  %3421 = vmatpush1.bf16.msra.mxu1 %v12962_v4  ;;  %v13242_v33 = vld [vmem:[#allocation13 + $0xec] ss:$16 sps:$4 sm:$0xff]   ;;  %v13246_v3 = vld [vmem:[#allocation13 + $0xe8] ss:$16 sps:$4 sm:$0xff]   ;;  %v13252_v14 = vld [vmem:[#allocation14 + $0x4] ss:$16 sps:$4 sm:$0xff]  }
 0x43f   :  { %3381 = vmatprep.subr.bf16.mxu0 %v12966_v42  ;;  %3422 = vmatprep.subr.bf16.mxu1 %v12968_v26  ;;  %v14491_v26 = vld [vmem:[#allocation92_spill] sm:$0xff] }
 0x440   :  { %3411 = vmatprep.mubr.bf16.mxu0 %v14469_v30  ;;  %3452 = vmatprep.mubr.bf16.mxu1 %v14469_v30  ;;  %v13254_v49 = vld [vmem:[#allocation14 + $0xc] ss:$16 sps:$4 sm:$0xff]   ;;  %v13352_v57 = vld [vmem:[#allocation14 + $0xc8] ss:$16 sps:$4 sm:$0xff]  }
 0x442   :  { %3382 = vmatpush1.bf16.msra.mxu0 %v12972_v29  ;;  %3423 = vmatpush1.bf16.msra.mxu1 %v12974_v12 }
 0x443   :  { %3383 = vmatprep.subr.bf16.mxu0 %v12978_v38  ;;  %3424 = vmatprep.subr.bf16.mxu1 %v12980_v45  ;;  %v14492_v45 = vld [vmem:[#allocation93_spill] sm:$0xff] }
 0x444   :  { %v11573_v39 = vpop.eup %11572 }
 0x445   :  { %v11575_v35 = vpop.eup %11574  ;;  %v2867_v4 = vmul.f32 0.5, %v11573_v39 }
 0x446   :  { %v2871_v51 = vmul.f32 0.5, %v11575_v35  ;;  %3384 = vmatpush1.bf16.msra.mxu0 %v12986_v48  ;;  %3425 = vmatpush1.bf16.msra.mxu1 %v12988_v40  ;;  %v11577_v29 = vpop.eup %11576  ;;  %v14493_v40 = vld [vmem:[#allocation94_spill] sm:$0xff] }
 0x447   :  { %v2868_v42 = vadd.f32 0.5, %v2867_v4  ;;  %3385 = vmatprep.subr.bf16.mxu0 %v12992_v37  ;;  %3426 = vmatprep.subr.bf16.mxu1 %v14491_v26  ;;  %v14494_v37 = vld [vmem:[#allocation95_spill] sm:$0xff] }
 0x448   :  { %v2872_v12 = vadd.f32 0.5, %v2871_v51  ;;  %v14502_v4 = vld [vmem:[#allocation43_spill] sm:$0xff] }
 0x449   :  { %v2879_v13 = vmul.f32 %v11577_v29, %v2868_v42  ;;  %v14503_v42 = vld [vmem:[#allocation46_spill] sm:$0xff] }
 0x44a   :  { %v2878_v38 = vmul.f32 %v2872_v12, %v13021_v34  ;;  %3386 = vmatpush1.bf16.msra.mxu0 %v12998_v58  ;;  %3427 = vmatpush1.bf16.msra.mxu1 %v13000_v8  ;;  %v11579_v34 = vpop.eup %11578  ;;  %v14497_v58 = vld [vmem:[#allocation98_spill] sm:$0xff]  ;;  %v14498_v8 = vld [vmem:[#allocation99_spill] sm:$0xff] }
 0x44b   :  { %3387 = vmatprep.subr.bf16.mxu0 %v13004_v53  ;;  %3428 = vmatprep.subr.bf16.mxu1 %v14492_v45  ;;  %v2876_v53 = vmul.f32 0.5, %v11579_v34  ;;  %v14505_v45 = vld [vmem:[#allocation47_spill] sm:$0xff] }
 0x44c   :  { %v13133_v48 = vadd.f32 %v2879_v13, %v2878_v38  ;;  %v14504_v13 = vld [vmem:[#allocation45_spill] sm:$0xff] }
 0x44d   :  { %v2877_v31 = vadd.f32 0.5, %v2876_v53 }
 0x44e   :  { %11580 = vtanh.f32 %v13133_v48  ;;  %3388 = vmatpush1.bf16.msra.mxu0 %v14493_v40  ;;  %3429 = vmatpush1.bf16.msra.mxu1 %v14494_v37 }
 0x44f   :  { %3389 = vmatprep.subr.bf16.mxu0 %v14495_v9  ;;  %3430 = vmatprep.subr.bf16.mxu1 %v14496_v21 }
 0x452   :  { %3390 = vmatpush1.bf16.msra.mxu0 %v14497_v58  ;;  %3431 = vmatpush1.bf16.msra.mxu1 %v14498_v8 }
 0x453   :  { %3391 = vmatprep.subr.bf16.mxu0 %v14499_v59  ;;  %3432 = vmatprep.subr.bf16.mxu1 %v13034_v63  ;;  %v13162_v63 = vld [vmem:[#allocation13 + $0x8] ss:$16 sps:$4 sm:$0xff]  }
 0x456   :  { %3392 = vmatpush1.bf16.msra.mxu0 %v14500_v7  ;;  %3433 = vmatpush1.bf16.msra.mxu1 %v13040_v54  ;;  %v13156_v54 = vld [vmem:[#allocation13 + $0x4] ss:$16 sps:$4 sm:$0xff]  }
 0x457   :  { %3393 = vmatprep.subr.bf16.mxu0 %v13044_v55  ;;  %3434 = vmatprep.subr.bf16.mxu1 %v13046_v47  ;;  %v13158_v55 = vld [vmem:[#allocation13 + $0xc] ss:$16 sps:$4 sm:$0xff]   ;;  %v13160_v47 = vld [vmem:[#allocation13] ss:$16 sps:$4 sm:$0xff]  }
 0x458   :  { %v11581_v56 = vpop.eup %11580 }
 0x459   :  { %v13148_v36 = vmul.f32 %v11581_v56, %v2877_v31 }
 0x45a   :  { %3394 = vmatpush1.bf16.msra.mxu0 %v13050_v52  ;;  %3435 = vmatpush1.bf16.msra.mxu1 %v13052_v24  ;;  %v13168_v52 = vld [vmem:[#allocation13 + $0x24] ss:$16 sps:$4 sm:$0xff]   ;;  %v13170_v24 = vld [vmem:[#allocation13 + $0x2c] ss:$16 sps:$4 sm:$0xff]  }
 0x45b   :  { %14501 = vst [vmem:[#allocation44_spill] sm:$0xff] %v13148_v36  ;;  %v3186_v2 = vpack.c.bf16 %v13148_v36, %v13148_v36  ;;  %3709 = vmatprep.subr.bf16.mxu0 %v13156_v54  ;;  %3750 = vmatprep.subr.bf16.mxu1 %v13158_v55  ;;  %v13329_v36 = vld [vmem:[#allocation14 + $0xa4] ss:$16 sps:$4 sm:$0xff]  }
 0x45c   :  { %14513 = vst [vmem:[#allocation87_spill] sm:$0xff] %v13329_v36 }
 0x45d   :  { %3412 = vmatmul.mubr.bf16.vlgmr.msra.gmra.mrb[60].mxu0 %v3186_v2  ;;  %3453 = vmatmul.mubr.bf16.vlgmr.msra.gmra.mrb[60].mxu1 %v3186_v2 }
 0x45e   :  { %3741 = vmatprep.mubr.bf16.mxu0 %v14469_v30  ;;  %3782 = vmatprep.mubr.bf16.mxu1 %v14469_v30 }
 0x45f   :  { %3710 = vmatpush1.bf16.msra.mxu0 %v13160_v47  ;;  %3751 = vmatpush1.bf16.msra.mxu1 %v13162_v63 }
 0x460   :  { %3711 = vmatprep.subr.bf16.mxu0 %v13168_v52  ;;  %3752 = vmatprep.subr.bf16.mxu1 %v13170_v24 }
 0x463   :  { %3712 = vmatpush1.bf16.msra.mxu0 %v13172_v32  ;;  %3753 = vmatpush1.bf16.msra.mxu1 %v13174_v43 }
 0x464   :  { %3713 = vmatprep.subr.bf16.mxu0 %v13180_v60  ;;  %3754 = vmatprep.subr.bf16.mxu1 %v13182_v5 }
 0x467   :  { %3714 = vmatpush1.bf16.msra.mxu0 %v13184_v61  ;;  %3755 = vmatpush1.bf16.msra.mxu1 %v13186_v1 }
 0x468   :  { %3715 = vmatprep.subr.bf16.mxu0 %v13192_v10  ;;  %3756 = vmatprep.subr.bf16.mxu1 %v13194_v11 }
 0x46b   :  { %3716 = vmatpush1.bf16.msra.mxu0 %v13196_v23  ;;  %3757 = vmatpush1.bf16.msra.mxu1 %v13198_v25 }
 0x46c   :  { %3717 = vmatprep.subr.bf16.mxu0 %v13204_v15  ;;  %3758 = vmatprep.subr.bf16.mxu1 %v13206_v18 }
 0x46f   :  { %3718 = vmatpush1.bf16.msra.mxu0 %v13208_v17  ;;  %3759 = vmatpush1.bf16.msra.mxu1 %v13210_v28 }
 0x470   :  { %3719 = vmatprep.subr.bf16.mxu0 %v13216_v0  ;;  %3760 = vmatprep.subr.bf16.mxu1 %v13218_v46 }
 0x473   :  { %3720 = vmatpush1.bf16.msra.mxu0 %v13220_v50  ;;  %3761 = vmatpush1.bf16.msra.mxu1 %v13222_v6 }
 0x474   :  { %3721 = vmatprep.subr.bf16.mxu0 %v13228_v20  ;;  %3762 = vmatprep.subr.bf16.mxu1 %v13230_v44 }
 0x477   :  { %3722 = vmatpush1.bf16.msra.mxu0 %v13232_v19  ;;  %3763 = vmatpush1.bf16.msra.mxu1 %v13234_v16 }
 0x478   :  { %3723 = vmatprep.subr.bf16.mxu0 %v13240_v22  ;;  %3764 = vmatprep.subr.bf16.mxu1 %v13242_v33 }
 0x47b   :  { %3724 = vmatpush1.bf16.msra.mxu0 %v13244_v41  ;;  %3765 = vmatpush1.bf16.msra.mxu1 %v13246_v3 }
 0x47c   :  { %3993 = vmatprep.subr.bf16.mxu0 %v13252_v14  ;;  %4034 = vmatprep.subr.bf16.mxu1 %v13254_v49 }
 0x510   :  { %v3126_v39 = vpop.f32.mrb[56].mxu0  ;;  %v3167_v35 = vpop.f32.mrb[56].mxu1 }
 0x511   :  { %v3174_v51 = vadd.f32 %v3126_v39, %v14502_v4  ;;  %v3176_v26 = vadd.f32 %v3167_v35, %v14503_v42  ;;  %v3128_v29 = vpop.f32.mrb[57].mxu0  ;;  %v3169_v12 = vpop.f32.mrb[57].mxu1 }
 0x512   :  { %v3175_v38 = vadd.f32 %v3128_v29, %v14504_v13  ;;  %v3177_v40 = vadd.f32 %v3169_v12, %v14505_v45  ;;  %v3130_v37 = vpop.f32.mrb[58].mxu0  ;;  %v3171_v9 = vpop.f32.mrb[58].mxu1 }
 0x513   :  { %v3466_v21 = vmul.f32 0.5, %v3174_v51  ;;  %v3131_v34 = vpop.f32.mrb[59].mxu0  ;;  %v3172_v58 = vpop.f32.mrb[59].mxu1 }
 0x514   :  { %v3470_v8 = vmul.f32 0.5, %v3175_v38  ;;  %v3475_v53 = vmul.f32 0.5, %v3177_v40  ;;  %v14506_v38 = vld [vmem:[#allocation80_spill] sm:$0xff]  ;;  %v14507_v40 = vld [vmem:[#allocation82_spill] sm:$0xff]  ;;  %v14508_v58 = vld [vmem:[#allocation81_spill] sm:$0xff] }
 0x515   :  { %11582 = vtanh.f32 %v3466_v21 }
 0x516   :  { %11584 = vtanh.f32 %v3470_v8 }
 0x517   :  { %11586 = vtanh.f32 %v3176_v26 }
 0x518   :  { %11588 = vtanh.f32 %v3475_v53  ;;  %v14509_v53 = vld [vmem:[#allocation84_spill] sm:$0xff] }
 0x51f   :  { %v11583_v59 = vpop.eup %11582 }
 0x520   :  { %v11585_v7 = vpop.eup %11584  ;;  %v3468_v31 = vmul.f32 0.5, %v11583_v59 }
 0x521   :  { %v3472_v56 = vmul.f32 0.5, %v11585_v7  ;;  %v11587_v39 = vpop.eup %11586 }
 0x522   :  { %v3469_v2 = vadd.f32 0.5, %v3468_v31  ;;  %v11589_v51 = vpop.eup %11588 }
 0x523   :  { %v3473_v35 = vadd.f32 0.5, %v3472_v56  ;;  %v3477_v12 = vmul.f32 0.5, %v11589_v51  ;;  %v13274_v51 = vld [vmem:[#allocation14 + $0x8] ss:$16 sps:$4 sm:$0xff]  }
 0x524   :  { %v3480_v4 = vmul.f32 %v11587_v39, %v3469_v2 }
 0x525   :  { %v3479_v42 = vmul.f32 %v3473_v35, %v13103_v62  ;;  %v3478_v34 = vadd.f32 0.5, %v3477_v12 }
 0x527   :  { %v13263_v29 = vadd.f32 %v3480_v4, %v3479_v42  ;;  %v13272_v42 = vld [vmem:[#allocation14] ss:$16 sps:$4 sm:$0xff]  }
 0x529   :  { %11590 = vtanh.f32 %v13263_v29 }
 0x530   :  { %v3413_v13 = vpop.f32.mrb[60].mxu0  ;;  %v3454_v26 = vpop.f32.mrb[60].mxu1 }
 0x531   :  { %v3461_v45 = vadd.f32 %v3413_v13, %v14506_v38  ;;  %v3463_v37 = vadd.f32 %v3454_v26, %v14507_v40  ;;  %v3415_v9 = vpop.f32.mrb[61].mxu0  ;;  %v3456_v21 = vpop.f32.mrb[61].mxu1  ;;  %v13278_v13 = vld [vmem:[#allocation14 + $0x24] ss:$16 sps:$4 sm:$0xff]   ;;  %v13280_v26 = vld [vmem:[#allocation14 + $0x2c] ss:$16 sps:$4 sm:$0xff]  }
 0x532   :  { %v3462_v8 = vadd.f32 %v3415_v9, %v14508_v58  ;;  %v3464_v59 = vadd.f32 %v3456_v21, %v14509_v53  ;;  %v3417_v62 = vpop.f32.mrb[62].mxu0  ;;  %v3458_v7 = vpop.f32.mrb[62].mxu1  ;;  %v13284_v38 = vld [vmem:[#allocation14 + $0x20] ss:$16 sps:$4 sm:$0xff]   ;;  %v13290_v40 = vld [vmem:[#allocation14 + $0x44] ss:$16 sps:$4 sm:$0xff]  }
 0x533   :  { %v11591_v31 = vpop.eup %11590  ;;  %v3485_v56 = vmul.f32 0.5, %v3461_v45  ;;  %v3418_v2 = vpop.f32.mrb[63].mxu0  ;;  %v13286_v45 = vld [vmem:[#allocation14 + $0x28] ss:$16 sps:$4 sm:$0xff]   ;;  %v13292_v9 = vld [vmem:[#allocation14 + $0x4c] ss:$16 sps:$4 sm:$0xff]  }
 0x534   :  { %v3459_v39 = vpop.f32.mrb[63].mxu1  ;;  %v13270_v35 = vmul.f32 %v11591_v31, %v3478_v34  ;;  %v3489_v4 = vmul.f32 0.5, %v3462_v8  ;;  %v13298_v21 = vld [vmem:[#allocation14 + $0x40] ss:$16 sps:$4 sm:$0xff]   ;;  %v13300_v34 = vld [vmem:[#allocation14 + $0x48] ss:$16 sps:$4 sm:$0xff]  }
 0x535   :  { %11592 = vtanh.f32 %v3485_v56  ;;  %v13304_v58 = vld [vmem:[#allocation14 + $0x64] ss:$16 sps:$4 sm:$0xff]   ;;  %v13306_v8 = vld [vmem:[#allocation14 + $0x6c] ss:$16 sps:$4 sm:$0xff]   ;;  %v13310_v31 = vld [vmem:[#allocation14 + $0x60] ss:$16 sps:$4 sm:$0xff]  }
 0x536   :  { %14510 = vst [vmem:[#allocation83_spill] sm:$0xff] %v13270_v35  ;;  %11594 = vtanh.f32 %v3489_v4  ;;  %v3516_v12 = vpack.c.bf16 %v13270_v35, %v13270_v35  ;;  %v13312_v56 = vld [vmem:[#allocation14 + $0x68] ss:$16 sps:$4 sm:$0xff]   ;;  %v13316_v39 = vld [vmem:[#allocation14 + $0x84] ss:$16 sps:$4 sm:$0xff]  }
 0x537   :  { %11596 = vtanh.f32 %v3463_v37  ;;  %v3494_v37 = vmul.f32 0.5, %v3464_v59  ;;  %v13318_v4 = vld [vmem:[#allocation14 + $0x8c] ss:$16 sps:$4 sm:$0xff]  }
 0x538   :  { %3742 = vmatmul.mubr.bf16.vlgmr.msra.gmra.mrb[64].mxu0 %v3516_v12  ;;  %3783 = vmatmul.mubr.bf16.vlgmr.msra.gmra.mrb[64].mxu1 %v3516_v12  ;;  %v13331_v35 = vld [vmem:[#allocation14 + $0xac] ss:$16 sps:$4 sm:$0xff]  }
 0x539   :  { %3994 = vmatpush1.bf16.msra.mxu0 %v13272_v42  ;;  %4035 = vmatpush1.bf16.msra.mxu1 %v13274_v51  ;;  %11598 = vtanh.f32 %v3494_v37  ;;  %14514 = vst [vmem:[#allocation92_spill] sm:$0xff] %v13331_v35 }
 0x53a   :  { %3995 = vmatprep.subr.bf16.mxu0 %v13278_v13  ;;  %4036 = vmatprep.subr.bf16.mxu1 %v13280_v26 }
 0x53b   :  { %4025 = vmatprep.mubr.bf16.mxu0 %v14469_v30  ;;  %4066 = vmatprep.mubr.bf16.mxu1 %v14469_v30 }
 0x53d   :  { %3996 = vmatpush1.bf16.msra.mxu0 %v13284_v38  ;;  %4037 = vmatpush1.bf16.msra.mxu1 %v13286_v45 }
 0x53e   :  { %3997 = vmatprep.subr.bf16.mxu0 %v13290_v40  ;;  %4038 = vmatprep.subr.bf16.mxu1 %v13292_v9 }
 0x53f   :  { %v11593_v53 = vpop.eup %11592 }
 0x540   :  { %v11595_v62 = vpop.eup %11594  ;;  %v3487_v7 = vmul.f32 0.5, %v11593_v53 }
 0x541   :  { %v3491_v59 = vmul.f32 0.5, %v11595_v62  ;;  %3998 = vmatpush1.bf16.msra.mxu0 %v13298_v21  ;;  %4039 = vmatpush1.bf16.msra.mxu1 %v13300_v34  ;;  %v11597_v12 = vpop.eup %11596 }
 0x542   :  { %v3488_v2 = vadd.f32 0.5, %v3487_v7  ;;  %3999 = vmatprep.subr.bf16.mxu0 %v13304_v58  ;;  %4040 = vmatprep.subr.bf16.mxu1 %v13306_v8  ;;  %v13325_v7 = vld [vmem:[#allocation14 + $0x88] ss:$16 sps:$4 sm:$0xff]  }
 0x543   :  { %v3492_v53 = vadd.f32 0.5, %v3491_v59  ;;  %14512 = vst [vmem:[#allocation85_spill] sm:$0xff] %v13325_v7 }
 0x544   :  { %v3499_v37 = vmul.f32 %v11597_v12, %v3488_v2  ;;  %v13340_v2 = vld [vmem:[#allocation14 + $0xa8] ss:$16 sps:$4 sm:$0xff]   ;;  %v13344_v12 = vld [vmem:[#allocation14 + $0xc4] ss:$16 sps:$4 sm:$0xff]  }
 0x545   :  { %v3498_v62 = vmul.f32 %v3492_v53, %v13133_v48  ;;  %4000 = vmatpush1.bf16.msra.mxu0 %v13310_v31  ;;  %4041 = vmatpush1.bf16.msra.mxu1 %v13312_v56  ;;  %v13338_v48 = vld [vmem:[#allocation14 + $0xa0] ss:$16 sps:$4 sm:$0xff]   ;;  %14516 = vst [vmem:[#allocation94_spill] sm:$0xff] %v13340_v2  ;;  %14517 = vst [vmem:[#allocation95_spill] sm:$0xff] %v13344_v12  ;;  %v13346_v53 = vld [vmem:[#allocation14 + $0xcc] ss:$16 sps:$4 sm:$0xff]  }
 0x546   :  { %4001 = vmatprep.subr.bf16.mxu0 %v13316_v39  ;;  %4042 = vmatprep.subr.bf16.mxu1 %v13318_v4  ;;  %14515 = vst [vmem:[#allocation93_spill] sm:$0xff] %v13338_v48 }
 0x547   :  { %v13333_v59 = vadd.f32 %v3499_v37, %v3498_v62  ;;  %v11599_v37 = vpop.eup %11598  ;;  %v13350_v62 = vld [vmem:[#allocation14 + $0xc0] ss:$16 sps:$4 sm:$0xff]  }
 0x548   :  { %14518 = vst [vmem:[#allocation96_spill] sm:$0xff] %v13350_v62 }
 0x549   :  { %11600 = vtanh.f32 %v13333_v59  ;;  %4002 = vmatpush1.bf16.msra.mxu0 %v13323_v27  ;;  %4043 = vmatpush1.bf16.msra.mxu1 %v13325_v7  ;;  %v3496_v7 = vmul.f32 0.5, %v11599_v37 }
 0x54a   :  { %4003 = vmatprep.subr.bf16.mxu0 %v13329_v36  ;;  %4044 = vmatprep.subr.bf16.mxu1 %v13331_v35  ;;  %v13356_v36 = vld [vmem:[#allocation14 + $0xe4] ss:$16 sps:$4 sm:$0xff]   ;;  %v13358_v35 = vld [vmem:[#allocation14 + $0xec] ss:$16 sps:$4 sm:$0xff]  }
 0x54b   :  { %v3497_v27 = vadd.f32 0.5, %v3496_v7  ;;  %v14525_v7 = vld [vmem:[#allocation78_spill] sm:$0xff] }
 0x54d   :  { %4004 = vmatpush1.bf16.msra.mxu0 %v13338_v48  ;;  %4045 = vmatpush1.bf16.msra.mxu1 %v13340_v2  ;;  %v13362_v48 = vld [vmem:[#allocation14 + $0xe0] ss:$16 sps:$4 sm:$0xff]   ;;  %v13364_v2 = vld [vmem:[#allocation14 + $0xe8] ss:$16 sps:$4 sm:$0xff]  }
 0x54e   :  { %4005 = vmatprep.subr.bf16.mxu0 %v13344_v12  ;;  %4046 = vmatprep.subr.bf16.mxu1 %v13346_v53 }
 0x551   :  { %4006 = vmatpush1.bf16.msra.mxu0 %v13350_v62  ;;  %4047 = vmatpush1.bf16.msra.mxu1 %v13352_v57 }
 0x552   :  { %4007 = vmatprep.subr.bf16.mxu0 %v13356_v36  ;;  %4048 = vmatprep.subr.bf16.mxu1 %v13358_v35 }
 0x553   :  { %v11601_v37 = vpop.eup %11600 }
 0x554   :  { %v13368_v12 = vmul.f32 %v11601_v37, %v3497_v27 }
 0x555   :  { %4008 = vmatpush1.bf16.msra.mxu0 %v13362_v48  ;;  %4049 = vmatpush1.bf16.msra.mxu1 %v13364_v2 }
 0x556   :  { %14519 = vst [vmem:[#allocation97_spill] sm:$0xff] %v13368_v12  ;;  %v3800_v62 = vpack.c.bf16 %v13368_v12, %v13368_v12  ;;  %4321 = vmatprep.subr.bf16.mxu0 %v13156_v54  ;;  %4362 = vmatprep.subr.bf16.mxu1 %v13158_v55  ;;  %v14520_v55 = vld [vmem:[#allocation48_spill] sm:$0xff] }
 0x557   :  { %v13643_v12 = vld [vmem:[#allocation14 + $0xac] ss:$16 sps:$4 sm:$0xff]  }
 0x558   :  { %4026 = vmatmul.mubr.bf16.vlgmr.msra.gmra.mrb[68].mxu0 %v3800_v62  ;;  %4067 = vmatmul.mubr.bf16.vlgmr.msra.gmra.mrb[68].mxu1 %v3800_v62  ;;  %14550 = vst [vmem:[#allocation45_spill] sm:$0xff] %v13643_v12 }
 0x559   :  { %4322 = vmatpush1.bf16.msra.mxu0 %v13160_v47  ;;  %4363 = vmatpush1.bf16.msra.mxu1 %v13162_v63  ;;  %v14521_v63 = vld [vmem:[#allocation50_spill] sm:$0xff] }
 0x55a   :  { %4323 = vmatprep.subr.bf16.mxu0 %v13168_v52  ;;  %4364 = vmatprep.subr.bf16.mxu1 %v13170_v24 }
 0x55b   :  { %4353 = vmatprep.mubr.bf16.mxu0 %v14469_v30  ;;  %4394 = vmatprep.mubr.bf16.mxu1 %v14469_v30 }
 0x55d   :  { %4324 = vmatpush1.bf16.msra.mxu0 %v13172_v32  ;;  %4365 = vmatpush1.bf16.msra.mxu1 %v13174_v43  ;;  %v14522_v43 = vld [vmem:[#allocation49_spill] sm:$0xff] }
 0x55e   :  { %4325 = vmatprep.subr.bf16.mxu0 %v13180_v60  ;;  %4366 = vmatprep.subr.bf16.mxu1 %v13182_v5  ;;  %v14523_v5 = vld [vmem:[#allocation52_spill] sm:$0xff] }
 0x561   :  { %4326 = vmatpush1.bf16.msra.mxu0 %v13184_v61  ;;  %4367 = vmatpush1.bf16.msra.mxu1 %v13186_v1 }
 0x562   :  { %4327 = vmatprep.subr.bf16.mxu0 %v13192_v10  ;;  %4368 = vmatprep.subr.bf16.mxu1 %v13194_v11 }
 0x565   :  { %4328 = vmatpush1.bf16.msra.mxu0 %v13196_v23  ;;  %4369 = vmatpush1.bf16.msra.mxu1 %v13198_v25 }
 0x566   :  { %4329 = vmatprep.subr.bf16.mxu0 %v13204_v15  ;;  %4370 = vmatprep.subr.bf16.mxu1 %v13206_v18 }
 0x569   :  { %4330 = vmatpush1.bf16.msra.mxu0 %v13208_v17  ;;  %4371 = vmatpush1.bf16.msra.mxu1 %v13210_v28 }
 0x56a   :  { %4331 = vmatprep.subr.bf16.mxu0 %v13216_v0  ;;  %4372 = vmatprep.subr.bf16.mxu1 %v13218_v46 }
 0x56d   :  { %4332 = vmatpush1.bf16.msra.mxu0 %v13220_v50  ;;  %4373 = vmatpush1.bf16.msra.mxu1 %v13222_v6 }
 0x56e   :  { %4333 = vmatprep.subr.bf16.mxu0 %v13228_v20  ;;  %4374 = vmatprep.subr.bf16.mxu1 %v13230_v44 }
 0x571   :  { %4334 = vmatpush1.bf16.msra.mxu0 %v13232_v19  ;;  %4375 = vmatpush1.bf16.msra.mxu1 %v13234_v16 }
 0x572   :  { %4335 = vmatprep.subr.bf16.mxu0 %v13240_v22  ;;  %4376 = vmatprep.subr.bf16.mxu1 %v13242_v33 }
 0x575   :  { %4336 = vmatpush1.bf16.msra.mxu0 %v13244_v41  ;;  %4377 = vmatpush1.bf16.msra.mxu1 %v13246_v3 }
 0x576   :  { %4605 = vmatprep.subr.bf16.mxu0 %v13252_v14  ;;  %4646 = vmatprep.subr.bf16.mxu1 %v13254_v49  ;;  %v14524_v14 = vld [vmem:[#allocation75_spill] sm:$0xff] }
 0x60b   :  { %v3743_v27 = vpop.f32.mrb[64].mxu0  ;;  %v3784_v54 = vpop.f32.mrb[64].mxu1 }
 0x60c   :  { %v3791_v47 = vadd.f32 %v3743_v27, %v14520_v55  ;;  %v3793_v52 = vadd.f32 %v3784_v54, %v14521_v63  ;;  %v3745_v24 = vpop.f32.mrb[65].mxu0  ;;  %v3786_v32 = vpop.f32.mrb[65].mxu1  ;;  %v14526_v55 = vld [vmem:[#allocation77_spill] sm:$0xff]  ;;  %v14527_v63 = vld [vmem:[#allocation79_spill] sm:$0xff] }
 0x60d   :  { %v3792_v60 = vadd.f32 %v3745_v24, %v14522_v43  ;;  %v3794_v61 = vadd.f32 %v3786_v32, %v14523_v5  ;;  %v3747_v1 = vpop.f32.mrb[66].mxu0  ;;  %v3788_v10 = vpop.f32.mrb[66].mxu1 }
 0x60e   :  { %v4080_v11 = vmul.f32 0.5, %v3791_v47  ;;  %v3748_v23 = vpop.f32.mrb[67].mxu0  ;;  %v3789_v25 = vpop.f32.mrb[67].mxu1 }
 0x60f   :  { %v4084_v15 = vmul.f32 0.5, %v3792_v60  ;;  %v4089_v18 = vmul.f32 0.5, %v3794_v61 }
 0x610   :  { %11602 = vtanh.f32 %v4080_v11 }
 0x611   :  { %11604 = vtanh.f32 %v4084_v15  ;;  %v14535_v15 = vld [vmem:[#allocation95_spill] sm:$0xff] }
 0x612   :  { %11606 = vtanh.f32 %v3793_v52 }
 0x613   :  { %11608 = vtanh.f32 %v4089_v18 }
 0x61a   :  { %v11603_v17 = vpop.eup %11602 }
 0x61b   :  { %v11605_v28 = vpop.eup %11604  ;;  %v4082_v0 = vmul.f32 0.5, %v11603_v17 }
 0x61c   :  { %v4086_v46 = vmul.f32 0.5, %v11605_v28  ;;  %v11607_v6 = vpop.eup %11606 }
 0x61d   :  { %v4083_v50 = vadd.f32 0.5, %v4082_v0  ;;  %v11609_v22 = vpop.eup %11608 }
 0x61e   :  { %v4087_v20 = vadd.f32 0.5, %v4086_v46  ;;  %v4091_v33 = vmul.f32 0.5, %v11609_v22  ;;  %v13484_v46 = vld [vmem:[#allocation13 + $0x20] ss:$16 sps:$4 sm:$0xff]   ;;  %v13504_v22 = vld [vmem:[#allocation13 + $0x64] ss:$16 sps:$4 sm:$0xff]  }
 0x61f   :  { %v4094_v44 = vmul.f32 %v11607_v6, %v4083_v50  ;;  %v13486_v50 = vld [vmem:[#allocation13 + $0x28] ss:$16 sps:$4 sm:$0xff]   ;;  %v13492_v6 = vld [vmem:[#allocation13 + $0x44] ss:$16 sps:$4 sm:$0xff]  }
 0x620   :  { %v4093_v19 = vmul.f32 %v4087_v20, %v13263_v29  ;;  %v4092_v54 = vadd.f32 0.5, %v4091_v33  ;;  %v13494_v20 = vld [vmem:[#allocation13 + $0x4c] ss:$16 sps:$4 sm:$0xff]  }
 0x621   :  { %v13506_v33 = vld [vmem:[#allocation13 + $0x6c] ss:$16 sps:$4 sm:$0xff]  }
 0x622   :  { %v13415_v16 = vadd.f32 %v4094_v44, %v4093_v19  ;;  %v13496_v44 = vld [vmem:[#allocation13 + $0x40] ss:$16 sps:$4 sm:$0xff]   ;;  %v13498_v19 = vld [vmem:[#allocation13 + $0x48] ss:$16 sps:$4 sm:$0xff]  }
 0x624   :  { %11610 = vtanh.f32 %v13415_v16 }
 0x62b   :  { %v4027_v41 = vpop.f32.mrb[68].mxu0  ;;  %v4068_v3 = vpop.f32.mrb[68].mxu1 }
 0x62c   :  { %v4075_v49 = vadd.f32 %v4027_v41, %v14524_v14  ;;  %v4077_v62 = vadd.f32 %v4068_v3, %v14525_v7  ;;  %v4029_v37 = vpop.f32.mrb[69].mxu0  ;;  %v4070_v27 = vpop.f32.mrb[69].mxu1  ;;  %v13508_v41 = vld [vmem:[#allocation13 + $0x60] ss:$16 sps:$4 sm:$0xff]   ;;  %v13510_v3 = vld [vmem:[#allocation13 + $0x68] ss:$16 sps:$4 sm:$0xff]  }
 0x62d   :  { %v4076_v47 = vadd.f32 %v4029_v37, %v14526_v55  ;;  %v4078_v52 = vadd.f32 %v4070_v27, %v14527_v63  ;;  %v4031_v29 = vpop.f32.mrb[70].mxu0  ;;  %v4072_v24 = vpop.f32.mrb[70].mxu1  ;;  %v13516_v14 = vld [vmem:[#allocation13 + $0x84] ss:$16 sps:$4 sm:$0xff]   ;;  %v13520_v7 = vld [vmem:[#allocation13 + $0x80] ss:$16 sps:$4 sm:$0xff]  }
 0x62e   :  { %v11611_v32 = vpop.eup %11610  ;;  %v4099_v43 = vmul.f32 0.5, %v4075_v49  ;;  %v4032_v60 = vpop.f32.mrb[71].mxu0  ;;  %v13518_v49 = vld [vmem:[#allocation13 + $0x8c] ss:$16 sps:$4 sm:$0xff]   ;;  %v13528_v37 = vld [vmem:[#allocation13 + $0xa4] ss:$16 sps:$4 sm:$0xff]  }
 0x62f   :  { %v4073_v5 = vpop.f32.mrb[71].mxu1  ;;  %v13422_v61 = vmul.f32 %v11611_v32, %v4092_v54  ;;  %v4103_v1 = vmul.f32 0.5, %v4076_v47  ;;  %v4108_v11 = vmul.f32 0.5, %v4078_v52  ;;  %v13530_v27 = vld [vmem:[#allocation13 + $0xac] ss:$16 sps:$4 sm:$0xff]  }
 0x630   :  { %11612 = vtanh.f32 %v4099_v43  ;;  %v13532_v54 = vld [vmem:[#allocation13 + $0xa0] ss:$16 sps:$4 sm:$0xff]   ;;  %v13534_v55 = vld [vmem:[#allocation13 + $0xa8] ss:$16 sps:$4 sm:$0xff]   ;;  %v13540_v47 = vld [vmem:[#allocation13 + $0xc4] ss:$16 sps:$4 sm:$0xff]  }
 0x631   :  { %14528 = vst [vmem:[#allocation98_spill] sm:$0xff] %v13422_v61  ;;  %11614 = vtanh.f32 %v4103_v1  ;;  %v4128_v10 = vpack.c.bf16 %v13422_v61, %v13422_v61  ;;  %v13542_v63 = vld [vmem:[#allocation13 + $0xcc] ss:$16 sps:$4 sm:$0xff]   ;;  %v13544_v52 = vld [vmem:[#allocation13 + $0xc0] ss:$16 sps:$4 sm:$0xff]  }
 0x632   :  { %11616 = vtanh.f32 %v4077_v62  ;;  %v13522_v62 = vld [vmem:[#allocation13 + $0x88] ss:$16 sps:$4 sm:$0xff]   ;;  %v13552_v24 = vld [vmem:[#allocation13 + $0xe4] ss:$16 sps:$4 sm:$0xff]   ;;  %v13554_v32 = vld [vmem:[#allocation13 + $0xec] ss:$16 sps:$4 sm:$0xff]  }
 0x633   :  { %4354 = vmatmul.mubr.bf16.vlgmr.msra.gmra.mrb[72].mxu0 %v4128_v10  ;;  %4395 = vmatmul.mubr.bf16.vlgmr.msra.gmra.mrb[72].mxu1 %v4128_v10  ;;  %11618 = vtanh.f32 %v4108_v11  ;;  %v13546_v29 = vld [vmem:[#allocation13 + $0xc8] ss:$16 sps:$4 sm:$0xff]   ;;  %v13556_v43 = vld [vmem:[#allocation13 + $0xe0] ss:$16 sps:$4 sm:$0xff]   ;;  %v13564_v5 = vld [vmem:[#allocation14 + $0x4] ss:$16 sps:$4 sm:$0xff]  }
 0x634   :  { %4606 = vmatpush1.bf16.msra.mxu0 %v13272_v42  ;;  %4647 = vmatpush1.bf16.msra.mxu1 %v13274_v51  ;;  %v13558_v60 = vld [vmem:[#allocation13 + $0xe8] ss:$16 sps:$4 sm:$0xff]   ;;  %v13566_v1 = vld [vmem:[#allocation14 + $0xc] ss:$16 sps:$4 sm:$0xff]   ;;  %v13641_v61 = vld [vmem:[#allocation14 + $0xa4] ss:$16 sps:$4 sm:$0xff]  }
 0x635   :  { %4607 = vmatprep.subr.bf16.mxu0 %v13278_v13  ;;  %4648 = vmatprep.subr.bf16.mxu1 %v13280_v26  ;;  %14549 = vst [vmem:[#allocation46_spill] sm:$0xff] %v13641_v61 }
 0x636   :  { %4637 = vmatprep.mubr.bf16.mxu0 %v14469_v30  ;;  %4678 = vmatprep.mubr.bf16.mxu1 %v14469_v30 }
 0x638   :  { %4608 = vmatpush1.bf16.msra.mxu0 %v13284_v38  ;;  %4649 = vmatpush1.bf16.msra.mxu1 %v13286_v45 }
 0x639   :  { %4609 = vmatprep.subr.bf16.mxu0 %v13290_v40  ;;  %4650 = vmatprep.subr.bf16.mxu1 %v13292_v9 }
 0x63a   :  { %v11613_v42 = vpop.eup %11612 }
 0x63b   :  { %v11615_v23 = vpop.eup %11614  ;;  %v4101_v51 = vmul.f32 0.5, %v11613_v42  ;;  %v14538_v42 = vld [vmem:[#allocation51_spill] sm:$0xff] }
 0x63c   :  { %v4105_v25 = vmul.f32 0.5, %v11615_v23  ;;  %4610 = vmatpush1.bf16.msra.mxu0 %v13298_v21  ;;  %4651 = vmatpush1.bf16.msra.mxu1 %v13300_v34  ;;  %v11617_v26 = vpop.eup %11616  ;;  %v14529_v21 = vld [vmem:[#allocation86_spill] sm:$0xff]  ;;  %v14530_v34 = vld [vmem:[#allocation85_spill] sm:$0xff] }
 0x63d   :  { %v4102_v13 = vadd.f32 0.5, %v4101_v51  ;;  %4611 = vmatprep.subr.bf16.mxu0 %v13304_v58  ;;  %4652 = vmatprep.subr.bf16.mxu1 %v13306_v8  ;;  %v14531_v58 = vld [vmem:[#allocation87_spill] sm:$0xff]  ;;  %v14532_v8 = vld [vmem:[#allocation92_spill] sm:$0xff]  ;;  %v14539_v51 = vld [vmem:[#allocation54_spill] sm:$0xff] }
 0x63e   :  { %v4106_v38 = vadd.f32 0.5, %v4105_v25 }
 0x63f   :  { %v4113_v45 = vmul.f32 %v11617_v26, %v4102_v13 }
 0x640   :  { %v4112_v40 = vmul.f32 %v4106_v38, %v13333_v59  ;;  %4612 = vmatpush1.bf16.msra.mxu0 %v13310_v31  ;;  %4653 = vmatpush1.bf16.msra.mxu1 %v13312_v56  ;;  %v11619_v59 = vpop.eup %11618  ;;  %v14533_v31 = vld [vmem:[#allocation93_spill] sm:$0xff]  ;;  %v14534_v56 = vld [vmem:[#allocation94_spill] sm:$0xff] }
 0x641   :  { %4613 = vmatprep.subr.bf16.mxu0 %v13316_v39  ;;  %4654 = vmatprep.subr.bf16.mxu1 %v13318_v4  ;;  %v4110_v39 = vmul.f32 0.5, %v11619_v59  ;;  %v14536_v4 = vld [vmem:[#allocation96_spill] sm:$0xff]  ;;  %v14540_v38 = vld [vmem:[#allocation53_spill] sm:$0xff] }
 0x642   :  { %v13445_v9 = vadd.f32 %v4113_v45, %v4112_v40  ;;  %v14541_v40 = vld [vmem:[#allocation55_spill] sm:$0xff] }
 0x643   :  { %v4111_v18 = vadd.f32 0.5, %v4110_v39 }
 0x644   :  { %11620 = vtanh.f32 %v13445_v9  ;;  %4614 = vmatpush1.bf16.msra.mxu0 %v14529_v21  ;;  %4655 = vmatpush1.bf16.msra.mxu1 %v14530_v34 }
 0x645   :  { %4615 = vmatprep.subr.bf16.mxu0 %v14531_v58  ;;  %4656 = vmatprep.subr.bf16.mxu1 %v14532_v8 }
 0x648   :  { %4616 = vmatpush1.bf16.msra.mxu0 %v14533_v31  ;;  %4657 = vmatpush1.bf16.msra.mxu1 %v14534_v56 }
 0x649   :  { %4617 = vmatprep.subr.bf16.mxu0 %v14535_v15  ;;  %4658 = vmatprep.subr.bf16.mxu1 %v13346_v53  ;;  %v13474_v53 = vld [vmem:[#allocation13 + $0x8] ss:$16 sps:$4 sm:$0xff]  }
 0x64c   :  { %4618 = vmatpush1.bf16.msra.mxu0 %v14536_v4  ;;  %4659 = vmatpush1.bf16.msra.mxu1 %v13352_v57  ;;  %v13468_v57 = vld [vmem:[#allocation13 + $0x4] ss:$16 sps:$4 sm:$0xff]  }
 0x64d   :  { %4619 = vmatprep.subr.bf16.mxu0 %v13356_v36  ;;  %4660 = vmatprep.subr.bf16.mxu1 %v13358_v35  ;;  %v13470_v36 = vld [vmem:[#allocation13 + $0xc] ss:$16 sps:$4 sm:$0xff]   ;;  %v13472_v35 = vld [vmem:[#allocation13] ss:$16 sps:$4 sm:$0xff]  }
 0x64e   :  { %v11621_v17 = vpop.eup %11620 }
 0x64f   :  { %v13460_v28 = vmul.f32 %v11621_v17, %v4111_v18 }
 0x650   :  { %4620 = vmatpush1.bf16.msra.mxu0 %v13362_v48  ;;  %4661 = vmatpush1.bf16.msra.mxu1 %v13364_v2  ;;  %v13480_v48 = vld [vmem:[#allocation13 + $0x24] ss:$16 sps:$4 sm:$0xff]   ;;  %v13482_v2 = vld [vmem:[#allocation13 + $0x2c] ss:$16 sps:$4 sm:$0xff]  }
 0x651   :  { %14537 = vst [vmem:[#allocation99_spill] sm:$0xff] %v13460_v28  ;;  %v4412_v0 = vpack.c.bf16 %v13460_v28, %v13460_v28  ;;  %4933 = vmatprep.subr.bf16.mxu0 %v13468_v57  ;;  %4974 = vmatprep.subr.bf16.mxu1 %v13470_v36  ;;  %v13664_v28 = vld [vmem:[#allocation14 + $0xc8] ss:$16 sps:$4 sm:$0xff]  }
 0x653   :  { %4638 = vmatmul.mubr.bf16.vlgmr.msra.gmra.mrb[76].mxu0 %v4412_v0  ;;  %4679 = vmatmul.mubr.bf16.vlgmr.msra.gmra.mrb[76].mxu1 %v4412_v0 }
 0x654   :  { %4965 = vmatprep.mubr.bf16.mxu0 %v14469_v30  ;;  %5006 = vmatprep.mubr.bf16.mxu1 %v14469_v30 }
 0x655   :  { %4934 = vmatpush1.bf16.msra.mxu0 %v13472_v35  ;;  %4975 = vmatpush1.bf16.msra.mxu1 %v13474_v53 }
 0x656   :  { %4935 = vmatprep.subr.bf16.mxu0 %v13480_v48  ;;  %4976 = vmatprep.subr.bf16.mxu1 %v13482_v2 }
 0x659   :  { %4936 = vmatpush1.bf16.msra.mxu0 %v13484_v46  ;;  %4977 = vmatpush1.bf16.msra.mxu1 %v13486_v50 }
 0x65a   :  { %4937 = vmatprep.subr.bf16.mxu0 %v13492_v6  ;;  %4978 = vmatprep.subr.bf16.mxu1 %v13494_v20 }
 0x65d   :  { %4938 = vmatpush1.bf16.msra.mxu0 %v13496_v44  ;;  %4979 = vmatpush1.bf16.msra.mxu1 %v13498_v19 }
 0x65e   :  { %4939 = vmatprep.subr.bf16.mxu0 %v13504_v22  ;;  %4980 = vmatprep.subr.bf16.mxu1 %v13506_v33 }
 0x661   :  { %4940 = vmatpush1.bf16.msra.mxu0 %v13508_v41  ;;  %4981 = vmatpush1.bf16.msra.mxu1 %v13510_v3 }
 0x662   :  { %4941 = vmatprep.subr.bf16.mxu0 %v13516_v14  ;;  %4982 = vmatprep.subr.bf16.mxu1 %v13518_v49 }
 0x665   :  { %4942 = vmatpush1.bf16.msra.mxu0 %v13520_v7  ;;  %4983 = vmatpush1.bf16.msra.mxu1 %v13522_v62 }
 0x666   :  { %4943 = vmatprep.subr.bf16.mxu0 %v13528_v37  ;;  %4984 = vmatprep.subr.bf16.mxu1 %v13530_v27 }
 0x669   :  { %4944 = vmatpush1.bf16.msra.mxu0 %v13532_v54  ;;  %4985 = vmatpush1.bf16.msra.mxu1 %v13534_v55 }
 0x66a   :  { %4945 = vmatprep.subr.bf16.mxu0 %v13540_v47  ;;  %4986 = vmatprep.subr.bf16.mxu1 %v13542_v63 }
 0x66d   :  { %4946 = vmatpush1.bf16.msra.mxu0 %v13544_v52  ;;  %4987 = vmatpush1.bf16.msra.mxu1 %v13546_v29 }
 0x66e   :  { %4947 = vmatprep.subr.bf16.mxu0 %v13552_v24  ;;  %4988 = vmatprep.subr.bf16.mxu1 %v13554_v32 }
 0x671   :  { %4948 = vmatpush1.bf16.msra.mxu0 %v13556_v43  ;;  %4989 = vmatpush1.bf16.msra.mxu1 %v13558_v60 }
 0x672   :  { %5217 = vmatprep.subr.bf16.mxu0 %v13564_v5  ;;  %5258 = vmatprep.subr.bf16.mxu1 %v13566_v1 }
 0x706   :  { %v4355_v10 = vpop.f32.mrb[72].mxu0  ;;  %v4396_v11 = vpop.f32.mrb[72].mxu1 }
 0x707   :  { %v4403_v23 = vadd.f32 %v4355_v10, %v14538_v42  ;;  %v4405_v25 = vadd.f32 %v4396_v11, %v14539_v51  ;;  %v4357_v13 = vpop.f32.mrb[73].mxu0  ;;  %v4398_v26 = vpop.f32.mrb[73].mxu1 }
 0x708   :  { %v4404_v45 = vadd.f32 %v4357_v13, %v14540_v38  ;;  %v4406_v21 = vadd.f32 %v4398_v26, %v14541_v40  ;;  %v4359_v34 = vpop.f32.mrb[74].mxu0  ;;  %v4400_v58 = vpop.f32.mrb[74].mxu1 }
 0x709   :  { %v4692_v8 = vmul.f32 0.5, %v4403_v23  ;;  %v4360_v59 = vpop.f32.mrb[75].mxu0  ;;  %v4401_v31 = vpop.f32.mrb[75].mxu1 }
 0x70a   :  { %v4696_v56 = vmul.f32 0.5, %v4404_v45  ;;  %v4701_v39 = vmul.f32 0.5, %v4406_v21  ;;  %v14542_v45 = vld [vmem:[#allocation72_spill] sm:$0xff]  ;;  %v14543_v21 = vld [vmem:[#allocation74_spill] sm:$0xff]  ;;  %v14544_v31 = vld [vmem:[#allocation73_spill] sm:$0xff] }
 0x70b   :  { %11622 = vtanh.f32 %v4692_v8 }
 0x70c   :  { %11624 = vtanh.f32 %v4696_v56 }
 0x70d   :  { %11626 = vtanh.f32 %v4405_v25 }
 0x70e   :  { %11628 = vtanh.f32 %v4701_v39  ;;  %v14545_v39 = vld [vmem:[#allocation76_spill] sm:$0xff] }
 0x715   :  { %v11623_v15 = vpop.eup %11622 }
 0x716   :  { %v11625_v4 = vpop.eup %11624  ;;  %v4694_v18 = vmul.f32 0.5, %v11623_v15 }
 0x717   :  { %v4698_v17 = vmul.f32 0.5, %v11625_v4  ;;  %v11627_v10 = vpop.eup %11626 }
 0x718   :  { %v4695_v0 = vadd.f32 0.5, %v4694_v18  ;;  %v11629_v23 = vpop.eup %11628 }
 0x719   :  { %v4699_v11 = vadd.f32 0.5, %v4698_v17  ;;  %v4703_v26 = vmul.f32 0.5, %v11629_v23  ;;  %v13586_v23 = vld [vmem:[#allocation14 + $0x8] ss:$16 sps:$4 sm:$0xff]  }
 0x71a   :  { %v4706_v42 = vmul.f32 %v11627_v10, %v4695_v0 }
 0x71b   :  { %v4705_v51 = vmul.f32 %v4699_v11, %v13415_v16  ;;  %v4704_v59 = vadd.f32 0.5, %v4703_v26 }
 0x71d   :  { %v13575_v13 = vadd.f32 %v4706_v42, %v4705_v51  ;;  %v13584_v51 = vld [vmem:[#allocation14] ss:$16 sps:$4 sm:$0xff]  }
 0x71f   :  { %11630 = vtanh.f32 %v13575_v13 }
 0x726   :  { %v4639_v38 = vpop.f32.mrb[76].mxu0  ;;  %v4680_v25 = vpop.f32.mrb[76].mxu1 }
 0x727   :  { %v4687_v40 = vadd.f32 %v4639_v38, %v14542_v45  ;;  %v4689_v34 = vadd.f32 %v4680_v25, %v14543_v21  ;;  %v4641_v58 = vpop.f32.mrb[77].mxu0  ;;  %v4682_v8 = vpop.f32.mrb[77].mxu1  ;;  %v13590_v38 = vld [vmem:[#allocation14 + $0x24] ss:$16 sps:$4 sm:$0xff]   ;;  %v13592_v25 = vld [vmem:[#allocation14 + $0x2c] ss:$16 sps:$4 sm:$0xff]  }
 0x728   :  { %v4688_v56 = vadd.f32 %v4641_v58, %v14544_v31  ;;  %v4690_v15 = vadd.f32 %v4682_v8, %v14545_v39  ;;  %v4643_v16 = vpop.f32.mrb[78].mxu0  ;;  %v4684_v4 = vpop.f32.mrb[78].mxu1  ;;  %v13596_v45 = vld [vmem:[#allocation14 + $0x20] ss:$16 sps:$4 sm:$0xff]   ;;  %v13602_v21 = vld [vmem:[#allocation14 + $0x44] ss:$16 sps:$4 sm:$0xff]  }
 0x729   :  { %v11631_v18 = vpop.eup %11630  ;;  %v4711_v17 = vmul.f32 0.5, %v4687_v40  ;;  %v4644_v0 = vpop.f32.mrb[79].mxu0  ;;  %v13598_v40 = vld [vmem:[#allocation14 + $0x28] ss:$16 sps:$4 sm:$0xff]   ;;  %v13604_v58 = vld [vmem:[#allocation14 + $0x4c] ss:$16 sps:$4 sm:$0xff]  }
 0x72a   :  { %v4685_v10 = vpop.f32.mrb[79].mxu1  ;;  %v13582_v11 = vmul.f32 %v11631_v18, %v4704_v59  ;;  %v4715_v42 = vmul.f32 0.5, %v4688_v56  ;;  %v13610_v8 = vld [vmem:[#allocation14 + $0x40] ss:$16 sps:$4 sm:$0xff]   ;;  %v13612_v59 = vld [vmem:[#allocation14 + $0x48] ss:$16 sps:$4 sm:$0xff]  }
 0x72b   :  { %11632 = vtanh.f32 %v4711_v17  ;;  %v13616_v31 = vld [vmem:[#allocation14 + $0x64] ss:$16 sps:$4 sm:$0xff]   ;;  %v13618_v56 = vld [vmem:[#allocation14 + $0x6c] ss:$16 sps:$4 sm:$0xff]   ;;  %v13622_v18 = vld [vmem:[#allocation14 + $0x60] ss:$16 sps:$4 sm:$0xff]  }
 0x72c   :  { %14546 = vst [vmem:[#allocation100_spill] sm:$0xff] %v13582_v11  ;;  %11634 = vtanh.f32 %v4715_v42  ;;  %v4740_v26 = vpack.c.bf16 %v13582_v11, %v13582_v11  ;;  %v13624_v17 = vld [vmem:[#allocation14 + $0x68] ss:$16 sps:$4 sm:$0xff]   ;;  %v13628_v10 = vld [vmem:[#allocation14 + $0x84] ss:$16 sps:$4 sm:$0xff]  }
 0x72d   :  { %11636 = vtanh.f32 %v4689_v34  ;;  %v4720_v34 = vmul.f32 0.5, %v4690_v15  ;;  %v13630_v42 = vld [vmem:[#allocation14 + $0x8c] ss:$16 sps:$4 sm:$0xff]   ;;  %v13635_v11 = vld [vmem:[#allocation14 + $0x80] ss:$16 sps:$4 sm:$0xff]  }
 0x72e   :  { %4966 = vmatmul.mubr.bf16.vlgmr.msra.gmra.mrb[80].mxu0 %v4740_v26  ;;  %5007 = vmatmul.mubr.bf16.vlgmr.msra.gmra.mrb[80].mxu1 %v4740_v26  ;;  %14547 = vst [vmem:[#allocation101_spill] sm:$0xff] %v13635_v11 }
 0x72f   :  { %5218 = vmatpush1.bf16.msra.mxu0 %v13584_v51  ;;  %5259 = vmatpush1.bf16.msra.mxu1 %v13586_v23  ;;  %11638 = vtanh.f32 %v4720_v34 }
 0x730   :  { %5219 = vmatprep.subr.bf16.mxu0 %v13590_v38  ;;  %5260 = vmatprep.subr.bf16.mxu1 %v13592_v25 }
 0x731   :  { %5249 = vmatprep.mubr.bf16.mxu0 %v14469_v30  ;;  %5290 = vmatprep.mubr.bf16.mxu1 %v14469_v30 }
 0x733   :  { %5220 = vmatpush1.bf16.msra.mxu0 %v13596_v45  ;;  %5261 = vmatpush1.bf16.msra.mxu1 %v13598_v40 }
 0x734   :  { %5221 = vmatprep.subr.bf16.mxu0 %v13602_v21  ;;  %5262 = vmatprep.subr.bf16.mxu1 %v13604_v58 }
 0x735   :  { %v11633_v39 = vpop.eup %11632 }
 0x736   :  { %v11635_v16 = vpop.eup %11634  ;;  %v4713_v4 = vmul.f32 0.5, %v11633_v39 }
 0x737   :  { %v4717_v15 = vmul.f32 0.5, %v11635_v16  ;;  %5222 = vmatpush1.bf16.msra.mxu0 %v13610_v8  ;;  %5263 = vmatpush1.bf16.msra.mxu1 %v13612_v59  ;;  %v11637_v26 = vpop.eup %11636 }
 0x738   :  { %v4714_v0 = vadd.f32 0.5, %v4713_v4  ;;  %5223 = vmatprep.subr.bf16.mxu0 %v13616_v31  ;;  %5264 = vmatprep.subr.bf16.mxu1 %v13618_v56  ;;  %v13637_v4 = vld [vmem:[#allocation14 + $0x88] ss:$16 sps:$4 sm:$0xff]  }
 0x739   :  { %v4718_v39 = vadd.f32 0.5, %v4717_v15  ;;  %14548 = vst [vmem:[#allocation43_spill] sm:$0xff] %v13637_v4 }
 0x73a   :  { %v4725_v34 = vmul.f32 %v11637_v26, %v4714_v0  ;;  %v13652_v0 = vld [vmem:[#allocation14 + $0xa8] ss:$16 sps:$4 sm:$0xff]   ;;  %v13656_v26 = vld [vmem:[#allocation14 + $0xc4] ss:$16 sps:$4 sm:$0xff]  }
 0x73b   :  { %v4724_v16 = vmul.f32 %v4718_v39, %v13445_v9  ;;  %5224 = vmatpush1.bf16.msra.mxu0 %v13622_v18  ;;  %5265 = vmatpush1.bf16.msra.mxu1 %v13624_v17  ;;  %v13650_v9 = vld [vmem:[#allocation14 + $0xa0] ss:$16 sps:$4 sm:$0xff]   ;;  %14552 = vst [vmem:[#allocation80_spill] sm:$0xff] %v13652_v0  ;;  %14553 = vst [vmem:[#allocation82_spill] sm:$0xff] %v13656_v26  ;;  %v13658_v39 = vld [vmem:[#allocation14 + $0xcc] ss:$16 sps:$4 sm:$0xff]  }
 0x73c   :  { %5225 = vmatprep.subr.bf16.mxu0 %v13628_v10  ;;  %5266 = vmatprep.subr.bf16.mxu1 %v13630_v42  ;;  %14551 = vst [vmem:[#allocation47_spill] sm:$0xff] %v13650_v9 }
 0x73d   :  { %v13645_v15 = vadd.f32 %v4725_v34, %v4724_v16  ;;  %v11639_v34 = vpop.eup %11638  ;;  %v13662_v16 = vld [vmem:[#allocation14 + $0xc0] ss:$16 sps:$4 sm:$0xff]  }
 0x73e   :  { %14554 = vst [vmem:[#allocation81_spill] sm:$0xff] %v13662_v16 }
 0x73f   :  { %11640 = vtanh.f32 %v13645_v15  ;;  %5226 = vmatpush1.bf16.msra.mxu0 %v13635_v11  ;;  %5267 = vmatpush1.bf16.msra.mxu1 %v13637_v4  ;;  %v4722_v4 = vmul.f32 0.5, %v11639_v34 }
 0x740   :  { %5227 = vmatprep.subr.bf16.mxu0 %v13641_v61  ;;  %5268 = vmatprep.subr.bf16.mxu1 %v13643_v12  ;;  %v13668_v61 = vld [vmem:[#allocation14 + $0xe4] ss:$16 sps:$4 sm:$0xff]   ;;  %v13670_v12 = vld [vmem:[#allocation14 + $0xec] ss:$16 sps:$4 sm:$0xff]  }
 0x741   :  { %v4723_v11 = vadd.f32 0.5, %v4722_v4  ;;  %v14560_v4 = vld [vmem:[#allocation70_spill] sm:$0xff] }
 0x743   :  { %5228 = vmatpush1.bf16.msra.mxu0 %v13650_v9  ;;  %5269 = vmatpush1.bf16.msra.mxu1 %v13652_v0  ;;  %v13674_v9 = vld [vmem:[#allocation14 + $0xe0] ss:$16 sps:$4 sm:$0xff]   ;;  %v13676_v0 = vld [vmem:[#allocation14 + $0xe8] ss:$16 sps:$4 sm:$0xff]  }
 0x744   :  { %5229 = vmatprep.subr.bf16.mxu0 %v13656_v26  ;;  %5270 = vmatprep.subr.bf16.mxu1 %v13658_v39 }
 0x747   :  { %5230 = vmatpush1.bf16.msra.mxu0 %v13662_v16  ;;  %5271 = vmatpush1.bf16.msra.mxu1 %v13664_v28 }
 0x748   :  { %5231 = vmatprep.subr.bf16.mxu0 %v13668_v61  ;;  %5272 = vmatprep.subr.bf16.mxu1 %v13670_v12 }
 0x749   :  { %v11641_v34 = vpop.eup %11640 }
 0x74a   :  { %v13680_v26 = vmul.f32 %v11641_v34, %v4723_v11 }
 0x74b   :  { %5232 = vmatpush1.bf16.msra.mxu0 %v13674_v9  ;;  %5273 = vmatpush1.bf16.msra.mxu1 %v13676_v0 }
 0x74c   :  { %v5024_v16 = vpack.c.bf16 %v13680_v26, %v13680_v26  ;;  %5545 = vmatprep.subr.bf16.mxu0 %v13468_v57  ;;  %5586 = vmatprep.subr.bf16.mxu1 %v13470_v36 }
 0x74e   :  { %5250 = vmatmul.mubr.bf16.vlgmr.msra.gmra.mrb[84].mxu0 %v5024_v16  ;;  %5291 = vmatmul.mubr.bf16.vlgmr.msra.gmra.mrb[84].mxu1 %v5024_v16 }
 0x74f   :  { %5546 = vmatpush1.bf16.msra.mxu0 %v13472_v35  ;;  %5587 = vmatpush1.bf16.msra.mxu1 %v13474_v53  ;;  %v14555_v35 = vld [vmem:[#allocation56_spill] sm:$0xff] }
 0x750   :  { %5547 = vmatprep.subr.bf16.mxu0 %v13480_v48  ;;  %5588 = vmatprep.subr.bf16.mxu1 %v13482_v2  ;;  %v14556_v48 = vld [vmem:[#allocation58_spill] sm:$0xff] }
 0x751   :  { %5577 = vmatprep.mubr.bf16.mxu0 %v14469_v30  ;;  %5618 = vmatprep.mubr.bf16.mxu1 %v14469_v30 }
 0x753   :  { %5548 = vmatpush1.bf16.msra.mxu0 %v13484_v46  ;;  %5589 = vmatpush1.bf16.msra.mxu1 %v13486_v50 }
 0x754   :  { %5549 = vmatprep.subr.bf16.mxu0 %v13492_v6  ;;  %5590 = vmatprep.subr.bf16.mxu1 %v13494_v20  ;;  %v14557_v6 = vld [vmem:[#allocation57_spill] sm:$0xff] }
 0x757   :  { %5550 = vmatpush1.bf16.msra.mxu0 %v13496_v44  ;;  %5591 = vmatpush1.bf16.msra.mxu1 %v13498_v19  ;;  %v14558_v44 = vld [vmem:[#allocation60_spill] sm:$0xff] }
 0x758   :  { %5551 = vmatprep.subr.bf16.mxu0 %v13504_v22  ;;  %5592 = vmatprep.subr.bf16.mxu1 %v13506_v33 }
 0x75b   :  { %5552 = vmatpush1.bf16.msra.mxu0 %v13508_v41  ;;  %5593 = vmatpush1.bf16.msra.mxu1 %v13510_v3 }
 0x75c   :  { %5553 = vmatprep.subr.bf16.mxu0 %v13516_v14  ;;  %5594 = vmatprep.subr.bf16.mxu1 %v13518_v49 }
 0x75f   :  { %5554 = vmatpush1.bf16.msra.mxu0 %v13520_v7  ;;  %5595 = vmatpush1.bf16.msra.mxu1 %v13522_v62 }
 0x760   :  { %5555 = vmatprep.subr.bf16.mxu0 %v13528_v37  ;;  %5596 = vmatprep.subr.bf16.mxu1 %v13530_v27 }
 0x763   :  { %5556 = vmatpush1.bf16.msra.mxu0 %v13532_v54  ;;  %5597 = vmatpush1.bf16.msra.mxu1 %v13534_v55 }
 0x764   :  { %5557 = vmatprep.subr.bf16.mxu0 %v13540_v47  ;;  %5598 = vmatprep.subr.bf16.mxu1 %v13542_v63 }
 0x767   :  { %5558 = vmatpush1.bf16.msra.mxu0 %v13544_v52  ;;  %5599 = vmatpush1.bf16.msra.mxu1 %v13546_v29 }
 0x768   :  { %5559 = vmatprep.subr.bf16.mxu0 %v13552_v24  ;;  %5600 = vmatprep.subr.bf16.mxu1 %v13554_v32 }
 0x76b   :  { %5560 = vmatpush1.bf16.msra.mxu0 %v13556_v43  ;;  %5601 = vmatpush1.bf16.msra.mxu1 %v13558_v60 }
 0x76c   :  { %5829 = vmatprep.subr.bf16.mxu0 %v13564_v5  ;;  %5870 = vmatprep.subr.bf16.mxu1 %v13566_v1  ;;  %v14559_v1 = vld [vmem:[#allocation67_spill] sm:$0xff] }
 0x801   :  { %v4967_v57 = vpop.f32.mrb[80].mxu0  ;;  %v5008_v36 = vpop.f32.mrb[80].mxu1 }
 0x802   :  { %v5015_v53 = vadd.f32 %v4967_v57, %v14555_v35  ;;  %v5017_v2 = vadd.f32 %v5008_v36, %v14556_v48  ;;  %v4969_v46 = vpop.f32.mrb[81].mxu0  ;;  %v5010_v50 = vpop.f32.mrb[81].mxu1  ;;  %v14561_v35 = vld [vmem:[#allocation69_spill] sm:$0xff]  ;;  %v14562_v48 = vld [vmem:[#allocation71_spill] sm:$0xff] }
 0x803   :  { %v5016_v20 = vadd.f32 %v4969_v46, %v14557_v6  ;;  %v5018_v19 = vadd.f32 %v5010_v50, %v14558_v44  ;;  %v4971_v22 = vpop.f32.mrb[82].mxu0  ;;  %v5012_v33 = vpop.f32.mrb[82].mxu1 }
 0x804   :  { %v5304_v41 = vmul.f32 0.5, %v5015_v53  ;;  %v4972_v3 = vpop.f32.mrb[83].mxu0  ;;  %v5013_v14 = vpop.f32.mrb[83].mxu1 }
 0x805   :  { %v5308_v49 = vmul.f32 0.5, %v5016_v20  ;;  %v5313_v7 = vmul.f32 0.5, %v5018_v19 }
 0x806   :  { %11642 = vtanh.f32 %v5304_v41 }
 0x807   :  { %11644 = vtanh.f32 %v5308_v49  ;;  %v14569_v49 = vld [vmem:[#allocation82_spill] sm:$0xff] }
 0x808   :  { %11646 = vtanh.f32 %v5017_v2 }
 0x809   :  { %11648 = vtanh.f32 %v5313_v7 }
 0x810   :  { %v11643_v62 = vpop.eup %11642 }
 0x811   :  { %v11645_v37 = vpop.eup %11644  ;;  %v5306_v27 = vmul.f32 0.5, %v11643_v62 }
 0x812   :  { %v5310_v54 = vmul.f32 0.5, %v11645_v37  ;;  %v11647_v47 = vpop.eup %11646 }
 0x813   :  { %v5307_v55 = vadd.f32 0.5, %v5306_v27  ;;  %v11649_v32 = vpop.eup %11648 }
 0x814   :  { %v5311_v63 = vadd.f32 0.5, %v5310_v54  ;;  %v5315_v43 = vmul.f32 0.5, %v11649_v32  ;;  %v11223_v54 = vld [vmem:[#allocation17 + $0xc] ss:$16 sps:$4 sm:$0xff]   ;;  %v11238_v32 = vld [vmem:[#allocation17 + $0x64] ss:$16 sps:$4 sm:$0xff]  }
 0x815   :  { %v5318_v52 = vmul.f32 %v11647_v47, %v5307_v55  ;;  %v11221_v55 = vld [vmem:[#allocation17 + $0x8] ss:$16 sps:$4 sm:$0xff]   ;;  %v11224_v47 = vld [vmem:[#allocation17 + $0x20] ss:$16 sps:$4 sm:$0xff]  }
 0x816   :  { %v5317_v29 = vmul.f32 %v5311_v63, %v13575_v13  ;;  %v5316_v36 = vadd.f32 0.5, %v5315_v43  ;;  %v11227_v63 = vld [vmem:[#allocation17 + $0x28] ss:$16 sps:$4 sm:$0xff]   ;;  %v11241_v43 = vld [vmem:[#allocation17 + $0x6c] ss:$16 sps:$4 sm:$0xff]  }
 0x818   :  { %v13727_v24 = vadd.f32 %v5318_v52, %v5317_v29  ;;  %v11230_v52 = vld [vmem:[#allocation17 + $0x40] ss:$16 sps:$4 sm:$0xff]   ;;  %v11233_v29 = vld [vmem:[#allocation17 + $0x48] ss:$16 sps:$4 sm:$0xff]  }
 0x81a   :  { %11650 = vtanh.f32 %v13727_v24 }
 0x821   :  { %v5251_v60 = vpop.f32.mrb[84].mxu0  ;;  %v5292_v5 = vpop.f32.mrb[84].mxu1 }
 0x822   :  { %v5299_v11 = vadd.f32 %v5251_v60, %v14559_v1  ;;  %v5301_v16 = vadd.f32 %v5292_v5, %v14560_v4  ;;  %v5253_v34 = vpop.f32.mrb[85].mxu0  ;;  %v5294_v57 = vpop.f32.mrb[85].mxu1  ;;  %v11236_v60 = vld [vmem:[#allocation17 + $0x60] ss:$16 sps:$4 sm:$0xff]   ;;  %v11239_v5 = vld [vmem:[#allocation17 + $0x68] ss:$16 sps:$4 sm:$0xff]  }
 0x823   :  { %v5300_v53 = vadd.f32 %v5253_v34, %v14561_v35  ;;  %v5302_v2 = vadd.f32 %v5294_v57, %v14562_v48  ;;  %v5255_v13 = vpop.f32.mrb[86].mxu0  ;;  %v5296_v46 = vpop.f32.mrb[86].mxu1  ;;  %v11244_v1 = vld [vmem:[#allocation17 + $0x84] ss:$16 sps:$4 sm:$0xff]   ;;  %v11242_v4 = vld [vmem:[#allocation17 + $0x80] ss:$16 sps:$4 sm:$0xff]  }
 0x824   :  { %v11651_v50 = vpop.eup %11650  ;;  %v5323_v6 = vmul.f32 0.5, %v5299_v11  ;;  %v5256_v20 = vpop.f32.mrb[87].mxu0  ;;  %v11247_v11 = vld [vmem:[#allocation17 + $0x8c] ss:$16 sps:$4 sm:$0xff]   ;;  %v11250_v34 = vld [vmem:[#allocation17 + $0xa4] ss:$16 sps:$4 sm:$0xff]  }
 0x825   :  { %v5297_v44 = vpop.f32.mrb[87].mxu1  ;;  %v13734_v19 = vmul.f32 %v11651_v50, %v5316_v36  ;;  %v5327_v22 = vmul.f32 0.5, %v5300_v53  ;;  %v5332_v41 = vmul.f32 0.5, %v5302_v2  ;;  %v11253_v57 = vld [vmem:[#allocation17 + $0xac] ss:$16 sps:$4 sm:$0xff]  }
 0x826   :  { %11652 = vtanh.f32 %v5323_v6  ;;  %v11248_v36 = vld [vmem:[#allocation17 + $0xa0] ss:$16 sps:$4 sm:$0xff]   ;;  %v11251_v35 = vld [vmem:[#allocation17 + $0xa8] ss:$16 sps:$4 sm:$0xff]   ;;  %v11256_v53 = vld [vmem:[#allocation17 + $0xc4] ss:$16 sps:$4 sm:$0xff]  }
 0x827   :  { %11654 = vtanh.f32 %v5327_v22  ;;  %v5352_v33 = vpack.c.bf16 %v13734_v19, %v13734_v19  ;;  %v11259_v48 = vld [vmem:[#allocation17 + $0xcc] ss:$16 sps:$4 sm:$0xff]   ;;  %v11254_v2 = vld [vmem:[#allocation17 + $0xc0] ss:$16 sps:$4 sm:$0xff]   ;;  %v11257_v13 = vld [vmem:[#allocation17 + $0xc8] ss:$16 sps:$4 sm:$0xff]  }
 0x828   :  { %11656 = vtanh.f32 %v5301_v16  ;;  %v11245_v16 = vld [vmem:[#allocation17 + $0x88] ss:$16 sps:$4 sm:$0xff]   ;;  %v11262_v46 = vld [vmem:[#allocation17 + $0xe4] ss:$16 sps:$4 sm:$0xff]   ;;  %v11265_v50 = vld [vmem:[#allocation17 + $0xec] ss:$16 sps:$4 sm:$0xff]  }
 0x829   :  { %5578 = vmatmul.mubr.bf16.vlgmr.msra.gmra.mrb[88].mxu0 %v5352_v33  ;;  %5619 = vmatmul.mubr.bf16.vlgmr.msra.gmra.mrb[88].mxu1 %v5352_v33  ;;  %11658 = vtanh.f32 %v5332_v41  ;;  %v11260_v6 = vld [vmem:[#allocation17 + $0xe0] ss:$16 sps:$4 sm:$0xff]   ;;  %v11263_v20 = vld [vmem:[#allocation17 + $0xe8] ss:$16 sps:$4 sm:$0xff]   ;;  %v11268_v44 = vld [vmem:[#allocation17 + $0x104] ss:$16 sps:$4 sm:$0xff]  }
 0x82a   :  { %5830 = vmatpush1.bf16.msra.mxu0 %v13584_v51  ;;  %5871 = vmatpush1.bf16.msra.mxu1 %v13586_v23  ;;  %v11271_v22 = vld [vmem:[#allocation17 + $0x10c] ss:$16 sps:$4 sm:$0xff]   ;;  %v11266_v33 = vld [vmem:[#allocation17 + $0x100] ss:$16 sps:$4 sm:$0xff]   ;;  %v11269_v41 = vld [vmem:[#allocation17 + $0x108] ss:$16 sps:$4 sm:$0xff]  }
 0x82b   :  { %5831 = vmatprep.subr.bf16.mxu0 %v13590_v38  ;;  %5872 = vmatprep.subr.bf16.mxu1 %v13592_v25 }
 0x82c   :  { %5861 = vmatprep.mubr.bf16.mxu0 %v14469_v30  ;;  %5902 = vmatprep.mubr.bf16.mxu1 %v14469_v30 }
 0x82e   :  { %5832 = vmatpush1.bf16.msra.mxu0 %v13596_v45  ;;  %5873 = vmatpush1.bf16.msra.mxu1 %v13598_v40 }
 0x82f   :  { %5833 = vmatprep.subr.bf16.mxu0 %v13602_v21  ;;  %5874 = vmatprep.subr.bf16.mxu1 %v13604_v58 }
 0x830   :  { %v11653_v51 = vpop.eup %11652 }
 0x831   :  { %v11655_v3 = vpop.eup %11654  ;;  %v5325_v23 = vmul.f32 0.5, %v11653_v51  ;;  %v11274_v51 = vld [vmem:[#allocation17 + $0x124] ss:$16 sps:$4 sm:$0xff]  }
 0x832   :  { %v5329_v14 = vmul.f32 0.5, %v11655_v3  ;;  %5834 = vmatpush1.bf16.msra.mxu0 %v13610_v8  ;;  %5875 = vmatpush1.bf16.msra.mxu1 %v13612_v59  ;;  %v11657_v25 = vpop.eup %11656  ;;  %v14563_v8 = vld [vmem:[#allocation101_spill] sm:$0xff]  ;;  %v14564_v59 = vld [vmem:[#allocation43_spill] sm:$0xff] }
 0x833   :  { %v5326_v38 = vadd.f32 0.5, %v5325_v23  ;;  %5835 = vmatprep.subr.bf16.mxu0 %v13616_v31  ;;  %5876 = vmatprep.subr.bf16.mxu1 %v13618_v56  ;;  %v14565_v31 = vld [vmem:[#allocation46_spill] sm:$0xff]  ;;  %v14566_v56 = vld [vmem:[#allocation45_spill] sm:$0xff] }
 0x834   :  { %v5330_v45 = vadd.f32 0.5, %v5329_v14  ;;  %v11277_v3 = vld [vmem:[#allocation17 + $0x12c] ss:$16 sps:$4 sm:$0xff]   ;;  %v11272_v23 = vld [vmem:[#allocation17 + $0x120] ss:$16 sps:$4 sm:$0xff]  }
 0x835   :  { %v5337_v40 = vmul.f32 %v11657_v25, %v5326_v38  ;;  %v11275_v14 = vld [vmem:[#allocation17 + $0x128] ss:$16 sps:$4 sm:$0xff]   ;;  %v11280_v38 = vld [vmem:[#allocation17 + $0x144] ss:$16 sps:$4 sm:$0xff]   ;;  %v11283_v25 = vld [vmem:[#allocation17 + $0x14c] ss:$16 sps:$4 sm:$0xff]  }
 0x836   :  { %v5336_v21 = vmul.f32 %v5330_v45, %v13645_v15  ;;  %5836 = vmatpush1.bf16.msra.mxu0 %v13622_v18  ;;  %5877 = vmatpush1.bf16.msra.mxu1 %v13624_v17  ;;  %v11659_v15 = vpop.eup %11658  ;;  %v14567_v18 = vld [vmem:[#allocation47_spill] sm:$0xff]  ;;  %v14568_v17 = vld [vmem:[#allocation80_spill] sm:$0xff] }
 0x837   :  { %5837 = vmatprep.subr.bf16.mxu0 %v13628_v10  ;;  %5878 = vmatprep.subr.bf16.mxu1 %v13630_v42  ;;  %v5334_v10 = vmul.f32 0.5, %v11659_v15  ;;  %v14570_v42 = vld [vmem:[#allocation81_spill] sm:$0xff] }
 0x838   :  { %v13757_v58 = vadd.f32 %v5337_v40, %v5336_v21  ;;  %v11278_v45 = vld [vmem:[#allocation17 + $0x140] ss:$16 sps:$4 sm:$0xff]   ;;  %v11281_v40 = vld [vmem:[#allocation17 + $0x148] ss:$16 sps:$4 sm:$0xff]   ;;  %v11286_v21 = vld [vmem:[#allocation17 + $0x164] ss:$16 sps:$4 sm:$0xff]  }
 0x839   :  { %v5335_v7 = vadd.f32 0.5, %v5334_v10  ;;  %v11295_v15 = vld [vmem:[#allocation17 + $0x18c] ss:$16 sps:$4 sm:$0xff]   ;;  %v11298_v10 = vld [vmem:[#allocation17 + $0x1a4] ss:$16 sps:$4 sm:$0xff]  }
 0x83a   :  { %11660 = vtanh.f32 %v13757_v58  ;;  %5838 = vmatpush1.bf16.msra.mxu0 %v14563_v8  ;;  %5879 = vmatpush1.bf16.msra.mxu1 %v14564_v59  ;;  %v11289_v8 = vld [vmem:[#allocation17 + $0x16c] ss:$16 sps:$4 sm:$0xff]   ;;  %v11284_v59 = vld [vmem:[#allocation17 + $0x160] ss:$16 sps:$4 sm:$0xff]  }
 0x83b   :  { %5839 = vmatprep.subr.bf16.mxu0 %v14565_v31  ;;  %5880 = vmatprep.subr.bf16.mxu1 %v14566_v56  ;;  %v11287_v31 = vld [vmem:[#allocation17 + $0x168] ss:$16 sps:$4 sm:$0xff]   ;;  %v11292_v56 = vld [vmem:[#allocation17 + $0x184] ss:$16 sps:$4 sm:$0xff]  }
 0x83e   :  { %5840 = vmatpush1.bf16.msra.mxu0 %v14567_v18  ;;  %5881 = vmatpush1.bf16.msra.mxu1 %v14568_v17  ;;  %v11290_v18 = vld [vmem:[#allocation17 + $0x180] ss:$16 sps:$4 sm:$0xff]   ;;  %v11293_v17 = vld [vmem:[#allocation17 + $0x188] ss:$16 sps:$4 sm:$0xff]  }
 0x83f   :  { %5841 = vmatprep.subr.bf16.mxu0 %v14569_v49  ;;  %5882 = vmatprep.subr.bf16.mxu1 %v13658_v39  ;;  %v11220_v39 = vld [vmem:[#allocation17 + $0x4] ss:$16 sps:$4 sm:$0xff]   ;;  %v11301_v49 = vld [vmem:[#allocation17 + $0x1ac] ss:$16 sps:$4 sm:$0xff]  }
 0x842   :  { %5842 = vmatpush1.bf16.msra.mxu0 %v14570_v42  ;;  %5883 = vmatpush1.bf16.msra.mxu1 %v13664_v28  ;;  %v11218_v28 = vld [vmem:[#allocation17] ss:$16 sps:$4 sm:$0xff]  }
 0x843   :  { %5843 = vmatprep.subr.bf16.mxu0 %v13668_v61  ;;  %5884 = vmatprep.subr.bf16.mxu1 %v13670_v12  ;;  %v11226_v12 = vld [vmem:[#allocation17 + $0x24] ss:$16 sps:$4 sm:$0xff]   ;;  %v11229_v61 = vld [vmem:[#allocation17 + $0x2c] ss:$16 sps:$4 sm:$0xff]   ;;  %v11296_v42 = vld [vmem:[#allocation17 + $0x1a0] ss:$16 sps:$4 sm:$0xff]  }
 0x844   :  { %v11661_v62 = vpop.eup %11660 }
 0x845   :  { %v13772_v37 = vmul.f32 %v11661_v62, %v5335_v7  ;;  %v11299_v7 = vld [vmem:[#allocation17 + $0x1a8] ss:$16 sps:$4 sm:$0xff]   ;;  %v11304_v62 = vld [vmem:[#allocation17 + $0x1c4] ss:$16 sps:$4 sm:$0xff]  }
 0x846   :  { %5844 = vmatpush1.bf16.msra.mxu0 %v13674_v9  ;;  %5885 = vmatpush1.bf16.msra.mxu1 %v13676_v0  ;;  %v11232_v9 = vld [vmem:[#allocation17 + $0x44] ss:$16 sps:$4 sm:$0xff]   ;;  %v11235_v0 = vld [vmem:[#allocation17 + $0x4c] ss:$16 sps:$4 sm:$0xff]  }
 0x847   :  { %v5636_v27 = vpack.c.bf16 %v13772_v37, %v13772_v37  ;;  %6389 = vmatprep.subr.bf16.mxu0 %v11220_v39  ;;  %6462 = vmatprep.subr.bf16.mxu1 %v11223_v54  ;;  %v11302_v39 = vld [vmem:[#allocation17 + $0x1c0] ss:$16 sps:$4 sm:$0xff]   ;;  %v11305_v54 = vld [vmem:[#allocation17 + $0x1c8] ss:$16 sps:$4 sm:$0xff]  }
 0x849   :  { %5862 = vmatmul.mubr.bf16.vlgmr.msra.gmra.mrb[92].mxu0 %v5636_v27  ;;  %5903 = vmatmul.mubr.bf16.vlgmr.msra.gmra.mrb[92].mxu1 %v5636_v27  ;;  %v11307_v27 = vld [vmem:[#allocation17 + $0x1cc] ss:$16 sps:$4 sm:$0xff]  }
 0x84a   :  { %6390 = vmatpush1.bf16.msra.mxu0 %v11218_v28  ;;  %6463 = vmatpush1.bf16.msra.mxu1 %v11221_v55  ;;  %v11310_v28 = vld [vmem:[#allocation17 + $0x1e4] ss:$16 sps:$4 sm:$0xff]   ;;  %v11313_v55 = vld [vmem:[#allocation17 + $0x1ec] ss:$16 sps:$4 sm:$0xff]  }
 0x84b   :  { %6391 = vmatprep.subr.bf16.mxu0 %v11226_v12  ;;  %6464 = vmatprep.subr.bf16.mxu1 %v11229_v61  ;;  %v11308_v12 = vld [vmem:[#allocation17 + $0x1e0] ss:$16 sps:$4 sm:$0xff]   ;;  %v11311_v61 = vld [vmem:[#allocation17 + $0x1e8] ss:$16 sps:$4 sm:$0xff]  }
 0x84e   :  { %6392 = vmatpush1.bf16.msra.mxu0 %v11224_v47  ;;  %6465 = vmatpush1.bf16.msra.mxu1 %v11227_v63  ;;  %v13778_v47 = vld [vmem:[#allocation19 + $0x4] ss:$16 sps:$4 sm:$0xff]   ;;  %v13780_v63 = vld [vmem:[#allocation19 + $0xc] ss:$16 sps:$4 sm:$0xff]  }
 0x84f   :  { %6393 = vmatprep.subr.bf16.mxu0 %v11232_v9  ;;  %6466 = vmatprep.subr.bf16.mxu1 %v11235_v0 }
 0x852   :  { %6394 = vmatpush1.bf16.msra.mxu0 %v11230_v52  ;;  %6467 = vmatpush1.bf16.msra.mxu1 %v11233_v29  ;;  %v14571_v52 = vld [vmem:[#allocation59_spill] sm:$0xff] }
 0x853   :  { %6395 = vmatprep.subr.bf16.mxu0 %v11238_v32  ;;  %6468 = vmatprep.subr.bf16.mxu1 %v11241_v43  ;;  %v14572_v32 = vld [vmem:[#allocation62_spill] sm:$0xff] }
 0x856   :  { %6396 = vmatpush1.bf16.msra.mxu0 %v11236_v60  ;;  %6469 = vmatpush1.bf16.msra.mxu1 %v11239_v5 }
 0x857   :  { %6397 = vmatprep.subr.bf16.mxu0 %v11244_v1  ;;  %6470 = vmatprep.subr.bf16.mxu1 %v11247_v11  ;;  %v14573_v1 = vld [vmem:[#allocation61_spill] sm:$0xff] }
 0x85a   :  { %6398 = vmatpush1.bf16.msra.mxu0 %v11242_v4  ;;  %6471 = vmatpush1.bf16.msra.mxu1 %v11245_v16  ;;  %v14574_v4 = vld [vmem:[#allocation63_spill] sm:$0xff] }
 0x85b   :  { %6399 = vmatprep.subr.bf16.mxu0 %v11250_v34  ;;  %6472 = vmatprep.subr.bf16.mxu1 %v11253_v57 }
 0x85e   :  { %6400 = vmatpush1.bf16.msra.mxu0 %v11248_v36  ;;  %6473 = vmatpush1.bf16.msra.mxu1 %v11251_v35 }
 0x85f   :  { %6401 = vmatprep.subr.bf16.mxu0 %v11256_v53  ;;  %6474 = vmatprep.subr.bf16.mxu1 %v11259_v48 }
 0x862   :  { %6402 = vmatpush1.bf16.msra.mxu0 %v11254_v2  ;;  %6475 = vmatpush1.bf16.msra.mxu1 %v11257_v13 }
 0x863   :  { %6403 = vmatprep.subr.bf16.mxu0 %v11262_v46  ;;  %6476 = vmatprep.subr.bf16.mxu1 %v11265_v50 }
 0x866   :  { %6404 = vmatpush1.bf16.msra.mxu0 %v11260_v6  ;;  %6477 = vmatpush1.bf16.msra.mxu1 %v11263_v20 }
 0x867   :  { %6405 = vmatprep.subr.bf16.mxu0 %v11268_v44  ;;  %6478 = vmatprep.subr.bf16.mxu1 %v11271_v22 }
 0x86a   :  { %6406 = vmatpush1.bf16.msra.mxu0 %v11266_v33  ;;  %6479 = vmatpush1.bf16.msra.mxu1 %v11269_v41 }
 0x86b   :  { %6407 = vmatprep.subr.bf16.mxu0 %v11274_v51  ;;  %6480 = vmatprep.subr.bf16.mxu1 %v11277_v3 }
 0x86e   :  { %6408 = vmatpush1.bf16.msra.mxu0 %v11272_v23  ;;  %6481 = vmatpush1.bf16.msra.mxu1 %v11275_v14 }
 0x86f   :  { %6409 = vmatprep.subr.bf16.mxu0 %v11280_v38  ;;  %6482 = vmatprep.subr.bf16.mxu1 %v11283_v25  ;;  %v14575_v25 = vld [vmem:[#allocation64_spill] sm:$0xff] }
 0x872   :  { %6410 = vmatpush1.bf16.msra.mxu0 %v11278_v45  ;;  %6483 = vmatpush1.bf16.msra.mxu1 %v11281_v40  ;;  %v14576_v40 = vld [vmem:[#allocation66_spill] sm:$0xff] }
 0x873   :  { %6411 = vmatprep.subr.bf16.mxu0 %v11286_v21  ;;  %6484 = vmatprep.subr.bf16.mxu1 %v11289_v8 }
 0x876   :  { %6412 = vmatpush1.bf16.msra.mxu0 %v11284_v59  ;;  %6485 = vmatpush1.bf16.msra.mxu1 %v11287_v31 }
 0x877   :  { %6413 = vmatprep.subr.bf16.mxu0 %v11292_v56  ;;  %6486 = vmatprep.subr.bf16.mxu1 %v11295_v15  ;;  %v14577_v56 = vld [vmem:[#allocation65_spill] sm:$0xff] }
 0x87a   :  { %6414 = vmatpush1.bf16.msra.mxu0 %v11290_v18  ;;  %6487 = vmatpush1.bf16.msra.mxu1 %v11293_v17  ;;  %v14578_v18 = vld [vmem:[#allocation68_spill] sm:$0xff] }
 0x87b   :  { %6415 = vmatprep.subr.bf16.mxu0 %v11298_v10  ;;  %6488 = vmatprep.subr.bf16.mxu1 %v11301_v49 }
 0x87e   :  { %6416 = vmatpush1.bf16.msra.mxu0 %v11296_v42  ;;  %6489 = vmatpush1.bf16.msra.mxu1 %v11299_v7 }
 0x87f   :  { %6417 = vmatprep.subr.bf16.mxu0 %v11304_v62  ;;  %6490 = vmatprep.subr.bf16.mxu1 %v11307_v27 }
 0x882   :  { %6418 = vmatpush1.bf16.msra.mxu0 %v11302_v39  ;;  %6491 = vmatpush1.bf16.msra.mxu1 %v11305_v54 }
 0x883   :  { %6419 = vmatprep.subr.bf16.mxu0 %v11310_v28  ;;  %6492 = vmatprep.subr.bf16.mxu1 %v11313_v55 }
 0x886   :  { %6420 = vmatpush1.bf16.msra.mxu0 %v11308_v12  ;;  %6493 = vmatpush1.bf16.msra.mxu1 %v11311_v61 }
 0x887   :  { %6767 = vmatprep.subr.bf16.mxu0 %v13778_v47  ;;  %6808 = vmatprep.subr.bf16.mxu1 %v13780_v63 }
 0x8fc   :  { %v5579_v9 = vpop.f32.mrb[88].mxu0  ;;  %v5620_v0 = vpop.f32.mrb[88].mxu1 }
 0x8fd   :  { %v5627_v29 = vadd.f32 %v5579_v9, %v14571_v52  ;;  %v5629_v43 = vadd.f32 %v5620_v0, %v14572_v32  ;;  %v5581_v60 = vpop.f32.mrb[89].mxu0  ;;  %v5622_v5 = vpop.f32.mrb[89].mxu1 }
 0x8fe   :  { %v5628_v11 = vadd.f32 %v5581_v60, %v14573_v1  ;;  %v5630_v16 = vadd.f32 %v5622_v5, %v14574_v4  ;;  %v5583_v34 = vpop.f32.mrb[90].mxu0  ;;  %v5624_v57 = vpop.f32.mrb[90].mxu1 }
 0x8ff   :  { %v5916_v36 = vmul.f32 0.5, %v5627_v29  ;;  %v5584_v35 = vpop.f32.mrb[91].mxu0  ;;  %v5625_v53 = vpop.f32.mrb[91].mxu1  ;;  %v13797_v34 = vld [vmem:[#allocation19] ss:$16 sps:$4 sm:$0xff]  }
 0x900   :  { %v5920_v48 = vmul.f32 0.5, %v5628_v11  ;;  %v5925_v2 = vmul.f32 0.5, %v5630_v16  ;;  %v14580_v57 = vld [vmem:[#allocation88_spill] sm:$0xff] }
 0x901   :  { %11662 = vtanh.f32 %v5916_v36  ;;  %v14581_v36 = vld [vmem:[#allocation91_spill] sm:$0xff] }
 0x902   :  { %11664 = vtanh.f32 %v5920_v48  ;;  %v5975_v35 = vpack.c.bf16 %v14581_v36, %v14580_v57  ;;  %v13801_v53 = vld [vmem:[#allocation19 + $0x8] ss:$16 sps:$4 sm:$0xff]  }
 0x903   :  { %11666 = vtanh.f32 %v5629_v43  ;;  %v14595_v57 = vld [vmem:[#allocation40_spill] sm:$0xff] }
 0x904   :  { %11668 = vtanh.f32 %v5925_v2  ;;  %v13805_v2 = vld [vmem:[#allocation19 + $0x24] ss:$16 sps:$4 sm:$0xff]  }
 0x90b   :  { %v11663_v13 = vpop.eup %11662 }
 0x90c   :  { %v11665_v46 = vpop.eup %11664  ;;  %v5918_v50 = vmul.f32 0.5, %v11663_v13  ;;  %v13807_v13 = vld [vmem:[#allocation19 + $0x2c] ss:$16 sps:$4 sm:$0xff]  }
 0x90d   :  { %v5922_v6 = vmul.f32 0.5, %v11665_v46  ;;  %v11667_v44 = vpop.eup %11666  ;;  %v13813_v46 = vld [vmem:[#allocation19 + $0x28] ss:$16 sps:$4 sm:$0xff]  }
 0x90e   :  { %v5919_v20 = vadd.f32 0.5, %v5918_v50  ;;  %v11669_v3 = vpop.eup %11668  ;;  %v13815_v50 = vld [vmem:[#allocation19 + $0x44] ss:$16 sps:$4 sm:$0xff]  }
 0x90f   :  { %v5923_v22 = vadd.f32 0.5, %v5922_v6  ;;  %v5927_v23 = vmul.f32 0.5, %v11669_v3  ;;  %v13822_v6 = vld [vmem:[#allocation19 + $0x40] ss:$16 sps:$4 sm:$0xff]  }
 0x910   :  { %v5930_v33 = vmul.f32 %v11667_v44, %v5919_v20  ;;  %v14583_v20 = vld [vmem:[#allocation42_spill] sm:$0xff]  ;;  %v14584_v44 = vld [vmem:[#allocation83_spill] sm:$0xff] }
 0x911   :  { %v5929_v41 = vmul.f32 %v5923_v22, %v13727_v24  ;;  %v5928_v31 = vadd.f32 0.5, %v5927_v23  ;;  %v5977_v22 = vpack.c.bf16 %v14584_v44, %v14583_v20  ;;  %v13833_v23 = vld [vmem:[#allocation19 + $0x64] ss:$16 sps:$4 sm:$0xff]  }
 0x913   :  { %v5931_v51 = vadd.f32 %v5930_v33, %v5929_v41  ;;  %v13828_v33 = vld [vmem:[#allocation19 + $0x48] ss:$16 sps:$4 sm:$0xff]  }
 0x914   :  { %v14585_v41 = vld [vmem:[#allocation97_spill] sm:$0xff] }
 0x915   :  { %11670 = vtanh.f32 %v5931_v51  ;;  %v14586_v51 = vld [vmem:[#allocation44_spill] sm:$0xff] }
 0x916   :  { %v5980_v3 = vpack.c.bf16 %v14586_v51, %v14585_v41 }
 0x91c   :  { %v5863_v14 = vpop.f32.mrb[92].mxu0  ;;  %v5904_v38 = vpop.f32.mrb[92].mxu1 }
 0x91d   :  { %v5911_v45 = vadd.f32 %v5863_v14, %v14575_v25  ;;  %v5913_v21 = vadd.f32 %v5904_v38, %v14576_v40  ;;  %v5865_v8 = vpop.f32.mrb[93].mxu0  ;;  %v5906_v59 = vpop.f32.mrb[93].mxu1  ;;  %v13835_v14 = vld [vmem:[#allocation19 + $0x6c] ss:$16 sps:$4 sm:$0xff]   ;;  %v13838_v38 = vld [vmem:[#allocation19 + $0x60] ss:$16 sps:$4 sm:$0xff]  }
 0x91e   :  { %v5912_v15 = vadd.f32 %v5865_v8, %v14577_v56  ;;  %v5914_v17 = vadd.f32 %v5906_v59, %v14578_v18  ;;  %v5867_v10 = vpop.f32.mrb[94].mxu0  ;;  %v5908_v49 = vpop.f32.mrb[94].mxu1  ;;  %v13841_v25 = vld [vmem:[#allocation19 + $0x68] ss:$16 sps:$4 sm:$0xff]   ;;  %v13847_v40 = vld [vmem:[#allocation19 + $0x8c] ss:$16 sps:$4 sm:$0xff]  }
 0x91f   :  { %v11671_v24 = vpop.eup %11670  ;;  %v5935_v42 = vmul.f32 0.5, %v5911_v45  ;;  %v5868_v7 = vpop.f32.mrb[95].mxu0  ;;  %v13843_v45 = vld [vmem:[#allocation19 + $0x84] ss:$16 sps:$4 sm:$0xff]   ;;  %v13856_v56 = vld [vmem:[#allocation19 + $0x88] ss:$16 sps:$4 sm:$0xff]  }
 0x920   :  { %v5909_v62 = vpop.f32.mrb[95].mxu1  ;;  %v5939_v27 = vmul.f32 0.5, %v5912_v15  ;;  %v13793_v39 = vmul.f32 %v11671_v24, %v5928_v31  ;;  %v5944_v54 = vmul.f32 0.5, %v5914_v17  ;;  %v14587_v8 = vld [vmem:[#allocation98_spill] sm:$0xff]  ;;  %v14588_v59 = vld [vmem:[#allocation100_spill] sm:$0xff]  ;;  %v14590_v18 = vld [vmem:[#allocation89_spill] sm:$0xff] }
 0x921   :  { %11672 = vtanh.f32 %v5935_v42  ;;  %v5979_v31 = vpack.c.bf16 %v14588_v59, %v14587_v8  ;;  %v14589_v15 = vld [vmem:[#allocation102_spill] sm:$0xff]  ;;  %v13863_v49 = vld [vmem:[#allocation19 + $0xac] ss:$16 sps:$4 sm:$0xff]  }
 0x922   :  { %14579 = vst [vmem:[#allocation84_spill] sm:$0xff] %v13793_v39  ;;  %11674 = vtanh.f32 %v5939_v27  ;;  %v5982_v17 = vpack.c.bf16 %v14590_v18, %v14589_v15  ;;  %v13861_v10 = vld [vmem:[#allocation19 + $0xa4] ss:$16 sps:$4 sm:$0xff]   ;;  %v13866_v24 = vld [vmem:[#allocation19 + $0xa0] ss:$16 sps:$4 sm:$0xff]  }
 0x923   :  { %11676 = vtanh.f32 %v5913_v21  ;;  %v13850_v21 = vld [vmem:[#allocation19 + $0x80] ss:$16 sps:$4 sm:$0xff]   ;;  %v13869_v42 = vld [vmem:[#allocation19 + $0xa8] ss:$16 sps:$4 sm:$0xff]   ;;  %v13871_v7 = vld [vmem:[#allocation19 + $0xc4] ss:$16 sps:$4 sm:$0xff]  }
 0x924   :  { %11678 = vtanh.f32 %v5944_v54  ;;  %v13875_v62 = vld [vmem:[#allocation19 + $0xcc] ss:$16 sps:$4 sm:$0xff]   ;;  %v13878_v27 = vld [vmem:[#allocation19 + $0xc0] ss:$16 sps:$4 sm:$0xff]   ;;  %v5981_v54 = vpack.c.bf16 %v13793_v39, %v13734_v19  ;;  %v13897_v19 = vld [vmem:[#allocation19 + $0xe8] ss:$16 sps:$4 sm:$0xff]  }
 0x92b   :  { %v11673_v28 = vpop.eup %11672 }
 0x92c   :  { %v11675_v55 = vpop.eup %11674  ;;  %v5937_v12 = vmul.f32 0.5, %v11673_v28  ;;  %v13884_v28 = vld [vmem:[#allocation19 + $0xc8] ss:$16 sps:$4 sm:$0xff]  }
 0x92d   :  { %v5941_v61 = vmul.f32 0.5, %v11675_v55  ;;  %v11677_v0 = vpop.eup %11676  ;;  %v13886_v55 = vld [vmem:[#allocation19 + $0xe4] ss:$16 sps:$4 sm:$0xff]  }
 0x92e   :  { %v5938_v9 = vadd.f32 0.5, %v5937_v12  ;;  %v11679_v60 = vpop.eup %11678  ;;  %v13889_v12 = vld [vmem:[#allocation19 + $0xec] ss:$16 sps:$4 sm:$0xff]  }
 0x92f   :  { %v5942_v52 = vadd.f32 0.5, %v5941_v61  ;;  %v5946_v5 = vmul.f32 0.5, %v11679_v60  ;;  %v13892_v61 = vld [vmem:[#allocation19 + $0xe0] ss:$16 sps:$4 sm:$0xff]  }
 0x930   :  { %v5949_v29 = vmul.f32 %v11677_v0, %v5938_v9  ;;  %v14591_v9 = vmov 0.0|0.0   ;;  %v6047_v0 = vld [vmem:[#allocation20] sm:$0xf] }
 0x931   :  { %v5948_v32 = vmul.f32 %v5942_v52, %v13757_v58  ;;  %v5947_v1 = vadd.f32 0.5, %v5946_v5  ;;  %v14582_v58 = vld [vmem:[#allocation99_spill] sm:$0xff]  ;;  %v6064_v36 = vrot.slane %v6047_v0, %v14595_v57 }
 0x932   :  { %v5978_v48 = vpack.c.bf16 %v14582_v58, %v13680_v26  ;;  %v13819_v26 = vld [vmem:[#allocation19 + $0x4c] ss:$16 sps:$4 sm:$0xff]  }
 0x933   :  { %v5950_v43 = vadd.f32 %v5949_v29, %v5948_v32  ;;  %v14592_v32 = vld [vmem:[#allocation38_spill] sm:$0xff]  ;;  %v14593_v60 = vld [vmem:[#allocation39_spill] sm:$0xff] }
 0x934   :  { %v6060_v5 = vrot.slane %v6047_v0, %v14593_v60 }
 0x935   :  { %11680 = vtanh.f32 %v5950_v43  ;;  %v6052_v43 = vrot.slane %v6047_v0, %v14592_v32 }
 0x93f   :  { %v11681_v11 = vpop.eup %11680 }
 0x940   :  { %v5952_v4 = vmul.f32 %v11681_v11, %v5947_v1 }
 0x942   :  { %v5976_v16 = vpack.c.bf16 %v13772_v37, %v5952_v4  ;;  %v13810_v37 = vld [vmem:[#allocation19 + $0x20] ss:$16 sps:$4 sm:$0xff]  }
 0x943   :  { %v14594_v4 = vld [vmem:[#allocation41_spill] sm:$0xff] }
 0x944   :  { %6421 = vmatprep.mubr.bf16.mxu0 %v5976_v16  ;;  %6494 = vmatprep.mubr.bf16.mxu1 %v5976_v16  ;;  %v6056_v16 = vrot.slane %v6047_v0, %v14594_v4 }
 0x945   :  { %6422 = vmatmul.mubr.bf16.vlgmr.msra.gmra.mrb[96].mxu0 %v5975_v35  ;;  %6495 = vmatmul.mubr.bf16.vlgmr.msra.gmra.mrb[96].mxu1 %v5975_v35 }
 0x946   :  { %6768 = vmatpush1.bf16.msra.mxu0 %v13797_v34  ;;  %6431 = vmatprep.mubr.bf16.mxu0 %v5978_v48 }
 0x947   :  { %6504 = vmatprep.mubr.bf16.mxu1 %v5978_v48  ;;  %6809 = vmatpush1.bf16.msra.mxu1 %v13801_v53 }
 0x948   :  { %6769 = vmatprep.subr.bf16.mxu0 %v13805_v2  ;;  %6810 = vmatprep.subr.bf16.mxu1 %v13807_v13 }
 0x94a   :  { %6770 = vmatpush1.bf16.msra.mxu0 %v13810_v37 }
 0x94b   :  { %6811 = vmatpush1.bf16.msra.mxu1 %v13813_v46  ;;  %6771 = vmatprep.subr.bf16.mxu0 %v13815_v50 }
 0x94c   :  { %6812 = vmatprep.subr.bf16.mxu1 %v13819_v26 }
 0x94d   :  { %6432 = vmatmul.mubr.bf16.gmra.mrb[100].mxu0 %v5977_v22  ;;  %6505 = vmatmul.mubr.bf16.gmra.mrb[100].mxu1 %v5977_v22 }
 0x94e   :  { %6772 = vmatpush1.bf16.msra.mxu0 %v13822_v6  ;;  %6441 = vmatprep.mubr.bf16.mxu0 %v5980_v3 }
 0x94f   :  { %6514 = vmatprep.mubr.bf16.mxu1 %v5980_v3  ;;  %6813 = vmatpush1.bf16.msra.mxu1 %v13828_v33 }
 0x950   :  { %6773 = vmatprep.subr.bf16.mxu0 %v13833_v23  ;;  %6814 = vmatprep.subr.bf16.mxu1 %v13835_v14 }
 0x952   :  { %6774 = vmatpush1.bf16.msra.mxu0 %v13838_v38 }
 0x953   :  { %6815 = vmatpush1.bf16.msra.mxu1 %v13841_v25  ;;  %6775 = vmatprep.subr.bf16.mxu0 %v13843_v45 }
 0x954   :  { %6816 = vmatprep.subr.bf16.mxu1 %v13847_v40 }
 0x955   :  { %6442 = vmatmul.mubr.bf16.gmra.mrb[104].mxu0 %v5979_v31  ;;  %6515 = vmatmul.mubr.bf16.gmra.mrb[104].mxu1 %v5979_v31 }
 0x956   :  { %6776 = vmatpush1.bf16.msra.mxu0 %v13850_v21  ;;  %6451 = vmatprep.mubr.bf16.mxu0 %v5982_v17 }
 0x957   :  { %6524 = vmatprep.mubr.bf16.mxu1 %v5982_v17  ;;  %6817 = vmatpush1.bf16.msra.mxu1 %v13856_v56 }
 0x958   :  { %6777 = vmatprep.subr.bf16.mxu0 %v13861_v10  ;;  %6818 = vmatprep.subr.bf16.mxu1 %v13863_v49 }
 0x95a   :  { %6778 = vmatpush1.bf16.msra.mxu0 %v13866_v24 }
 0x95b   :  { %6819 = vmatpush1.bf16.msra.mxu1 %v13869_v42  ;;  %6779 = vmatprep.subr.bf16.mxu0 %v13871_v7 }
 0x95c   :  { %6820 = vmatprep.subr.bf16.mxu1 %v13875_v62 }
 0x95d   :  { %6452 = vmatmul.mubr.bf16.gmra.mrb[108].mxu0 %v5981_v54  ;;  %6525 = vmatmul.mubr.bf16.gmra.mrb[108].mxu1 %v5981_v54 }
 0x95e   :  { %6780 = vmatpush1.bf16.msra.mxu0 %v13878_v27  ;;  %6799 = vmatprep.mubr.bf16.mxu0 %v14469_v30 }
 0x95f   :  { %6821 = vmatpush1.bf16.msra.mxu1 %v13884_v28  ;;  %6781 = vmatprep.subr.bf16.mxu0 %v13886_v55 }
 0x960   :  { %6822 = vmatprep.subr.bf16.mxu1 %v13889_v12  ;;  %6840 = vmatprep.mubr.bf16.mxu1 %v14469_v30 }
 0x962   :  { %6782 = vmatpush1.bf16.msra.mxu0 %v13892_v61 }
 0x963   :  { %6823 = vmatpush1.bf16.msra.mxu1 %v13897_v19  ;;  %7072 = vmatprep.subr.bf16.mxu0 %v13778_v47 }
 0x964   :  { %7113 = vmatprep.subr.bf16.mxu1 %v13780_v63 }
 0x965   :  { %6800 = vmatmul.mubr.bf16.vlgmr.msra.gmra.mrb[112].mxu0 %v14591_v9 }
 0x966   :  { %6841 = vmatmul.mubr.bf16.vlgmr.msra.gmra.mrb[112].mxu1 %v14591_v9  ;;  %7073 = vmatpush1.bf16.msra.mxu0 %v13797_v34 }
 0x967   :  { %7114 = vmatpush1.bf16.msra.mxu1 %v13801_v53  ;;  %7074 = vmatprep.subr.bf16.mxu0 %v13805_v2 }
 0x968   :  { %7115 = vmatprep.subr.bf16.mxu1 %v13807_v13  ;;  %7104 = vmatprep.mubr.bf16.mxu0 %v14469_v30 }
 0x969   :  { %7145 = vmatprep.mubr.bf16.mxu1 %v14469_v30 }
 0x96a   :  { %7075 = vmatpush1.bf16.msra.mxu0 %v13810_v37 }
 0x96b   :  { %7116 = vmatpush1.bf16.msra.mxu1 %v13813_v46  ;;  %7076 = vmatprep.subr.bf16.mxu0 %v13815_v50 }
 0x96c   :  { %7117 = vmatprep.subr.bf16.mxu1 %v13819_v26 }
 0x96e   :  { %7077 = vmatpush1.bf16.msra.mxu0 %v13822_v6 }
 0x96f   :  { %7118 = vmatpush1.bf16.msra.mxu1 %v13828_v33  ;;  %7078 = vmatprep.subr.bf16.mxu0 %v13833_v23 }
 0x970   :  { %7119 = vmatprep.subr.bf16.mxu1 %v13835_v14 }
 0x972   :  { %7079 = vmatpush1.bf16.msra.mxu0 %v13838_v38 }
 0x973   :  { %7120 = vmatpush1.bf16.msra.mxu1 %v13841_v25  ;;  %7080 = vmatprep.subr.bf16.mxu0 %v13843_v45 }
 0x974   :  { %7121 = vmatprep.subr.bf16.mxu1 %v13847_v40 }
 0x976   :  { %7081 = vmatpush1.bf16.msra.mxu0 %v13850_v21 }
 0x977   :  { %7122 = vmatpush1.bf16.msra.mxu1 %v13856_v56  ;;  %7082 = vmatprep.subr.bf16.mxu0 %v13861_v10 }
 0x978   :  { %7123 = vmatprep.subr.bf16.mxu1 %v13863_v49 }
 0x97a   :  { %7083 = vmatpush1.bf16.msra.mxu0 %v13866_v24 }
 0x97b   :  { %7124 = vmatpush1.bf16.msra.mxu1 %v13869_v42  ;;  %7084 = vmatprep.subr.bf16.mxu0 %v13871_v7 }
 0x97c   :  { %7125 = vmatprep.subr.bf16.mxu1 %v13875_v62 }
 0x97e   :  { %7085 = vmatpush1.bf16.msra.mxu0 %v13878_v27 }
 0x97f   :  { %7126 = vmatpush1.bf16.msra.mxu1 %v13884_v28  ;;  %7086 = vmatprep.subr.bf16.mxu0 %v13886_v55 }
 0x980   :  { %7127 = vmatprep.subr.bf16.mxu1 %v13889_v12 }
 0x982   :  { %7087 = vmatpush1.bf16.msra.mxu0 %v13892_v61 }
 0x983   :  { %7128 = vmatpush1.bf16.msra.mxu1 %v13897_v19  ;;  %7377 = vmatprep.subr.bf16.mxu0 %v13778_v47 }
 0x984   :  { %7418 = vmatprep.subr.bf16.mxu1 %v13780_v63 }
 0xa18   :  { %v13941_v52 = vpop.f32.mrb[96].mxu0  ;;  %v13943_v29 = vpop.f32.mrb[96].mxu1 }
 0xa19   :  { %v6425_v1 = vpop.f32.mrb[97].mxu0  ;;  %v13947_v11 = vpop.f32.mrb[97].mxu1 }
 0xa1a   :  { %v6427_v35 = vpop.f32.mrb[98].mxu0  ;;  %v6500_v58 = vpop.f32.mrb[98].mxu1 }
 0xa1b   :  { %v13951_v48 = vadd.f32 %v6427_v35, %v6052_v43  ;;  %v13953_v20 = vadd.f32 %v6500_v58, %v6060_v5  ;;  %v6429_v44 = vpop.f32.mrb[99].mxu0  ;;  %v6502_v22 = vpop.f32.mrb[99].mxu1 }
 0xa1c   :  { %v13955_v41 = vadd.f32 %v6429_v44, %v6056_v16  ;;  %v13957_v51 = vadd.f32 %v6502_v22, %v6064_v36 }
 0xa20   :  { %v6433_v3 = vpop.f32.mrb[100].mxu0  ;;  %v6506_v8 = vpop.f32.mrb[100].mxu1 }
 0xa21   :  { %v13959_v59 = vadd.f32 %v6433_v3, %v6052_v43  ;;  %v13961_v31 = vadd.f32 %v6506_v8, %v6060_v5  ;;  %v6435_v15 = vpop.f32.mrb[101].mxu0  ;;  %v6508_v18 = vpop.f32.mrb[101].mxu1 }
 0xa22   :  { %v13963_v17 = vadd.f32 %v6435_v15, %v6056_v16  ;;  %v13965_v54 = vadd.f32 %v6508_v18, %v6064_v36  ;;  %v6437_v9 = vpop.f32.mrb[102].mxu0  ;;  %v6510_v0 = vpop.f32.mrb[102].mxu1 }
 0xa23   :  { %14596 = vst [vmem:[#allocation48_spill] sm:$0xff] %v13961_v31  ;;  %v13967_v35 = vadd.f32 %v6437_v9, %v6052_v43  ;;  %v13969_v58 = vadd.f32 %v6510_v0, %v6060_v5  ;;  %v6439_v44 = vpop.f32.mrb[103].mxu0  ;;  %v6512_v22 = vpop.f32.mrb[103].mxu1 }
 0xa24   :  { %14597 = vst [vmem:[#allocation50_spill] sm:$0xff] %v13963_v17  ;;  %14598 = vst [vmem:[#allocation49_spill] sm:$0xff] %v13965_v54  ;;  %v13971_v57 = vadd.f32 %v6439_v44, %v6056_v16  ;;  %v13973_v3 = vadd.f32 %v6512_v22, %v6064_v36 }
 0xa25   :  { %14599 = vst [vmem:[#allocation52_spill] sm:$0xff] %v13967_v35  ;;  %14600 = vst [vmem:[#allocation75_spill] sm:$0xff] %v13969_v58 }
 0xa26   :  { %14601 = vst [vmem:[#allocation78_spill] sm:$0xff] %v13971_v57  ;;  %14602 = vst [vmem:[#allocation77_spill] sm:$0xff] %v13973_v3 }
 0xa28   :  { %v6443_v8 = vpop.f32.mrb[104].mxu0  ;;  %v6516_v60 = vpop.f32.mrb[104].mxu1 }
 0xa29   :  { %v13975_v4 = vadd.f32 %v6443_v8, %v6052_v43  ;;  %v13977_v15 = vadd.f32 %v6516_v60, %v6060_v5  ;;  %v6445_v18 = vpop.f32.mrb[105].mxu0  ;;  %v6518_v32 = vpop.f32.mrb[105].mxu1 }
 0xa2a   :  { %v13979_v39 = vadd.f32 %v6445_v18, %v6056_v16  ;;  %v13981_v9 = vadd.f32 %v6518_v32, %v6064_v36  ;;  %v6447_v0 = vpop.f32.mrb[106].mxu0  ;;  %v6520_v58 = vpop.f32.mrb[106].mxu1 }
 0xa2b   :  { %14603 = vst [vmem:[#allocation79_spill] sm:$0xff] %v13975_v4  ;;  %14604 = vst [vmem:[#allocation86_spill] sm:$0xff] %v13977_v15  ;;  %v13983_v35 = vadd.f32 %v6447_v0, %v6052_v43  ;;  %v13985_v44 = vadd.f32 %v6520_v58, %v6060_v5  ;;  %v6449_v22 = vpop.f32.mrb[107].mxu0  ;;  %v6522_v3 = vpop.f32.mrb[107].mxu1 }
 0xa2c   :  { %14605 = vst [vmem:[#allocation85_spill] sm:$0xff] %v13979_v39  ;;  %14606 = vst [vmem:[#allocation87_spill] sm:$0xff] %v13981_v9  ;;  %v13987_v57 = vadd.f32 %v6449_v22, %v6056_v16  ;;  %v13989_v8 = vadd.f32 %v6522_v3, %v6064_v36 }
 0xa2d   :  { %14607 = vst [vmem:[#allocation92_spill] sm:$0xff] %v13983_v35  ;;  %14608 = vst [vmem:[#allocation93_spill] sm:$0xff] %v13985_v44 }
 0xa2e   :  { %14609 = vst [vmem:[#allocation94_spill] sm:$0xff] %v13987_v57  ;;  %14610 = vst [vmem:[#allocation95_spill] sm:$0xff] %v13989_v8 }
 0xa30   :  { %v6453_v60 = vpop.f32.mrb[108].mxu0  ;;  %v6526_v15 = vpop.f32.mrb[108].mxu1 }
 0xa31   :  { %v13991_v4 = vadd.f32 %v6453_v60, %v6052_v43  ;;  %v13993_v18 = vadd.f32 %v6526_v15, %v6060_v5  ;;  %v6455_v32 = vpop.f32.mrb[109].mxu0  ;;  %v6528_v9 = vpop.f32.mrb[109].mxu1  ;;  %v6424_v15 = vadd.f32 %v13941_v52, %v6052_v43 }
 0xa32   :  { %v13995_v39 = vadd.f32 %v6455_v32, %v6056_v16  ;;  %v13997_v0 = vadd.f32 %v6528_v9, %v6064_v36  ;;  %v6457_v58 = vpop.f32.mrb[110].mxu0  ;;  %v6530_v44 = vpop.f32.mrb[110].mxu1  ;;  %v6426_v32 = vadd.f32 %v6425_v1, %v6056_v16  ;;  %v6499_v9 = vadd.f32 %v13947_v11, %v6064_v36 }
 0xa33   :  { %14611 = vst [vmem:[#allocation96_spill] sm:$0xff] %v13991_v4  ;;  %14612 = vst [vmem:[#allocation51_spill] sm:$0xff] %v13993_v18  ;;  %v13999_v35 = vadd.f32 %v6457_v58, %v6052_v43  ;;  %v14001_v22 = vadd.f32 %v6530_v44, %v6060_v5  ;;  %v6459_v3 = vpop.f32.mrb[111].mxu0  ;;  %v6532_v8 = vpop.f32.mrb[111].mxu1  ;;  %v6497_v18 = vadd.f32 %v13943_v29, %v6060_v5 }
 0xa34   :  { %14613 = vst [vmem:[#allocation54_spill] sm:$0xff] %v13995_v39  ;;  %14614 = vst [vmem:[#allocation53_spill] sm:$0xff] %v13997_v0  ;;  %v14003_v57 = vadd.f32 %v6459_v3, %v6056_v16  ;;  %v14005_v60 = vadd.f32 %v6532_v8, %v6064_v36 }
 0xa35   :  { %14615 = vst [vmem:[#allocation55_spill] sm:$0xff] %v13999_v35  ;;  %14616 = vst [vmem:[#allocation72_spill] sm:$0xff] %v14001_v22 }
 0xa36   :  { %14617 = vst [vmem:[#allocation74_spill] sm:$0xff] %v14003_v57  ;;  %14618 = vst [vmem:[#allocation73_spill] sm:$0xff] %v14005_v60 }
 0xa38   :  { %v6801_v39 = vpop.f32.mrb[112].mxu0 }
 0xa39   :  { %v6849_v0 = vadd.f32 %v6801_v39, %v6424_v15  ;;  %v6842_v4 = vpop.f32.mrb[112].mxu1  ;;  %v6803_v58 = vpop.f32.mrb[113].mxu0 }
 0xa3a   :  { %v6851_v35 = vadd.f32 %v6842_v4, %v6497_v18  ;;  %v6850_v44 = vadd.f32 %v6803_v58, %v6426_v32  ;;  %v6844_v22 = vpop.f32.mrb[113].mxu1  ;;  %v6805_v54 = vpop.f32.mrb[114].mxu0 }
 0xa3b   :  { %v6854_v17 = vmul.f32 0.5, %v6849_v0  ;;  %v6852_v3 = vadd.f32 %v6844_v22, %v6499_v9  ;;  %v6806_v57 = vpop.f32.mrb[115].mxu0  ;;  %v6846_v8 = vpop.f32.mrb[114].mxu1 }
 0xa3c   :  { %v6858_v60 = vmul.f32 0.5, %v6850_v44  ;;  %v6847_v31 = vpop.f32.mrb[115].mxu1 }
 0xa3d   :  { %11682 = vtanh.f32 %v6854_v17  ;;  %v6863_v52 = vmul.f32 0.5, %v6852_v3 }
 0xa3e   :  { %11684 = vtanh.f32 %v6858_v60 }
 0xa3f   :  { %11686 = vtanh.f32 %v6851_v35 }
 0xa40   :  { %11688 = vtanh.f32 %v6863_v52 }
 0xa47   :  { %v11683_v29 = vpop.eup %11682 }
 0xa48   :  { %v11685_v43 = vpop.eup %11684  ;;  %v6856_v5 = vmul.f32 0.5, %v11683_v29 }
 0xa49   :  { %v6860_v39 = vmul.f32 0.5, %v11685_v43  ;;  %v11687_v11 = vpop.eup %11686 }
 0xa4a   :  { %v6857_v1 = vadd.f32 0.5, %v6856_v5  ;;  %v11689_v57 = vpop.eup %11688 }
 0xa4b   :  { %v6861_v4 = vadd.f32 0.5, %v6860_v39  ;;  %v6865_v31 = vmul.f32 0.5, %v11689_v57 }
 0xa4c   :  { %v6868_v16 = vmul.f32 %v11687_v11, %v6857_v1 }
 0xa4d   :  { %v6867_v36 = vmul.f32 0.0, %v6861_v4  ;;  %v6866_v17 = vadd.f32 0.5, %v6865_v31 }
 0xa4f   :  { %v14010_v54 = vadd.f32 %v6868_v16, %v6867_v36 }
 0xa51   :  { %11690 = vtanh.f32 %v14010_v54 }
 0xa5b   :  { %v11691_v18 = vpop.eup %11690 }
 0xa5c   :  { %v6871_v35 = vmul.f32 %v11691_v18, %v6866_v17 }
 0xa5e   :  { %v6879_v0 = vpack.c.bf16 %v6871_v35, %v6871_v35 }
 0xa60   :  { %7105 = vmatmul.mubr.bf16.vlgmr.msra.gmra.mrb[116].mxu0 %v6879_v0  ;;  %7146 = vmatmul.mubr.bf16.vlgmr.msra.gmra.mrb[116].mxu1 %v6879_v0 }
 0xa61   :  { %7378 = vmatpush1.bf16.msra.mxu0 %v13797_v34  ;;  %7419 = vmatpush1.bf16.msra.mxu1 %v13801_v53 }
 0xa62   :  { %7379 = vmatprep.subr.bf16.mxu0 %v13805_v2  ;;  %7420 = vmatprep.subr.bf16.mxu1 %v13807_v13 }
 0xa63   :  { %7409 = vmatprep.mubr.bf16.mxu0 %v14469_v30  ;;  %7450 = vmatprep.mubr.bf16.mxu1 %v14469_v30 }
 0xa65   :  { %7380 = vmatpush1.bf16.msra.mxu0 %v13810_v37  ;;  %7421 = vmatpush1.bf16.msra.mxu1 %v13813_v46 }
 0xa66   :  { %7381 = vmatprep.subr.bf16.mxu0 %v13815_v50  ;;  %7422 = vmatprep.subr.bf16.mxu1 %v13819_v26 }
 0xa69   :  { %7382 = vmatpush1.bf16.msra.mxu0 %v13822_v6  ;;  %7423 = vmatpush1.bf16.msra.mxu1 %v13828_v33 }
 0xa6a   :  { %7383 = vmatprep.subr.bf16.mxu0 %v13833_v23  ;;  %7424 = vmatprep.subr.bf16.mxu1 %v13835_v14 }
 0xa6d   :  { %7384 = vmatpush1.bf16.msra.mxu0 %v13838_v38  ;;  %7425 = vmatpush1.bf16.msra.mxu1 %v13841_v25 }
 0xa6e   :  { %7385 = vmatprep.subr.bf16.mxu0 %v13843_v45  ;;  %7426 = vmatprep.subr.bf16.mxu1 %v13847_v40 }
 0xa71   :  { %7386 = vmatpush1.bf16.msra.mxu0 %v13850_v21  ;;  %7427 = vmatpush1.bf16.msra.mxu1 %v13856_v56 }
 0xa72   :  { %7387 = vmatprep.subr.bf16.mxu0 %v13861_v10  ;;  %7428 = vmatprep.subr.bf16.mxu1 %v13863_v49 }
 0xa75   :  { %7388 = vmatpush1.bf16.msra.mxu0 %v13866_v24  ;;  %7429 = vmatpush1.bf16.msra.mxu1 %v13869_v42 }
 0xa76   :  { %7389 = vmatprep.subr.bf16.mxu0 %v13871_v7  ;;  %7430 = vmatprep.subr.bf16.mxu1 %v13875_v62 }
 0xa79   :  { %7390 = vmatpush1.bf16.msra.mxu0 %v13878_v27  ;;  %7431 = vmatpush1.bf16.msra.mxu1 %v13884_v28 }
 0xa7a   :  { %7391 = vmatprep.subr.bf16.mxu0 %v13886_v55  ;;  %7432 = vmatprep.subr.bf16.mxu1 %v13889_v12 }
 0xa7d   :  { %7392 = vmatpush1.bf16.msra.mxu0 %v13892_v61  ;;  %7433 = vmatpush1.bf16.msra.mxu1 %v13897_v19 }
 0xa7e   :  { %7682 = vmatprep.subr.bf16.mxu0 %v13778_v47  ;;  %7723 = vmatprep.subr.bf16.mxu1 %v13780_v63 }
 0xb33   :  { %v7106_v22 = vpop.f32.mrb[116].mxu0  ;;  %v7147_v60 = vpop.f32.mrb[116].mxu1 }
 0xb34   :  { %v7154_v15 = vadd.f32 %v7106_v22, %v13951_v48  ;;  %v7156_v32 = vadd.f32 %v7147_v60, %v13953_v20  ;;  %v7108_v9 = vpop.f32.mrb[117].mxu0  ;;  %v7149_v58 = vpop.f32.mrb[117].mxu1 }
 0xb35   :  { %v7155_v44 = vadd.f32 %v7108_v9, %v13955_v41  ;;  %v7157_v3 = vadd.f32 %v7149_v58, %v13957_v51  ;;  %v7110_v8 = vpop.f32.mrb[118].mxu0  ;;  %v7151_v52 = vpop.f32.mrb[118].mxu1  ;;  %v14101_v9 = vld [vmem:[#allocation19] ss:$16 sps:$4 sm:$0xff]   ;;  %v14103_v58 = vld [vmem:[#allocation19 + $0x8] ss:$16 sps:$4 sm:$0xff]  }
 0xb36   :  { %v7159_v29 = vmul.f32 0.5, %v7154_v15  ;;  %v7111_v43 = vpop.f32.mrb[119].mxu0  ;;  %v7152_v5 = vpop.f32.mrb[119].mxu1  ;;  %v14097_v15 = vld [vmem:[#allocation19 + $0x4] ss:$16 sps:$4 sm:$0xff]  }
 0xb37   :  { %v7163_v47 = vmul.f32 0.5, %v7155_v44  ;;  %v7168_v63 = vmul.f32 0.5, %v7157_v3  ;;  %v14109_v44 = vld [vmem:[#allocation19 + $0x24] ss:$16 sps:$4 sm:$0xff]   ;;  %v14111_v3 = vld [vmem:[#allocation19 + $0x2c] ss:$16 sps:$4 sm:$0xff]  }
 0xb38   :  { %11692 = vtanh.f32 %v7159_v29  ;;  %v14113_v8 = vld [vmem:[#allocation19 + $0x20] ss:$16 sps:$4 sm:$0xff]   ;;  %v14115_v52 = vld [vmem:[#allocation19 + $0x28] ss:$16 sps:$4 sm:$0xff]   ;;  %v14121_v29 = vld [vmem:[#allocation19 + $0x44] ss:$16 sps:$4 sm:$0xff]  }
 0xb39   :  { %11694 = vtanh.f32 %v7163_v47  ;;  %v14123_v43 = vld [vmem:[#allocation19 + $0x4c] ss:$16 sps:$4 sm:$0xff]   ;;  %v14125_v5 = vld [vmem:[#allocation19 + $0x40] ss:$16 sps:$4 sm:$0xff]   ;;  %v14127_v47 = vld [vmem:[#allocation19 + $0x48] ss:$16 sps:$4 sm:$0xff]  }
 0xb3a   :  { %11696 = vtanh.f32 %v7156_v32  ;;  %v14099_v32 = vld [vmem:[#allocation19 + $0xc] ss:$16 sps:$4 sm:$0xff]  }
 0xb3b   :  { %11698 = vtanh.f32 %v7168_v63  ;;  %v14133_v63 = vld [vmem:[#allocation19 + $0x64] ss:$16 sps:$4 sm:$0xff]  }
 0xb42   :  { %v11693_v39 = vpop.eup %11692 }
 0xb43   :  { %v11695_v48 = vpop.eup %11694  ;;  %v7161_v1 = vmul.f32 0.5, %v11693_v39  ;;  %v14135_v39 = vld [vmem:[#allocation19 + $0x6c] ss:$16 sps:$4 sm:$0xff]  }
 0xb44   :  { %v7165_v20 = vmul.f32 0.5, %v11695_v48  ;;  %v11697_v4 = vpop.eup %11696  ;;  %v14137_v48 = vld [vmem:[#allocation19 + $0x60] ss:$16 sps:$4 sm:$0xff]  }
 0xb45   :  { %v7162_v11 = vadd.f32 0.5, %v7161_v1  ;;  %v11699_v57 = vpop.eup %11698  ;;  %v14139_v1 = vld [vmem:[#allocation19 + $0x68] ss:$16 sps:$4 sm:$0xff]  }
 0xb46   :  { %v7166_v41 = vadd.f32 0.5, %v7165_v20  ;;  %v7170_v31 = vmul.f32 0.5, %v11699_v57  ;;  %v14145_v20 = vld [vmem:[#allocation19 + $0x84] ss:$16 sps:$4 sm:$0xff]   ;;  %v14163_v57 = vld [vmem:[#allocation19 + $0xa8] ss:$16 sps:$4 sm:$0xff]  }
 0xb47   :  { %v7173_v16 = vmul.f32 %v11697_v4, %v7162_v11  ;;  %v14147_v11 = vld [vmem:[#allocation19 + $0x8c] ss:$16 sps:$4 sm:$0xff]   ;;  %v14149_v4 = vld [vmem:[#allocation19 + $0x80] ss:$16 sps:$4 sm:$0xff]  }
 0xb48   :  { %v7172_v51 = vmul.f32 %v7166_v41, %v14010_v54  ;;  %v7171_v17 = vadd.f32 0.5, %v7170_v31  ;;  %v14151_v41 = vld [vmem:[#allocation19 + $0x88] ss:$16 sps:$4 sm:$0xff]   ;;  %v14169_v31 = vld [vmem:[#allocation19 + $0xc4] ss:$16 sps:$4 sm:$0xff]  }
 0xb4a   :  { %v14052_v36 = vadd.f32 %v7173_v16, %v7172_v51  ;;  %v14157_v16 = vld [vmem:[#allocation19 + $0xa4] ss:$16 sps:$4 sm:$0xff]   ;;  %v14159_v51 = vld [vmem:[#allocation19 + $0xac] ss:$16 sps:$4 sm:$0xff]  }
 0xb4c   :  { %11700 = vtanh.f32 %v14052_v36 }
 0xb56   :  { %v11701_v18 = vpop.eup %11700 }
 0xb57   :  { %v7176_v35 = vmul.f32 %v11701_v18, %v7171_v17  ;;  %v14171_v17 = vld [vmem:[#allocation19 + $0xcc] ss:$16 sps:$4 sm:$0xff]   ;;  %v14173_v18 = vld [vmem:[#allocation19 + $0xc0] ss:$16 sps:$4 sm:$0xff]  }
 0xb59   :  { %v7184_v0 = vpack.c.bf16 %v7176_v35, %v7176_v35  ;;  %v14175_v35 = vld [vmem:[#allocation19 + $0xc8] ss:$16 sps:$4 sm:$0xff]  }
 0xb5b   :  { %7410 = vmatmul.mubr.bf16.vlgmr.msra.gmra.mrb[120].mxu0 %v7184_v0  ;;  %7451 = vmatmul.mubr.bf16.vlgmr.msra.gmra.mrb[120].mxu1 %v7184_v0  ;;  %v14181_v0 = vld [vmem:[#allocation19 + $0xe4] ss:$16 sps:$4 sm:$0xff]  }
 0xb5c   :  { %7683 = vmatpush1.bf16.msra.mxu0 %v13797_v34  ;;  %7724 = vmatpush1.bf16.msra.mxu1 %v13801_v53 }
 0xb5d   :  { %7684 = vmatprep.subr.bf16.mxu0 %v13805_v2  ;;  %7725 = vmatprep.subr.bf16.mxu1 %v13807_v13  ;;  %v14619_v13 = vld [vmem:[#allocation48_spill] sm:$0xff] }
 0xb5e   :  { %7714 = vmatprep.mubr.bf16.mxu0 %v14469_v30  ;;  %7755 = vmatprep.mubr.bf16.mxu1 %v14469_v30 }
 0xb60   :  { %7685 = vmatpush1.bf16.msra.mxu0 %v13810_v37  ;;  %7726 = vmatpush1.bf16.msra.mxu1 %v13813_v46 }
 0xb61   :  { %7686 = vmatprep.subr.bf16.mxu0 %v13815_v50  ;;  %7727 = vmatprep.subr.bf16.mxu1 %v13819_v26  ;;  %v14620_v26 = vld [vmem:[#allocation50_spill] sm:$0xff] }
 0xb64   :  { %7687 = vmatpush1.bf16.msra.mxu0 %v13822_v6  ;;  %7728 = vmatpush1.bf16.msra.mxu1 %v13828_v33  ;;  %v14621_v33 = vld [vmem:[#allocation49_spill] sm:$0xff] }
 0xb65   :  { %7688 = vmatprep.subr.bf16.mxu0 %v13833_v23  ;;  %7729 = vmatprep.subr.bf16.mxu1 %v13835_v14 }
 0xb68   :  { %7689 = vmatpush1.bf16.msra.mxu0 %v13838_v38  ;;  %7730 = vmatpush1.bf16.msra.mxu1 %v13841_v25 }
 0xb69   :  { %7690 = vmatprep.subr.bf16.mxu0 %v13843_v45  ;;  %7731 = vmatprep.subr.bf16.mxu1 %v13847_v40 }
 0xb6c   :  { %7691 = vmatpush1.bf16.msra.mxu0 %v13850_v21  ;;  %7732 = vmatpush1.bf16.msra.mxu1 %v13856_v56 }
 0xb6d   :  { %7692 = vmatprep.subr.bf16.mxu0 %v13861_v10  ;;  %7733 = vmatprep.subr.bf16.mxu1 %v13863_v49 }
 0xb70   :  { %7693 = vmatpush1.bf16.msra.mxu0 %v13866_v24  ;;  %7734 = vmatpush1.bf16.msra.mxu1 %v13869_v42 }
 0xb71   :  { %7694 = vmatprep.subr.bf16.mxu0 %v13871_v7  ;;  %7735 = vmatprep.subr.bf16.mxu1 %v13875_v62 }
 0xb74   :  { %7695 = vmatpush1.bf16.msra.mxu0 %v13878_v27  ;;  %7736 = vmatpush1.bf16.msra.mxu1 %v13884_v28 }
 0xb75   :  { %7696 = vmatprep.subr.bf16.mxu0 %v13886_v55  ;;  %7737 = vmatprep.subr.bf16.mxu1 %v13889_v12 }
 0xb78   :  { %7697 = vmatpush1.bf16.msra.mxu0 %v13892_v61  ;;  %7738 = vmatpush1.bf16.msra.mxu1 %v13897_v19 }
 0xb79   :  { %7987 = vmatprep.subr.bf16.mxu0 %v14097_v15  ;;  %8028 = vmatprep.subr.bf16.mxu1 %v14099_v32 }
 0xc2e   :  { %v7411_v34 = vpop.f32.mrb[120].mxu0  ;;  %v7452_v53 = vpop.f32.mrb[120].mxu1 }
 0xc2f   :  { %v7459_v2 = vadd.f32 %v7411_v34, %v13959_v59  ;;  %v7461_v37 = vadd.f32 %v7452_v53, %v14619_v13  ;;  %v7413_v46 = vpop.f32.mrb[121].mxu0  ;;  %v7454_v50 = vpop.f32.mrb[121].mxu1  ;;  %v14183_v34 = vld [vmem:[#allocation19 + $0xec] ss:$16 sps:$4 sm:$0xff]   ;;  %v14185_v53 = vld [vmem:[#allocation19 + $0xe0] ss:$16 sps:$4 sm:$0xff]  }
 0xc30   :  { %v7460_v6 = vadd.f32 %v7413_v46, %v14620_v26  ;;  %v7462_v23 = vadd.f32 %v7454_v50, %v14621_v33  ;;  %v7415_v14 = vpop.f32.mrb[122].mxu0  ;;  %v7456_v38 = vpop.f32.mrb[122].mxu1  ;;  %v14622_v46 = vld [vmem:[#allocation52_spill] sm:$0xff]  ;;  %v14623_v26 = vld [vmem:[#allocation75_spill] sm:$0xff] }
 0xc31   :  { %v7464_v25 = vmul.f32 0.5, %v7459_v2  ;;  %v7416_v45 = vpop.f32.mrb[123].mxu0  ;;  %v7457_v40 = vpop.f32.mrb[123].mxu1  ;;  %v14187_v2 = vld [vmem:[#allocation19 + $0xe8] ss:$16 sps:$4 sm:$0xff]  }
 0xc32   :  { %v7468_v21 = vmul.f32 0.5, %v7460_v6  ;;  %v7473_v56 = vmul.f32 0.5, %v7462_v23  ;;  %v14624_v14 = vld [vmem:[#allocation78_spill] sm:$0xff] }
 0xc33   :  { %11702 = vtanh.f32 %v7464_v25  ;;  %v14625_v25 = vld [vmem:[#allocation77_spill] sm:$0xff] }
 0xc34   :  { %11704 = vtanh.f32 %v7468_v21 }
 0xc35   :  { %11706 = vtanh.f32 %v7461_v37 }
 0xc36   :  { %11708 = vtanh.f32 %v7473_v56 }
 0xc3d   :  { %v11703_v10 = vpop.eup %11702 }
 0xc3e   :  { %v11705_v49 = vpop.eup %11704  ;;  %v7466_v24 = vmul.f32 0.5, %v11703_v10 }
 0xc3f   :  { %v7470_v42 = vmul.f32 0.5, %v11705_v49  ;;  %v11707_v62 = vpop.eup %11706 }
 0xc40   :  { %v7467_v7 = vadd.f32 0.5, %v7466_v24  ;;  %v11709_v61 = vpop.eup %11708 }
 0xc41   :  { %v7471_v27 = vadd.f32 0.5, %v7470_v42  ;;  %v7475_v19 = vmul.f32 0.5, %v11709_v61 }
 0xc42   :  { %v7478_v28 = vmul.f32 %v11707_v62, %v7467_v7 }
 0xc43   :  { %v7477_v55 = vmul.f32 %v7471_v27, %v14052_v36  ;;  %v7476_v59 = vadd.f32 0.5, %v7475_v19  ;;  %v14161_v36 = vld [vmem:[#allocation19 + $0xa0] ss:$16 sps:$4 sm:$0xff]  }
 0xc45   :  { %v14092_v12 = vadd.f32 %v7478_v28, %v7477_v55 }
 0xc47   :  { %11710 = vtanh.f32 %v14092_v12 }
 0xc51   :  { %v11711_v54 = vpop.eup %11710 }
 0xc52   :  { %v7481_v22 = vmul.f32 %v11711_v54, %v7476_v59 }
 0xc54   :  { %v7489_v60 = vpack.c.bf16 %v7481_v22, %v7481_v22 }
 0xc56   :  { %7715 = vmatmul.mubr.bf16.vlgmr.msra.gmra.mrb[124].mxu0 %v7489_v60  ;;  %7756 = vmatmul.mubr.bf16.vlgmr.msra.gmra.mrb[124].mxu1 %v7489_v60 }
 0xc57   :  { %8019 = vmatprep.mubr.bf16.mxu0 %v14469_v30  ;;  %8060 = vmatprep.mubr.bf16.mxu1 %v14469_v30 }
 0xc58   :  { %7988 = vmatpush1.bf16.msra.mxu0 %v14101_v9  ;;  %8029 = vmatpush1.bf16.msra.mxu1 %v14103_v58 }
 0xc59   :  { %7989 = vmatprep.subr.bf16.mxu0 %v14109_v44  ;;  %8030 = vmatprep.subr.bf16.mxu1 %v14111_v3 }
 0xc5c   :  { %7990 = vmatpush1.bf16.msra.mxu0 %v14113_v8  ;;  %8031 = vmatpush1.bf16.msra.mxu1 %v14115_v52 }
 0xc5d   :  { %7991 = vmatprep.subr.bf16.mxu0 %v14121_v29  ;;  %8032 = vmatprep.subr.bf16.mxu1 %v14123_v43 }
 0xc60   :  { %7992 = vmatpush1.bf16.msra.mxu0 %v14125_v5  ;;  %8033 = vmatpush1.bf16.msra.mxu1 %v14127_v47 }
 0xc61   :  { %7993 = vmatprep.subr.bf16.mxu0 %v14133_v63  ;;  %8034 = vmatprep.subr.bf16.mxu1 %v14135_v39 }
 0xc64   :  { %7994 = vmatpush1.bf16.msra.mxu0 %v14137_v48  ;;  %8035 = vmatpush1.bf16.msra.mxu1 %v14139_v1 }
 0xc65   :  { %7995 = vmatprep.subr.bf16.mxu0 %v14145_v20  ;;  %8036 = vmatprep.subr.bf16.mxu1 %v14147_v11 }
 0xc68   :  { %7996 = vmatpush1.bf16.msra.mxu0 %v14149_v4  ;;  %8037 = vmatpush1.bf16.msra.mxu1 %v14151_v41 }
 0xc69   :  { %7997 = vmatprep.subr.bf16.mxu0 %v14157_v16  ;;  %8038 = vmatprep.subr.bf16.mxu1 %v14159_v51 }
 0xc6c   :  { %7998 = vmatpush1.bf16.msra.mxu0 %v14161_v36  ;;  %8039 = vmatpush1.bf16.msra.mxu1 %v14163_v57 }
 0xc6d   :  { %7999 = vmatprep.subr.bf16.mxu0 %v14169_v31  ;;  %8040 = vmatprep.subr.bf16.mxu1 %v14171_v17 }
 0xc70   :  { %8000 = vmatpush1.bf16.msra.mxu0 %v14173_v18  ;;  %8041 = vmatpush1.bf16.msra.mxu1 %v14175_v35 }
 0xc71   :  { %8001 = vmatprep.subr.bf16.mxu0 %v14181_v0  ;;  %8042 = vmatprep.subr.bf16.mxu1 %v14183_v34 }
 0xc74   :  { %8002 = vmatpush1.bf16.msra.mxu0 %v14185_v53  ;;  %8043 = vmatpush1.bf16.msra.mxu1 %v14187_v2 }
 0xc75   :  { %8292 = vmatprep.subr.bf16.mxu0 %v14097_v15  ;;  %8333 = vmatprep.subr.bf16.mxu1 %v14099_v32 }
 0xd29   :  { %v7716_v13 = vpop.f32.mrb[124].mxu0  ;;  %v7757_v37 = vpop.f32.mrb[124].mxu1 }
 0xd2a   :  { %v7764_v50 = vadd.f32 %v7716_v13, %v14622_v46  ;;  %v7766_v6 = vadd.f32 %v7757_v37, %v14623_v26  ;;  %v7718_v33 = vpop.f32.mrb[125].mxu0  ;;  %v7759_v23 = vpop.f32.mrb[125].mxu1 }
 0xd2b   :  { %v7765_v38 = vadd.f32 %v7718_v33, %v14624_v14  ;;  %v7767_v45 = vadd.f32 %v7759_v23, %v14625_v25  ;;  %v7720_v40 = vpop.f32.mrb[126].mxu0  ;;  %v7761_v21 = vpop.f32.mrb[126].mxu1  ;;  %v14626_v33 = vld [vmem:[#allocation79_spill] sm:$0xff]  ;;  %v14627_v14 = vld [vmem:[#allocation86_spill] sm:$0xff] }
 0xd2c   :  { %v7769_v56 = vmul.f32 0.5, %v7764_v50  ;;  %v7721_v10 = vpop.f32.mrb[127].mxu0  ;;  %v7762_v49 = vpop.f32.mrb[127].mxu1  ;;  %v14628_v40 = vld [vmem:[#allocation85_spill] sm:$0xff] }
 0xd2d   :  { %v7773_v24 = vmul.f32 0.5, %v7765_v38  ;;  %v7778_v42 = vmul.f32 0.5, %v7767_v45 }
 0xd2e   :  { %11712 = vtanh.f32 %v7769_v56  ;;  %v14629_v56 = vld [vmem:[#allocation87_spill] sm:$0xff] }
 0xd2f   :  { %11714 = vtanh.f32 %v7773_v24 }
 0xd30   :  { %11716 = vtanh.f32 %v7766_v6 }
 0xd31   :  { %11718 = vtanh.f32 %v7778_v42 }
 0xd38   :  { %v11713_v7 = vpop.eup %11712 }
 0xd39   :  { %v11715_v62 = vpop.eup %11714  ;;  %v7771_v27 = vmul.f32 0.5, %v11713_v7 }
 0xd3a   :  { %v7775_v28 = vmul.f32 0.5, %v11715_v62  ;;  %v11717_v61 = vpop.eup %11716 }
 0xd3b   :  { %v7772_v55 = vadd.f32 0.5, %v7771_v27  ;;  %v11719_v60 = vpop.eup %11718 }
 0xd3c   :  { %v7776_v19 = vadd.f32 0.5, %v7775_v28  ;;  %v7780_v13 = vmul.f32 0.5, %v11719_v60 }
 0xd3d   :  { %v7783_v59 = vmul.f32 %v11717_v61, %v7772_v55 }
 0xd3e   :  { %v7782_v54 = vmul.f32 %v7776_v19, %v14092_v12  ;;  %v7781_v37 = vadd.f32 0.5, %v7780_v13 }
 0xd40   :  { %v14200_v22 = vadd.f32 %v7783_v59, %v7782_v54 }
 0xd42   :  { %11720 = vtanh.f32 %v14200_v22 }
 0xd4c   :  { %v11721_v46 = vpop.eup %11720 }
 0xd4d   :  { %v7786_v50 = vmul.f32 %v11721_v46, %v7781_v37 }
 0xd4f   :  { %v7794_v26 = vpack.c.bf16 %v7786_v50, %v7786_v50 }
 0xd51   :  { %8020 = vmatmul.mubr.bf16.vlgmr.msra.gmra.mrb[128].mxu0 %v7794_v26  ;;  %8061 = vmatmul.mubr.bf16.vlgmr.msra.gmra.mrb[128].mxu1 %v7794_v26 }
 0xd52   :  { %8293 = vmatpush1.bf16.msra.mxu0 %v14101_v9  ;;  %8334 = vmatpush1.bf16.msra.mxu1 %v14103_v58 }
 0xd53   :  { %8294 = vmatprep.subr.bf16.mxu0 %v14109_v44  ;;  %8335 = vmatprep.subr.bf16.mxu1 %v14111_v3 }
 0xd54   :  { %8324 = vmatprep.mubr.bf16.mxu0 %v14469_v30  ;;  %8365 = vmatprep.mubr.bf16.mxu1 %v14469_v30 }
 0xd56   :  { %8295 = vmatpush1.bf16.msra.mxu0 %v14113_v8  ;;  %8336 = vmatpush1.bf16.msra.mxu1 %v14115_v52 }
 0xd57   :  { %8296 = vmatprep.subr.bf16.mxu0 %v14121_v29  ;;  %8337 = vmatprep.subr.bf16.mxu1 %v14123_v43 }
 0xd5a   :  { %8297 = vmatpush1.bf16.msra.mxu0 %v14125_v5  ;;  %8338 = vmatpush1.bf16.msra.mxu1 %v14127_v47 }
 0xd5b   :  { %8298 = vmatprep.subr.bf16.mxu0 %v14133_v63  ;;  %8339 = vmatprep.subr.bf16.mxu1 %v14135_v39 }
 0xd5e   :  { %8299 = vmatpush1.bf16.msra.mxu0 %v14137_v48  ;;  %8340 = vmatpush1.bf16.msra.mxu1 %v14139_v1 }
 0xd5f   :  { %8300 = vmatprep.subr.bf16.mxu0 %v14145_v20  ;;  %8341 = vmatprep.subr.bf16.mxu1 %v14147_v11 }
 0xd62   :  { %8301 = vmatpush1.bf16.msra.mxu0 %v14149_v4  ;;  %8342 = vmatpush1.bf16.msra.mxu1 %v14151_v41 }
 0xd63   :  { %8302 = vmatprep.subr.bf16.mxu0 %v14157_v16  ;;  %8343 = vmatprep.subr.bf16.mxu1 %v14159_v51 }
 0xd66   :  { %8303 = vmatpush1.bf16.msra.mxu0 %v14161_v36  ;;  %8344 = vmatpush1.bf16.msra.mxu1 %v14163_v57 }
 0xd67   :  { %8304 = vmatprep.subr.bf16.mxu0 %v14169_v31  ;;  %8345 = vmatprep.subr.bf16.mxu1 %v14171_v17 }
 0xd6a   :  { %8305 = vmatpush1.bf16.msra.mxu0 %v14173_v18  ;;  %8346 = vmatpush1.bf16.msra.mxu1 %v14175_v35 }
 0xd6b   :  { %8306 = vmatprep.subr.bf16.mxu0 %v14181_v0  ;;  %8347 = vmatprep.subr.bf16.mxu1 %v14183_v34 }
 0xd6e   :  { %8307 = vmatpush1.bf16.msra.mxu0 %v14185_v53  ;;  %8348 = vmatpush1.bf16.msra.mxu1 %v14187_v2 }
 0xd6f   :  { %8597 = vmatprep.subr.bf16.mxu0 %v14097_v15  ;;  %8638 = vmatprep.subr.bf16.mxu1 %v14099_v32 }
 0xe24   :  { %v8021_v12 = vpop.f32.mrb[128].mxu0  ;;  %v8062_v6 = vpop.f32.mrb[128].mxu1 }
 0xe25   :  { %v8069_v23 = vadd.f32 %v8021_v12, %v14626_v33  ;;  %v8071_v38 = vadd.f32 %v8062_v6, %v14627_v14  ;;  %v8023_v25 = vpop.f32.mrb[129].mxu0  ;;  %v8064_v45 = vpop.f32.mrb[129].mxu1 }
 0xe26   :  { %v8070_v21 = vadd.f32 %v8023_v25, %v14628_v40  ;;  %v8072_v10 = vadd.f32 %v8064_v45, %v14629_v56  ;;  %v8025_v49 = vpop.f32.mrb[130].mxu0  ;;  %v8066_v24 = vpop.f32.mrb[130].mxu1  ;;  %v14630_v25 = vld [vmem:[#allocation92_spill] sm:$0xff]  ;;  %v14631_v40 = vld [vmem:[#allocation93_spill] sm:$0xff] }
 0xe27   :  { %v8074_v42 = vmul.f32 0.5, %v8069_v23  ;;  %v8026_v7 = vpop.f32.mrb[131].mxu0  ;;  %v8067_v62 = vpop.f32.mrb[131].mxu1  ;;  %v14632_v49 = vld [vmem:[#allocation94_spill] sm:$0xff] }
 0xe28   :  { %v8078_v27 = vmul.f32 0.5, %v8070_v21  ;;  %v8083_v28 = vmul.f32 0.5, %v8072_v10 }
 0xe29   :  { %11722 = vtanh.f32 %v8074_v42  ;;  %v14633_v42 = vld [vmem:[#allocation95_spill] sm:$0xff] }
 0xe2a   :  { %11724 = vtanh.f32 %v8078_v27 }
 0xe2b   :  { %11726 = vtanh.f32 %v8071_v38 }
 0xe2c   :  { %11728 = vtanh.f32 %v8083_v28 }
 0xe33   :  { %v11723_v55 = vpop.eup %11722 }
 0xe34   :  { %v11725_v61 = vpop.eup %11724  ;;  %v8076_v19 = vmul.f32 0.5, %v11723_v55 }
 0xe35   :  { %v8080_v59 = vmul.f32 0.5, %v11725_v61  ;;  %v11727_v60 = vpop.eup %11726 }
 0xe36   :  { %v8077_v54 = vadd.f32 0.5, %v8076_v19  ;;  %v11729_v26 = vpop.eup %11728 }
 0xe37   :  { %v8081_v13 = vadd.f32 0.5, %v8080_v59  ;;  %v8085_v12 = vmul.f32 0.5, %v11729_v26 }
 0xe38   :  { %v8088_v37 = vmul.f32 %v11727_v60, %v8077_v54 }
 0xe39   :  { %v8087_v46 = vmul.f32 %v8081_v13, %v14200_v22  ;;  %v8086_v6 = vadd.f32 0.5, %v8085_v12 }
 0xe3b   :  { %v14242_v50 = vadd.f32 %v8088_v37, %v8087_v46 }
 0xe3d   :  { %11730 = vtanh.f32 %v14242_v50 }
 0xe47   :  { %v11731_v33 = vpop.eup %11730 }
 0xe48   :  { %v8091_v23 = vmul.f32 %v11731_v33, %v8086_v6 }
 0xe4a   :  { %v8099_v14 = vpack.c.bf16 %v8091_v23, %v8091_v23 }
 0xe4c   :  { %8325 = vmatmul.mubr.bf16.vlgmr.msra.gmra.mrb[132].mxu0 %v8099_v14  ;;  %8366 = vmatmul.mubr.bf16.vlgmr.msra.gmra.mrb[132].mxu1 %v8099_v14 }
 0xe4d   :  { %8598 = vmatpush1.bf16.msra.mxu0 %v14101_v9  ;;  %8639 = vmatpush1.bf16.msra.mxu1 %v14103_v58 }
 0xe4e   :  { %8599 = vmatprep.subr.bf16.mxu0 %v14109_v44  ;;  %8640 = vmatprep.subr.bf16.mxu1 %v14111_v3 }
 0xe4f   :  { %8629 = vmatprep.mubr.bf16.mxu0 %v14469_v30  ;;  %8670 = vmatprep.mubr.bf16.mxu1 %v14469_v30 }
 0xe51   :  { %8600 = vmatpush1.bf16.msra.mxu0 %v14113_v8  ;;  %8641 = vmatpush1.bf16.msra.mxu1 %v14115_v52 }
 0xe52   :  { %8601 = vmatprep.subr.bf16.mxu0 %v14121_v29  ;;  %8642 = vmatprep.subr.bf16.mxu1 %v14123_v43 }
 0xe55   :  { %8602 = vmatpush1.bf16.msra.mxu0 %v14125_v5  ;;  %8643 = vmatpush1.bf16.msra.mxu1 %v14127_v47 }
 0xe56   :  { %8603 = vmatprep.subr.bf16.mxu0 %v14133_v63  ;;  %8644 = vmatprep.subr.bf16.mxu1 %v14135_v39 }
 0xe59   :  { %8604 = vmatpush1.bf16.msra.mxu0 %v14137_v48  ;;  %8645 = vmatpush1.bf16.msra.mxu1 %v14139_v1 }
 0xe5a   :  { %8605 = vmatprep.subr.bf16.mxu0 %v14145_v20  ;;  %8646 = vmatprep.subr.bf16.mxu1 %v14147_v11 }
 0xe5d   :  { %8606 = vmatpush1.bf16.msra.mxu0 %v14149_v4  ;;  %8647 = vmatpush1.bf16.msra.mxu1 %v14151_v41 }
 0xe5e   :  { %8607 = vmatprep.subr.bf16.mxu0 %v14157_v16  ;;  %8648 = vmatprep.subr.bf16.mxu1 %v14159_v51 }
 0xe61   :  { %8608 = vmatpush1.bf16.msra.mxu0 %v14161_v36  ;;  %8649 = vmatpush1.bf16.msra.mxu1 %v14163_v57 }
 0xe62   :  { %8609 = vmatprep.subr.bf16.mxu0 %v14169_v31  ;;  %8650 = vmatprep.subr.bf16.mxu1 %v14171_v17 }
 0xe65   :  { %8610 = vmatpush1.bf16.msra.mxu0 %v14173_v18  ;;  %8651 = vmatpush1.bf16.msra.mxu1 %v14175_v35 }
 0xe66   :  { %8611 = vmatprep.subr.bf16.mxu0 %v14181_v0  ;;  %8652 = vmatprep.subr.bf16.mxu1 %v14183_v34 }
 0xe69   :  { %8612 = vmatpush1.bf16.msra.mxu0 %v14185_v53  ;;  %8653 = vmatpush1.bf16.msra.mxu1 %v14187_v2 }
 0xe6a   :  { %8902 = vmatprep.subr.bf16.mxu0 %v14097_v15  ;;  %8943 = vmatprep.subr.bf16.mxu1 %v14099_v32 }
 0xf1f   :  { %v8326_v22 = vpop.f32.mrb[132].mxu0  ;;  %v8367_v38 = vpop.f32.mrb[132].mxu1 }
 0xf20   :  { %v8374_v45 = vadd.f32 %v8326_v22, %v14630_v25  ;;  %v8376_v21 = vadd.f32 %v8367_v38, %v14631_v40  ;;  %v8328_v56 = vpop.f32.mrb[133].mxu0  ;;  %v8369_v10 = vpop.f32.mrb[133].mxu1 }
 0xf21   :  { %v8375_v24 = vadd.f32 %v8328_v56, %v14632_v49  ;;  %v8377_v7 = vadd.f32 %v8369_v10, %v14633_v42  ;;  %v8330_v62 = vpop.f32.mrb[134].mxu0  ;;  %v8371_v27 = vpop.f32.mrb[134].mxu1  ;;  %v11410_v10 = vld [vmem:[#allocation22] ss:$16 sps:$4 sm:$0xff]   ;;  %v11413_v49 = vld [vmem:[#allocation22 + $0x8] ss:$16 sps:$4 sm:$0xff]  }
 0xf22   :  { %v8379_v28 = vmul.f32 0.5, %v8374_v45  ;;  %v8331_v55 = vpop.f32.mrb[135].mxu0  ;;  %v8372_v61 = vpop.f32.mrb[135].mxu1  ;;  %v11418_v42 = vld [vmem:[#allocation22 + $0x24] ss:$16 sps:$4 sm:$0xff]  }
 0xf23   :  { %v8383_v15 = vmul.f32 0.5, %v8375_v24  ;;  %v8388_v32 = vmul.f32 0.5, %v8377_v7  ;;  %v11421_v7 = vld [vmem:[#allocation22 + $0x2c] ss:$16 sps:$4 sm:$0xff]   ;;  %v11416_v62 = vld [vmem:[#allocation22 + $0x20] ss:$16 sps:$4 sm:$0xff]  }
 0xf24   :  { %11732 = vtanh.f32 %v8379_v28  ;;  %v11419_v27 = vld [vmem:[#allocation22 + $0x28] ss:$16 sps:$4 sm:$0xff]   ;;  %v14638_v28 = vld [vmem:[#allocation90_spill] sm:$0xff] }
 0xf25   :  { %11734 = vtanh.f32 %v8383_v15  ;;  %v11424_v55 = vld [vmem:[#allocation22 + $0x44] ss:$16 sps:$4 sm:$0xff]   ;;  %v11427_v61 = vld [vmem:[#allocation22 + $0x4c] ss:$16 sps:$4 sm:$0xff]   ;;  %v11422_v15 = vld [vmem:[#allocation22 + $0x40] ss:$16 sps:$4 sm:$0xff]  }
 0xf26   :  { %11736 = vtanh.f32 %v8376_v21 }
 0xf27   :  { %11738 = vtanh.f32 %v8388_v32  ;;  %v11425_v32 = vld [vmem:[#allocation22 + $0x48] ss:$16 sps:$4 sm:$0xff]  }
 0xf2e   :  { %v11733_v19 = vpop.eup %11732 }
 0xf2f   :  { %v11735_v59 = vpop.eup %11734  ;;  %v8381_v54 = vmul.f32 0.5, %v11733_v19  ;;  %v11430_v19 = vld [vmem:[#allocation22 + $0x64] ss:$16 sps:$4 sm:$0xff]  }
 0xf30   :  { %v8385_v60 = vmul.f32 0.5, %v11735_v59  ;;  %v11737_v37 = vpop.eup %11736  ;;  %v11433_v59 = vld [vmem:[#allocation22 + $0x6c] ss:$16 sps:$4 sm:$0xff]  }
 0xf31   :  { %v8382_v13 = vadd.f32 0.5, %v8381_v54  ;;  %v11739_v33 = vpop.eup %11738  ;;  %v11428_v54 = vld [vmem:[#allocation22 + $0x60] ss:$16 sps:$4 sm:$0xff]  }
 0xf32   :  { %v8386_v46 = vadd.f32 0.5, %v8385_v60  ;;  %v8390_v23 = vmul.f32 0.5, %v11739_v33  ;;  %v11431_v60 = vld [vmem:[#allocation22 + $0x68] ss:$16 sps:$4 sm:$0xff]   ;;  %v11440_v33 = vld [vmem:[#allocation22 + $0xa0] ss:$16 sps:$4 sm:$0xff]  }
 0xf33   :  { %v8393_v26 = vmul.f32 %v11737_v37, %v8382_v13  ;;  %v11436_v13 = vld [vmem:[#allocation22 + $0x84] ss:$16 sps:$4 sm:$0xff]   ;;  %v11439_v37 = vld [vmem:[#allocation22 + $0x8c] ss:$16 sps:$4 sm:$0xff]  }
 0xf34   :  { %v8392_v12 = vmul.f32 %v8386_v46, %v14242_v50  ;;  %v8391_v14 = vadd.f32 0.5, %v8390_v23  ;;  %v11434_v46 = vld [vmem:[#allocation22 + $0x80] ss:$16 sps:$4 sm:$0xff]   ;;  %v11443_v23 = vld [vmem:[#allocation22 + $0xa8] ss:$16 sps:$4 sm:$0xff]  }
 0xf36   :  { %v14284_v6 = vadd.f32 %v8393_v26, %v8392_v12  ;;  %v11437_v26 = vld [vmem:[#allocation22 + $0x88] ss:$16 sps:$4 sm:$0xff]   ;;  %v11442_v12 = vld [vmem:[#allocation22 + $0xa4] ss:$16 sps:$4 sm:$0xff]  }
 0xf38   :  { %11740 = vtanh.f32 %v14284_v6 }
 0xf42   :  { %v11741_v22 = vpop.eup %11740 }
 0xf43   :  { %v8396_v38 = vmul.f32 %v11741_v22, %v8391_v14  ;;  %v11448_v14 = vld [vmem:[#allocation22 + $0xc4] ss:$16 sps:$4 sm:$0xff]   ;;  %v11451_v22 = vld [vmem:[#allocation22 + $0xcc] ss:$16 sps:$4 sm:$0xff]  }
 0xf45   :  { %v8404_v25 = vpack.c.bf16 %v8396_v38, %v8396_v38  ;;  %v11446_v38 = vld [vmem:[#allocation22 + $0xc0] ss:$16 sps:$4 sm:$0xff]  }
 0xf47   :  { %8630 = vmatmul.mubr.bf16.vlgmr.msra.gmra.mrb[136].mxu0 %v8404_v25  ;;  %8671 = vmatmul.mubr.bf16.vlgmr.msra.gmra.mrb[136].mxu1 %v8404_v25  ;;  %v11449_v25 = vld [vmem:[#allocation22 + $0xc8] ss:$16 sps:$4 sm:$0xff]  }
 0xf48   :  { %8903 = vmatpush1.bf16.msra.mxu0 %v14101_v9  ;;  %8944 = vmatpush1.bf16.msra.mxu1 %v14103_v58  ;;  %v11415_v9 = vld [vmem:[#allocation22 + $0xc] ss:$16 sps:$4 sm:$0xff]  }
 0xf49   :  { %8904 = vmatprep.subr.bf16.mxu0 %v14109_v44  ;;  %8945 = vmatprep.subr.bf16.mxu1 %v14111_v3  ;;  %v14634_v3 = vld [vmem:[#allocation96_spill] sm:$0xff] }
 0xf4a   :  { %8934 = vmatprep.mubr.bf16.mxu0 %v14469_v30  ;;  %8975 = vmatprep.mubr.bf16.mxu1 %v14469_v30  ;;  %v11412_v30 = vld [vmem:[#allocation22 + $0x4] ss:$16 sps:$4 sm:$0xff]  }
 0xf4c   :  { %8905 = vmatpush1.bf16.msra.mxu0 %v14113_v8  ;;  %8946 = vmatpush1.bf16.msra.mxu1 %v14115_v52  ;;  %v14635_v52 = vld [vmem:[#allocation51_spill] sm:$0xff] }
 0xf4d   :  { %8906 = vmatprep.subr.bf16.mxu0 %v14121_v29  ;;  %8947 = vmatprep.subr.bf16.mxu1 %v14123_v43 }
 0xf50   :  { %8907 = vmatpush1.bf16.msra.mxu0 %v14125_v5  ;;  %8948 = vmatpush1.bf16.msra.mxu1 %v14127_v47  ;;  %v14636_v47 = vld [vmem:[#allocation54_spill] sm:$0xff] }
 0xf51   :  { %8908 = vmatprep.subr.bf16.mxu0 %v14133_v63  ;;  %8949 = vmatprep.subr.bf16.mxu1 %v14135_v39  ;;  %v14637_v39 = vld [vmem:[#allocation53_spill] sm:$0xff] }
 0xf54   :  { %8909 = vmatpush1.bf16.msra.mxu0 %v14137_v48  ;;  %8950 = vmatpush1.bf16.msra.mxu1 %v14139_v1 }
 0xf55   :  { %8910 = vmatprep.subr.bf16.mxu0 %v14145_v20  ;;  %8951 = vmatprep.subr.bf16.mxu1 %v14147_v11 }
 0xf58   :  { %8911 = vmatpush1.bf16.msra.mxu0 %v14149_v4  ;;  %8952 = vmatpush1.bf16.msra.mxu1 %v14151_v41 }
 0xf59   :  { %8912 = vmatprep.subr.bf16.mxu0 %v14157_v16  ;;  %8953 = vmatprep.subr.bf16.mxu1 %v14159_v51 }
 0xf5c   :  { %8913 = vmatpush1.bf16.msra.mxu0 %v14161_v36  ;;  %8954 = vmatpush1.bf16.msra.mxu1 %v14163_v57 }
 0xf5d   :  { %8914 = vmatprep.subr.bf16.mxu0 %v14169_v31  ;;  %8955 = vmatprep.subr.bf16.mxu1 %v14171_v17 }
 0xf60   :  { %8915 = vmatpush1.bf16.msra.mxu0 %v14173_v18  ;;  %8956 = vmatpush1.bf16.msra.mxu1 %v14175_v35 }
 0xf61   :  { %8916 = vmatprep.subr.bf16.mxu0 %v14181_v0  ;;  %8957 = vmatprep.subr.bf16.mxu1 %v14183_v34 }
 0xf64   :  { %8917 = vmatpush1.bf16.msra.mxu0 %v14185_v53  ;;  %8958 = vmatpush1.bf16.msra.mxu1 %v14187_v2 }
 0xf65   :  { %9419 = vmatprep.subr.bf16.mxu0 %v11412_v30  ;;  %9460 = vmatprep.subr.bf16.mxu1 %v11415_v9  ;;  %v11454_v30 = vld [vmem:[#allocation22 + $0xe4] ss:$16 sps:$4 sm:$0xff]   ;;  %v11457_v9 = vld [vmem:[#allocation22 + $0xec] ss:$16 sps:$4 sm:$0xff]  }
0x101a   :  { %v8631_v58 = vpop.f32.mrb[136].mxu0  ;;  %v8672_v44 = vpop.f32.mrb[136].mxu1 }
0x101b   :  { %v8679_v8 = vadd.f32 %v8631_v58, %v14634_v3  ;;  %v8681_v29 = vadd.f32 %v8672_v44, %v14635_v52  ;;  %v8633_v43 = vpop.f32.mrb[137].mxu0  ;;  %v8674_v5 = vpop.f32.mrb[137].mxu1  ;;  %v11452_v58 = vld [vmem:[#allocation22 + $0xe0] ss:$16 sps:$4 sm:$0xff]   ;;  %v11455_v44 = vld [vmem:[#allocation22 + $0xe8] ss:$16 sps:$4 sm:$0xff]  }
0x101c   :  { %v8680_v63 = vadd.f32 %v8633_v43, %v14636_v47  ;;  %v8682_v48 = vadd.f32 %v8674_v5, %v14637_v39  ;;  %v8635_v1 = vpop.f32.mrb[138].mxu0  ;;  %v8676_v20 = vpop.f32.mrb[138].mxu1  ;;  %v11460_v3 = vld [vmem:[#allocation22 + $0x104] ss:$16 sps:$4 sm:$0xff]   ;;  %v11458_v52 = vld [vmem:[#allocation22 + $0x100] ss:$16 sps:$4 sm:$0xff]  }
0x101d   :  { %v8684_v11 = vmul.f32 0.5, %v8679_v8  ;;  %v8636_v4 = vpop.f32.mrb[139].mxu0  ;;  %v8677_v41 = vpop.f32.mrb[139].mxu1  ;;  %v11463_v8 = vld [vmem:[#allocation22 + $0x10c] ss:$16 sps:$4 sm:$0xff]  }
0x101e   :  { %v8688_v16 = vmul.f32 0.5, %v8680_v63  ;;  %v8693_v51 = vmul.f32 0.5, %v8682_v48  ;;  %v11466_v43 = vld [vmem:[#allocation22 + $0x124] ss:$16 sps:$4 sm:$0xff]   ;;  %v11469_v5 = vld [vmem:[#allocation22 + $0x12c] ss:$16 sps:$4 sm:$0xff]  }
0x101f   :  { %11742 = vtanh.f32 %v8684_v11  ;;  %v11464_v47 = vld [vmem:[#allocation22 + $0x120] ss:$16 sps:$4 sm:$0xff]   ;;  %v11467_v63 = vld [vmem:[#allocation22 + $0x128] ss:$16 sps:$4 sm:$0xff]   ;;  %v11472_v39 = vld [vmem:[#allocation22 + $0x144] ss:$16 sps:$4 sm:$0xff]  }
0x1020   :  { %11744 = vtanh.f32 %v8688_v16  ;;  %v11475_v48 = vld [vmem:[#allocation22 + $0x14c] ss:$16 sps:$4 sm:$0xff]   ;;  %v11470_v1 = vld [vmem:[#allocation22 + $0x140] ss:$16 sps:$4 sm:$0xff]   ;;  %v11473_v20 = vld [vmem:[#allocation22 + $0x148] ss:$16 sps:$4 sm:$0xff]  }
0x1021   :  { %11746 = vtanh.f32 %v8681_v29  ;;  %v11461_v29 = vld [vmem:[#allocation22 + $0x108] ss:$16 sps:$4 sm:$0xff]   ;;  %v11478_v11 = vld [vmem:[#allocation22 + $0x164] ss:$16 sps:$4 sm:$0xff]   ;;  %v11481_v4 = vld [vmem:[#allocation22 + $0x16c] ss:$16 sps:$4 sm:$0xff]  }
0x1022   :  { %11748 = vtanh.f32 %v8693_v51  ;;  %v11476_v41 = vld [vmem:[#allocation22 + $0x160] ss:$16 sps:$4 sm:$0xff]   ;;  %v11479_v16 = vld [vmem:[#allocation22 + $0x168] ss:$16 sps:$4 sm:$0xff]   ;;  %v11484_v51 = vld [vmem:[#allocation22 + $0x184] ss:$16 sps:$4 sm:$0xff]  }
0x1029   :  { %v11743_v36 = vpop.eup %11742 }
0x102a   :  { %v11745_v57 = vpop.eup %11744  ;;  %v8686_v31 = vmul.f32 0.5, %v11743_v36  ;;  %v11487_v36 = vld [vmem:[#allocation22 + $0x18c] ss:$16 sps:$4 sm:$0xff]  }
0x102b   :  { %v8690_v17 = vmul.f32 0.5, %v11745_v57  ;;  %v11747_v35 = vpop.eup %11746  ;;  %v11482_v57 = vld [vmem:[#allocation22 + $0x180] ss:$16 sps:$4 sm:$0xff]  }
0x102c   :  { %v8687_v18 = vadd.f32 0.5, %v8686_v31  ;;  %v11749_v50 = vpop.eup %11748  ;;  %v11485_v31 = vld [vmem:[#allocation22 + $0x188] ss:$16 sps:$4 sm:$0xff]  }
0x102d   :  { %v8691_v0 = vadd.f32 0.5, %v8690_v17  ;;  %v8695_v45 = vmul.f32 0.5, %v11749_v50  ;;  %v11490_v17 = vld [vmem:[#allocation22 + $0x1a4] ss:$16 sps:$4 sm:$0xff]   ;;  %v11494_v50 = vld [vmem:[#allocation22 + $0x1c0] ss:$16 sps:$4 sm:$0xff]  }
0x102e   :  { %v8698_v34 = vmul.f32 %v11747_v35, %v8687_v18  ;;  %v11493_v18 = vld [vmem:[#allocation22 + $0x1ac] ss:$16 sps:$4 sm:$0xff]   ;;  %v11488_v35 = vld [vmem:[#allocation22 + $0x1a0] ss:$16 sps:$4 sm:$0xff]  }
0x102f   :  { %v8697_v53 = vmul.f32 %v8691_v0, %v14284_v6  ;;  %v8696_v40 = vadd.f32 0.5, %v8695_v45  ;;  %v11445_v6 = vld [vmem:[#allocation22 + $0xac] ss:$16 sps:$4 sm:$0xff]   ;;  %v11491_v0 = vld [vmem:[#allocation22 + $0x1a8] ss:$16 sps:$4 sm:$0xff]  }
0x1030   :  { %v11497_v45 = vld [vmem:[#allocation22 + $0x1c8] ss:$16 sps:$4 sm:$0xff]  }
0x1031   :  { %v14324_v2 = vadd.f32 %v8698_v34, %v8697_v53  ;;  %v11496_v34 = vld [vmem:[#allocation22 + $0x1c4] ss:$16 sps:$4 sm:$0xff]   ;;  %v11499_v53 = vld [vmem:[#allocation22 + $0x1cc] ss:$16 sps:$4 sm:$0xff]  }
0x1033   :  { %11750 = vtanh.f32 %v14324_v2 }
0x103d   :  { %v11751_v21 = vpop.eup %11750 }
0x103e   :  { %v8701_v56 = vmul.f32 %v11751_v21, %v8696_v40  ;;  %v11502_v40 = vld [vmem:[#allocation22 + $0x1e4] ss:$16 sps:$4 sm:$0xff]   ;;  %v11505_v21 = vld [vmem:[#allocation22 + $0x1ec] ss:$16 sps:$4 sm:$0xff]  }
0x1040   :  { %v8709_v24 = vpack.c.bf16 %v8701_v56, %v8701_v56  ;;  %v11500_v56 = vld [vmem:[#allocation22 + $0x1e0] ss:$16 sps:$4 sm:$0xff]  }
0x1042   :  { %8935 = vmatmul.mubr.bf16.vlgmr.msra.gmra.mrb[140].mxu0 %v8709_v24  ;;  %8976 = vmatmul.mubr.bf16.vlgmr.msra.gmra.mrb[140].mxu1 %v8709_v24 }
0x1043   :  { %9420 = vmatpush1.bf16.msra.mxu0 %v11410_v10  ;;  %9461 = vmatpush1.bf16.msra.mxu1 %v11413_v49  ;;  %v11503_v10 = vld [vmem:[#allocation22 + $0x1e8] ss:$16 sps:$4 sm:$0xff]   ;;  %v14639_v49 = vld [vmem:[#allocation84_spill] sm:$0xff] }
0x1044   :  { %9451 = vmatprep.mubr.bf16.mxu0 %v14638_v28  ;;  %9492 = vmatprep.mubr.bf16.mxu1 %v14638_v28  ;;  %v9011_v24 = vpack.c.bf16 %v14639_v49, %v14639_v49  ;;  %v11509_v28 = vld [vmem:[#allocation25 + $0x18] sm:$0xff]  }
0x1045   :  { %9421 = vmatprep.subr.bf16.mxu0 %v11418_v42  ;;  %9462 = vmatprep.subr.bf16.mxu1 %v11421_v7  ;;  %v11506_v42 = vld [vmem:[#allocation25] sm:$0xff]   ;;  %v12147_v7 = vmov 0.0  }
0x1047   :  { %9422 = vmatpush1.bf16.msra.mxu0 %v11416_v62  ;;  %9463 = vmatpush1.bf16.msra.mxu1 %v11419_v27  ;;  %v11507_v62 = vld [vmem:[#allocation25 + $0x8] sm:$0xff]   ;;  %v11508_v27 = vld [vmem:[#allocation25 + $0x10] sm:$0xff]  }
0x1048   :  { %9423 = vmatprep.subr.bf16.mxu0 %v11424_v55  ;;  %9464 = vmatprep.subr.bf16.mxu1 %v11427_v61  ;;  %v11510_v55 = vld [vmem:[#allocation25 + $0x20] sm:$0xff]   ;;  %v11511_v61 = vld [vmem:[#allocation25 + $0x28] sm:$0xff]  }
0x104b   :  { %9424 = vmatpush1.bf16.msra.mxu0 %v11422_v15  ;;  %9465 = vmatpush1.bf16.msra.mxu1 %v11425_v32  ;;  %v11512_v15 = vld [vmem:[#allocation25 + $0x30] sm:$0xff]   ;;  %v11513_v32 = vld [vmem:[#allocation25 + $0x38] sm:$0xff]  }
0x104c   :  { %9425 = vmatprep.subr.bf16.mxu0 %v11430_v19  ;;  %9466 = vmatprep.subr.bf16.mxu1 %v11433_v59  ;;  %v11514_v19 = vld [vmem:[#allocation26] sm:$0xff]   ;;  %v11515_v59 = vld [vmem:[#allocation26 + $0x8] sm:$0xff]  }
0x104f   :  { %9426 = vmatpush1.bf16.msra.mxu0 %v11428_v54  ;;  %9467 = vmatpush1.bf16.msra.mxu1 %v11431_v60  ;;  %v11516_v54 = vld [vmem:[#allocation26 + $0x10] sm:$0xff]   ;;  %v11517_v60 = vld [vmem:[#allocation26 + $0x18] sm:$0xff]  }
0x1050   :  { %9427 = vmatprep.subr.bf16.mxu0 %v11436_v13  ;;  %9468 = vmatprep.subr.bf16.mxu1 %v11439_v37  ;;  %v11518_v13 = vld [vmem:[#allocation26 + $0x20] sm:$0xff]   ;;  %v11519_v37 = vld [vmem:[#allocation26 + $0x28] sm:$0xff]  }
0x1053   :  { %9428 = vmatpush1.bf16.msra.mxu0 %v11434_v46  ;;  %9469 = vmatpush1.bf16.msra.mxu1 %v11437_v26  ;;  %v11520_v46 = vld [vmem:[#allocation26 + $0x30] sm:$0xff]   ;;  %v11521_v26 = vld [vmem:[#allocation26 + $0x38] sm:$0xff]  }
0x1054   :  { %9429 = vmatprep.subr.bf16.mxu0 %v11442_v12  ;;  %9470 = vmatprep.subr.bf16.mxu1 %v11445_v6 }
0x1057   :  { %9430 = vmatpush1.bf16.msra.mxu0 %v11440_v33  ;;  %9471 = vmatpush1.bf16.msra.mxu1 %v11443_v23  ;;  %v14640_v33 = vld [vmem:[#allocation55_spill] sm:$0xff] }
0x1058   :  { %9431 = vmatprep.subr.bf16.mxu0 %v11448_v14  ;;  %9472 = vmatprep.subr.bf16.mxu1 %v11451_v22  ;;  %v14641_v14 = vld [vmem:[#allocation72_spill] sm:$0xff] }
0x105b   :  { %9432 = vmatpush1.bf16.msra.mxu0 %v11446_v38  ;;  %9473 = vmatpush1.bf16.msra.mxu1 %v11449_v25 }
0x105c   :  { %9433 = vmatprep.subr.bf16.mxu0 %v11454_v30  ;;  %9474 = vmatprep.subr.bf16.mxu1 %v11457_v9  ;;  %v14642_v30 = vld [vmem:[#allocation74_spill] sm:$0xff] }
0x105f   :  { %9434 = vmatpush1.bf16.msra.mxu0 %v11452_v58  ;;  %9475 = vmatpush1.bf16.msra.mxu1 %v11455_v44  ;;  %v14643_v58 = vld [vmem:[#allocation73_spill] sm:$0xff] }
0x1060   :  { %9435 = vmatprep.subr.bf16.mxu0 %v11460_v3  ;;  %9476 = vmatprep.subr.bf16.mxu1 %v11463_v8 }
0x1063   :  { %9436 = vmatpush1.bf16.msra.mxu0 %v11458_v52  ;;  %9477 = vmatpush1.bf16.msra.mxu1 %v11461_v29 }
0x1064   :  { %9437 = vmatprep.subr.bf16.mxu0 %v11466_v43  ;;  %9478 = vmatprep.subr.bf16.mxu1 %v11469_v5 }
0x1067   :  { %9438 = vmatpush1.bf16.msra.mxu0 %v11464_v47  ;;  %9479 = vmatpush1.bf16.msra.mxu1 %v11467_v63 }
0x1068   :  { %9439 = vmatprep.subr.bf16.mxu0 %v11472_v39  ;;  %9480 = vmatprep.subr.bf16.mxu1 %v11475_v48 }
0x106b   :  { %9440 = vmatpush1.bf16.msra.mxu0 %v11470_v1  ;;  %9481 = vmatpush1.bf16.msra.mxu1 %v11473_v20 }
0x106c   :  { %9441 = vmatprep.subr.bf16.mxu0 %v11478_v11  ;;  %9482 = vmatprep.subr.bf16.mxu1 %v11481_v4 }
0x106f   :  { %9442 = vmatpush1.bf16.msra.mxu0 %v11476_v41  ;;  %9483 = vmatpush1.bf16.msra.mxu1 %v11479_v16 }
0x1070   :  { %9443 = vmatprep.subr.bf16.mxu0 %v11484_v51  ;;  %9484 = vmatprep.subr.bf16.mxu1 %v11487_v36 }
0x1073   :  { %9444 = vmatpush1.bf16.msra.mxu0 %v11482_v57  ;;  %9485 = vmatpush1.bf16.msra.mxu1 %v11485_v31 }
0x1074   :  { %9445 = vmatprep.subr.bf16.mxu0 %v11490_v17  ;;  %9486 = vmatprep.subr.bf16.mxu1 %v11493_v18 }
0x1077   :  { %9446 = vmatpush1.bf16.msra.mxu0 %v11488_v35  ;;  %9487 = vmatpush1.bf16.msra.mxu1 %v11491_v0  ;;  %v9077_v0 = vld [vmem:[#allocation23] sm:$0xf] }
0x1078   :  { %9447 = vmatprep.subr.bf16.mxu0 %v11496_v34  ;;  %9488 = vmatprep.subr.bf16.mxu1 %v11499_v53  ;;  %v14644_v34 = vld [vmem:[#allocation38_spill] sm:$0xff] }
0x1079   :  { %v9082_v53 = vrot.slane %v9077_v0, %v14644_v34 }
0x107b   :  { %9448 = vmatpush1.bf16.msra.mxu0 %v11494_v50  ;;  %9489 = vmatpush1.bf16.msra.mxu1 %v11497_v45  ;;  %v14645_v50 = vld [vmem:[#allocation41_spill] sm:$0xff] }
0x107c   :  { %9449 = vmatprep.subr.bf16.mxu0 %v11502_v40  ;;  %9490 = vmatprep.subr.bf16.mxu1 %v11505_v21  ;;  %v9086_v45 = vrot.slane %v9077_v0, %v14645_v50 }
0x107f   :  { %9450 = vmatpush1.bf16.msra.mxu0 %v11500_v56  ;;  %9491 = vmatpush1.bf16.msra.mxu1 %v11503_v10  ;;  %v14646_v10 = vld [vmem:[#allocation39_spill] sm:$0xff] }
0x1080   :  { %10786 = vmatprep.subr.bf16.mxu1 %v12147_v7  ;;  %10766 = vmatprep.subr.bf16.mxu0 %v12147_v7  ;;  %v9090_v49 = vrot.slane %v9077_v0, %v14646_v10 }
0x1082   :  { %9452 = vmatmul.mubr.bf16.vlgmr.msra.gmra.mrb[144].mxu0 %v9011_v24  ;;  %9493 = vmatmul.mubr.bf16.vlgmr.msra.gmra.mrb[144].mxu1 %v9011_v24 }
0x1083   :  { %10787 = vmatpush3.bf16.msra.mxu1 %v11506_v42  ;;  %10802 = vmatprep.mubr.msk.bf16.mxu1 %vm12148_vm0, %v12147_v7 }
0x1084   :  { %10788 = vmatprep.subr.bf16.mxu1 %v12147_v7  ;;  %10782 = vmatprep.mubr.msk.bf16.mxu0 %vm12148_vm0, %v12147_v7 }
0x1085   :  { %10767 = vmatpush3.bf16.msra.mxu0 %v11514_v19 }
0x1086   :  { %10768 = vmatprep.subr.bf16.mxu0 %v12147_v7 }
0x1087   :  { %10789 = vmatpush3.bf16.msra.mxu1 %v11507_v62 }
0x1088   :  { %10790 = vmatprep.subr.bf16.mxu1 %v12147_v7 }
0x1089   :  { %10769 = vmatpush3.bf16.msra.mxu0 %v11515_v59 }
0x108a   :  { %10770 = vmatprep.subr.bf16.mxu0 %v12147_v7 }
0x108b   :  { %10791 = vmatpush3.bf16.msra.mxu1 %v11508_v27 }
0x108c   :  { %10792 = vmatprep.subr.bf16.mxu1 %v12147_v7 }
0x108d   :  { %10771 = vmatpush3.bf16.msra.mxu0 %v11516_v54 }
0x108e   :  { %10772 = vmatprep.subr.bf16.mxu0 %v12147_v7 }
0x108f   :  { %10793 = vmatpush3.bf16.msra.mxu1 %v11509_v28 }
0x1090   :  { %10794 = vmatprep.subr.bf16.mxu1 %v12147_v7 }
0x1091   :  { %10773 = vmatpush3.bf16.msra.mxu0 %v11517_v60 }
0x1092   :  { %10774 = vmatprep.subr.bf16.mxu0 %v12147_v7 }
0x1093   :  { %10795 = vmatpush3.bf16.msra.mxu1 %v11510_v55 }
0x1094   :  { %10796 = vmatprep.subr.bf16.mxu1 %v12147_v7 }
0x1095   :  { %10775 = vmatpush3.bf16.msra.mxu0 %v11518_v13 }
0x1096   :  { %10776 = vmatprep.subr.bf16.mxu0 %v12147_v7 }
0x1097   :  { %10797 = vmatpush3.bf16.msra.mxu1 %v11511_v61 }
0x1098   :  { %10798 = vmatprep.subr.bf16.mxu1 %v12147_v7 }
0x1099   :  { %10777 = vmatpush3.bf16.msra.mxu0 %v11519_v37 }
0x109a   :  { %10778 = vmatprep.subr.bf16.mxu0 %v12147_v7 }
0x109b   :  { %10799 = vmatpush3.bf16.msra.mxu1 %v11512_v15 }
0x109c   :  { %10800 = vmatprep.subr.bf16.mxu1 %v12147_v7 }
0x109d   :  { %10779 = vmatpush3.bf16.msra.mxu0 %v11520_v46 }
0x109e   :  { %10780 = vmatprep.subr.bf16.mxu0 %v12147_v7 }
0x109f   :  { %10801 = vmatpush3.bf16.msra.mxu1 %v11513_v32  ;;  %v14647_v32 = vld [vmem:[#allocation40_spill] sm:$0xff] }
0x10a0   :  { %v9094_v19 = vrot.slane %v9077_v0, %v14647_v32 }
0x10a1   :  { %10781 = vmatpush3.bf16.msra.mxu0 %v11521_v26 }
0x1115   :  { %v8936_v12 = vpop.f32.mrb[140].mxu0  ;;  %v8977_v6 = vpop.f32.mrb[140].mxu1 }
0x1116   :  { %v8984_v23 = vadd.f32 %v8936_v12, %v14640_v33  ;;  %v8986_v22 = vadd.f32 %v8977_v6, %v14641_v14  ;;  %v8938_v38 = vpop.f32.mrb[141].mxu0  ;;  %v8979_v25 = vpop.f32.mrb[141].mxu1 }
0x1117   :  { %v8985_v9 = vadd.f32 %v8938_v38, %v14642_v30  ;;  %v8987_v44 = vadd.f32 %v8979_v25, %v14643_v58  ;;  %v8940_v3 = vpop.f32.mrb[142].mxu0  ;;  %v8981_v8 = vpop.f32.mrb[142].mxu1 }
0x1118   :  { %v8989_v52 = vmul.f32 0.5, %v8984_v23  ;;  %v8941_v29 = vpop.f32.mrb[143].mxu0  ;;  %v8982_v43 = vpop.f32.mrb[143].mxu1 }
0x1119   :  { %v8993_v5 = vmul.f32 0.5, %v8985_v9  ;;  %v8998_v47 = vmul.f32 0.5, %v8987_v44  ;;  %v10747_v43 = vld [vmem:[#allocation28] ss:$0 sm:$0xff] }
0x111a   :  { %11752 = vtanh.f32 %v8989_v52 }
0x111b   :  { %11754 = vtanh.f32 %v8993_v5 }
0x111c   :  { %11756 = vtanh.f32 %v8986_v22 }
0x111d   :  { %11758 = vtanh.f32 %v8998_v47 }
0x1124   :  { %v11753_v63 = vpop.eup %11752 }
0x1125   :  { %v11755_v39 = vpop.eup %11754  ;;  %v8991_v48 = vmul.f32 0.5, %v11753_v63 }
0x1126   :  { %v8995_v1 = vmul.f32 0.5, %v11755_v39  ;;  %v11757_v11 = vpop.eup %11756 }
0x1127   :  { %v8992_v20 = vadd.f32 0.5, %v8991_v48  ;;  %v11759_v36 = vpop.eup %11758 }
0x1128   :  { %v8996_v4 = vadd.f32 0.5, %v8995_v1  ;;  %v9000_v57 = vmul.f32 0.5, %v11759_v36 }
0x1129   :  { %v9003_v41 = vmul.f32 %v11757_v11, %v8992_v20 }
0x112a   :  { %v9002_v16 = vmul.f32 %v8996_v4, %v14324_v2  ;;  %v9001_v31 = vadd.f32 0.5, %v9000_v57 }
0x112c   :  { %v9004_v51 = vadd.f32 %v9003_v41, %v9002_v16 }
0x112e   :  { %11760 = vtanh.f32 %v9004_v51 }
0x1138   :  { %v11761_v17 = vpop.eup %11760 }
0x1139   :  { %v9006_v18 = vmul.f32 %v11761_v17, %v9001_v31 }
0x113b   :  { %v9520_v35 = vpack.c.bf16 %v9006_v18, %v9006_v18 }
0x113d   :  { %10803 = vmatmul.mubr.bf16.vlgmr.msra.gmra.mrb[148].mxu1 %v9520_v35 }
0x1155   :  { %v9453_v40 = vpop.f32.mrb[144].mxu0  ;;  %v9494_v21 = vpop.f32.mrb[144].mxu1 }
0x1156   :  { %v9454_v56 = vadd.f32 %v9453_v40, %v9082_v53  ;;  %v9455_v2 = vpop.f32.mrb[145].mxu0  ;;  %v9496_v24 = vpop.f32.mrb[145].mxu1  ;;  %v9495_v15 = vadd.f32 %v9494_v21, %v9090_v49 }
0x1157   :  { %v9456_v42 = vadd.f32 %v9455_v2, %v9086_v45  ;;  %v9457_v7 = vpop.f32.mrb[146].mxu0  ;;  %v9498_v62 = vpop.f32.mrb[146].mxu1  ;;  %v9497_v59 = vadd.f32 %v9496_v24, %v9094_v19 }
0x1158   :  { %v9501_v27 = vmul.f32 0.5, %v9454_v56  ;;  %v9458_v28 = vpop.f32.mrb[147].mxu0  ;;  %v9499_v55 = vpop.f32.mrb[147].mxu1 }
0x1159   :  { %v9505_v61 = vmul.f32 0.5, %v9456_v42  ;;  %v9510_v54 = vmul.f32 0.5, %v9497_v59 }
0x115a   :  { %11762 = vtanh.f32 %v9501_v27 }
0x115b   :  { %11764 = vtanh.f32 %v9505_v61 }
0x115c   :  { %11766 = vtanh.f32 %v9495_v15 }
0x115d   :  { %11768 = vtanh.f32 %v9510_v54 }
0x1164   :  { %v11763_v60 = vpop.eup %11762 }
0x1165   :  { %v11765_v13 = vpop.eup %11764  ;;  %v9503_v37 = vmul.f32 0.5, %v11763_v60 }
0x1166   :  { %v9507_v46 = vmul.f32 0.5, %v11765_v13  ;;  %v11767_v12 = vpop.eup %11766 }
0x1167   :  { %v9504_v26 = vadd.f32 0.5, %v9503_v37  ;;  %v11769_v22 = vpop.eup %11768 }
0x1168   :  { %v9508_v6 = vadd.f32 0.5, %v9507_v46  ;;  %v9512_v38 = vmul.f32 0.5, %v11769_v22 }
0x1169   :  { %v9515_v33 = vmul.f32 %v11767_v12, %v9504_v26 }
0x116a   :  { %v9514_v23 = vmul.f32 0.0, %v9508_v6  ;;  %v9513_v25 = vadd.f32 0.5, %v9512_v38 }
0x116c   :  { %v9516_v14 = vadd.f32 %v9515_v33, %v9514_v23 }
0x116e   :  { %11770 = vtanh.f32 %v9516_v14 }
0x1178   :  { %v11771_v30 = vpop.eup %11770 }
0x1179   :  { %v9518_v9 = vmul.f32 %v11771_v30, %v9513_v25 }
0x117b   :  { %v9537_v58 = vpack.c.bf16 %v9518_v9, %v9518_v9 }
0x117d   :  { %10783 = vmatmul.mubr.bf16.vlgmr.msra.gmra.mrb[148].mxu0 %v9537_v58 }
0x1210   :  { %v9724_v44 = vpop.f32.mrb[148].mxu1 }
0x1211   :  { %v10804_v3 = vpop.f32.mrb[149].mxu1 }
0x1212   :  { %v9727_v8 = vpop.f32.mrb[150].mxu1 }
0x1213   :  { %v10805_v52 = vpop.f32.mrb[151].mxu1 }
0x1250   :  { %v9636_v29 = vpop.f32.mrb[148].mxu0 }
0x1251   :  { %v9725_v5 = vadd.f32 %v9724_v44, %v9636_v29  ;;  %v10784_v47 = vpop.f32.mrb[149].mxu0 }
0x1252   :  { %v9639_v63 = vpop.f32.mrb[150].mxu0 }
0x1253   :  { %v9737_v39 = vadd.f32 %v10747_v43, %v9725_v5  ;;  %v10785_v48 = vpop.f32.mrb[151].mxu0 }
0x1255   :  { %9738 = vst [vmem:[#allocation29] sm:$0xff] %v9737_v39 }
0x1256   :  { %12099 = shalt.err (!%p12096_p10)
}
0x1257   :  { %s12100_s9 = scalar_lea.hbm %s14365_s13, 128 }
0x1258   :  { %p12101_p11 = scmp.ne.s32.totalorder %s14365_s13, %s12100_s9  ;;  %p12104_p12 = scmp.lt.u32.totalorder %s12100_s9, %s14365_s13 }
0x125a   :  { %p12106_p13 = pnand %p12104_p12, %p12101_p11 }
0x125c   :  { %12109 = shalt.err (!%p12106_p13)
}
0x125d   :  { %9748 = dma.vmem_to_hbm [thread:$0]  %s9746_s23, 128, %s14365_s13, [#allocation10]  }
0x125e   :  { %12124 = dma.done.wait [#allocation10], 128  }
0x125f   :  { %12125 = vsyncadd [#allocation10], 4294967168 }
0x1260   :  { %9752 = vsyncpa [#allocation9], 1 }
0x1261   :  { %9753 = vsyncpa [#allocation12], 1 }
0x1262   :  { %9754 = vsyncpa [#allocation15], 1 }
0x1263   :  { %9755 = vsyncpa [#allocation18], 1 }
0x1264   :  { %9756 = vsyncpa [#allocation21], 1 }
0x1265   :  { %9757 = vsyncpa [#allocation24], 1 }
0x1266   :  { %9758 = vsyncpa [#allocation27], 1 }
0x1267   :  { %9759 = vsyncpa [#allocation10], 1 }

</bundles_post_ra>
